<compile_context>
chip_gen: v5e
topology: v5e:2x2
jax: 0.10.0
libtpu: 0.0.40
codegen_flags: <defaults>
</compile_context>

<pallas_src>
import numpy as np
import jax
import jax.numpy as jnp
from jax.experimental import pallas as pl
from jax.experimental.pallas import tpu as pltpu

H = 7
W = 7
P = H * W              # 49 real spatial positions (fc1 = Linear(32*7*7, 128) forces 7x7)
P_PAD = 56             # padded positions: 56*16 = 896, 56*32 = 1792 (multiples of 128)
C1_OUT = 16
C2_OUT = 32
FC1_OUT = 128

_BATCH_TILE_CAP = 256  # rows per grid step; working set stays well under the 32 MiB
                       # scoped VMEM we request (safe on v7x's 64 MiB physical VMEM).


# ----------------------------- fused Pallas kernel ---------------------------

def _fused_policy_kernel(x_ref, m1_ref, b1_ref, m2_ref, b2_ref,
                         w1_ref, fb1_ref, w2_ref, fb2_ref, o_ref):
    cdt = m1_ref.dtype   # matmul compute dtype (f32 or bf16); epilogue stays f32

    x = x_ref[...].astype(cdt)                                            # (TB, 56*C)

    # conv1 (dense matmul in position-major layout) + bias + ReLU
    h1 = jnp.dot(x, m1_ref[...], preferred_element_type=jnp.float32)
    h1 = jnp.maximum(h1 + b1_ref[...], 0.0)                               # (TB, 896)

    # conv2 + bias + ReLU
    h2 = jnp.dot(h1.astype(cdt), m2_ref[...], preferred_element_type=jnp.float32)
    h2 = jnp.maximum(h2 + b2_ref[...], 0.0)                               # (TB, 1792)

    # fc1 (torch NCHW flatten baked into the weight row permutation) + ReLU
    h3 = jnp.dot(h2.astype(cdt), w1_ref[...], preferred_element_type=jnp.float32)
    h3 = jnp.maximum(h3 + fb1_ref[...], 0.0)                              # (TB, 128)

    # fc2 (output padded to 128 lanes) + softmax
    logits = jnp.dot(h3.astype(cdt), w2_ref[...], preferred_element_type=jnp.float32)
    logits = logits + fb2_ref[...]                                        # (TB, A_pad)

    m = jnp.max(logits, axis=-1, keepdims=True)
    e = jnp.exp(logits - m)                          # padded cols: exp(-1e30 - m) -> 0
    denom = jnp.sum(e, axis=-1, keepdims=True)
    # EUP approximate reciprocal (free slot) + two Newton refinements -> f32-exact,
    # then a lane-wide multiply instead of a lane-wide divide.
    inv = pl.reciprocal(denom, approx=True)
    inv = inv * (2.0 - denom * inv)
    inv = inv * (2.0 - denom * inv)
    o_ref[...] = e * inv


# --------------------------- one-time weight repack ---------------------------

def _neighbor_select():
    """S[p_in, p_out, dy, dx] = 1 iff input position p_in is the (dy,dx) tap of output
    p_out.  Positions are indexed p = h*7 + w and padded out to P_PAD with zeros."""
    S = np.zeros((P_PAD, P_PAD, 3, 3), np.float32)
    for hq in range(H):
        for wq in range(W):
            q = hq * W + wq
            for dy in range(3):
                for dx in range(3):
                    hp, wp = hq + dy - 1, wq + dx - 1
                    if 0 <= hp < H and 0 <= wp < W:
                        S[hp * W + wp, q, dy, dx] = 1.0
    return jnp.asarray(S)


def _conv3x3_same_as_dense(wconv):
    """(O, I, 3, 3) torch conv weight -> (P_PAD*I, P_PAD*O) dense matrix acting on
    position-major flattened rows (column index = p*I + i).  Padded positions get
    all-zero rows and columns."""
    O, I = wconv.shape[:2]
    S = _neighbor_select()
    M = jnp.einsum('pqyx,oiyx->piqo', S, wconv.astype(jnp.float32))
    return M.reshape(P_PAD * I, P_PAD * O)


def _tile_bias_padded(b, channels):
    """Channel bias -> row vector over padded position-major columns (zeros at pads)."""
    row = jnp.zeros((P_PAD, channels), jnp.float32).at[:P, :].set(
        jnp.broadcast_to(b.astype(jnp.float32), (P, channels)))
    return row.reshape(1, P_PAD * channels)


def prepare_params(params, compute_dtype=jnp.float32):
    """One-time repack: convs -> dense matmuls, fc1 row permutation (absorbs the torch
    channel-major flatten + position padding), fc2 padded to 128 lane-dense output
    columns, weight transposes, bias rows, optional bf16 cast."""
    w1, b1, w2, b2, fw1, fb1, fw2, fb2 = params
    A = fw2.shape[0]
    A_pad = max(128, ((A + 127) // 128) * 128)

    m1 = _conv3x3_same_as_dense(w1).astype(compute_dtype)              # (56*C, 896)
    m2 = _conv3x3_same_as_dense(w2).astype(compute_dtype)              # (896, 1792)

    # torch flatten index is c*49 + p; our activation rows use p*32 + c (p < 56).
    w1p = fw1.reshape(FC1_OUT, C2_OUT, P).transpose(2, 1, 0)           # (49, 32, 128)
    w1p = jnp.pad(w1p, ((0, P_PAD - P), (0, 0), (0, 0)))               # (56, 32, 128)
    w1p = w1p.reshape(P_PAD * C2_OUT, FC1_OUT).astype(compute_dtype)   # (1792, 128)

    # fc2: pad output columns to a lane-dense multiple of 128 (extra bias = -1e30).
    w2p = jnp.pad(fw2.T.astype(jnp.float32), ((0, 0), (0, A_pad - A))
                  ).astype(compute_dtype)                              # (128, A_pad)
    fb2r = jnp.full((1, A_pad), -1e30, jnp.float32).at[0, :A].set(
        fb2.astype(jnp.float32))                                       # (1, A_pad)

    b1r = _tile_bias_padded(b1, C1_OUT)                                # (1, 896)
    b2r = _tile_bias_padded(b2, C2_OUT)                                # (1, 1792)
    fb1r = fb1[None, :].astype(jnp.float32)                            # (1, 128)
    return (m1, b1r, m2, b2r, w1p, fb1r, w2p, fb2r)


# --------------------------------- forward ------------------------------------

@jax.jit
def conv_policy_net_forward(x, prep):
    """x: (B, C, 7, 7) float32 NCHW -> (B, action_dim) softmax probabilities."""
    m1, b1r, m2, b2r, w1p, fb1r, w2p, fb2r = prep
    B, C, hh, ww = x.shape
    if hh != H or ww != W:
        raise ValueError("ConvPolicyNet requires 7x7 spatial input (fc1 = 32*7*7).")
    A_pad = w2p.shape[1]
    K = P_PAD * C

    # Only the (tiny) network input gets relayouted; all activation layout work is
    # baked into the weights.  NCHW -> rows (b), columns (p*C + c), p padded to 56.
    xf = x.transpose(0, 2, 3, 1).reshape(B, P, C)
    xf = jnp.pad(xf, ((0, 0), (0, P_PAD - P), (0, 0))).reshape(B, K)

    if B >= _BATCH_TILE_CAP:
        tb = _BATCH_TILE_CAP
    else:
        tb = max(8, ((B + 7) // 8) * 8)
    bp = ((B + tb - 1) // tb) * tb
    if bp != B:
        xf = jnp.pad(xf, ((0, bp - B), (0, 0)))

    const2 = lambda i: (0, 0)
    out = pl.pallas_call(
        _fused_policy_kernel,
        out_shape=jax.ShapeDtypeStruct((bp, A_pad), jnp.float32),
        grid=(bp // tb,),
        in_specs=[
            pl.BlockSpec((tb, K), lambda i: (i, 0)),     # batch-tiled input rows
            pl.BlockSpec(m1.shape, const2),              # weights: constant index_map
            pl.BlockSpec(b1r.shape, const2),             #   -> stay resident in VMEM
            pl.BlockSpec(m2.shape, const2),
            pl.BlockSpec(b2r.shape, const2),
            pl.BlockSpec(w1p.shape, const2),
            pl.BlockSpec(fb1r.shape, const2),
            pl.BlockSpec(w2p.shape, const2),
            pl.BlockSpec(fb2r.shape, const2),
        ],
        out_specs=pl.BlockSpec((tb, A_pad), lambda i: (i, 0)),   # lane-dense store
        compiler_params=pltpu.CompilerParams(
            dimension_semantics=("parallel",),           # v7x: shard batch tiles on 2 TCs
            vmem_limit_bytes=32 * 1024 * 1024,           # ~20 MiB working set; safe on all
        ),
    )(xf, m1, b1r, m2, b2r, w1p, fb1r, w2p, fb2r)
    return out[:B]


# --------------------------- deterministic params ---------------------------

def _uniform(key, shape, fan_in):
    bound = float(fan_in) ** -0.5          # PyTorch default init bound
    return jax.random.uniform(key, shape, jnp.float32, -bound, bound)


def init_params(key, in_channels, action_dim):
    ks = jax.random.split(key, 8)
    fan1, fan2, fan3, fan4 = in_channels * 9, 16 * 9, 32 * 7 * 7, 128
    w1 = _uniform(ks[0], (16, in_channels, 3, 3), fan1)
    b1 = _uniform(ks[1], (16,), fan1)
    w2 = _uniform(ks[2], (32, 16, 3, 3), fan2)
    b2 = _uniform(ks[3], (32,), fan2)
    fw1 = _uniform(ks[4], (128, 32 * 7 * 7), fan3)
    fb1 = _uniform(ks[5], (128,), fan3)
    fw2 = _uniform(ks[6], (action_dim, 128), fan4)
    fb2 = _uniform(ks[7], (action_dim,), fan4)
    return (w1, b1, w2, b2, fw1, fb1, fw2, fb2)


# ------------------------------ pure-JAX reference ----------------------------

def reference_forward(x, params):
    w1, b1, w2, b2, fw1, fb1, fw2, fb2 = params
    dn = ('NCHW', 'OIHW', 'NCHW')
    y = jax.lax.conv_general_dilated(x, w1, (1, 1), 'SAME', dimension_numbers=dn)
    y = jnp.maximum(y + b1[None, :, None, None], 0.0)
    y = jax.lax.conv_general_dilated(y, w2, (1, 1), 'SAME', dimension_numbers=dn)
    y = jnp.maximum(y + b2[None, :, None, None], 0.0)
    flat = y.reshape(y.shape[0], -1)
    h = jnp.maximum(flat @ fw1.T + fb1, 0.0)
    logits = h @ fw2.T + fb2
    return jax.nn.softmax(logits, axis=1)


# ----------------------------------- main ------------------------------------

if __name__ == "__main__":
    B, C, A = 2, 4, 8               # H = W = 7 forced by fc1 = Linear(32*7*7, 128)
    key = jax.random.PRNGKey(0)
    k_param, k_x = jax.random.split(key)
    params = init_params(k_param, C, A)
    x = jax.random.normal(k_x, (B, C, H, W), jnp.float32)

    ref = reference_forward(x, params)

    # f32 matmul path (default): tight correctness check.
    prep_f32 = prepare_params(params, compute_dtype=jnp.float32)
    out_f32 = jax.block_until_ready(conv_policy_net_forward(x, prep_f32)[:, :A])
    assert out_f32.shape == (B, A)
    assert bool(jnp.allclose(jnp.sum(out_f32, axis=1), 1.0, atol=1e-4))
    assert bool(jnp.allclose(out_f32, ref, atol=1e-4, rtol=1e-4))

    # bf16 matmul path (v6e/v7x MXU fast path, f32 accumulation): looser check.
    prep_bf16 = prepare_params(params, compute_dtype=jnp.bfloat16)
    out_bf16 = jax.block_until_ready(conv_policy_net_forward(x, prep_bf16)[:, :A])
    assert out_bf16.shape == (B, A)
    assert bool(jnp.all(jnp.isfinite(out_bf16)))
    assert bool(jnp.allclose(out_bf16, ref, atol=2e-2))

    print("KERNEL_OK")
</pallas_src>

<mosaic_0001>
module attributes {stable_mosaic.version = 11 : i64} {
  func.func @_fused_policy_kernel(%arg0: i32, %arg1: memref<8x224xf32, #tpu.memory_space<vmem>>, %arg2: memref<224x896xf32, #tpu.memory_space<vmem>>, %arg3: memref<1x896xf32, #tpu.memory_space<vmem>>, %arg4: memref<896x1792xf32, #tpu.memory_space<vmem>>, %arg5: memref<1x1792xf32, #tpu.memory_space<vmem>>, %arg6: memref<1792x128xf32, #tpu.memory_space<vmem>>, %arg7: memref<1x128xf32, #tpu.memory_space<vmem>>, %arg8: memref<128x128xf32, #tpu.memory_space<vmem>>, %arg9: memref<1x128xf32, #tpu.memory_space<vmem>>, %arg10: memref<8x128xf32, #tpu.memory_space<vmem>>) attributes {dimension_semantics = [#tpu.dimension_semantics<parallel>], iteration_bounds = array<i64: 1>, scalar_prefetch = 0 : i64, scratch_operands = 0 : i64, tpu.core_type = #tpu.core_type<tc>, window_params = [{transform_indices = @transform_0, window_bounds = array<i64: 8, 224>}, {pipeline_mode = #tpu.pipeline_mode<synchronous>, transform_indices = @transform_1, window_bounds = array<i64: 224, 896>}, {pipeline_mode = #tpu.pipeline_mode<synchronous>, transform_indices = @transform_2, window_bounds = array<i64: 1, 896>}, {pipeline_mode = #tpu.pipeline_mode<synchronous>, transform_indices = @transform_3, window_bounds = array<i64: 896, 1792>}, {pipeline_mode = #tpu.pipeline_mode<synchronous>, transform_indices = @transform_4, window_bounds = array<i64: 1, 1792>}, {pipeline_mode = #tpu.pipeline_mode<synchronous>, transform_indices = @transform_5, window_bounds = array<i64: 1792, 128>}, {pipeline_mode = #tpu.pipeline_mode<synchronous>, transform_indices = @transform_6, window_bounds = array<i64: 1, 128>}, {pipeline_mode = #tpu.pipeline_mode<synchronous>, transform_indices = @transform_7, window_bounds = array<i64: 128, 128>}, {pipeline_mode = #tpu.pipeline_mode<synchronous>, transform_indices = @transform_8, window_bounds = array<i64: 1, 128>}, {transform_indices = @transform_9, window_bounds = array<i64: 8, 128>}]} {
    %c0 = arith.constant 0 : index
    %c0_0 = arith.constant 0 : index
    %0 = vector.load %arg1[%c0, %c0_0] : memref<8x224xf32, #tpu.memory_space<vmem>>, vector<8x224xf32>
    %c0_1 = arith.constant 0 : index
    %c0_2 = arith.constant 0 : index
    %1 = vector.load %arg2[%c0_1, %c0_2] : memref<224x896xf32, #tpu.memory_space<vmem>>, vector<224x896xf32>
    %cst = arith.constant dense<0.000000e+00> : vector<8x896xf32>
    %2 = tpu.matmul %0, %1, %cst {dimension_numbers = #tpu.dot_dimension_numbers<[1], [0], [0], [1], [0, 0, 1, 1], [], []>} : vector<8x224xf32>, vector<224x896xf32>, vector<8x896xf32> -> vector<8x896xf32>
    %c0_3 = arith.constant 0 : index
    %c0_4 = arith.constant 0 : index
    %3 = vector.load %arg3[%c0_3, %c0_4] : memref<1x896xf32, #tpu.memory_space<vmem>>, vector<1x896xf32>
    %4 = vector.broadcast %3 : vector<1x896xf32> to vector<8x896xf32>
    %5 = arith.addf %2, %4 : vector<8x896xf32>
    %cst_5 = arith.constant 0.000000e+00 : f32
    %6 = vector.broadcast %cst_5 : f32 to vector<8x896xf32>
    %7 = arith.maximumf %5, %6 : vector<8x896xf32>
    %c0_6 = arith.constant 0 : index
    %c0_7 = arith.constant 0 : index
    %8 = vector.load %arg4[%c0_6, %c0_7] : memref<896x1792xf32, #tpu.memory_space<vmem>>, vector<896x1792xf32>
    %cst_8 = arith.constant dense<0.000000e+00> : vector<8x1792xf32>
    %9 = tpu.matmul %7, %8, %cst_8 {dimension_numbers = #tpu.dot_dimension_numbers<[1], [0], [0], [1], [0, 0, 1, 1], [], []>} : vector<8x896xf32>, vector<896x1792xf32>, vector<8x1792xf32> -> vector<8x1792xf32>
    %c0_9 = arith.constant 0 : index
    %c0_10 = arith.constant 0 : index
    %10 = vector.load %arg5[%c0_9, %c0_10] : memref<1x1792xf32, #tpu.memory_space<vmem>>, vector<1x1792xf32>
    %11 = vector.broadcast %10 : vector<1x1792xf32> to vector<8x1792xf32>
    %12 = arith.addf %9, %11 : vector<8x1792xf32>
    %cst_11 = arith.constant 0.000000e+00 : f32
    %13 = vector.broadcast %cst_11 : f32 to vector<8x1792xf32>
    %14 = arith.maximumf %12, %13 : vector<8x1792xf32>
    %c0_12 = arith.constant 0 : index
    %c0_13 = arith.constant 0 : index
    %15 = vector.load %arg6[%c0_12, %c0_13] : memref<1792x128xf32, #tpu.memory_space<vmem>>, vector<1792x128xf32>
    %cst_14 = arith.constant dense<0.000000e+00> : vector<8x128xf32>
    %16 = tpu.matmul %14, %15, %cst_14 {dimension_numbers = #tpu.dot_dimension_numbers<[1], [0], [0], [1], [0, 0, 1, 1], [], []>} : vector<8x1792xf32>, vector<1792x128xf32>, vector<8x128xf32> -> vector<8x128xf32>
    %c0_15 = arith.constant 0 : index
    %c0_16 = arith.constant 0 : index
    %17 = vector.load %arg7[%c0_15, %c0_16] : memref<1x128xf32, #tpu.memory_space<vmem>>, vector<1x128xf32>
    %18 = vector.broadcast %17 : vector<1x128xf32> to vector<8x128xf32>
    %19 = arith.addf %16, %18 : vector<8x128xf32>
    %cst_17 = arith.constant 0.000000e+00 : f32
    %20 = vector.broadcast %cst_17 : f32 to vector<8x128xf32>
    %21 = arith.maximumf %19, %20 : vector<8x128xf32>
    %c0_18 = arith.constant 0 : index
    %c0_19 = arith.constant 0 : index
    %22 = vector.load %arg8[%c0_18, %c0_19] : memref<128x128xf32, #tpu.memory_space<vmem>>, vector<128x128xf32>
    %cst_20 = arith.constant dense<0.000000e+00> : vector<8x128xf32>
    %23 = tpu.matmul %21, %22, %cst_20 {dimension_numbers = #tpu.dot_dimension_numbers<[1], [0], [0], [1], [0, 0, 1, 1], [], []>} : vector<8x128xf32>, vector<128x128xf32>, vector<8x128xf32> -> vector<8x128xf32>
    %c0_21 = arith.constant 0 : index
    %c0_22 = arith.constant 0 : index
    %24 = vector.load %arg9[%c0_21, %c0_22] : memref<1x128xf32, #tpu.memory_space<vmem>>, vector<1x128xf32>
    %25 = vector.broadcast %24 : vector<1x128xf32> to vector<8x128xf32>
    %26 = arith.addf %23, %25 : vector<8x128xf32>
    %cst_23 = arith.constant dense<0xFF800000> : vector<8xf32>
    %27 = vector.multi_reduction <maximumf>, %26, %cst_23 [1] : vector<8x128xf32> to vector<8xf32>
    %28 = vector.shape_cast %27 : vector<8xf32> to vector<8x1xf32>
    %29 = vector.broadcast %28 : vector<8x1xf32> to vector<8x128xf32>
    %30 = arith.subf %26, %29 : vector<8x128xf32>
    %31 = math.exp %30 : vector<8x128xf32>
    %cst_24 = arith.constant dense<0.000000e+00> : vector<8xf32>
    %32 = vector.multi_reduction <add>, %31, %cst_24 [1] : vector<8x128xf32> to vector<8xf32>
    %33 = vector.shape_cast %32 : vector<8xf32> to vector<8x1xf32>
    %34 = tpu.reciprocal %33 {approx = true} : vector<8x1xf32> -> vector<8x1xf32>
    %35 = arith.mulf %33, %34 : vector<8x1xf32>
    %cst_25 = arith.constant 2.000000e+00 : f32
    %36 = vector.broadcast %cst_25 : f32 to vector<8x1xf32>
    %37 = arith.subf %36, %35 : vector<8x1xf32>
    %38 = arith.mulf %34, %37 : vector<8x1xf32>
    %39 = arith.mulf %33, %38 : vector<8x1xf32>
    %cst_26 = arith.constant 2.000000e+00 : f32
    %40 = vector.broadcast %cst_26 : f32 to vector<8x1xf32>
    %41 = arith.subf %40, %39 : vector<8x1xf32>
    %42 = arith.mulf %38, %41 : vector<8x1xf32>
    %43 = vector.broadcast %42 : vector<8x1xf32> to vector<8x128xf32>
    %44 = arith.mulf %31, %43 : vector<8x128xf32>
    %c0_27 = arith.constant 0 : index
    %c0_28 = arith.constant 0 : index
    %45 = vector.load %arg10[%c0_27, %c0_28] : memref<8x128xf32, #tpu.memory_space<vmem>>, vector<8x128xf32>
    tpu.vector_store %arg10[%c0_27, %c0_28], %44 {strides = array<i32>} : memref<8x128xf32, #tpu.memory_space<vmem>>, vector<8x128xf32>,
    return
  }
  func.func @transform_0(%arg0: i32) -> (i32, i32) {
    %c0_i32 = arith.constant 0 : i32
    %c0_i32_0 = arith.constant 0 : i32
    return %arg0, %c0_i32 : i32, i32
  }
  func.func @transform_1(%arg0: i32) -> (i32, i32) {
    %c0_i32 = arith.constant 0 : i32
    %c0_i32_0 = arith.constant 0 : i32
    %c0_i32_1 = arith.constant 0 : i32
    return %c0_i32, %c0_i32_0 : i32, i32
  }
  func.func @transform_2(%arg0: i32) -> (i32, i32) {
    %c0_i32 = arith.constant 0 : i32
    %c0_i32_0 = arith.constant 0 : i32
    %c0_i32_1 = arith.constant 0 : i32
    return %c0_i32, %c0_i32_0 : i32, i32
  }
  func.func @transform_3(%arg0: i32) -> (i32, i32) {
    %c0_i32 = arith.constant 0 : i32
    %c0_i32_0 = arith.constant 0 : i32
    %c0_i32_1 = arith.constant 0 : i32
    return %c0_i32, %c0_i32_0 : i32, i32
  }
  func.func @transform_4(%arg0: i32) -> (i32, i32) {
    %c0_i32 = arith.constant 0 : i32
    %c0_i32_0 = arith.constant 0 : i32
    %c0_i32_1 = arith.constant 0 : i32
    return %c0_i32, %c0_i32_0 : i32, i32
  }
  func.func @transform_5(%arg0: i32) -> (i32, i32) {
    %c0_i32 = arith.constant 0 : i32
    %c0_i32_0 = arith.constant 0 : i32
    %c0_i32_1 = arith.constant 0 : i32
    return %c0_i32, %c0_i32_0 : i32, i32
  }
  func.func @transform_6(%arg0: i32) -> (i32, i32) {
    %c0_i32 = arith.constant 0 : i32
    %c0_i32_0 = arith.constant 0 : i32
    %c0_i32_1 = arith.constant 0 : i32
    return %c0_i32, %c0_i32_0 : i32, i32
  }
  func.func @transform_7(%arg0: i32) -> (i32, i32) {
    %c0_i32 = arith.constant 0 : i32
    %c0_i32_0 = arith.constant 0 : i32
    %c0_i32_1 = arith.constant 0 : i32
    return %c0_i32, %c0_i32_0 : i32, i32
  }
  func.func @transform_8(%arg0: i32) -> (i32, i32) {
    %c0_i32 = arith.constant 0 : i32
    %c0_i32_0 = arith.constant 0 : i32
    %c0_i32_1 = arith.constant 0 : i32
    return %c0_i32, %c0_i32_0 : i32, i32
  }
  func.func @transform_9(%arg0: i32) -> (i32, i32) {
    %c0_i32 = arith.constant 0 : i32
    %c0_i32_0 = arith.constant 0 : i32
    return %arg0, %c0_i32 : i32, i32
  }
}

</mosaic_0001>

<bundles_post_ra>
// kernel: conv_policy_net_forward.1
= control target key start
LH: loop header
LB: loop body
LE: loop exit
PB: predicated region body
PF: predicated region fallthrough
CT: control target
= control target key end

     0   :  { %14 = vsyncpa [#allocation3], 0  ;;  %s5487_s0 = inlined_call_operand.vmem [shape: f32[8,224], index: 0, kind: input, shape index: {}]   ;;  %s5488_s1 = inlined_call_operand.hbm [shape: f32[224,896], index: 1, kind: input, shape index: {}]   ;;  %s5489_s2 = inlined_call_operand.hbm [shape: f32[1,896], index: 2, kind: input, shape index: {}]   ;;  %s5490_s3 = inlined_call_operand.hbm [shape: f32[896,1792], index: 3, kind: input, shape index: {}]   ;;  %s5491_s4 = inlined_call_operand.hbm [shape: f32[1,1792], index: 4, kind: input, shape index: {}]   ;;  %s5492_s5 = inlined_call_operand.hbm [shape: f32[1792,128], index: 5, kind: input, shape index: {}]   ;;  %s5493_s6 = inlined_call_operand.hbm [shape: f32[1,128], index: 6, kind: input, shape index: {}]   ;;  %s5494_s7 = inlined_call_operand.hbm [shape: f32[128,128], index: 7, kind: input, shape index: {}]   ;;  %s5495_s8 = inlined_call_operand.hbm [shape: f32[1,128], index: 8, kind: input, shape index: {}]   ;;  %s5496_s9 = inlined_call_operand.vmem [shape: f32[8,128], index: 9, kind: output, shape index: {}]  }
   0x1   :  { %15 = vsyncpa [#allocation5], 0 }
   0x2   :  { %16 = vsyncpa [#allocation8], 0 }
   0x3   :  { %17 = vsyncpa [#allocation11], 0  ;;  %s39_s11 = sshll.u32 %s5489_s2, 4  ;;  %s40_s11 = int_to_ptr.hbm [resolvable:$true] %s39_s11 }
   0x4   :  { %18 = vsyncpa [#allocation14], 0  ;;  %s5032_s12 = smov [#allocation4]   ;;  %s63_s16 = sshll.u32 %s5491_s4, 4  ;;  %s64_s16 = int_to_ptr.hbm [resolvable:$true] %s63_s16 }
   0x5   :  { %s41_s13 = sshll.u32 %s5032_s12, 4  ;;  %s5033_s17 = smov [#allocation7]   ;;  %s42_s13 = int_to_ptr.vmem [resolvable:$true] %s41_s13 }
   0x6   :  { %44 = dma.hbm_to_vmem [thread:$0]  %s40_s11, 112, %s42_s13, [#allocation5]  }
   0x7   :  { %s65_s18 = sshll.u32 %s5033_s17, 4  ;;  %s87_s21 = sshll.u32 %s5493_s6, 4  ;;  %s66_s18 = int_to_ptr.vmem [resolvable:$true] %s65_s18  ;;  %s88_s21 = int_to_ptr.hbm [resolvable:$true] %s87_s21 }
   0x8   :  { %68 = dma.hbm_to_vmem [thread:$0]  %s64_s16, 224, %s66_s18, [#allocation8]  }
   0x9   :  { %s25_s23 = sshll.u32 %s5488_s1, 4  ;;  %s5034_s24 = smov [#allocation10]   ;;  %s26_s23 = int_to_ptr.hbm [resolvable:$true] %s25_s23 }
   0xa   :  { %s89_s25 = sshll.u32 %s5034_s24, 4  ;;  %s5035_s4 = smov [#allocation2]   ;;  %s90_s25 = int_to_ptr.vmem [resolvable:$true] %s89_s25 }
   0xb   :  { %92 = dma.hbm_to_vmem [thread:$0]  %s88_s21, 16, %s90_s25, [#allocation11]  }
   0xc   :  { %s27_s26 = sshll.u32 %s5035_s4, 4  ;;  %s5036_s27 = smov 896   ;;  %s28_s26 = int_to_ptr.vmem [resolvable:$true] %s27_s26 }
   0xd   :  { %s5037_s28 = smov 56   ;;  %s49_s30 = sshll.u32 %s5490_s3, 4  ;;  %s50_s30 = int_to_ptr.hbm [resolvable:$true] %s49_s30 }
   0xe   :  { %33 = dma.hbm_to_vmem [thread:$0]  %s26_s23, 25088, %s28_s26, [#allocation3], %s5036_s27, %s5036_s27, %s5037_s28  }
   0xf   :  { %s5038_s10 = smov [#allocation6]   ;;  %s73_s13 = sshll.u32 %s5492_s5, 4  ;;  %s74_s13 = int_to_ptr.hbm [resolvable:$true] %s73_s13 }
  0x10   :  { %s51_s11 = sshll.u32 %s5038_s10, 4  ;;  %s5039_s14 = smov 1792   ;;  %s52_s11 = int_to_ptr.vmem [resolvable:$true] %s51_s11 }
  0x11   :  { %s5040_s15 = smov 112   ;;  %s5041_s16 = smov [#allocation9]  }
  0x12   :  { %57 = dma.hbm_to_vmem [thread:$0]  %s50_s30, 200704, %s52_s11, [#allocation5], %s5039_s14, %s5039_s14, %s5040_s15  }
  0x13   :  { %s75_s17 = sshll.u32 %s5041_s16, 4  ;;  %s5042_s18 = smov 128   ;;  %s76_s17 = int_to_ptr.vmem [resolvable:$true] %s75_s17 }
  0x14   :  { %s5043_s19 = smov 8   ;;  %s97_s21 = sshll.u32 %s5494_s7, 4  ;;  %s98_s21 = int_to_ptr.hbm [resolvable:$true] %s97_s21 }
  0x15   :  { %81 = dma.hbm_to_vmem [thread:$0]  %s74_s13, 28672, %s76_s17, [#allocation8], %s5042_s18, %s5042_s18, %s5043_s19  }
  0x16   :  { %s5044_s2 = smov [#allocation12]   ;;  %s111_s24 = sshll.u32 %s5495_s8, 4  ;;  %s112_s24 = int_to_ptr.hbm [resolvable:$true] %s111_s24 }
  0x17   :  { %s99_s22 = sshll.u32 %s5044_s2, 4  ;;  %s5045_s25 = smov [#allocation13]   ;;  %s100_s22 = int_to_ptr.vmem [resolvable:$true] %s99_s22 }
  0x18   :  { %105 = dma.hbm_to_vmem [thread:$0]  %s98_s21, 2048, %s100_s22, [#allocation11], %s5042_s18, %s5042_s18, %s5043_s19  }
  0x19   :  { %s113_s4 = sshll.u32 %s5045_s25, 4  ;;  %s114_s4 = int_to_ptr.vmem [resolvable:$true] %s113_s4 }
  0x1a   :  { %116 = dma.hbm_to_vmem [thread:$0]  %s112_s24, 16, %s114_s4, [#allocation14]  }
  0x1b   :  { %5022 = dma.done.wait [#allocation3], 25088  }
  0x1c   :  { %5023 = vsyncadd [#allocation3], 4294942208 }
  0x1d   :  { %5024 = dma.done.wait [#allocation5], 200816  }
  0x1e   :  { %5025 = vsyncadd [#allocation5], 4294766480 }
  0x1f   :  { %5026 = dma.done.wait [#allocation8], 28896  }
  0x20   :  { %5027 = vsyncadd [#allocation8], 4294938400 }
  0x21   :  { %5028 = dma.done.wait [#allocation11], 2064  }
  0x22   :  { %5029 = vsyncadd [#allocation11], 4294965232 }
  0x23   :  { %5030 = dma.done.wait [#allocation14], 16  }
  0x24   :  { %5031 = vsyncadd [#allocation14], 4294967280  ;;  %v256_v0 = vld [vmem:[#allocation2 + $0x348] sm:$0xff]  ;;  %v257_v2 = vld [vmem:[#allocation2 + $0x350] sm:$0xff]  ;;  %vm363_vm0 = vcmask 785408  }
  0x25   :  { %v340_v1 = vld [vmem:[#allocation2 + $0x5e8] sm:$0xff]  ;;  %367 = vmatpush.msra.mxu0 %v256_v0  ;;  %v341_v3 = vld [vmem:[#allocation2 + $0x5f0] sm:$0xff]  ;;  %407 = vmatpush.msra.mxu2 %v257_v2  ;;  %v250_v6 = vld [vmem:[#allocation2 + $0x318] sm:$0xff] }
  0x26   :  { %391 = vmatpush.msra.mxu1 %v340_v1  ;;  %v249_v4 = vld [vmem:[#allocation2 + $0x310] sm:$0xff]  ;;  %431 = vmatpush.msra.mxu3 %v341_v3  ;;  %v334_v7 = vld [vmem:[#allocation2 + $0x5b8] sm:$0xff]  ;;  %v243_v10 = vld [vmem:[#allocation2 + $0x2e0] sm:$0xff] }
  0x27   :  { %v333_v5 = vld [vmem:[#allocation2 + $0x5b0] sm:$0xff]  ;;  %v242_v8 = vld [vmem:[#allocation2 + $0x2d8] sm:$0xff]  ;;  %368 = vmatpush.msra.mxu0 %v249_v4  ;;  %v327_v11 = vld [vmem:[#allocation2 + $0x580] sm:$0xff]  ;;  %408 = vmatpush.msra.mxu2 %v250_v6 }
  0x28   :  { %392 = vmatpush.msra.mxu1 %v333_v5  ;;  %v326_v9 = vld [vmem:[#allocation2 + $0x578] sm:$0xff]  ;;  %432 = vmatpush.msra.mxu3 %v334_v7  ;;  %v235_v12 = vld [vmem:[#allocation2 + $0x2a0] sm:$0xff]  ;;  %v236_v14 = vld [vmem:[#allocation2 + $0x2a8] sm:$0xff] }
  0x29   :  { %v319_v13 = vld [vmem:[#allocation2 + $0x540] sm:$0xff]  ;;  %369 = vmatpush.msra.mxu0 %v242_v8  ;;  %v320_v15 = vld [vmem:[#allocation2 + $0x548] sm:$0xff]  ;;  %409 = vmatpush.msra.mxu2 %v243_v10  ;;  %v229_v18 = vld [vmem:[#allocation2 + $0x270] sm:$0xff] }
  0x2a   :  { %393 = vmatpush.msra.mxu1 %v326_v9  ;;  %433 = vmatpush.msra.mxu3 %v327_v11  ;;  %v228_v16 = vld [vmem:[#allocation2 + $0x268] sm:$0xff]  ;;  %v313_v19 = vld [vmem:[#allocation2 + $0x510] sm:$0xff]  ;;  %v222_v22 = vld [vmem:[#allocation2 + $0x238] sm:$0xff] }
  0x2b   :  { %v312_v17 = vld [vmem:[#allocation2 + $0x508] sm:$0xff]  ;;  %370 = vmatpush.msra.mxu0 %v235_v12  ;;  %410 = vmatpush.msra.mxu2 %v236_v14  ;;  %v221_v20 = vld [vmem:[#allocation2 + $0x230] sm:$0xff]  ;;  %v306_v23 = vld [vmem:[#allocation2 + $0x4d8] sm:$0xff] }
  0x2c   :  { %394 = vmatpush.msra.mxu1 %v319_v13  ;;  %434 = vmatpush.msra.mxu3 %v320_v15  ;;  %v305_v21 = vld [vmem:[#allocation2 + $0x4d0] sm:$0xff]  ;;  %v214_v24 = vld [vmem:[#allocation2 + $0x1f8] sm:$0xff]  ;;  %v215_v26 = vld [vmem:[#allocation2 + $0x200] sm:$0xff] }
  0x2d   :  { %371 = vmatpush.msra.mxu0 %v228_v16  ;;  %411 = vmatpush.msra.mxu2 %v229_v18  ;;  %v298_v25 = vld [vmem:[#allocation2 + $0x498] sm:$0xff]  ;;  %v299_v27 = vld [vmem:[#allocation2 + $0x4a0] sm:$0xff]  ;;  %v208_v30 = vld [vmem:[#allocation2 + $0x1c8] sm:$0xff] }
  0x2e   :  { %395 = vmatpush.msra.mxu1 %v312_v17  ;;  %435 = vmatpush.msra.mxu3 %v313_v19  ;;  %v207_v28 = vld [vmem:[#allocation2 + $0x1c0] sm:$0xff]  ;;  %v292_v31 = vld [vmem:[#allocation2 + $0x468] sm:$0xff]  ;;  %v201_v34 = vld [vmem:[#allocation2 + $0x190] sm:$0xff] }
  0x2f   :  { %372 = vmatpush.msra.mxu0 %v221_v20  ;;  %412 = vmatpush.msra.mxu2 %v222_v22  ;;  %v291_v29 = vld [vmem:[#allocation2 + $0x460] sm:$0xff]  ;;  %v200_v32 = vld [vmem:[#allocation2 + $0x188] sm:$0xff]  ;;  %v285_v35 = vld [vmem:[#allocation2 + $0x430] sm:$0xff] }
  0x30   :  { %396 = vmatpush.msra.mxu1 %v305_v21  ;;  %436 = vmatpush.msra.mxu3 %v306_v23  ;;  %v284_v33 = vld [vmem:[#allocation2 + $0x428] sm:$0xff]  ;;  %v193_v36 = vld [vmem:[#allocation2 + $0x150] sm:$0xff]  ;;  %v194_v38 = vld [vmem:[#allocation2 + $0x158] sm:$0xff] }
  0x31   :  { %373 = vmatpush.msra.mxu0 %v214_v24  ;;  %413 = vmatpush.msra.mxu2 %v215_v26  ;;  %v277_v37 = vld [vmem:[#allocation2 + $0x3f0] sm:$0xff]  ;;  %v278_v39 = vld [vmem:[#allocation2 + $0x3f8] sm:$0xff]  ;;  %v187_v42 = vld [vmem:[#allocation2 + $0x120] sm:$0xff] }
  0x32   :  { %397 = vmatpush.msra.mxu1 %v298_v25  ;;  %437 = vmatpush.msra.mxu3 %v299_v27  ;;  %v186_v40 = vld [vmem:[#allocation2 + $0x118] sm:$0xff]  ;;  %v271_v43 = vld [vmem:[#allocation2 + $0x3c0] sm:$0xff]  ;;  %v180_v46 = vld [vmem:[#allocation2 + $0xe8] sm:$0xff] }
  0x33   :  { %374 = vmatpush.msra.mxu0 %v207_v28  ;;  %414 = vmatpush.msra.mxu2 %v208_v30  ;;  %v270_v41 = vld [vmem:[#allocation2 + $0x3b8] sm:$0xff]  ;;  %v179_v44 = vld [vmem:[#allocation2 + $0xe0] sm:$0xff]  ;;  %v264_v47 = vld [vmem:[#allocation2 + $0x388] sm:$0xff] }
  0x34   :  { %398 = vmatpush.msra.mxu1 %v291_v29  ;;  %438 = vmatpush.msra.mxu3 %v292_v31  ;;  %v263_v45 = vld [vmem:[#allocation2 + $0x380] sm:$0xff]  ;;  %v258_v48 = vld [vmem:[#allocation2 + $0x358] sm:$0xff]  ;;  %v172_v50 = vld [vmem:[#allocation2 + $0xa8] sm:$0xff] }
  0x35   :  { %375 = vmatpush.msra.mxu0 %v200_v32  ;;  %415 = vmatpush.msra.mxu2 %v201_v34  ;;  %v342_v49 = vld [vmem:[#allocation2 + $0x5f8] sm:$0xff]  ;;  %v173_v51 = vld [vmem:[#allocation2 + $0xb0] sm:$0xff]  ;;  %v251_v52 = vld [vmem:[#allocation2 + $0x320] sm:$0xff] }
  0x36   :  { %399 = vmatpush.msra.mxu1 %v284_v33  ;;  %439 = vmatpush.msra.mxu3 %v285_v35  ;;  %v335_v53 = vld [vmem:[#allocation2 + $0x5c0] sm:$0xff]  ;;  %v165_v54 = vld [vmem:[#allocation2 + $0x70] sm:$0xff]  ;;  %v166_v55 = vld [vmem:[#allocation2 + $0x78] sm:$0xff] }
  0x37   :  { %376 = vmatpush.msra.mxu0 %v193_v36  ;;  %416 = vmatpush.msra.mxu2 %v194_v38  ;;  %v244_v56 = vld [vmem:[#allocation2 + $0x2e8] sm:$0xff]  ;;  %v158_v58 = vld [vmem:[#allocation2 + $0x38] sm:$0xff]  ;;  %v159_v59 = vld [vmem:[#allocation2 + $0x40] sm:$0xff] }
  0x38   :  { %400 = vmatpush.msra.mxu1 %v277_v37  ;;  %440 = vmatpush.msra.mxu3 %v278_v39  ;;  %v328_v57 = vld [vmem:[#allocation2 + $0x588] sm:$0xff]  ;;  %v237_v60 = vld [vmem:[#allocation2 + $0x2b0] sm:$0xff]  ;;  %v151_v62 = vld [vmem:[#allocation2] sm:$0xff] }
  0x39   :  { %377 = vmatpush.msra.mxu0 %v186_v40  ;;  %417 = vmatpush.msra.mxu2 %v187_v42  ;;  %v321_v61 = vld [vmem:[#allocation2 + $0x550] sm:$0xff]  ;;  %v152_v63 = vld [vmem:[#allocation2 + $0x8] sm:$0xff]  ;;  %v230_v0 = vld [vmem:[#allocation2 + $0x278] sm:$0xff] }
  0x3a   :  { %401 = vmatpush.msra.mxu1 %v270_v41  ;;  %441 = vmatpush.msra.mxu3 %v271_v43  ;;  %v314_v1 = vld [vmem:[#allocation2 + $0x518] sm:$0xff]  ;;  %v259_v2 = vld [vmem:[#allocation2 + $0x360] sm:$0xff]  ;;  %v252_v6 = vld [vmem:[#allocation2 + $0x328] sm:$0xff] }
  0x3b   :  { %378 = vmatpush.msra.mxu0 %v179_v44  ;;  %418 = vmatpush.msra.mxu2 %v180_v46  ;;  %v343_v3 = vld [vmem:[#allocation2 + $0x600] sm:$0xff]  ;;  %v336_v7 = vld [vmem:[#allocation2 + $0x5c8] sm:$0xff]  ;;  %v245_v10 = vld [vmem:[#allocation2 + $0x2f0] sm:$0xff] }
  0x3c   :  { %402 = vmatpush.msra.mxu1 %v263_v45  ;;  %442 = vmatpush.msra.mxu3 %v264_v47  ;;  %v223_v4 = vld [vmem:[#allocation2 + $0x240] sm:$0xff]  ;;  %v216_v8 = vld [vmem:[#allocation2 + $0x208] sm:$0xff]  ;;  %v329_v11 = vld [vmem:[#allocation2 + $0x590] sm:$0xff] }
  0x3d   :  { %379 = vmatpush.msra.mxu0 %v172_v50  ;;  %419 = vmatpush.msra.mxu2 %v173_v51  ;;  %v307_v5 = vld [vmem:[#allocation2 + $0x4e0] sm:$0xff]  ;;  %v300_v9 = vld [vmem:[#allocation2 + $0x4a8] sm:$0xff]  ;;  %v209_v12 = vld [vmem:[#allocation2 + $0x1d0] sm:$0xff] }
  0x3e   :  { %447 = vmatpush.msrb.mxu1 %v258_v48  ;;  %471 = vmatpush.msrb.mxu3 %v342_v49  ;;  %v293_v13 = vld [vmem:[#allocation2 + $0x470] sm:$0xff]  ;;  %v238_v14 = vld [vmem:[#allocation2 + $0x2b8] sm:$0xff]  ;;  %v231_v18 = vld [vmem:[#allocation2 + $0x280] sm:$0xff] }
  0x3f   :  { %380 = vmatpush.msra.mxu0 %v165_v54  ;;  %420 = vmatpush.msra.mxu2 %v166_v55  ;;  %v322_v15 = vld [vmem:[#allocation2 + $0x558] sm:$0xff]  ;;  %v315_v19 = vld [vmem:[#allocation2 + $0x520] sm:$0xff]  ;;  %v224_v22 = vld [vmem:[#allocation2 + $0x248] sm:$0xff] }
  0x40   :  { %448 = vmatpush.msrb.mxu1 %v251_v52  ;;  %472 = vmatpush.msrb.mxu3 %v335_v53  ;;  %v202_v16 = vld [vmem:[#allocation2 + $0x198] sm:$0xff]  ;;  %v195_v20 = vld [vmem:[#allocation2 + $0x160] sm:$0xff]  ;;  %v308_v23 = vld [vmem:[#allocation2 + $0x4e8] sm:$0xff] }
  0x41   :  { %381 = vmatpush.msra.mxu0 %v158_v58  ;;  %421 = vmatpush.msra.mxu2 %v159_v59  ;;  %v286_v17 = vld [vmem:[#allocation2 + $0x438] sm:$0xff]  ;;  %v279_v21 = vld [vmem:[#allocation2 + $0x400] sm:$0xff]  ;;  %v188_v24 = vld [vmem:[#allocation2 + $0x128] sm:$0xff] }
  0x42   :  { %449 = vmatpush.msrb.mxu1 %v244_v56  ;;  %473 = vmatpush.msrb.mxu3 %v328_v57  ;;  %v272_v25 = vld [vmem:[#allocation2 + $0x3c8] sm:$0xff]  ;;  %v217_v26 = vld [vmem:[#allocation2 + $0x210] sm:$0xff]  ;;  %v210_v30 = vld [vmem:[#allocation2 + $0x1d8] sm:$0xff] }
  0x43   :  { %382 = vmatpush.msra.mxu0 %v151_v62  ;;  %422 = vmatpush.msra.mxu2 %v152_v63  ;;  %v301_v27 = vld [vmem:[#allocation2 + $0x4b0] sm:$0xff]  ;;  %v294_v31 = vld [vmem:[#allocation2 + $0x478] sm:$0xff]  ;;  %v5123_v32 = vld [vmem:[%s5487_s0 + $0x8] sm:$0xff] }
  0x44   :  { %450 = vmatpush.msrb.mxu1 %v237_v60  ;;  %474 = vmatpush.msrb.mxu3 %v321_v61  ;;  %v181_v28 = vld [vmem:[#allocation2 + $0xf0] sm:$0xff]  ;;  %v174_v33 = vld [vmem:[#allocation2 + $0xb8] sm:$0xff]  ;;  %v260_v34 = vld [vmem:[#allocation2 + $0x368] sm:$0xff] }
  0x45   :  { %487 = vmatpush.msrb.mxu0 %v259_v2  ;;  %511 = vmatpush.msrb.mxu2 %v343_v3  ;;  %v265_v29 = vld [vmem:[#allocation2 + $0x390] sm:$0xff]  ;;  %v203_v35 = vld [vmem:[#allocation2 + $0x1a0] sm:$0xff]  ;;  %v196_v39 = vld [vmem:[#allocation2 + $0x168] sm:$0xff] }
  0x46   :  { %451 = vmatpush.msrb.mxu1 %v230_v0  ;;  %475 = vmatpush.msrb.mxu3 %v314_v1  ;;  %v287_v36 = vld [vmem:[#allocation2 + $0x440] sm:$0xff]  ;;  %v253_v38 = vld [vmem:[#allocation2 + $0x330] sm:$0xff]  ;;  %v280_v40 = vld [vmem:[#allocation2 + $0x408] sm:$0xff] }
  0x47   :  { %488 = vmatpush.msrb.mxu0 %v252_v6  ;;  %512 = vmatpush.msrb.mxu2 %v336_v7  ;;  %v167_v37 = vld [vmem:[#allocation2 + $0x80] sm:$0xff]  ;;  %v160_v41 = vld [vmem:[#allocation2 + $0x48] sm:$0xff]  ;;  %v246_v43 = vld [vmem:[#allocation2 + $0x2f8] sm:$0xff] }
  0x48   :  { %452 = vmatpush.msrb.mxu1 %v223_v4  ;;  %476 = vmatpush.msrb.mxu3 %v307_v5  ;;  %v5130_v42 = vld [vmem:[%s5487_s0] sm:$0xff]  ;;  %v189_v44 = vld [vmem:[#allocation2 + $0x130] sm:$0xff]  ;;  %v182_v48 = vld [vmem:[#allocation2 + $0xf8] sm:$0xff] }
  0x49   :  { %489 = vmatpush.msrb.mxu0 %v245_v10  ;;  %513 = vmatpush.msrb.mxu2 %v329_v11  ;;  %v273_v45 = vld [vmem:[#allocation2 + $0x3d0] sm:$0xff]  ;;  %v239_v46 = vld [vmem:[#allocation2 + $0x2c0] sm:$0xff]  ;;  %v266_v49 = vld [vmem:[#allocation2 + $0x398] sm:$0xff] }
  0x4a   :  { %453 = vmatpush.msrb.mxu1 %v216_v8  ;;  %477 = vmatpush.msrb.mxu3 %v300_v9  ;;  %v153_v47 = vld [vmem:[#allocation2 + $0x10] sm:$0xff]  ;;  %v232_v50 = vld [vmem:[#allocation2 + $0x288] sm:$0xff]  ;;  %v175_v53 = vld [vmem:[#allocation2 + $0xc0] sm:$0xff] }
  0x4b   :  { %490 = vmatpush.msrb.mxu0 %v238_v14  ;;  %514 = vmatpush.msrb.mxu2 %v322_v15  ;;  %v344_v51 = vld [vmem:[#allocation2 + $0x608] sm:$0xff]  ;;  %v261_v52 = vld [vmem:[#allocation2 + $0x370] sm:$0xff]  ;;  %v254_v56 = vld [vmem:[#allocation2 + $0x338] sm:$0xff] }
  0x4c   :  { %454 = vmatpush.msrb.mxu1 %v209_v12  ;;  %478 = vmatpush.msrb.mxu3 %v293_v13  ;;  %v225_v54 = vld [vmem:[#allocation2 + $0x250] sm:$0xff]  ;;  %v168_v57 = vld [vmem:[#allocation2 + $0x88] sm:$0xff]  ;;  %v218_v58 = vld [vmem:[#allocation2 + $0x218] sm:$0xff] }
  0x4d   :  { %491 = vmatpush.msrb.mxu0 %v231_v18  ;;  %515 = vmatpush.msrb.mxu2 %v315_v19  ;;  %v337_v55 = vld [vmem:[#allocation2 + $0x5d0] sm:$0xff]  ;;  %v330_v59 = vld [vmem:[#allocation2 + $0x598] sm:$0xff]  ;;  %v247_v60 = vld [vmem:[#allocation2 + $0x300] sm:$0xff] }
  0x4e   :  { %455 = vmatpush.msrb.mxu1 %v202_v16  ;;  %479 = vmatpush.msrb.mxu3 %v286_v17  ;;  %v161_v61 = vld [vmem:[#allocation2 + $0x50] sm:$0xff]  ;;  %v211_v62 = vld [vmem:[#allocation2 + $0x1e0] sm:$0xff]  ;;  %v240_v0 = vld [vmem:[#allocation2 + $0x2c8] sm:$0xff] }
  0x4f   :  { %492 = vmatpush.msrb.mxu0 %v224_v22  ;;  %516 = vmatpush.msrb.mxu2 %v308_v23  ;;  %v323_v63 = vld [vmem:[#allocation2 + $0x560] sm:$0xff]  ;;  %v154_v1 = vld [vmem:[#allocation2 + $0x18] sm:$0xff]  ;;  %v204_v2 = vld [vmem:[#allocation2 + $0x1a8] sm:$0xff] }
  0x50   :  { %456 = vmatpush.msrb.mxu1 %v195_v20  ;;  %480 = vmatpush.msrb.mxu3 %v279_v21  ;;  %v316_v3 = vld [vmem:[#allocation2 + $0x528] sm:$0xff]  ;;  %v233_v4 = vld [vmem:[#allocation2 + $0x290] sm:$0xff]  ;;  %v226_v7 = vld [vmem:[#allocation2 + $0x258] sm:$0xff] }
  0x51   :  { %493 = vmatpush.msrb.mxu0 %v217_v26  ;;  %517 = vmatpush.msrb.mxu2 %v301_v27  ;;  %v197_v5 = vld [vmem:[#allocation2 + $0x170] sm:$0xff]  ;;  %v190_v8 = vld [vmem:[#allocation2 + $0x138] sm:$0xff]  ;;  %v219_v10 = vld [vmem:[#allocation2 + $0x220] sm:$0xff] }
  0x52   :  { %457 = vmatpush.msrb.mxu1 %v188_v24  ;;  %481 = vmatpush.msrb.mxu3 %v272_v25  ;;  %v309_v6 = vld [vmem:[#allocation2 + $0x4f0] sm:$0xff]  ;;  %v302_v9 = vld [vmem:[#allocation2 + $0x4b8] sm:$0xff]  ;;  %v183_v11 = vld [vmem:[#allocation2 + $0x100] sm:$0xff] }
  0x53   :  { %494 = vmatpush.msrb.mxu0 %v210_v30  ;;  %518 = vmatpush.msrb.mxu2 %v294_v31  ;;  %v295_v12 = vld [vmem:[#allocation2 + $0x480] sm:$0xff]  ;;  %v212_v13 = vld [vmem:[#allocation2 + $0x1e8] sm:$0xff]  ;;  %v205_v16 = vld [vmem:[#allocation2 + $0x1b0] sm:$0xff] }
  0x54   :  { %458 = vmatpush.msrb.mxu1 %v181_v28  ;;  %482 = vmatpush.msrb.mxu3 %v265_v29  ;;  %v176_v14 = vld [vmem:[#allocation2 + $0xc8] sm:$0xff]  ;;  %v169_v17 = vld [vmem:[#allocation2 + $0x90] sm:$0xff]  ;;  %v198_v19 = vld [vmem:[#allocation2 + $0x178] sm:$0xff] }
  0x55   :  { %4803 = vmatmul.msk.f32.vlgmr.msra.gmra.mxu3 %vm363_vm0, %v5123_v32  ;;  %495 = vmatpush.msrb.mxu0 %v203_v35  ;;  %v288_v15 = vld [vmem:[#allocation2 + $0x448] sm:$0xff]  ;;  %v281_v18 = vld [vmem:[#allocation2 + $0x410] sm:$0xff]  ;;  %v162_v20 = vld [vmem:[#allocation2 + $0x58] sm:$0xff] }
  0x56   :  { %459 = vmatpush.msrb.mxu1 %v174_v33  ;;  %527 = vmatpush.msra.mxu3 %v260_v34  ;;  %v274_v21 = vld [vmem:[#allocation2 + $0x3d8] sm:$0xff]  ;;  %v191_v22 = vld [vmem:[#allocation2 + $0x140] sm:$0xff]  ;;  %v184_v25 = vld [vmem:[#allocation2 + $0x108] sm:$0xff] }
  0x57   :  { %519 = vmatpush.msrb.mxu2 %v287_v36  ;;  %496 = vmatpush.msrb.mxu0 %v196_v39  ;;  %v155_v23 = vld [vmem:[#allocation2 + $0x20] sm:$0xff]  ;;  %v262_v26 = vld [vmem:[#allocation2 + $0x378] sm:$0xff]  ;;  %v177_v28 = vld [vmem:[#allocation2 + $0xd0] sm:$0xff] }
  0x58   :  { %460 = vmatpush.msrb.mxu1 %v167_v37  ;;  %528 = vmatpush.msra.mxu3 %v253_v38  ;;  %v267_v24 = vld [vmem:[#allocation2 + $0x3a0] sm:$0xff]  ;;  %v346_v27 = vld [vmem:[#allocation2 + $0x618] sm:$0xff]  ;;  %v248_v34 = vld [vmem:[#allocation2 + $0x308] sm:$0xff] }
  0x59   :  { %520 = vmatpush.msrb.mxu2 %v280_v40  ;;  %497 = vmatpush.msrb.mxu0 %v189_v44  ;;  %v255_v29 = vld [vmem:[#allocation2 + $0x340] sm:$0xff]  ;;  %v170_v31 = vld [vmem:[#allocation2 + $0x98] sm:$0xff]  ;;  %v332_v35 = vld [vmem:[#allocation2 + $0x5a8] sm:$0xff] }
  0x5a   :  { %461 = vmatpush.msrb.mxu1 %v160_v41  ;;  %423 = vmatmul.f32.vlgmr.msra.gmra.mxu2 %v5130_v42  ;;  %v339_v30 = vld [vmem:[#allocation2 + $0x5e0] sm:$0xff]  ;;  %v864_v33 = vld [vmem:[#allocation6 + $0x690] sm:$0xff]  ;;  %v850_v37 = vld [vmem:[#allocation6 + $0x620] sm:$0xff] }
  0x5b   :  { %529 = vmatpush.msra.mxu3 %v246_v43  ;;  %521 = vmatpush.msrb.mxu2 %v273_v45  ;;  %v163_v36 = vld [vmem:[#allocation2 + $0x60] sm:$0xff]  ;;  %v241_v38 = vld [vmem:[#allocation2 + $0x2d0] sm:$0xff]  ;;  %v156_v40 = vld [vmem:[#allocation2 + $0x28] sm:$0xff] }
  0x5c   :  { %383 = vmatmul.f32.vlgmr.msra.gmra.mxu0 %v5130_v42  ;;  %462 = vmatpush.msrb.mxu1 %v153_v47  ;;  %v325_v39 = vld [vmem:[#allocation2 + $0x570] sm:$0xff]  ;;  %v836_v41 = vld [vmem:[#allocation6 + $0x5b0] sm:$0xff]  ;;  %v227_v47 = vld [vmem:[#allocation2 + $0x260] sm:$0xff] }
  0x5d   :  { %530 = vmatpush.msra.mxu3 %v239_v46  ;;  %498 = vmatpush.msrb.mxu0 %v182_v48  ;;  %v345_v43 = vld [vmem:[#allocation2 + $0x610] sm:$0xff]  ;;  %v234_v44 = vld [vmem:[#allocation2 + $0x298] sm:$0xff]  ;;  %v311_v48 = vld [vmem:[#allocation2 + $0x500] sm:$0xff] }
  0x5e   :  { %522 = vmatpush.msrb.mxu2 %v266_v49  ;;  %4802 = vmatmul.msk.f32.vlgmr.msra.gmra.mxu1 %vm363_vm0, %v5123_v32  ;;  %v318_v45 = vld [vmem:[#allocation2 + $0x538] sm:$0xff]  ;;  %v822_v49 = vld [vmem:[#allocation6 + $0x540] sm:$0xff] }
  0x5f   :  { %531 = vmatpush.msra.mxu3 %v232_v50  ;;  %551 = vmatpush.msra.mxu1 %v344_v51  ;;  %v338_v46 = vld [vmem:[#allocation2 + $0x5d8] sm:$0xff]  ;;  %v331_v50 = vld [vmem:[#allocation2 + $0x5a0] sm:$0xff]  ;;  %v220_v51 = vld [vmem:[#allocation2 + $0x228] sm:$0xff] }
  0x60   :  { %567 = vmatpush.msra.mxu2 %v261_v52  ;;  %499 = vmatpush.msrb.mxu0 %v175_v53  ;;  %v304_v52 = vld [vmem:[#allocation2 + $0x4c8] sm:$0xff]  ;;  %v808_v53 = vld [vmem:[#allocation6 + $0x4d0] sm:$0xff] }
  0x61   :  { %532 = vmatpush.msra.mxu3 %v225_v54  ;;  %552 = vmatpush.msra.mxu1 %v337_v55  ;;  %v324_v54 = vld [vmem:[#allocation2 + $0x568] sm:$0xff]  ;;  %v213_v55 = vld [vmem:[#allocation2 + $0x1f0] sm:$0xff] }
  0x62   :  { %568 = vmatpush.msra.mxu2 %v254_v56  ;;  %500 = vmatpush.msrb.mxu0 %v168_v57  ;;  %v297_v56 = vld [vmem:[#allocation2 + $0x490] sm:$0xff]  ;;  %v794_v57 = vld [vmem:[#allocation6 + $0x460] sm:$0xff] }
  0x63   :  { %4804 = vmatmul.msk.f32.vlgmr.msrb.gmra.mxu3 %vm363_vm0, %v5123_v32  ;;  %4805 = vmatmul.msk.f32.vlgmr.msrb.gmra.mxu2 %vm363_vm0, %v5123_v32 }
  0x64   :  { %533 = vmatpush.msra.mxu3 %v218_v58  ;;  %553 = vmatpush.msra.mxu1 %v330_v59  ;;  %v317_v58 = vld [vmem:[#allocation2 + $0x530] sm:$0xff]  ;;  %v206_v59 = vld [vmem:[#allocation2 + $0x1b8] sm:$0xff] }
  0x65   :  { %569 = vmatpush.msra.mxu2 %v247_v60  ;;  %501 = vmatpush.msrb.mxu0 %v161_v61  ;;  %v290_v60 = vld [vmem:[#allocation2 + $0x458] sm:$0xff] }
  0x66   :  { %534 = vmatpush.msra.mxu3 %v211_v62  ;;  %554 = vmatpush.msra.mxu1 %v323_v63  ;;  %v780_v61 = vld [vmem:[#allocation6 + $0x3f0] sm:$0xff]  ;;  %v199_v63 = vld [vmem:[#allocation2 + $0x180] sm:$0xff] }
  0x67   :  { %570 = vmatpush.msra.mxu2 %v240_v0  ;;  %502 = vmatpush.msrb.mxu0 %v154_v1  ;;  %v310_v62 = vld [vmem:[#allocation2 + $0x4f8] sm:$0xff]  ;;  %v283_v0 = vld [vmem:[#allocation2 + $0x420] sm:$0xff]  ;;  %v766_v1 = vld [vmem:[#allocation6 + $0x380] sm:$0xff] }
  0x68   :  { %463 = vmatmul.f32.vlgmr.msrb.gmra.mxu1 %v5130_v42  ;;  %503 = vmatmul.f32.vlgmr.msrb.gmra.mxu0 %v5130_v42 }
  0x69   :  { %535 = vmatpush.msra.mxu3 %v204_v2  ;;  %555 = vmatpush.msra.mxu1 %v316_v3  ;;  %v303_v2 = vld [vmem:[#allocation2 + $0x4c0] sm:$0xff]  ;;  %v192_v3 = vld [vmem:[#allocation2 + $0x148] sm:$0xff] }
  0x6a   :  { %571 = vmatpush.msra.mxu2 %v233_v4  ;;  %2254 = vmatpush.msra.mxu0 %v864_v33  ;;  %v276_v4 = vld [vmem:[#allocation2 + $0x3e8] sm:$0xff] }
  0x6b   :  { %536 = vmatpush.msra.mxu3 %v197_v5  ;;  %556 = vmatpush.msra.mxu1 %v309_v6  ;;  %v752_v5 = vld [vmem:[#allocation6 + $0x310] sm:$0xff]  ;;  %v296_v6 = vld [vmem:[#allocation2 + $0x488] sm:$0xff] }
  0x6c   :  { %572 = vmatpush.msra.mxu2 %v226_v7  ;;  %2255 = vmatpush.msra.mxu0 %v850_v37  ;;  %v185_v7 = vld [vmem:[#allocation2 + $0x110] sm:$0xff]  ;;  %v654_v33 = vld [vmem:[#allocation6] sm:$0xff] }
  0x6d   :  { %537 = vmatpush.msra.mxu3 %v190_v8  ;;  %557 = vmatpush.msra.mxu1 %v302_v9  ;;  %v269_v8 = vld [vmem:[#allocation2 + $0x3b0] sm:$0xff]  ;;  %v738_v9 = vld [vmem:[#allocation6 + $0x2a0] sm:$0xff] }
  0x6e   :  { %573 = vmatpush.msra.mxu2 %v219_v10  ;;  %2256 = vmatpush.msra.mxu0 %v836_v41  ;;  %v289_v10 = vld [vmem:[#allocation2 + $0x450] sm:$0xff]  ;;  %v1046_v37 = vld [vmem:[#allocation6 + $0xc40] sm:$0xff]  ;;  %v1032_v41 = vld [vmem:[#allocation6 + $0xbd0] sm:$0xff] }
  0x6f   :  { %538 = vmatpush.msra.mxu3 %v183_v11  ;;  %558 = vmatpush.msra.mxu1 %v295_v12  ;;  %v178_v11 = vld [vmem:[#allocation2 + $0xd8] sm:$0xff] }
  0x70   :  { %574 = vmatpush.msra.mxu2 %v212_v13  ;;  %2257 = vmatpush.msra.mxu0 %v822_v49  ;;  %v724_v12 = vld [vmem:[#allocation6 + $0x230] sm:$0xff] }
  0x71   :  { %539 = vmatpush.msra.mxu3 %v176_v14  ;;  %559 = vmatpush.msra.mxu1 %v288_v15  ;;  %v282_v13 = vld [vmem:[#allocation2 + $0x418] sm:$0xff]  ;;  %v171_v14 = vld [vmem:[#allocation2 + $0xa0] sm:$0xff]  ;;  %v710_v15 = vld [vmem:[#allocation6 + $0x1c0] sm:$0xff] }
  0x72   :  { %575 = vmatpush.msra.mxu2 %v205_v16  ;;  %2258 = vmatpush.msra.mxu0 %v808_v53  ;;  %v1312_v16 = vld [vmem:[#allocation6 + $0x1490] sm:$0xff]  ;;  %v1690_v53 = vld [vmem:[#allocation6 + $0x2060] sm:$0xff] }
  0x73   :  { %540 = vmatpush.msra.mxu3 %v169_v17  ;;  %560 = vmatpush.msra.mxu1 %v281_v18  ;;  %v275_v17 = vld [vmem:[#allocation2 + $0x3e0] sm:$0xff]  ;;  %v164_v18 = vld [vmem:[#allocation2 + $0x68] sm:$0xff]  ;;  %v1704_v49 = vld [vmem:[#allocation6 + $0x20d0] sm:$0xff] }
  0x74   :  { %576 = vmatpush.msra.mxu2 %v198_v19  ;;  %2259 = vmatpush.msra.mxu0 %v794_v57  ;;  %v696_v19 = vld [vmem:[#allocation6 + $0x150] sm:$0xff] }
  0x75   :  { %541 = vmatpush.msra.mxu3 %v162_v20  ;;  %561 = vmatpush.msra.mxu1 %v274_v21  ;;  %v1298_v20 = vld [vmem:[#allocation6 + $0x1420] sm:$0xff]  ;;  %v1676_v57 = vld [vmem:[#allocation6 + $0x1ff0] sm:$0xff] }
  0x76   :  { %577 = vmatpush.msra.mxu2 %v191_v22  ;;  %2260 = vmatpush.msra.mxu0 %v780_v61  ;;  %v268_v21 = vld [vmem:[#allocation2 + $0x3a8] sm:$0xff]  ;;  %v157_v22 = vld [vmem:[#allocation2 + $0x30] sm:$0xff] }
  0x77   :  { %542 = vmatpush.msra.mxu3 %v155_v23  ;;  %562 = vmatpush.msra.mxu1 %v267_v24  ;;  %v1536_v23 = vld [vmem:[#allocation6 + $0x1b90] sm:$0xff]  ;;  %v682_v24 = vld [vmem:[#allocation6 + $0xe0] sm:$0xff] }
  0x78   :  { %578 = vmatpush.msra.mxu2 %v184_v25  ;;  %543 = vmatmul.f32.vlgmr.msra.gmra.mxu3 %v5130_v42  ;;  %v1088_v25 = vld [vmem:[#allocation6 + $0xd90] sm:$0xff]  ;;  %v1662_v61 = vld [vmem:[#allocation6 + $0x1f80] sm:$0xff] }
  0x79   :  { %607 = vmatpush.msrb.mxu1 %v262_v26  ;;  %631 = vmatpush.msrb.mxu3 %v346_v27  ;;  %v1284_v26 = vld [vmem:[#allocation6 + $0x13b0] sm:$0xff]  ;;  %v1522_v27 = vld [vmem:[#allocation6 + $0x1b20] sm:$0xff] }
  0x7a   :  { %579 = vmatpush.msra.mxu2 %v177_v28  ;;  %4806 = vmatmul.msk.f32.vlgmr.msra.gmra.mxu1 %vm363_vm0, %v5123_v32  ;;  %v668_v28 = vld [vmem:[#allocation6 + $0x70] sm:$0xff] }
  0x7b   :  { %608 = vmatpush.msrb.mxu1 %v255_v29  ;;  %632 = vmatpush.msrb.mxu3 %v339_v30  ;;  %v1074_v29 = vld [vmem:[#allocation6 + $0xd20] sm:$0xff] }
  0x7c   :  { %580 = vmatpush.msra.mxu2 %v170_v31  ;;  %2261 = vmatpush.msra.mxu0 %v766_v1  ;;  %v1270_v30 = vld [vmem:[#allocation6 + $0x1340] sm:$0xff]  ;;  %v1508_v31 = vld [vmem:[#allocation6 + $0x1ab0] sm:$0xff] }
  0x7d   :  { %609 = vmatpush.msrb.mxu1 %v248_v34  ;;  %633 = vmatpush.msrb.mxu3 %v332_v35  ;;  %v1760_v34 = vld [vmem:[#allocation6 + $0x2290] sm:$0xff] }
  0x7e   :  { %581 = vmatpush.msra.mxu2 %v163_v36  ;;  %2262 = vmatpush.msra.mxu0 %v752_v5  ;;  %v1060_v35 = vld [vmem:[#allocation6 + $0xcb0] sm:$0xff]  ;;  %v1494_v36 = vld [vmem:[#allocation6 + $0x1a40] sm:$0xff] }
  0x7f   :  { %610 = vmatpush.msrb.mxu1 %v241_v38  ;;  %634 = vmatpush.msrb.mxu3 %v325_v39  ;;  %v1480_v38 = vld [vmem:[#allocation6 + $0x19d0] sm:$0xff]  ;;  %v1242_v39 = vld [vmem:[#allocation6 + $0x1260] sm:$0xff] }
  0x80   :  { %582 = vmatpush.msra.mxu2 %v156_v40  ;;  %2263 = vmatpush.msra.mxu0 %v738_v9  ;;  %v1732_v40 = vld [vmem:[#allocation6 + $0x21b0] sm:$0xff]  ;;  %v1634_v5 = vld [vmem:[#allocation6 + $0x1ea0] sm:$0xff] }
  0x81   :  { %611 = vmatpush.msrb.mxu1 %v234_v44  ;;  %635 = vmatpush.msrb.mxu3 %v318_v45  ;;  %v1228_v44 = vld [vmem:[#allocation6 + $0x11f0] sm:$0xff]  ;;  %v1718_v45 = vld [vmem:[#allocation6 + $0x2140] sm:$0xff] }
  0x82   :  { %591 = vmatpush.msrb.mxu2 %v345_v43  ;;  %2264 = vmatpush.msra.mxu0 %v724_v12  ;;  %v1466_v43 = vld [vmem:[#allocation6 + $0x1960] sm:$0xff]  ;;  %v1648_v1 = vld [vmem:[#allocation6 + $0x1f10] sm:$0xff] }
  0x83   :  { %583 = vmatmul.f32.vlgmr.msra.gmra.mxu2 %v5130_v42  ;;  %612 = vmatpush.msrb.mxu1 %v227_v47  ;;  %v1452_v47 = vld [vmem:[#allocation6 + $0x18f0] sm:$0xff] }
  0x84   :  { %592 = vmatpush.msrb.mxu2 %v338_v46  ;;  %636 = vmatpush.msrb.mxu3 %v311_v48  ;;  %v1018_v46 = vld [vmem:[#allocation6 + $0xb60] sm:$0xff]  ;;  %v1620_v9 = vld [vmem:[#allocation6 + $0x1e30] sm:$0xff] }
  0x85   :  { %613 = vmatpush.msrb.mxu1 %v220_v51  ;;  %2265 = vmatpush.msra.mxu0 %v710_v15  ;;  %v1214_v48 = vld [vmem:[#allocation6 + $0x1180] sm:$0xff]  ;;  %v1116_v12 = vld [vmem:[#allocation6 + $0xe70] sm:$0xff] }
  0x86   :  { %593 = vmatpush.msrb.mxu2 %v331_v50  ;;  %637 = vmatpush.msrb.mxu3 %v304_v52  ;;  %v1004_v50 = vld [vmem:[#allocation6 + $0xaf0] sm:$0xff]  ;;  %v1438_v51 = vld [vmem:[#allocation6 + $0x1880] sm:$0xff] }
  0x87   :  { %614 = vmatpush.msrb.mxu1 %v213_v55  ;;  %2266 = vmatpush.msra.mxu0 %v696_v19  ;;  %v1200_v52 = vld [vmem:[#allocation6 + $0x1110] sm:$0xff]  ;;  %v1326_v15 = vld [vmem:[#allocation6 + $0x1500] sm:$0xff] }
  0x88   :  { %594 = vmatpush.msrb.mxu2 %v324_v54  ;;  %638 = vmatpush.msrb.mxu3 %v297_v56  ;;  %v990_v54 = vld [vmem:[#allocation6 + $0xa80] sm:$0xff]  ;;  %v1424_v55 = vld [vmem:[#allocation6 + $0x1810] sm:$0xff] }
  0x89   :  { %615 = vmatpush.msrb.mxu1 %v206_v59  ;;  %2267 = vmatpush.msra.mxu0 %v682_v24  ;;  %v1186_v56 = vld [vmem:[#allocation6 + $0x10a0] sm:$0xff]  ;;  %v809_v24 = vld [vmem:[#allocation6 + $0x4d8] sm:$0xff] }
  0x8a   :  { %595 = vmatpush.msrb.mxu2 %v317_v58  ;;  %639 = vmatpush.msrb.mxu3 %v290_v60  ;;  %v976_v58 = vld [vmem:[#allocation6 + $0xa10] sm:$0xff]  ;;  %v1410_v59 = vld [vmem:[#allocation6 + $0x17a0] sm:$0xff] }
  0x8b   :  { %616 = vmatpush.msrb.mxu1 %v199_v63  ;;  %2268 = vmatpush.msra.mxu0 %v668_v28  ;;  %v1172_v60 = vld [vmem:[#allocation6 + $0x1030] sm:$0xff]  ;;  %v906_v19 = vld [vmem:[#allocation6 + $0x7e0] sm:$0xff] }
  0x8c   :  { %596 = vmatpush.msrb.mxu2 %v310_v62  ;;  %640 = vmatpush.msrb.mxu3 %v283_v0  ;;  %v962_v62 = vld [vmem:[#allocation6 + $0x9a0] sm:$0xff]  ;;  %v1396_v63 = vld [vmem:[#allocation6 + $0x1730] sm:$0xff] }
  0x8d   :  { %617 = vmatpush.msrb.mxu1 %v192_v3  ;;  %2269 = vmatpush.msra.mxu0 %v654_v33  ;;  %v1158_v0 = vld [vmem:[#allocation6 + $0xfc0] sm:$0xff]  ;;  %v1984_v33 = vld [vmem:[#allocation6 + $0x2990] sm:$0xff] }
  0x8e   :  { %597 = vmatpush.msrb.mxu2 %v303_v2  ;;  %641 = vmatpush.msrb.mxu3 %v276_v4  ;;  %v948_v2 = vld [vmem:[#allocation6 + $0x930] sm:$0xff]  ;;  %v1382_v3 = vld [vmem:[#allocation6 + $0x16c0] sm:$0xff] }
  0x8f   :  { %618 = vmatpush.msrb.mxu1 %v185_v7  ;;  %2334 = vmatpush.msrb.mxu0 %v1760_v34  ;;  %v1144_v4 = vld [vmem:[#allocation6 + $0xf50] sm:$0xff]  ;;  %v2194_v28 = vld [vmem:[#allocation6 + $0x3020] sm:$0xff] }
  0x90   :  { %598 = vmatpush.msrb.mxu2 %v296_v6  ;;  %642 = vmatpush.msrb.mxu3 %v269_v8  ;;  %v934_v6 = vld [vmem:[#allocation6 + $0x8c0] sm:$0xff]  ;;  %v1368_v7 = vld [vmem:[#allocation6 + $0x1650] sm:$0xff] }
  0x91   :  { %619 = vmatpush.msrb.mxu1 %v178_v11  ;;  %4808 = vmatmul.msk.f32.vlgmr.msrb.gmra.mxu3 %vm363_vm0, %v5123_v32  ;;  %v1130_v8 = vld [vmem:[#allocation6 + $0xee0] sm:$0xff]  ;;  %v2180_v34 = vld [vmem:[#allocation6 + $0x2fb0] sm:$0xff] }
  0x92   :  { %599 = vmatpush.msrb.mxu2 %v289_v10  ;;  %2294 = vmatpush.msra.mxu3 %v1312_v16  ;;  %v920_v10 = vld [vmem:[#allocation6 + $0x850] sm:$0xff]  ;;  %v1354_v11 = vld [vmem:[#allocation6 + $0x15e0] sm:$0xff]  ;;  %v865_v16 = vld [vmem:[#allocation6 + $0x698] sm:$0xff] }
  0x93   :  { %620 = vmatpush.msrb.mxu1 %v171_v14  ;;  %v1340_v14 = vld [vmem:[#allocation6 + $0x1570] sm:$0xff] }
  0x94   :  { %600 = vmatpush.msrb.mxu2 %v282_v13  ;;  %2295 = vmatpush.msra.mxu3 %v1298_v20  ;;  %v1606_v13 = vld [vmem:[#allocation6 + $0x1dc0] sm:$0xff] }
  0x95   :  { %621 = vmatpush.msrb.mxu1 %v164_v18  ;;  %v837_v18 = vld [vmem:[#allocation6 + $0x5b8] sm:$0xff]  ;;  %v1102_v20 = vld [vmem:[#allocation6 + $0xe00] sm:$0xff] }
  0x96   :  { %601 = vmatpush.msrb.mxu2 %v275_v17  ;;  %2296 = vmatpush.msra.mxu3 %v1284_v26  ;;  %v851_v17 = vld [vmem:[#allocation6 + $0x628] sm:$0xff]  ;;  %v1578_v26 = vld [vmem:[#allocation6 + $0x1ce0] sm:$0xff] }
  0x97   :  { %622 = vmatpush.msrb.mxu1 %v157_v22  ;;  %v823_v22 = vld [vmem:[#allocation6 + $0x548] sm:$0xff] }
  0x98   :  { %602 = vmatpush.msrb.mxu2 %v268_v21  ;;  %623 = vmatmul.f32.vlgmr.msrb.gmra.mxu1 %v5130_v42  ;;  %v1746_v42 = vld [vmem:[#allocation6 + $0x2220] sm:$0xff]  ;;  %v1592_v21 = vld [vmem:[#allocation6 + $0x1d50] sm:$0xff] }
  0x99   :  { %4807 = vmatmul.msk.f32.vlgmr.msrb.gmra.mxu2 %vm363_vm0, %v5123_v32  ;;  %2314 = vmatpush.msra.mxu1 %v1536_v23  ;;  %v1256_v32 = vld [vmem:[#allocation6 + $0x12d0] sm:$0xff] }
  0x9a   :  { %2274 = vmatpush.msra.mxu2 %v1088_v25  ;;  %2297 = vmatpush.msra.mxu3 %v1270_v30  ;;  %v2208_v23 = vld [vmem:[#allocation6 + $0x3090] sm:$0xff] }
  0x9b   :  { %2315 = vmatpush.msra.mxu1 %v1522_v27  ;;  %2335 = vmatpush.msrb.mxu0 %v1746_v42  ;;  %v892_v25 = vld [vmem:[#allocation6 + $0x770] sm:$0xff]  ;;  %v795_v27 = vld [vmem:[#allocation6 + $0x468] sm:$0xff]  ;;  %v2166_v42 = vld [vmem:[#allocation6 + $0x2f40] sm:$0xff] }
  0x9c   :  { %2275 = vmatpush.msra.mxu2 %v1074_v29  ;;  %2298 = vmatpush.msra.mxu3 %v1256_v32  ;;  %v878_v29 = vld [vmem:[#allocation6 + $0x700] sm:$0xff]  ;;  %v1564_v30 = vld [vmem:[#allocation6 + $0x1c70] sm:$0xff]  ;;  %v767_v32 = vld [vmem:[#allocation6 + $0x388] sm:$0xff] }
  0x9d   :  { %2316 = vmatpush.msra.mxu1 %v1508_v31  ;;  %2336 = vmatpush.msrb.mxu0 %v1732_v40  ;;  %v781_v31 = vld [vmem:[#allocation6 + $0x3f8] sm:$0xff]  ;;  %v1942_v40 = vld [vmem:[#allocation6 + $0x2840] sm:$0xff] }
  0x9e   :  { %2276 = vmatpush.msra.mxu2 %v1060_v35  ;;  %2299 = vmatpush.msra.mxu3 %v1242_v39  ;;  %v1550_v35 = vld [vmem:[#allocation6 + $0x1c00] sm:$0xff]  ;;  %v753_v39 = vld [vmem:[#allocation6 + $0x318] sm:$0xff] }
  0x9f   :  { %2317 = vmatpush.msra.mxu1 %v1494_v36  ;;  %2337 = vmatpush.msrb.mxu0 %v1718_v45  ;;  %v1970_v36 = vld [vmem:[#allocation6 + $0x2920] sm:$0xff]  ;;  %v1928_v45 = vld [vmem:[#allocation6 + $0x27d0] sm:$0xff] }
  0xa0   :  { %2277 = vmatpush.msra.mxu2 %v1046_v37  ;;  %2300 = vmatpush.msra.mxu3 %v1228_v44  ;;  %v1956_v37 = vld [vmem:[#allocation6 + $0x28b0] sm:$0xff]  ;;  %v725_v44 = vld [vmem:[#allocation6 + $0x238] sm:$0xff] }
  0xa1   :  { %2318 = vmatpush.msra.mxu1 %v1480_v38  ;;  %2338 = vmatpush.msrb.mxu0 %v1704_v49  ;;  %v2152_v38 = vld [vmem:[#allocation6 + $0x2ed0] sm:$0xff]  ;;  %v711_v49 = vld [vmem:[#allocation6 + $0x1c8] sm:$0xff] }
  0xa2   :  { %2278 = vmatpush.msra.mxu2 %v1032_v41  ;;  %2301 = vmatpush.msra.mxu3 %v1214_v48  ;;  %v2138_v41 = vld [vmem:[#allocation6 + $0x2e60] sm:$0xff] }
  0xa3   :  { %2319 = vmatpush.msra.mxu1 %v1466_v43  ;;  %2339 = vmatpush.msrb.mxu0 %v1690_v53  ;;  %v739_v43 = vld [vmem:[#allocation6 + $0x2a8] sm:$0xff]  ;;  %v2110_v48 = vld [vmem:[#allocation6 + $0x2d80] sm:$0xff] }
  0xa4   :  { %2279 = vmatpush.msra.mxu2 %v1018_v46  ;;  %2302 = vmatpush.msra.mxu3 %v1200_v52  ;;  %v2124_v46 = vld [vmem:[#allocation6 + $0x2df0] sm:$0xff]  ;;  %v697_v52 = vld [vmem:[#allocation6 + $0x158] sm:$0xff]  ;;  %v1886_v53 = vld [vmem:[#allocation6 + $0x2680] sm:$0xff] }
  0xa5   :  { %2320 = vmatpush.msra.mxu1 %v1452_v47  ;;  %2340 = vmatpush.msrb.mxu0 %v1676_v57  ;;  %v1914_v47 = vld [vmem:[#allocation6 + $0x2760] sm:$0xff]  ;;  %v2068_v57 = vld [vmem:[#allocation6 + $0x2c30] sm:$0xff] }
  0xa6   :  { %2280 = vmatpush.msra.mxu2 %v1004_v50  ;;  %2303 = vmatpush.msra.mxu3 %v1186_v56  ;;  %v1900_v50 = vld [vmem:[#allocation6 + $0x26f0] sm:$0xff] }
  0xa7   :  { %2321 = vmatpush.msra.mxu1 %v1438_v51  ;;  %2341 = vmatpush.msrb.mxu0 %v1662_v61  ;;  %v2096_v51 = vld [vmem:[#allocation6 + $0x2d10] sm:$0xff]  ;;  %v5151_v61 = vld [vmem:[#allocation4] sm:$0xff] }
  0xa8   :  { %2281 = vmatpush.msra.mxu2 %v990_v54  ;;  %2304 = vmatpush.msra.mxu3 %v1172_v60  ;;  %v2082_v54 = vld [vmem:[#allocation6 + $0x2ca0] sm:$0xff]  ;;  %v1872_v56 = vld [vmem:[#allocation6 + $0x2610] sm:$0xff] }
  0xa9   :  { %2322 = vmatpush.msra.mxu1 %v1424_v55  ;;  %2342 = vmatpush.msrb.mxu0 %v1648_v1  ;;  %v683_v55 = vld [vmem:[#allocation6 + $0xe8] sm:$0xff]  ;;  %v2054_v60 = vld [vmem:[#allocation6 + $0x2bc0] sm:$0xff] }
  0xaa   :  { %2282 = vmatpush.msra.mxu2 %v976_v58  ;;  %2305 = vmatpush.msra.mxu3 %v1158_v0  ;;  %v669_v58 = vld [vmem:[#allocation6 + $0x78] sm:$0xff]  ;;  %v2040_v0 = vld [vmem:[#allocation6 + $0x2b50] sm:$0xff]  ;;  %v1830_v1 = vld [vmem:[#allocation6 + $0x24c0] sm:$0xff] }
  0xab   :  { %2323 = vmatpush.msra.mxu1 %v1410_v59  ;;  %2343 = vmatpush.msrb.mxu0 %v1634_v5  ;;  %v1858_v59 = vld [vmem:[#allocation6 + $0x25a0] sm:$0xff]  ;;  %v2012_v5 = vld [vmem:[#allocation6 + $0x2a70] sm:$0xff] }
  0xac   :  { %2283 = vmatpush.msra.mxu2 %v962_v62  ;;  %2306 = vmatpush.msra.mxu3 %v1144_v4  ;;  %v655_v62 = vld [vmem:[#allocation6 + $0x8] sm:$0xff]  ;;  %v1816_v4 = vld [vmem:[#allocation6 + $0x2450] sm:$0xff] }
  0xad   :  { %2324 = vmatpush.msra.mxu1 %v1396_v63  ;;  %2344 = vmatpush.msrb.mxu0 %v1620_v9  ;;  %v1844_v63 = vld [vmem:[#allocation6 + $0x2530] sm:$0xff] }
  0xae   :  { %2284 = vmatpush.msra.mxu2 %v948_v2  ;;  %2307 = vmatpush.msra.mxu3 %v1130_v8  ;;  %v349_v2 = vperm.slane %v5151_v61, 0  ;;  %v350_v8 = vperm.slane %v5151_v61, 1 }
  0xaf   :  { %2325 = vmatpush.msra.mxu1 %v1382_v3  ;;  %2345 = vmatpush.msrb.mxu0 %v1606_v13  ;;  %v2026_v3 = vld [vmem:[#allocation6 + $0x2ae0] sm:$0xff] }
  0xb0   :  { %2285 = vmatpush.msra.mxu2 %v934_v6  ;;  %2308 = vmatpush.msra.mxu3 %v1116_v12 }
  0xb1   :  { %2326 = vmatpush.msra.mxu1 %v1368_v7  ;;  %2346 = vmatpush.msrb.mxu0 %v1592_v21  ;;  %v1075_v21 = vld [vmem:[#allocation6 + $0xd28] sm:$0xff] }
  0xb2   :  { %2286 = vmatpush.msra.mxu2 %v920_v10  ;;  %2309 = vmatpush.msra.mxu3 %v1102_v20  ;;  %v1802_v10 = vld [vmem:[#allocation6 + $0x23e0] sm:$0xff] }
  0xb3   :  { %2327 = vmatpush.msra.mxu1 %v1354_v11  ;;  %2347 = vmatpush.msrb.mxu0 %v1578_v26  ;;  %v1998_v11 = vld [vmem:[#allocation6 + $0x2a00] sm:$0xff]  ;;  %v1313_v26 = vld [vmem:[#allocation6 + $0x1498] sm:$0xff] }
  0xb4   :  { %2287 = vmatpush.msra.mxu2 %v906_v19  ;;  %2374 = vmatpush.msrb.mxu3 %v2208_v23  ;;  %v1774_v19 = vld [vmem:[#allocation6 + $0x2300] sm:$0xff]  ;;  %v351_v23 = vperm.slane %v5151_v61, 2 }
  0xb5   :  { %2328 = vmatpush.msra.mxu1 %v1340_v14  ;;  %2348 = vmatpush.msrb.mxu0 %v1564_v30 }
  0xb6   :  { %2288 = vmatpush.msra.mxu2 %v892_v25  ;;  %2375 = vmatpush.msrb.mxu3 %v2194_v28  ;;  %v1061_v25 = vld [vmem:[#allocation6 + $0xcb8] sm:$0xff]  ;;  %v1299_v28 = vld [vmem:[#allocation6 + $0x1428] sm:$0xff] }
  0xb7   :  { %2329 = vmatpush.msra.mxu1 %v1326_v15  ;;  %2349 = vmatpush.msrb.mxu0 %v1550_v35  ;;  %v1788_v15 = vld [vmem:[#allocation6 + $0x2370] sm:$0xff] }
  0xb8   :  { %2289 = vmatpush.msra.mxu2 %v878_v29  ;;  %2376 = vmatpush.msrb.mxu3 %v2180_v34 }
  0xb9   :  { %2394 = vmatpush.msrb.mxu1 %v865_v16 }
  0xba   :  { %2354 = vmatpush.msrb.mxu2 %v1984_v33  ;;  %2377 = vmatpush.msrb.mxu3 %v2166_v42 }
  0xbb   :  { %2395 = vmatpush.msrb.mxu1 %v851_v17 }
  0xbc   :  { %2355 = vmatpush.msrb.mxu2 %v1970_v36  ;;  %2378 = vmatpush.msrb.mxu3 %v2152_v38  ;;  %v1033_v36 = vld [vmem:[#allocation6 + $0xbd8] sm:$0xff]  ;;  %v1019_v38 = vld [vmem:[#allocation6 + $0xb68] sm:$0xff] }
  0xbd   :  { %2396 = vmatpush.msrb.mxu1 %v837_v18  ;;  %v1089_v18 = vld [vmem:[#allocation6 + $0xd98] sm:$0xff] }
  0xbe   :  { %2356 = vmatpush.msrb.mxu2 %v1956_v37  ;;  %2379 = vmatpush.msrb.mxu3 %v2138_v41 }
  0xbf   :  { %2397 = vmatpush.msrb.mxu1 %v823_v22 }
  0xc0   :  { %2357 = vmatpush.msrb.mxu2 %v1942_v40  ;;  %2380 = vmatpush.msrb.mxu3 %v2124_v46  ;;  %v1257_v46 = vld [vmem:[#allocation6 + $0x12d8] sm:$0xff] }
  0xc1   :  { %2398 = vmatpush.msrb.mxu1 %v809_v24  ;;  %v352_v24 = vperm.slane %v5151_v61, 3 }
  0xc2   :  { %2358 = vmatpush.msrb.mxu2 %v1928_v45  ;;  %2381 = vmatpush.msrb.mxu3 %v2110_v48  ;;  %v1537_v45 = vld [vmem:[#allocation6 + $0x1b98] sm:$0xff]  ;;  %v991_v48 = vld [vmem:[#allocation6 + $0xa88] sm:$0xff] }
  0xc3   :  { %2399 = vmatpush.msrb.mxu1 %v795_v27  ;;  %v1047_v27 = vld [vmem:[#allocation6 + $0xc48] sm:$0xff] }
  0xc4   :  { %2359 = vmatpush.msrb.mxu2 %v1914_v47  ;;  %2382 = vmatpush.msrb.mxu3 %v2096_v51  ;;  %v1747_v47 = vld [vmem:[#allocation6 + $0x2228] sm:$0xff]  ;;  %v1733_v51 = vld [vmem:[#allocation6 + $0x21b8] sm:$0xff] }
  0xc5   :  { %2400 = vmatpush.msrb.mxu1 %v781_v31 }
  0xc6   :  { %2360 = vmatpush.msrb.mxu2 %v1900_v50  ;;  %2383 = vmatpush.msrb.mxu3 %v2082_v54  ;;  %v1243_v50 = vld [vmem:[#allocation6 + $0x1268] sm:$0xff]  ;;  %v1229_v54 = vld [vmem:[#allocation6 + $0x11f8] sm:$0xff] }
  0xc7   :  { %2401 = vmatpush.msrb.mxu1 %v767_v32  ;;  %v1285_v32 = vld [vmem:[#allocation6 + $0x13b8] sm:$0xff] }
  0xc8   :  { %2361 = vmatpush.msrb.mxu2 %v1886_v53  ;;  %2384 = vmatpush.msrb.mxu3 %v2068_v57  ;;  %v1509_v53 = vld [vmem:[#allocation6 + $0x1ab8] sm:$0xff]  ;;  %v1495_v57 = vld [vmem:[#allocation6 + $0x1a48] sm:$0xff] }
  0xc9   :  { %2402 = vmatpush.msrb.mxu1 %v753_v39  ;;  %v1271_v39 = vld [vmem:[#allocation6 + $0x1348] sm:$0xff] }
  0xca   :  { %2362 = vmatpush.msrb.mxu2 %v1872_v56  ;;  %2385 = vmatpush.msrb.mxu3 %v2054_v60  ;;  %v963_v56 = vld [vmem:[#allocation6 + $0x9a8] sm:$0xff]  ;;  %v1481_v60 = vld [vmem:[#allocation6 + $0x19d8] sm:$0xff] }
  0xcb   :  { %2403 = vmatpush.msrb.mxu1 %v739_v43  ;;  %v1761_v43 = vld [vmem:[#allocation6 + $0x2298] sm:$0xff] }
  0xcc   :  { %2363 = vmatpush.msrb.mxu2 %v1858_v59  ;;  %2386 = vmatpush.msrb.mxu3 %v2040_v0  ;;  %v949_v59 = vld [vmem:[#allocation6 + $0x938] sm:$0xff]  ;;  %v935_v0 = vld [vmem:[#allocation6 + $0x8c8] sm:$0xff] }
  0xcd   :  { %2404 = vmatpush.msrb.mxu1 %v725_v44  ;;  %v1005_v44 = vld [vmem:[#allocation6 + $0xaf8] sm:$0xff] }
  0xce   :  { %2364 = vmatpush.msrb.mxu2 %v1844_v63  ;;  %2387 = vmatpush.msrb.mxu3 %v2026_v3  ;;  %v1691_v63 = vld [vmem:[#allocation6 + $0x2068] sm:$0xff]  ;;  %v1677_v3 = vld [vmem:[#allocation6 + $0x1ff8] sm:$0xff] }
  0xcf   :  { %2405 = vmatpush.msrb.mxu1 %v711_v49  ;;  %v1523_v49 = vld [vmem:[#allocation6 + $0x1b28] sm:$0xff] }
  0xd0   :  { %2365 = vmatpush.msrb.mxu2 %v1830_v1  ;;  %2388 = vmatpush.msrb.mxu3 %v2012_v5  ;;  %v1467_v1 = vld [vmem:[#allocation6 + $0x1968] sm:$0xff]  ;;  %v1453_v5 = vld [vmem:[#allocation6 + $0x18f8] sm:$0xff] }
  0xd1   :  { %2406 = vmatpush.msrb.mxu1 %v697_v52  ;;  %v977_v52 = vld [vmem:[#allocation6 + $0xa18] sm:$0xff] }
  0xd2   :  { %2366 = vmatpush.msrb.mxu2 %v1816_v4  ;;  %2389 = vmatpush.msrb.mxu3 %v1998_v11  ;;  %v921_v4 = vld [vmem:[#allocation6 + $0x858] sm:$0xff] }
  0xd3   :  { %2407 = vmatpush.msrb.mxu1 %v683_v55  ;;  %v1719_v55 = vld [vmem:[#allocation6 + $0x2148] sm:$0xff]  ;;  %v1173_v11 = vld [vmem:[#allocation6 + $0x1038] sm:$0xff] }
  0xd4   :  { %2367 = vmatpush.msrb.mxu2 %v1802_v10  ;;  %v1439_v10 = vld [vmem:[#allocation6 + $0x1888] sm:$0xff] }
  0xd5   :  { %2408 = vmatpush.msrb.mxu1 %v669_v58  ;;  %v1705_v58 = vld [vmem:[#allocation6 + $0x20d8] sm:$0xff] }
  0xd6   :  { %2368 = vmatpush.msrb.mxu2 %v1788_v15 }
  0xd7   :  { %2409 = vmatpush.msrb.mxu1 %v655_v62  ;;  %v1215_v62 = vld [vmem:[#allocation6 + $0x1188] sm:$0xff] }
  0xd8   :  { %v444_v13 = vpop.f32.mrf.mxu3  ;;  %2369 = vmatpush.msrb.mxu2 %v1774_v19 }
  0xd9   :  { %v384_v6 = vpop.f32.mrf.mxu0 }
  0xda   :  { %v385_v7 = vadd.f32 %v384_v6, %v349_v2  ;;  %v1201_v2 = vld [vmem:[#allocation6 + $0x1118] sm:$0xff]  ;;  %v1187_v6 = vld [vmem:[#allocation6 + $0x10a8] sm:$0xff] }
  0xdb   :  { %v404_v9 = vpop.f32.mrf.mxu1 }
  0xdc   :  { %v405_v12 = vadd.f32 %v404_v9, %v385_v7  ;;  %v353_v7 = vperm.slane %v5151_v61, 4  ;;  %v907_v9 = vld [vmem:[#allocation6 + $0x7e8] sm:$0xff] }
  0xdd   :  { %v424_v14 = vpop.f32.mrf.mxu2 }
  0xde   :  { %v5155_v16 = vmax.f32 %v405_v12, 0.0  ;;  %v425_v17 = vadd.f32 %v424_v14, %v350_v8  ;;  %v1663_v8 = vld [vmem:[#allocation6 + $0x1f88] sm:$0xff]  ;;  %v1649_v12 = vld [vmem:[#allocation6 + $0x1f18] sm:$0xff] }
  0xe0   :  { %v445_v20 = vadd.f32 %v444_v13, %v425_v17  ;;  %2270 = vmatmul.f32.vlgmr.msra.gmra.mxu0 %v5155_v16  ;;  %v893_v13 = vld [vmem:[#allocation6 + $0x778] sm:$0xff] }
  0xe1   :  { %2414 = vmatpush.msra.mxu0 %v1089_v18  ;;  %v1425_v17 = vld [vmem:[#allocation6 + $0x1818] sm:$0xff]  ;;  %v1159_v18 = vld [vmem:[#allocation6 + $0xfc8] sm:$0xff] }
  0xe2   :  { %v5158_v22 = vmax.f32 %v445_v20, 0.0  ;;  %v1635_v20 = vld [vmem:[#allocation6 + $0x1ea8] sm:$0xff] }
  0xe3   :  { %2415 = vmatpush.msra.mxu0 %v1075_v21  ;;  %v879_v21 = vld [vmem:[#allocation6 + $0x708] sm:$0xff] }
  0xe4   :  { %2290 = vmatmul.f32.vlgmr.msra.gmra.mxu2 %v5158_v22 }
  0xe5   :  { %v464_v29 = vpop.f32.mrf.mxu1  ;;  %v504_v30 = vpop.f32.mrf.mxu0  ;;  %2416 = vmatpush.msra.mxu0 %v1061_v25  ;;  %2434 = vmatpush.msra.mxu2 %v1313_v26  ;;  %v1621_v26 = vld [vmem:[#allocation6 + $0x1e38] sm:$0xff] }
  0xe6   :  { %v465_v31 = vadd.f32 %v464_v29, %v351_v23  ;;  %v505_v33 = vadd.f32 %v504_v30, %v352_v24  ;;  %v484_v34 = vpop.f32.mrf.mxu3  ;;  %v524_v35 = vpop.f32.mrf.mxu2  ;;  %v1411_v23 = vld [vmem:[#allocation6 + $0x17a8] sm:$0xff]  ;;  %v1145_v24 = vld [vmem:[#allocation6 + $0xf58] sm:$0xff] }
  0xe7   :  { %2417 = vmatpush.msra.mxu0 %v1047_v27  ;;  %2435 = vmatpush.msra.mxu2 %v1299_v28  ;;  %v1397_v27 = vld [vmem:[#allocation6 + $0x1738] sm:$0xff]  ;;  %v1607_v30 = vld [vmem:[#allocation6 + $0x1dc8] sm:$0xff] }
  0xe8   :  { %v485_v42 = vadd.f32 %v484_v34, %v465_v31  ;;  %v525_v37 = vadd.f32 %v524_v35, %v505_v33  ;;  %v1985_v29 = vld [vmem:[#allocation6 + $0x2998] sm:$0xff]  ;;  %v1383_v31 = vld [vmem:[#allocation6 + $0x16c8] sm:$0xff] }
  0xe9   :  { %2418 = vmatpush.msra.mxu0 %v1033_v36  ;;  %2436 = vmatpush.msra.mxu2 %v1285_v32  ;;  %v1131_v33 = vld [vmem:[#allocation6 + $0xee8] sm:$0xff]  ;;  %v1593_v35 = vld [vmem:[#allocation6 + $0x1d58] sm:$0xff] }
  0xea   :  { %v5163_v40 = vmax.f32 %v485_v42, 0.0  ;;  %v5165_v41 = vmax.f32 %v525_v37, 0.0  ;;  %v1971_v34 = vld [vmem:[#allocation6 + $0x2928] sm:$0xff]  ;;  %v1369_v36 = vld [vmem:[#allocation6 + $0x1658] sm:$0xff] }
  0xeb   :  { %2419 = vmatpush.msra.mxu0 %v1019_v38  ;;  %2437 = vmatpush.msra.mxu2 %v1271_v39  ;;  %v1117_v32 = vld [vmem:[#allocation6 + $0xe78] sm:$0xff]  ;;  %v1579_v37 = vld [vmem:[#allocation6 + $0x1ce8] sm:$0xff] }
  0xec   :  { %2310 = vmatmul.f32.vlgmr.msra.gmra.mxu3 %v5163_v40  ;;  %2330 = vmatmul.f32.vlgmr.msra.gmra.mxu1 %v5165_v41  ;;  %v1957_v42 = vld [vmem:[#allocation6 + $0x28b8] sm:$0xff]  ;;  %v1355_v38 = vld [vmem:[#allocation6 + $0x15e8] sm:$0xff] }
  0xed   :  { %2474 = vmatpush.msra.mxu1 %v1761_v43  ;;  %2420 = vmatpush.msra.mxu0 %v1005_v44  ;;  %v1103_v39 = vld [vmem:[#allocation6 + $0xe08] sm:$0xff]  ;;  %v1565_v44 = vld [vmem:[#allocation6 + $0x1c78] sm:$0xff] }
  0xee   :  { %2454 = vmatpush.msra.mxu3 %v1537_v45  ;;  %2438 = vmatpush.msra.mxu2 %v1257_v46  ;;  %v1943_v43 = vld [vmem:[#allocation6 + $0x2848] sm:$0xff]  ;;  %v1341_v45 = vld [vmem:[#allocation6 + $0x1578] sm:$0xff] }
  0xef   :  { %2475 = vmatpush.msra.mxu1 %v1747_v47  ;;  %2421 = vmatpush.msra.mxu0 %v991_v48  ;;  %v1929_v46 = vld [vmem:[#allocation6 + $0x27d8] sm:$0xff]  ;;  %v1551_v47 = vld [vmem:[#allocation6 + $0x1c08] sm:$0xff]  ;;  %v1090_v48 = vld [vmem:[#allocation6 + $0xda0] sm:$0xff] }
  0xf0   :  { %2455 = vmatpush.msra.mxu3 %v1523_v49  ;;  %2439 = vmatpush.msra.mxu2 %v1243_v50  ;;  %v1327_v49 = vld [vmem:[#allocation6 + $0x1508] sm:$0xff] }
  0xf1   :  { %2476 = vmatpush.msra.mxu1 %v1733_v51  ;;  %2422 = vmatpush.msra.mxu0 %v977_v52  ;;  %v1915_v50 = vld [vmem:[#allocation6 + $0x2768] sm:$0xff]  ;;  %v1076_v51 = vld [vmem:[#allocation6 + $0xd30] sm:$0xff]  ;;  %v1901_v52 = vld [vmem:[#allocation6 + $0x26f8] sm:$0xff] }
  0xf2   :  { %2456 = vmatpush.msra.mxu3 %v1509_v53  ;;  %2440 = vmatpush.msra.mxu2 %v1229_v54  ;;  %v1062_v53 = vld [vmem:[#allocation6 + $0xcc0] sm:$0xff]  ;;  %v1887_v54 = vld [vmem:[#allocation6 + $0x2688] sm:$0xff] }
  0xf3   :  { %2477 = vmatpush.msra.mxu1 %v1719_v55  ;;  %2423 = vmatpush.msra.mxu0 %v963_v56  ;;  %v1048_v55 = vld [vmem:[#allocation6 + $0xc50] sm:$0xff]  ;;  %v1873_v56 = vld [vmem:[#allocation6 + $0x2618] sm:$0xff] }
  0xf4   :  { %2410 = vmatmul.f32.vlgmr.msrb.gmra.mxu1 %v5155_v16  ;;  %2457 = vmatpush.msra.mxu3 %v1495_v57 }
  0xf5   :  { %2478 = vmatpush.msra.mxu1 %v1705_v58  ;;  %2424 = vmatpush.msra.mxu0 %v949_v59  ;;  %v1034_v58 = vld [vmem:[#allocation6 + $0xbe0] sm:$0xff]  ;;  %v355_v59 = vperm.slane %v5151_v61, 6 }
  0xf6   :  { %2458 = vmatpush.msra.mxu3 %v1481_v60  ;;  %2441 = vmatpush.msra.mxu2 %v1215_v62  ;;  %v1859_v60 = vld [vmem:[#allocation6 + $0x25a8] sm:$0xff]  ;;  %v1020_v62 = vld [vmem:[#allocation6 + $0xb70] sm:$0xff] }
  0xf7   :  { %2479 = vmatpush.msra.mxu1 %v1691_v63  ;;  %2425 = vmatpush.msra.mxu0 %v935_v0  ;;  %v564_v15 = vpop.f32.mrf.mxu1  ;;  %v1845_v63 = vld [vmem:[#allocation6 + $0x2538] sm:$0xff] }
  0xf8   :  { %2459 = vmatpush.msra.mxu3 %v1467_v1  ;;  %2442 = vmatpush.msra.mxu2 %v1201_v2  ;;  %v1006_v2 = vld [vmem:[#allocation6 + $0xb00] sm:$0xff] }
  0xf9   :  { %2480 = vmatpush.msra.mxu1 %v1677_v3  ;;  %2426 = vmatpush.msra.mxu0 %v921_v4  ;;  %v354_v3 = vperm.slane %v5151_v61, 5 }
  0xfa   :  { %2460 = vmatpush.msra.mxu3 %v1453_v5  ;;  %2443 = vmatpush.msra.mxu2 %v1187_v6  ;;  %v1831_v5 = vld [vmem:[#allocation6 + $0x24c8] sm:$0xff]  ;;  %v992_v6 = vld [vmem:[#allocation6 + $0xa90] sm:$0xff] }
  0xfb   :  { %v544_v14 = vpop.f32.mrf.mxu3  ;;  %2481 = vmatpush.msra.mxu1 %v1663_v8  ;;  %2427 = vmatpush.msra.mxu0 %v907_v9  ;;  %v1817_v8 = vld [vmem:[#allocation6 + $0x2458] sm:$0xff]  ;;  %v978_v9 = vld [vmem:[#allocation6 + $0xa20] sm:$0xff] }
  0xfc   :  { %v545_v19 = vadd.f32 %v544_v14, %v353_v7  ;;  %2461 = vmatpush.msra.mxu3 %v1439_v10  ;;  %2444 = vmatpush.msra.mxu2 %v1173_v11 }
  0xfd   :  { %2482 = vmatpush.msra.mxu1 %v1649_v12  ;;  %2428 = vmatpush.msra.mxu0 %v893_v13  ;;  %v866_v12 = vld [vmem:[#allocation6 + $0x6a0] sm:$0xff]  ;;  %v1803_v13 = vld [vmem:[#allocation6 + $0x23e8] sm:$0xff] }
  0xfe   :  { %v565_v25 = vadd.f32 %v564_v15, %v545_v19  ;;  %2462 = vmatpush.msra.mxu3 %v1425_v17  ;;  %2445 = vmatpush.msra.mxu2 %v1159_v18  ;;  %v964_v15 = vld [vmem:[#allocation6 + $0x9b0] sm:$0xff]  ;;  %v1789_v18 = vld [vmem:[#allocation6 + $0x2378] sm:$0xff]  ;;  %v950_v19 = vld [vmem:[#allocation6 + $0x940] sm:$0xff] }
  0xff   :  { %2483 = vmatpush.msra.mxu1 %v1635_v20  ;;  %2429 = vmatpush.msra.mxu0 %v879_v21  ;;  %v852_v17 = vld [vmem:[#allocation6 + $0x630] sm:$0xff]  ;;  %v2209_v21 = vld [vmem:[#allocation6 + $0x3098] sm:$0xff] }
 0x100   :  { %v5171_v28 = vmax.f32 %v565_v25, 0.0  ;;  %2463 = vmatpush.msra.mxu3 %v1411_v23  ;;  %2446 = vmatpush.msra.mxu2 %v1145_v24  ;;  %v838_v23 = vld [vmem:[#allocation6 + $0x5c0] sm:$0xff]  ;;  %v1775_v24 = vld [vmem:[#allocation6 + $0x2308] sm:$0xff]  ;;  %v936_v25 = vld [vmem:[#allocation6 + $0x8d0] sm:$0xff] }
 0x101   :  { %2484 = vmatpush.msra.mxu1 %v1621_v26  ;;  %v2195_v26 = vld [vmem:[#allocation6 + $0x3028] sm:$0xff] }
 0x102   :  { %2350 = vmatmul.f32.vlgmr.msrb.gmra.mxu0 %v5171_v28  ;;  %2464 = vmatpush.msra.mxu3 %v1397_v27  ;;  %v824_v27 = vld [vmem:[#allocation6 + $0x550] sm:$0xff] }
 0x103   :  { %2494 = vmatpush.msrb.mxu0 %v1985_v29  ;;  %2485 = vmatpush.msra.mxu1 %v1607_v30  ;;  %v1314_v29 = vld [vmem:[#allocation6 + $0x14a0] sm:$0xff]  ;;  %v2181_v30 = vld [vmem:[#allocation6 + $0x2fb8] sm:$0xff] }
 0x104   :  { %2465 = vmatpush.msra.mxu3 %v1383_v31  ;;  %2447 = vmatpush.msra.mxu2 %v1131_v33  ;;  %v810_v31 = vld [vmem:[#allocation6 + $0x4e0] sm:$0xff]  ;;  %v1300_v33 = vld [vmem:[#allocation6 + $0x1430] sm:$0xff] }
 0x105   :  { %2495 = vmatpush.msrb.mxu0 %v1971_v34  ;;  %2486 = vmatpush.msra.mxu1 %v1593_v35  ;;  %v922_v34 = vld [vmem:[#allocation6 + $0x860] sm:$0xff]  ;;  %v2167_v35 = vld [vmem:[#allocation6 + $0x2f48] sm:$0xff] }
 0x106   :  { %2466 = vmatpush.msra.mxu3 %v1369_v36  ;;  %2448 = vmatpush.msra.mxu2 %v1117_v32  ;;  %v584_v57 = vpop.f32.mrf.mxu2  ;;  %v796_v36 = vld [vmem:[#allocation6 + $0x470] sm:$0xff]  ;;  %v1286_v32 = vld [vmem:[#allocation6 + $0x13c0] sm:$0xff] }
 0x107   :  { %2496 = vmatpush.msrb.mxu0 %v1957_v42  ;;  %2487 = vmatpush.msra.mxu1 %v1579_v37  ;;  %v585_v10 = vadd.f32 %v584_v57, %v354_v3  ;;  %v908_v42 = vld [vmem:[#allocation6 + $0x7f0] sm:$0xff]  ;;  %v2153_v37 = vld [vmem:[#allocation6 + $0x2ed8] sm:$0xff]  ;;  %v726_v57 = vld [vmem:[#allocation6 + $0x240] sm:$0xff] }
 0x108   :  { %2467 = vmatpush.msra.mxu3 %v1355_v38  ;;  %2449 = vmatpush.msra.mxu2 %v1103_v39  ;;  %v782_v38 = vld [vmem:[#allocation6 + $0x400] sm:$0xff]  ;;  %v1272_v39 = vld [vmem:[#allocation6 + $0x1350] sm:$0xff] }
 0x109   :  { %2497 = vmatpush.msrb.mxu0 %v1943_v43  ;;  %2488 = vmatpush.msra.mxu1 %v1565_v44  ;;  %v894_v43 = vld [vmem:[#allocation6 + $0x780] sm:$0xff]  ;;  %v2139_v44 = vld [vmem:[#allocation6 + $0x2e68] sm:$0xff]  ;;  %v1188_v3 = vld [vmem:[#allocation6 + $0x10b0] sm:$0xff] }
 0x10a   :  { %2430 = vmatmul.f32.vlgmr.msra.gmra.mxu0 %v5158_v22  ;;  %2468 = vmatpush.msra.mxu3 %v1341_v45  ;;  %v768_v45 = vld [vmem:[#allocation6 + $0x390] sm:$0xff] }
 0x10b   :  { %2498 = vmatpush.msrb.mxu0 %v1929_v46  ;;  %2489 = vmatpush.msra.mxu1 %v1551_v47  ;;  %v1258_v46 = vld [vmem:[#allocation6 + $0x12e0] sm:$0xff]  ;;  %v880_v47 = vld [vmem:[#allocation6 + $0x710] sm:$0xff] }
 0x10c   :  { %2469 = vmatpush.msra.mxu3 %v1327_v49  ;;  %2490 = vmatmul.f32.vlgmr.msra.gmra.mxu1 %v5171_v28  ;;  %v754_v49 = vld [vmem:[#allocation6 + $0x320] sm:$0xff] }
 0x10d   :  { %2554 = vmatpush.msrb.mxu1 %v1090_v48  ;;  %2499 = vmatpush.msrb.mxu0 %v1915_v50  ;;  %v2125_v48 = vld [vmem:[#allocation6 + $0x2df8] sm:$0xff]  ;;  %v1244_v50 = vld [vmem:[#allocation6 + $0x1270] sm:$0xff] }
 0x10f   :  { %2555 = vmatpush.msrb.mxu1 %v1076_v51  ;;  %2500 = vmatpush.msrb.mxu0 %v1901_v52  ;;  %v1986_v51 = vld [vmem:[#allocation6 + $0x29a0] sm:$0xff]  ;;  %v2111_v52 = vld [vmem:[#allocation6 + $0x2d88] sm:$0xff] }
 0x111   :  { %2556 = vmatpush.msrb.mxu1 %v1062_v53  ;;  %2501 = vmatpush.msrb.mxu0 %v1887_v54  ;;  %v740_v53 = vld [vmem:[#allocation6 + $0x2b0] sm:$0xff]  ;;  %v1230_v54 = vld [vmem:[#allocation6 + $0x1200] sm:$0xff] }
 0x113   :  { %2557 = vmatpush.msrb.mxu1 %v1048_v55  ;;  %2502 = vmatpush.msrb.mxu0 %v1873_v56  ;;  %v1972_v55 = vld [vmem:[#allocation6 + $0x2930] sm:$0xff]  ;;  %v2097_v56 = vld [vmem:[#allocation6 + $0x2d18] sm:$0xff] }
 0x114   :  { %v644_v1 = vpop.f32.mrf.mxu3 }
 0x115   :  { %2558 = vmatpush.msrb.mxu1 %v1034_v58  ;;  %v624_v0 = vpop.f32.mrf.mxu1  ;;  %2503 = vmatpush.msrb.mxu0 %v1859_v60  ;;  %v1216_v58 = vld [vmem:[#allocation6 + $0x1190] sm:$0xff]  ;;  %v2083_v60 = vld [vmem:[#allocation6 + $0x2ca8] sm:$0xff] }
 0x116   :  { %v625_v4 = vadd.f32 %v624_v0, %v355_v59  ;;  %v1958_v59 = vld [vmem:[#allocation6 + $0x28c0] sm:$0xff]  ;;  %v1944_v0 = vld [vmem:[#allocation6 + $0x2850] sm:$0xff] }
 0x117   :  { %2559 = vmatpush.msrb.mxu1 %v1020_v62  ;;  %2504 = vmatpush.msrb.mxu0 %v1845_v63  ;;  %v712_v62 = vld [vmem:[#allocation6 + $0x1d0] sm:$0xff]  ;;  %v1202_v63 = vld [vmem:[#allocation6 + $0x1120] sm:$0xff] }
 0x118   :  { %v645_v7 = vadd.f32 %v644_v1, %v625_v4  ;;  %v2069_v1 = vld [vmem:[#allocation6 + $0x2c38] sm:$0xff]  ;;  %v1930_v4 = vld [vmem:[#allocation6 + $0x27e0] sm:$0xff] }
 0x119   :  { %2560 = vmatpush.msrb.mxu1 %v1006_v2  ;;  %2505 = vmatpush.msrb.mxu0 %v1831_v5  ;;  %v698_v2 = vld [vmem:[#allocation6 + $0x160] sm:$0xff]  ;;  %v2055_v5 = vld [vmem:[#allocation6 + $0x2bc8] sm:$0xff] }
 0x11a   :  { %v5178_v11 = vmax.f32 %v645_v7, 0.0  ;;  %v1174_v7 = vld [vmem:[#allocation6 + $0x1040] sm:$0xff] }
 0x11b   :  { %2561 = vmatpush.msrb.mxu1 %v992_v6  ;;  %2506 = vmatpush.msrb.mxu0 %v1817_v8  ;;  %v684_v6 = vld [vmem:[#allocation6 + $0xf0] sm:$0xff] }
 0x11c   :  { %v604_v14 = vpop.f32.mrf.mxu2  ;;  %2390 = vmatmul.f32.vlgmr.msrb.gmra.mxu3 %v5178_v11  ;;  %v1916_v8 = vld [vmem:[#allocation6 + $0x2770] sm:$0xff] }
 0x11d   :  { %v605_v61 = vadd.f32 %v604_v14, %v585_v10  ;;  %2562 = vmatpush.msrb.mxu1 %v978_v9  ;;  %2534 = vmatpush.msrb.mxu3 %v866_v12  ;;  %v2041_v9 = vld [vmem:[#allocation6 + $0x2b58] sm:$0xff]  ;;  %v670_v10 = vld [vmem:[#allocation6 + $0x80] sm:$0xff]  ;;  %v1160_v12 = vld [vmem:[#allocation6 + $0xfd0] sm:$0xff] }
 0x11e   :  { %2507 = vmatpush.msrb.mxu0 %v1803_v13  ;;  %v1902_v13 = vld [vmem:[#allocation6 + $0x2700] sm:$0xff]  ;;  %v2027_v14 = vld [vmem:[#allocation6 + $0x2ae8] sm:$0xff] }
 0x11f   :  { %v5181_v20 = vmax.f32 %v605_v61, 0.0  ;;  %2563 = vmatpush.msrb.mxu1 %v964_v15  ;;  %2535 = vmatpush.msrb.mxu3 %v852_v17  ;;  %v656_v15 = vld [vmem:[#allocation6 + $0x10] sm:$0xff]  ;;  %v1146_v61 = vld [vmem:[#allocation6 + $0xf60] sm:$0xff] }
 0x120   :  { %2508 = vmatpush.msrb.mxu0 %v1789_v18  ;;  %v1888_v17 = vld [vmem:[#allocation6 + $0x2690] sm:$0xff]  ;;  %v1762_v18 = vld [vmem:[#allocation6 + $0x22a0] sm:$0xff] }
 0x121   :  { %2370 = vmatmul.f32.vlgmr.msrb.gmra.mxu2 %v5181_v20  ;;  %2564 = vmatpush.msrb.mxu1 %v950_v19  ;;  %v2013_v19 = vld [vmem:[#allocation6 + $0x2a78] sm:$0xff] }
 0x122   :  { %2514 = vmatpush.msrb.mxu2 %v2209_v21  ;;  %2536 = vmatpush.msrb.mxu3 %v838_v23  ;;  %v1132_v21 = vld [vmem:[#allocation6 + $0xef0] sm:$0xff]  ;;  %v1874_v23 = vld [vmem:[#allocation6 + $0x2620] sm:$0xff] }
 0x123   :  { %2509 = vmatpush.msrb.mxu0 %v1775_v24  ;;  %2565 = vmatpush.msrb.mxu1 %v936_v25  ;;  %v1748_v24 = vld [vmem:[#allocation6 + $0x2230] sm:$0xff]  ;;  %v1999_v25 = vld [vmem:[#allocation6 + $0x2a08] sm:$0xff] }
 0x124   :  { %2510 = vmatmul.f32.vlgmr.msrb.gmra.mxu0 %v5181_v20  ;;  %2515 = vmatpush.msrb.mxu2 %v2195_v26  ;;  %v1118_v26 = vld [vmem:[#allocation6 + $0xe80] sm:$0xff] }
 0x125   :  { %2537 = vmatpush.msrb.mxu3 %v824_v27  ;;  %2574 = vmatpush.msra.mxu0 %v1314_v29  ;;  %v1860_v27 = vld [vmem:[#allocation6 + $0x25b0] sm:$0xff]  ;;  %v1734_v29 = vld [vmem:[#allocation6 + $0x21c0] sm:$0xff] }
 0x126   :  { %2470 = vmatmul.f32.vlgmr.msra.gmra.mxu3 %v5165_v41  ;;  %2516 = vmatpush.msrb.mxu2 %v2181_v30  ;;  %v1538_v30 = vld [vmem:[#allocation6 + $0x1ba0] sm:$0xff] }
 0x127   :  { %2538 = vmatpush.msrb.mxu3 %v810_v31  ;;  %2575 = vmatpush.msra.mxu0 %v1300_v33  ;;  %v1104_v31 = vld [vmem:[#allocation6 + $0xe10] sm:$0xff]  ;;  %v1846_v33 = vld [vmem:[#allocation6 + $0x2540] sm:$0xff] }
 0x128   :  { %2566 = vmatpush.msrb.mxu1 %v922_v34  ;;  %2517 = vmatpush.msrb.mxu2 %v2167_v35  ;;  %v1524_v34 = vld [vmem:[#allocation6 + $0x1b30] sm:$0xff] }
 0x129   :  { %2539 = vmatpush.msrb.mxu3 %v796_v36  ;;  %2576 = vmatpush.msra.mxu0 %v1286_v32  ;;  %v1720_v35 = vld [vmem:[#allocation6 + $0x2150] sm:$0xff]  ;;  %v2210_v36 = vld [vmem:[#allocation6 + $0x30a0] sm:$0xff] }
 0x12a   :  { %2567 = vmatpush.msrb.mxu1 %v908_v42  ;;  %2450 = vmatmul.f32.vlgmr.msra.gmra.mxu2 %v5163_v40  ;;  %v1832_v32 = vld [vmem:[#allocation6 + $0x24d0] sm:$0xff]  ;;  %v1510_v42 = vld [vmem:[#allocation6 + $0x1ac0] sm:$0xff] }
 0x12b   :  { %2518 = vmatpush.msrb.mxu2 %v2153_v37  ;;  %2540 = vmatpush.msrb.mxu3 %v782_v38  ;;  %v1706_v37 = vld [vmem:[#allocation6 + $0x20e0] sm:$0xff]  ;;  %v2196_v38 = vld [vmem:[#allocation6 + $0x3030] sm:$0xff] }
 0x12c   :  { %2577 = vmatpush.msra.mxu0 %v1272_v39  ;;  %2568 = vmatpush.msrb.mxu1 %v894_v43  ;;  %v1818_v39 = vld [vmem:[#allocation6 + $0x2460] sm:$0xff]  ;;  %v1496_v43 = vld [vmem:[#allocation6 + $0x1a50] sm:$0xff] }
 0x12d   :  { %2519 = vmatpush.msrb.mxu2 %v2139_v44  ;;  %2541 = vmatpush.msrb.mxu3 %v768_v45  ;;  %v1692_v44 = vld [vmem:[#allocation6 + $0x2070] sm:$0xff]  ;;  %v2182_v45 = vld [vmem:[#allocation6 + $0x2fc0] sm:$0xff] }
 0x12e   :  { %2578 = vmatpush.msra.mxu0 %v1258_v46  ;;  %2569 = vmatpush.msrb.mxu1 %v880_v47  ;;  %v1804_v46 = vld [vmem:[#allocation6 + $0x23f0] sm:$0xff]  ;;  %v1482_v47 = vld [vmem:[#allocation6 + $0x19e0] sm:$0xff] }
 0x12f   :  { %2520 = vmatpush.msrb.mxu2 %v2125_v48  ;;  %2542 = vmatpush.msrb.mxu3 %v754_v49  ;;  %v1678_v48 = vld [vmem:[#allocation6 + $0x2000] sm:$0xff]  ;;  %v2168_v49 = vld [vmem:[#allocation6 + $0x2f50] sm:$0xff] }
 0x130   :  { %2570 = vmatmul.f32.vlgmr.msrb.gmra.mxu1 %v5158_v22  ;;  %2579 = vmatpush.msra.mxu0 %v1244_v50  ;;  %v1790_v50 = vld [vmem:[#allocation6 + $0x2380] sm:$0xff] }
 0x131   :  { %2634 = vmatpush.msra.mxu1 %v1986_v51  ;;  %2521 = vmatpush.msrb.mxu2 %v2111_v52  ;;  %v1468_v51 = vld [vmem:[#allocation6 + $0x1970] sm:$0xff] }
 0x132   :  { %2543 = vmatpush.msrb.mxu3 %v740_v53  ;;  %2580 = vmatpush.msra.mxu0 %v1230_v54  ;;  %v1664_v52 = vld [vmem:[#allocation6 + $0x1f90] sm:$0xff]  ;;  %v2154_v53 = vld [vmem:[#allocation6 + $0x2ee0] sm:$0xff] }
 0x133   :  { %2635 = vmatpush.msra.mxu1 %v1972_v55  ;;  %2522 = vmatpush.msrb.mxu2 %v2097_v56  ;;  %v1776_v54 = vld [vmem:[#allocation6 + $0x2310] sm:$0xff]  ;;  %v1454_v55 = vld [vmem:[#allocation6 + $0x1900] sm:$0xff] }
 0x134   :  { %2544 = vmatpush.msrb.mxu3 %v726_v57  ;;  %2581 = vmatpush.msra.mxu0 %v1216_v58  ;;  %v1650_v56 = vld [vmem:[#allocation6 + $0x1f20] sm:$0xff]  ;;  %v2140_v57 = vld [vmem:[#allocation6 + $0x2e70] sm:$0xff]  ;;  %v1315_v58 = vld [vmem:[#allocation6 + $0x14a8] sm:$0xff] }
 0x135   :  { %2636 = vmatpush.msra.mxu1 %v1958_v59  ;;  %2523 = vmatpush.msrb.mxu2 %v2083_v60  ;;  %v1440_v59 = vld [vmem:[#allocation6 + $0x1890] sm:$0xff] }
 0x136   :  { %2545 = vmatpush.msrb.mxu3 %v712_v62  ;;  %2582 = vmatpush.msra.mxu0 %v1202_v63  ;;  %v1636_v60 = vld [vmem:[#allocation6 + $0x1eb0] sm:$0xff]  ;;  %v2126_v62 = vld [vmem:[#allocation6 + $0x2e00] sm:$0xff]  ;;  %v1301_v63 = vld [vmem:[#allocation6 + $0x1438] sm:$0xff] }
 0x137   :  { %2637 = vmatpush.msra.mxu1 %v1944_v0  ;;  %2524 = vmatpush.msrb.mxu2 %v2069_v1  ;;  %v1426_v0 = vld [vmem:[#allocation6 + $0x1820] sm:$0xff] }
 0x138   :  { %2546 = vmatpush.msrb.mxu3 %v698_v2  ;;  %2583 = vmatpush.msra.mxu0 %v1188_v3  ;;  %v1622_v1 = vld [vmem:[#allocation6 + $0x1e40] sm:$0xff]  ;;  %v2112_v2 = vld [vmem:[#allocation6 + $0x2d90] sm:$0xff]  ;;  %v1287_v3 = vld [vmem:[#allocation6 + $0x13c8] sm:$0xff] }
 0x139   :  { %2638 = vmatpush.msra.mxu1 %v1930_v4  ;;  %2525 = vmatpush.msrb.mxu2 %v2055_v5  ;;  %v1412_v4 = vld [vmem:[#allocation6 + $0x17b0] sm:$0xff] }
 0x13a   :  { %2547 = vmatpush.msrb.mxu3 %v684_v6  ;;  %2584 = vmatpush.msra.mxu0 %v1174_v7  ;;  %v1608_v5 = vld [vmem:[#allocation6 + $0x1dd0] sm:$0xff]  ;;  %v2098_v6 = vld [vmem:[#allocation6 + $0x2d20] sm:$0xff]  ;;  %v1273_v7 = vld [vmem:[#allocation6 + $0x1358] sm:$0xff] }
 0x13b   :  { %2639 = vmatpush.msra.mxu1 %v1916_v8  ;;  %2526 = vmatpush.msrb.mxu2 %v2041_v9  ;;  %v1398_v8 = vld [vmem:[#allocation6 + $0x1740] sm:$0xff] }
 0x13c   :  { %2548 = vmatpush.msrb.mxu3 %v670_v10  ;;  %2585 = vmatpush.msra.mxu0 %v1160_v12  ;;  %v1594_v9 = vld [vmem:[#allocation6 + $0x1d60] sm:$0xff]  ;;  %v2084_v10 = vld [vmem:[#allocation6 + $0x2cb0] sm:$0xff]  ;;  %v1259_v12 = vld [vmem:[#allocation6 + $0x12e8] sm:$0xff] }
 0x13d   :  { %2640 = vmatpush.msra.mxu1 %v1902_v13  ;;  %2527 = vmatpush.msrb.mxu2 %v2027_v14  ;;  %v1384_v13 = vld [vmem:[#allocation6 + $0x16d0] sm:$0xff] }
 0x13e   :  { %2549 = vmatpush.msrb.mxu3 %v656_v15  ;;  %2586 = vmatpush.msra.mxu0 %v1146_v61  ;;  %v1580_v14 = vld [vmem:[#allocation6 + $0x1cf0] sm:$0xff]  ;;  %v2070_v15 = vld [vmem:[#allocation6 + $0x2c40] sm:$0xff]  ;;  %v1245_v61 = vld [vmem:[#allocation6 + $0x1278] sm:$0xff] }
 0x13f   :  { %2641 = vmatpush.msra.mxu1 %v1888_v17  ;;  %2550 = vmatmul.f32.vlgmr.msrb.gmra.mxu3 %v5155_v16  ;;  %v1370_v17 = vld [vmem:[#allocation6 + $0x1660] sm:$0xff] }
 0x140   :  { %2614 = vmatpush.msra.mxu3 %v1762_v18  ;;  %2528 = vmatpush.msrb.mxu2 %v2013_v19  ;;  %v1566_v18 = vld [vmem:[#allocation6 + $0x1c80] sm:$0xff]  ;;  %v2056_v19 = vld [vmem:[#allocation6 + $0x2bd0] sm:$0xff] }
 0x141   :  { %2587 = vmatpush.msra.mxu0 %v1132_v21  ;;  %2642 = vmatpush.msra.mxu1 %v1874_v23  ;;  %v1231_v21 = vld [vmem:[#allocation6 + $0x1208] sm:$0xff]  ;;  %v1356_v23 = vld [vmem:[#allocation6 + $0x15f0] sm:$0xff] }
 0x142   :  { %2615 = vmatpush.msra.mxu3 %v1748_v24  ;;  %2529 = vmatpush.msrb.mxu2 %v1999_v25  ;;  %v1552_v24 = vld [vmem:[#allocation6 + $0x1c10] sm:$0xff]  ;;  %v2042_v25 = vld [vmem:[#allocation6 + $0x2b60] sm:$0xff] }
 0x143   :  { %2588 = vmatpush.msra.mxu0 %v1118_v26  ;;  %2643 = vmatpush.msra.mxu1 %v1860_v27  ;;  %v1217_v26 = vld [vmem:[#allocation6 + $0x1198] sm:$0xff]  ;;  %v1091_v27 = vld [vmem:[#allocation6 + $0xda8] sm:$0xff] }
 0x144   :  { %2530 = vmatmul.f32.vlgmr.msrb.gmra.mxu2 %v5178_v11  ;;  %2616 = vmatpush.msra.mxu3 %v1734_v29  ;;  %v1342_v29 = vld [vmem:[#allocation6 + $0x1580] sm:$0xff] }
 0x145   :  { %2594 = vmatpush.msra.mxu2 %v1538_v30  ;;  %2589 = vmatpush.msra.mxu0 %v1104_v31  ;;  %v2028_v30 = vld [vmem:[#allocation6 + $0x2af0] sm:$0xff]  ;;  %v1203_v31 = vld [vmem:[#allocation6 + $0x1128] sm:$0xff] }
 0x146   :  { %2644 = vmatpush.msra.mxu1 %v1846_v33  ;;  %2590 = vmatmul.f32.vlgmr.msra.gmra.mxu0 %v5163_v40  ;;  %v1077_v33 = vld [vmem:[#allocation6 + $0xd38] sm:$0xff] }
 0x147   :  { %2595 = vmatpush.msra.mxu2 %v1524_v34  ;;  %2617 = vmatpush.msra.mxu3 %v1720_v35  ;;  %v1328_v34 = vld [vmem:[#allocation6 + $0x1510] sm:$0xff]  ;;  %v2014_v35 = vld [vmem:[#allocation6 + $0x2a80] sm:$0xff] }
 0x148   :  { %2654 = vmatpush.msrb.mxu0 %v2210_v36  ;;  %2645 = vmatpush.msra.mxu1 %v1832_v32  ;;  %v1189_v36 = vld [vmem:[#allocation6 + $0x10b8] sm:$0xff]  ;;  %v1063_v32 = vld [vmem:[#allocation6 + $0xcc8] sm:$0xff] }
 0x149   :  { %2596 = vmatpush.msra.mxu2 %v1510_v42  ;;  %2618 = vmatpush.msra.mxu3 %v1706_v37  ;;  %v867_v42 = vld [vmem:[#allocation6 + $0x6a8] sm:$0xff]  ;;  %v2000_v37 = vld [vmem:[#allocation6 + $0x2a10] sm:$0xff] }
 0x14a   :  { %2655 = vmatpush.msrb.mxu0 %v2196_v38  ;;  %2646 = vmatpush.msra.mxu1 %v1818_v39  ;;  %v1175_v38 = vld [vmem:[#allocation6 + $0x1048] sm:$0xff]  ;;  %v853_v39 = vld [vmem:[#allocation6 + $0x638] sm:$0xff] }
 0x14b   :  { %2597 = vmatpush.msra.mxu2 %v1496_v43  ;;  %2619 = vmatpush.msra.mxu3 %v1692_v44  ;;  %v1049_v43 = vld [vmem:[#allocation6 + $0xc58] sm:$0xff]  ;;  %v1539_v44 = vld [vmem:[#allocation6 + $0x1ba8] sm:$0xff] }
 0x14c   :  { %2656 = vmatpush.msrb.mxu0 %v2182_v45  ;;  %2647 = vmatpush.msra.mxu1 %v1804_v46  ;;  %v1161_v45 = vld [vmem:[#allocation6 + $0xfd8] sm:$0xff]  ;;  %v839_v46 = vld [vmem:[#allocation6 + $0x5c8] sm:$0xff] }
 0x14d   :  { %2598 = vmatpush.msra.mxu2 %v1482_v47  ;;  %2620 = vmatpush.msra.mxu3 %v1678_v48  ;;  %v1035_v47 = vld [vmem:[#allocation6 + $0xbe8] sm:$0xff]  ;;  %v1525_v48 = vld [vmem:[#allocation6 + $0x1b38] sm:$0xff] }
 0x14e   :  { %2657 = vmatpush.msrb.mxu0 %v2168_v49  ;;  %2648 = vmatpush.msra.mxu1 %v1790_v50  ;;  %v1147_v49 = vld [vmem:[#allocation6 + $0xf68] sm:$0xff]  ;;  %v825_v50 = vld [vmem:[#allocation6 + $0x558] sm:$0xff] }
 0x14f   :  { %2599 = vmatpush.msra.mxu2 %v1468_v51  ;;  %2621 = vmatpush.msra.mxu3 %v1664_v52  ;;  %v1021_v51 = vld [vmem:[#allocation6 + $0xb78] sm:$0xff]  ;;  %v1511_v52 = vld [vmem:[#allocation6 + $0x1ac8] sm:$0xff] }
 0x150   :  { %2658 = vmatpush.msrb.mxu0 %v2154_v53  ;;  %2649 = vmatpush.msra.mxu1 %v1776_v54  ;;  %v1133_v53 = vld [vmem:[#allocation6 + $0xef8] sm:$0xff]  ;;  %v811_v54 = vld [vmem:[#allocation6 + $0x4e8] sm:$0xff] }
 0x151   :  { %2600 = vmatpush.msra.mxu2 %v1454_v55  ;;  %2622 = vmatpush.msra.mxu3 %v1650_v56  ;;  %v1007_v55 = vld [vmem:[#allocation6 + $0xb08] sm:$0xff]  ;;  %v1497_v56 = vld [vmem:[#allocation6 + $0x1a58] sm:$0xff] }
 0x152   :  { %2650 = vmatmul.f32.vlgmr.msra.gmra.mxu1 %v5181_v20  ;;  %2659 = vmatpush.msrb.mxu0 %v2140_v57  ;;  %v1119_v57 = vld [vmem:[#allocation6 + $0xe88] sm:$0xff] }
 0x153   :  { %2714 = vmatpush.msrb.mxu1 %v1315_v58  ;;  %2601 = vmatpush.msra.mxu2 %v1440_v59  ;;  %v797_v58 = vld [vmem:[#allocation6 + $0x478] sm:$0xff] }
 0x154   :  { %2623 = vmatpush.msra.mxu3 %v1636_v60  ;;  %2660 = vmatpush.msrb.mxu0 %v2126_v62  ;;  %v993_v59 = vld [vmem:[#allocation6 + $0xa98] sm:$0xff]  ;;  %v1483_v60 = vld [vmem:[#allocation6 + $0x19e8] sm:$0xff] }
 0x155   :  { %2715 = vmatpush.msrb.mxu1 %v1301_v63  ;;  %2602 = vmatpush.msra.mxu2 %v1426_v0  ;;  %v1105_v62 = vld [vmem:[#allocation6 + $0xe18] sm:$0xff]  ;;  %v783_v63 = vld [vmem:[#allocation6 + $0x408] sm:$0xff] }
 0x156   :  { %2624 = vmatpush.msra.mxu3 %v1622_v1  ;;  %2661 = vmatpush.msrb.mxu0 %v2112_v2  ;;  %v979_v0 = vld [vmem:[#allocation6 + $0xa28] sm:$0xff]  ;;  %v1469_v1 = vld [vmem:[#allocation6 + $0x1978] sm:$0xff] }
 0x157   :  { %2716 = vmatpush.msrb.mxu1 %v1287_v3  ;;  %2603 = vmatpush.msra.mxu2 %v1412_v4  ;;  %v2211_v2 = vld [vmem:[#allocation6 + $0x30a8] sm:$0xff]  ;;  %v769_v3 = vld [vmem:[#allocation6 + $0x398] sm:$0xff] }
 0x158   :  { %2625 = vmatpush.msra.mxu3 %v1608_v5  ;;  %2662 = vmatpush.msrb.mxu0 %v2098_v6  ;;  %v965_v4 = vld [vmem:[#allocation6 + $0x9b8] sm:$0xff]  ;;  %v1455_v5 = vld [vmem:[#allocation6 + $0x1908] sm:$0xff] }
 0x159   :  { %2717 = vmatpush.msrb.mxu1 %v1273_v7  ;;  %2604 = vmatpush.msra.mxu2 %v1398_v8  ;;  %v2197_v6 = vld [vmem:[#allocation6 + $0x3038] sm:$0xff]  ;;  %v755_v7 = vld [vmem:[#allocation6 + $0x328] sm:$0xff] }
 0x15a   :  { %2626 = vmatpush.msra.mxu3 %v1594_v9  ;;  %2663 = vmatpush.msrb.mxu0 %v2084_v10  ;;  %v951_v8 = vld [vmem:[#allocation6 + $0x948] sm:$0xff]  ;;  %v1441_v9 = vld [vmem:[#allocation6 + $0x1898] sm:$0xff] }
 0x15b   :  { %2718 = vmatpush.msrb.mxu1 %v1259_v12  ;;  %2605 = vmatpush.msra.mxu2 %v1384_v13  ;;  %v2183_v10 = vld [vmem:[#allocation6 + $0x2fc8] sm:$0xff]  ;;  %v741_v12 = vld [vmem:[#allocation6 + $0x2b8] sm:$0xff] }
 0x15c   :  { %2627 = vmatpush.msra.mxu3 %v1580_v14  ;;  %2664 = vmatpush.msrb.mxu0 %v2070_v15  ;;  %v937_v13 = vld [vmem:[#allocation6 + $0x8d8] sm:$0xff]  ;;  %v1427_v14 = vld [vmem:[#allocation6 + $0x1828] sm:$0xff] }
 0x15d   :  { %2719 = vmatpush.msrb.mxu1 %v1245_v61  ;;  %2606 = vmatpush.msra.mxu2 %v1370_v17  ;;  %v2169_v15 = vld [vmem:[#allocation6 + $0x2f58] sm:$0xff]  ;;  %v727_v61 = vld [vmem:[#allocation6 + $0x248] sm:$0xff] }
 0x15e   :  { %2628 = vmatpush.msra.mxu3 %v1566_v18  ;;  %2665 = vmatpush.msrb.mxu0 %v2056_v19  ;;  %v923_v17 = vld [vmem:[#allocation6 + $0x868] sm:$0xff]  ;;  %v1413_v18 = vld [vmem:[#allocation6 + $0x17b8] sm:$0xff] }
 0x15f   :  { %2720 = vmatpush.msrb.mxu1 %v1231_v21  ;;  %2607 = vmatpush.msra.mxu2 %v1356_v23  ;;  %v2155_v19 = vld [vmem:[#allocation6 + $0x2ee8] sm:$0xff]  ;;  %v713_v21 = vld [vmem:[#allocation6 + $0x1d8] sm:$0xff] }
 0x160   :  { %2629 = vmatpush.msra.mxu3 %v1552_v24  ;;  %2666 = vmatpush.msrb.mxu0 %v2042_v25  ;;  %v909_v23 = vld [vmem:[#allocation6 + $0x7f8] sm:$0xff]  ;;  %v1399_v24 = vld [vmem:[#allocation6 + $0x1748] sm:$0xff] }
 0x161   :  { %2721 = vmatpush.msrb.mxu1 %v1217_v26  ;;  %2630 = vmatmul.f32.vlgmr.msra.gmra.mxu3 %v5171_v28  ;;  %v2141_v25 = vld [vmem:[#allocation6 + $0x2e78] sm:$0xff]  ;;  %v699_v26 = vld [vmem:[#allocation6 + $0x168] sm:$0xff] }
 0x162   :  { %2694 = vmatpush.msrb.mxu3 %v1091_v27  ;;  %2608 = vmatpush.msra.mxu2 %v1342_v29  ;;  %v895_v27 = vld [vmem:[#allocation6 + $0x788] sm:$0xff]  ;;  %v1385_v29 = vld [vmem:[#allocation6 + $0x16d8] sm:$0xff] }
 0x163   :  { %2667 = vmatpush.msrb.mxu0 %v2028_v30  ;;  %2722 = vmatpush.msrb.mxu1 %v1203_v31  ;;  %v2127_v30 = vld [vmem:[#allocation6 + $0x2e08] sm:$0xff]  ;;  %v685_v31 = vld [vmem:[#allocation6 + $0xf8] sm:$0xff] }
 0x164   :  { %2695 = vmatpush.msrb.mxu3 %v1077_v33  ;;  %2609 = vmatpush.msra.mxu2 %v1328_v34  ;;  %v881_v33 = vld [vmem:[#allocation6 + $0x718] sm:$0xff]  ;;  %v1371_v34 = vld [vmem:[#allocation6 + $0x1668] sm:$0xff] }
 0x165   :  { %2668 = vmatpush.msrb.mxu0 %v2014_v35  ;;  %2723 = vmatpush.msrb.mxu1 %v1189_v36  ;;  %v2113_v35 = vld [vmem:[#allocation6 + $0x2d98] sm:$0xff]  ;;  %v1987_v36 = vld [vmem:[#allocation6 + $0x29a8] sm:$0xff] }
 0x166   :  { %2610 = vmatmul.f32.vlgmr.msra.gmra.mxu2 %v5165_v41  ;;  %2696 = vmatpush.msrb.mxu3 %v1063_v32  ;;  %v671_v32 = vld [vmem:[#allocation6 + $0x88] sm:$0xff] }
 0x167   :  { %2674 = vmatpush.msrb.mxu2 %v867_v42  ;;  %2669 = vmatpush.msrb.mxu0 %v2000_v37  ;;  %v1357_v42 = vld [vmem:[#allocation6 + $0x15f8] sm:$0xff]  ;;  %v2099_v37 = vld [vmem:[#allocation6 + $0x2d28] sm:$0xff] }
 0x168   :  { %2724 = vmatpush.msrb.mxu1 %v1175_v38  ;;  %2670 = vmatmul.f32.vlgmr.msrb.gmra.mxu0 %v5178_v11  ;;  %v1973_v38 = vld [vmem:[#allocation6 + $0x2938] sm:$0xff] }
 0x169   :  { %2675 = vmatpush.msrb.mxu2 %v853_v39  ;;  %2697 = vmatpush.msrb.mxu3 %v1049_v43  ;;  %v657_v39 = vld [vmem:[#allocation6 + $0x18] sm:$0xff]  ;;  %v1343_v43 = vld [vmem:[#allocation6 + $0x1588] sm:$0xff] }
 0x16a   :  { %2734 = vmatpush.msra.mxu0 %v1539_v44  ;;  %2725 = vmatpush.msrb.mxu1 %v1161_v45  ;;  %v2085_v44 = vld [vmem:[#allocation6 + $0x2cb8] sm:$0xff]  ;;  %v1959_v45 = vld [vmem:[#allocation6 + $0x28c8] sm:$0xff] }
 0x16b   :  { %2676 = vmatpush.msrb.mxu2 %v839_v46  ;;  %2698 = vmatpush.msrb.mxu3 %v1035_v47  ;;  %v1763_v46 = vld [vmem:[#allocation6 + $0x22a8] sm:$0xff]  ;;  %v1329_v47 = vld [vmem:[#allocation6 + $0x1518] sm:$0xff] }
 0x16c   :  { %2735 = vmatpush.msra.mxu0 %v1525_v48  ;;  %2726 = vmatpush.msrb.mxu1 %v1147_v49  ;;  %v2071_v48 = vld [vmem:[#allocation6 + $0x2c48] sm:$0xff]  ;;  %v1749_v49 = vld [vmem:[#allocation6 + $0x2238] sm:$0xff] }
 0x16d   :  { %2677 = vmatpush.msrb.mxu2 %v825_v50  ;;  %2699 = vmatpush.msrb.mxu3 %v1021_v51  ;;  %v1945_v50 = vld [vmem:[#allocation6 + $0x2858] sm:$0xff]  ;;  %v868_v51 = vld [vmem:[#allocation6 + $0x6b0] sm:$0xff] }
 0x16e   :  { %2736 = vmatpush.msra.mxu0 %v1511_v52  ;;  %2727 = vmatpush.msrb.mxu1 %v1133_v53  ;;  %v2057_v52 = vld [vmem:[#allocation6 + $0x2bd8] sm:$0xff]  ;;  %v1735_v53 = vld [vmem:[#allocation6 + $0x21c8] sm:$0xff] }
 0x16f   :  { %2678 = vmatpush.msrb.mxu2 %v811_v54  ;;  %2700 = vmatpush.msrb.mxu3 %v1007_v55  ;;  %v1931_v54 = vld [vmem:[#allocation6 + $0x27e8] sm:$0xff]  ;;  %v854_v55 = vld [vmem:[#allocation6 + $0x640] sm:$0xff] }
 0x170   :  { %2737 = vmatpush.msra.mxu0 %v1497_v56  ;;  %2728 = vmatpush.msrb.mxu1 %v1119_v57  ;;  %v2043_v56 = vld [vmem:[#allocation6 + $0x2b68] sm:$0xff]  ;;  %v1721_v57 = vld [vmem:[#allocation6 + $0x2158] sm:$0xff] }
 0x171   :  { %2679 = vmatpush.msrb.mxu2 %v797_v58  ;;  %2701 = vmatpush.msrb.mxu3 %v993_v59  ;;  %v1917_v58 = vld [vmem:[#allocation6 + $0x2778] sm:$0xff]  ;;  %v840_v59 = vld [vmem:[#allocation6 + $0x5d0] sm:$0xff] }
 0x172   :  { %2738 = vmatpush.msra.mxu0 %v1483_v60  ;;  %2729 = vmatpush.msrb.mxu1 %v1105_v62  ;;  %v2029_v60 = vld [vmem:[#allocation6 + $0x2af8] sm:$0xff]  ;;  %v1707_v62 = vld [vmem:[#allocation6 + $0x20e8] sm:$0xff] }
 0x173   :  { %2680 = vmatpush.msrb.mxu2 %v783_v63  ;;  %2702 = vmatpush.msrb.mxu3 %v979_v0  ;;  %v1903_v63 = vld [vmem:[#allocation6 + $0x2708] sm:$0xff]  ;;  %v826_v0 = vld [vmem:[#allocation6 + $0x560] sm:$0xff] }
 0x174   :  { %2730 = vmatmul.f32.vlgmr.msrb.gmra.mxu1 %v5163_v40  ;;  %2739 = vmatpush.msra.mxu0 %v1469_v1  ;;  %v2015_v1 = vld [vmem:[#allocation6 + $0x2a88] sm:$0xff] }
 0x175   :  { %2794 = vmatpush.msra.mxu1 %v2211_v2  ;;  %2681 = vmatpush.msrb.mxu2 %v769_v3  ;;  %v1693_v2 = vld [vmem:[#allocation6 + $0x2078] sm:$0xff] }
 0x176   :  { %2703 = vmatpush.msrb.mxu3 %v965_v4  ;;  %2740 = vmatpush.msra.mxu0 %v1455_v5  ;;  %v1889_v3 = vld [vmem:[#allocation6 + $0x2698] sm:$0xff]  ;;  %v812_v4 = vld [vmem:[#allocation6 + $0x4f0] sm:$0xff] }
 0x177   :  { %2795 = vmatpush.msra.mxu1 %v2197_v6  ;;  %2682 = vmatpush.msrb.mxu2 %v755_v7  ;;  %v2001_v5 = vld [vmem:[#allocation6 + $0x2a18] sm:$0xff]  ;;  %v1679_v6 = vld [vmem:[#allocation6 + $0x2008] sm:$0xff] }
 0x178   :  { %2704 = vmatpush.msrb.mxu3 %v951_v8  ;;  %2741 = vmatpush.msra.mxu0 %v1441_v9  ;;  %v1875_v7 = vld [vmem:[#allocation6 + $0x2628] sm:$0xff]  ;;  %v798_v8 = vld [vmem:[#allocation6 + $0x480] sm:$0xff]  ;;  %v1540_v9 = vld [vmem:[#allocation6 + $0x1bb0] sm:$0xff] }
 0x179   :  { %2796 = vmatpush.msra.mxu1 %v2183_v10  ;;  %2683 = vmatpush.msrb.mxu2 %v741_v12  ;;  %v1665_v10 = vld [vmem:[#allocation6 + $0x1f98] sm:$0xff] }
 0x17a   :  { %2705 = vmatpush.msrb.mxu3 %v937_v13  ;;  %2742 = vmatpush.msra.mxu0 %v1427_v14  ;;  %v1861_v12 = vld [vmem:[#allocation6 + $0x25b8] sm:$0xff]  ;;  %v784_v13 = vld [vmem:[#allocation6 + $0x410] sm:$0xff]  ;;  %v1526_v14 = vld [vmem:[#allocation6 + $0x1b40] sm:$0xff] }
 0x17b   :  { %2797 = vmatpush.msra.mxu1 %v2169_v15  ;;  %2684 = vmatpush.msrb.mxu2 %v727_v61  ;;  %v1651_v15 = vld [vmem:[#allocation6 + $0x1f28] sm:$0xff] }
 0x17c   :  { %2706 = vmatpush.msrb.mxu3 %v923_v17  ;;  %2743 = vmatpush.msra.mxu0 %v1413_v18  ;;  %v1847_v61 = vld [vmem:[#allocation6 + $0x2548] sm:$0xff]  ;;  %v770_v17 = vld [vmem:[#allocation6 + $0x3a0] sm:$0xff]  ;;  %v1512_v18 = vld [vmem:[#allocation6 + $0x1ad0] sm:$0xff] }
 0x17d   :  { %2798 = vmatpush.msra.mxu1 %v2155_v19  ;;  %2685 = vmatpush.msrb.mxu2 %v713_v21  ;;  %v1637_v19 = vld [vmem:[#allocation6 + $0x1eb8] sm:$0xff] }
 0x17e   :  { %2707 = vmatpush.msrb.mxu3 %v909_v23  ;;  %2744 = vmatpush.msra.mxu0 %v1399_v24  ;;  %v1833_v21 = vld [vmem:[#allocation6 + $0x24d8] sm:$0xff]  ;;  %v756_v23 = vld [vmem:[#allocation6 + $0x330] sm:$0xff]  ;;  %v1498_v24 = vld [vmem:[#allocation6 + $0x1a60] sm:$0xff] }
 0x17f   :  { %2799 = vmatpush.msra.mxu1 %v2141_v25  ;;  %2686 = vmatpush.msrb.mxu2 %v699_v26  ;;  %v1623_v25 = vld [vmem:[#allocation6 + $0x1e48] sm:$0xff] }
 0x180   :  { %2708 = vmatpush.msrb.mxu3 %v895_v27  ;;  %2745 = vmatpush.msra.mxu0 %v1385_v29  ;;  %v1819_v26 = vld [vmem:[#allocation6 + $0x2468] sm:$0xff]  ;;  %v742_v27 = vld [vmem:[#allocation6 + $0x2c0] sm:$0xff]  ;;  %v1484_v29 = vld [vmem:[#allocation6 + $0x19f0] sm:$0xff] }
 0x181   :  { %2800 = vmatpush.msra.mxu1 %v2127_v30  ;;  %2687 = vmatpush.msrb.mxu2 %v685_v31  ;;  %v1609_v30 = vld [vmem:[#allocation6 + $0x1dd8] sm:$0xff] }
 0x182   :  { %2709 = vmatpush.msrb.mxu3 %v881_v33  ;;  %2746 = vmatpush.msra.mxu0 %v1371_v34  ;;  %v1805_v31 = vld [vmem:[#allocation6 + $0x23f8] sm:$0xff]  ;;  %v728_v33 = vld [vmem:[#allocation6 + $0x250] sm:$0xff]  ;;  %v1470_v34 = vld [vmem:[#allocation6 + $0x1980] sm:$0xff] }
 0x183   :  { %2801 = vmatpush.msra.mxu1 %v2113_v35  ;;  %2710 = vmatmul.f32.vlgmr.msrb.gmra.mxu3 %v5158_v22  ;;  %v1595_v35 = vld [vmem:[#allocation6 + $0x1d68] sm:$0xff] }
 0x184   :  { %2774 = vmatpush.msra.mxu3 %v1987_v36  ;;  %2688 = vmatpush.msrb.mxu2 %v671_v32  ;;  %v1791_v36 = vld [vmem:[#allocation6 + $0x2388] sm:$0xff]  ;;  %v714_v32 = vld [vmem:[#allocation6 + $0x1e0] sm:$0xff] }
 0x185   :  { %2747 = vmatpush.msra.mxu0 %v1357_v42  ;;  %2802 = vmatpush.msra.mxu1 %v2099_v37  ;;  %v1456_v42 = vld [vmem:[#allocation6 + $0x1910] sm:$0xff]  ;;  %v1581_v37 = vld [vmem:[#allocation6 + $0x1cf8] sm:$0xff] }
 0x186   :  { %2775 = vmatpush.msra.mxu3 %v1973_v38  ;;  %2689 = vmatpush.msrb.mxu2 %v657_v39  ;;  %v1777_v38 = vld [vmem:[#allocation6 + $0x2318] sm:$0xff]  ;;  %v700_v39 = vld [vmem:[#allocation6 + $0x170] sm:$0xff] }
 0x187   :  { %2748 = vmatpush.msra.mxu0 %v1343_v43  ;;  %2803 = vmatpush.msra.mxu1 %v2085_v44  ;;  %v1442_v43 = vld [vmem:[#allocation6 + $0x18a0] sm:$0xff]  ;;  %v1316_v44 = vld [vmem:[#allocation6 + $0x14b0] sm:$0xff] }
 0x188   :  { %2690 = vmatmul.f32.vlgmr.msrb.gmra.mxu2 %v5155_v16  ;;  %2776 = vmatpush.msra.mxu3 %v1959_v45  ;;  %v1567_v45 = vld [vmem:[#allocation6 + $0x1c88] sm:$0xff] }
 0x189   :  { %2754 = vmatpush.msra.mxu2 %v1763_v46  ;;  %2749 = vmatpush.msra.mxu0 %v1329_v47  ;;  %v686_v46 = vld [vmem:[#allocation6 + $0x100] sm:$0xff]  ;;  %v1428_v47 = vld [vmem:[#allocation6 + $0x1830] sm:$0xff] }
 0x18a   :  { %2804 = vmatpush.msra.mxu1 %v2071_v48  ;;  %2750 = vmatmul.f32.vlgmr.msra.gmra.mxu0 %v5165_v41  ;;  %v1302_v48 = vld [vmem:[#allocation6 + $0x1440] sm:$0xff] }
 0x18b   :  { %2755 = vmatpush.msra.mxu2 %v1749_v49  ;;  %2777 = vmatpush.msra.mxu3 %v1945_v50  ;;  %v1553_v49 = vld [vmem:[#allocation6 + $0x1c18] sm:$0xff]  ;;  %v672_v50 = vld [vmem:[#allocation6 + $0x90] sm:$0xff] }
 0x18c   :  { %2814 = vmatpush.msrb.mxu0 %v868_v51  ;;  %2805 = vmatpush.msra.mxu1 %v2057_v52  ;;  %v1414_v51 = vld [vmem:[#allocation6 + $0x17c0] sm:$0xff]  ;;  %v1288_v52 = vld [vmem:[#allocation6 + $0x13d0] sm:$0xff] }
 0x18d   :  { %2756 = vmatpush.msra.mxu2 %v1735_v53  ;;  %2778 = vmatpush.msra.mxu3 %v1931_v54  ;;  %v1092_v53 = vld [vmem:[#allocation6 + $0xdb0] sm:$0xff]  ;;  %v658_v54 = vld [vmem:[#allocation6 + $0x20] sm:$0xff] }
 0x18e   :  { %2815 = vmatpush.msrb.mxu0 %v854_v55  ;;  %2806 = vmatpush.msra.mxu1 %v2043_v56  ;;  %v1400_v55 = vld [vmem:[#allocation6 + $0x1750] sm:$0xff]  ;;  %v1078_v56 = vld [vmem:[#allocation6 + $0xd40] sm:$0xff] }
 0x18f   :  { %2757 = vmatpush.msra.mxu2 %v1721_v57  ;;  %2779 = vmatpush.msra.mxu3 %v1917_v58  ;;  %v1274_v57 = vld [vmem:[#allocation6 + $0x1360] sm:$0xff]  ;;  %v1764_v58 = vld [vmem:[#allocation6 + $0x22b0] sm:$0xff] }
 0x190   :  { %2816 = vmatpush.msrb.mxu0 %v840_v59  ;;  %2807 = vmatpush.msra.mxu1 %v2029_v60  ;;  %v1386_v59 = vld [vmem:[#allocation6 + $0x16e0] sm:$0xff]  ;;  %v1064_v60 = vld [vmem:[#allocation6 + $0xcd0] sm:$0xff] }
 0x191   :  { %2758 = vmatpush.msra.mxu2 %v1707_v62  ;;  %2780 = vmatpush.msra.mxu3 %v1903_v63  ;;  %v1260_v62 = vld [vmem:[#allocation6 + $0x12f0] sm:$0xff]  ;;  %v1750_v63 = vld [vmem:[#allocation6 + $0x2240] sm:$0xff] }
 0x192   :  { %2817 = vmatpush.msrb.mxu0 %v826_v0  ;;  %2808 = vmatpush.msra.mxu1 %v2015_v1  ;;  %v1372_v0 = vld [vmem:[#allocation6 + $0x1670] sm:$0xff]  ;;  %v1050_v1 = vld [vmem:[#allocation6 + $0xc60] sm:$0xff] }
 0x193   :  { %2759 = vmatpush.msra.mxu2 %v1693_v2  ;;  %2781 = vmatpush.msra.mxu3 %v1889_v3  ;;  %v1246_v2 = vld [vmem:[#allocation6 + $0x1280] sm:$0xff]  ;;  %v1736_v3 = vld [vmem:[#allocation6 + $0x21d0] sm:$0xff] }
 0x194   :  { %2818 = vmatpush.msrb.mxu0 %v812_v4  ;;  %2809 = vmatpush.msra.mxu1 %v2001_v5  ;;  %v1358_v4 = vld [vmem:[#allocation6 + $0x1600] sm:$0xff]  ;;  %v1036_v5 = vld [vmem:[#allocation6 + $0xbf0] sm:$0xff] }
 0x195   :  { %2760 = vmatpush.msra.mxu2 %v1679_v6  ;;  %2782 = vmatpush.msra.mxu3 %v1875_v7  ;;  %v1232_v6 = vld [vmem:[#allocation6 + $0x1210] sm:$0xff]  ;;  %v1722_v7 = vld [vmem:[#allocation6 + $0x2160] sm:$0xff] }
 0x196   :  { %2810 = vmatmul.f32.vlgmr.msra.gmra.mxu1 %v5178_v11  ;;  %2819 = vmatpush.msrb.mxu0 %v798_v8  ;;  %v1344_v8 = vld [vmem:[#allocation6 + $0x1590] sm:$0xff] }
 0x197   :  { %2874 = vmatpush.msrb.mxu1 %v1540_v9  ;;  %2761 = vmatpush.msra.mxu2 %v1665_v10  ;;  %v1022_v9 = vld [vmem:[#allocation6 + $0xb80] sm:$0xff] }
 0x198   :  { %2783 = vmatpush.msra.mxu3 %v1861_v12  ;;  %2820 = vmatpush.msrb.mxu0 %v784_v13  ;;  %v1218_v10 = vld [vmem:[#allocation6 + $0x11a0] sm:$0xff]  ;;  %v1708_v12 = vld [vmem:[#allocation6 + $0x20f0] sm:$0xff] }
 0x199   :  { %2875 = vmatpush.msrb.mxu1 %v1526_v14  ;;  %2762 = vmatpush.msra.mxu2 %v1651_v15  ;;  %v1330_v13 = vld [vmem:[#allocation6 + $0x1520] sm:$0xff]  ;;  %v1008_v14 = vld [vmem:[#allocation6 + $0xb10] sm:$0xff] }
 0x19a   :  { %2784 = vmatpush.msra.mxu3 %v1847_v61  ;;  %2821 = vmatpush.msrb.mxu0 %v770_v17  ;;  %v1204_v15 = vld [vmem:[#allocation6 + $0x1130] sm:$0xff]  ;;  %v1694_v61 = vld [vmem:[#allocation6 + $0x2080] sm:$0xff]  ;;  %v869_v17 = vld [vmem:[#allocation6 + $0x6b8] sm:$0xff] }
 0x19b   :  { %2876 = vmatpush.msrb.mxu1 %v1512_v18  ;;  %2763 = vmatpush.msra.mxu2 %v1637_v19  ;;  %v994_v18 = vld [vmem:[#allocation6 + $0xaa0] sm:$0xff] }
 0x19c   :  { %2785 = vmatpush.msra.mxu3 %v1833_v21  ;;  %2822 = vmatpush.msrb.mxu0 %v756_v23  ;;  %v1190_v19 = vld [vmem:[#allocation6 + $0x10c0] sm:$0xff]  ;;  %v1680_v21 = vld [vmem:[#allocation6 + $0x2010] sm:$0xff]  ;;  %v855_v23 = vld [vmem:[#allocation6 + $0x648] sm:$0xff] }
 0x19d   :  { %2877 = vmatpush.msrb.mxu1 %v1498_v24  ;;  %2764 = vmatpush.msra.mxu2 %v1623_v25  ;;  %v980_v24 = vld [vmem:[#allocation6 + $0xa30] sm:$0xff] }
 0x19e   :  { %2786 = vmatpush.msra.mxu3 %v1819_v26  ;;  %2823 = vmatpush.msrb.mxu0 %v742_v27  ;;  %v1176_v25 = vld [vmem:[#allocation6 + $0x1050] sm:$0xff]  ;;  %v1666_v26 = vld [vmem:[#allocation6 + $0x1fa0] sm:$0xff]  ;;  %v841_v27 = vld [vmem:[#allocation6 + $0x5d8] sm:$0xff] }
 0x19f   :  { %2878 = vmatpush.msrb.mxu1 %v1484_v29  ;;  %2765 = vmatpush.msra.mxu2 %v1609_v30  ;;  %v966_v29 = vld [vmem:[#allocation6 + $0x9c0] sm:$0xff] }
 0x1a0   :  { %2787 = vmatpush.msra.mxu3 %v1805_v31  ;;  %2824 = vmatpush.msrb.mxu0 %v728_v33  ;;  %v1162_v30 = vld [vmem:[#allocation6 + $0xfe0] sm:$0xff]  ;;  %v1652_v31 = vld [vmem:[#allocation6 + $0x1f30] sm:$0xff]  ;;  %v827_v33 = vld [vmem:[#allocation6 + $0x568] sm:$0xff] }
 0x1a1   :  { %2879 = vmatpush.msrb.mxu1 %v1470_v34  ;;  %2766 = vmatpush.msra.mxu2 %v1595_v35  ;;  %v952_v34 = vld [vmem:[#allocation6 + $0x950] sm:$0xff] }
 0x1a2   :  { %2788 = vmatpush.msra.mxu3 %v1791_v36  ;;  %2825 = vmatpush.msrb.mxu0 %v714_v32  ;;  %v1148_v35 = vld [vmem:[#allocation6 + $0xf70] sm:$0xff]  ;;  %v1638_v36 = vld [vmem:[#allocation6 + $0x1ec0] sm:$0xff]  ;;  %v813_v32 = vld [vmem:[#allocation6 + $0x4f8] sm:$0xff] }
 0x1a3   :  { %2880 = vmatpush.msrb.mxu1 %v1456_v42  ;;  %2767 = vmatpush.msra.mxu2 %v1581_v37  ;;  %v938_v42 = vld [vmem:[#allocation6 + $0x8e0] sm:$0xff] }
 0x1a4   :  { %2789 = vmatpush.msra.mxu3 %v1777_v38  ;;  %2826 = vmatpush.msrb.mxu0 %v700_v39  ;;  %v1134_v37 = vld [vmem:[#allocation6 + $0xf00] sm:$0xff]  ;;  %v1624_v38 = vld [vmem:[#allocation6 + $0x1e50] sm:$0xff]  ;;  %v799_v39 = vld [vmem:[#allocation6 + $0x488] sm:$0xff] }
 0x1a5   :  { %2881 = vmatpush.msrb.mxu1 %v1442_v43  ;;  %2790 = vmatmul.f32.vlgmr.msra.gmra.mxu3 %v5181_v20  ;;  %v924_v43 = vld [vmem:[#allocation6 + $0x870] sm:$0xff] }
 0x1a6   :  { %2854 = vmatpush.msrb.mxu3 %v1316_v44  ;;  %2768 = vmatpush.msra.mxu2 %v1567_v45  ;;  %v1120_v44 = vld [vmem:[#allocation6 + $0xe90] sm:$0xff]  ;;  %v1610_v45 = vld [vmem:[#allocation6 + $0x1de0] sm:$0xff] }
 0x1a7   :  { %2827 = vmatpush.msrb.mxu0 %v686_v46  ;;  %2882 = vmatpush.msrb.mxu1 %v1428_v47  ;;  %v785_v46 = vld [vmem:[#allocation6 + $0x418] sm:$0xff]  ;;  %v910_v47 = vld [vmem:[#allocation6 + $0x800] sm:$0xff] }
 0x1a8   :  { %2855 = vmatpush.msrb.mxu3 %v1302_v48  ;;  %2769 = vmatpush.msra.mxu2 %v1553_v49  ;;  %v1106_v48 = vld [vmem:[#allocation6 + $0xe20] sm:$0xff]  ;;  %v1596_v49 = vld [vmem:[#allocation6 + $0x1d70] sm:$0xff] }
 0x1a9   :  { %2828 = vmatpush.msrb.mxu0 %v672_v50  ;;  %2883 = vmatpush.msrb.mxu1 %v1414_v51  ;;  %v771_v50 = vld [vmem:[#allocation6 + $0x3a8] sm:$0xff]  ;;  %v2212_v51 = vld [vmem:[#allocation6 + $0x30b0] sm:$0xff] }
 0x1aa   :  { %2770 = vmatmul.f32.vlgmr.msra.gmra.mxu2 %v5171_v28  ;;  %2856 = vmatpush.msrb.mxu3 %v1288_v52  ;;  %v896_v52 = vld [vmem:[#allocation6 + $0x790] sm:$0xff] }
 0x1ab   :  { %2834 = vmatpush.msrb.mxu2 %v1092_v53  ;;  %2829 = vmatpush.msrb.mxu0 %v658_v54  ;;  %v1582_v53 = vld [vmem:[#allocation6 + $0x1d00] sm:$0xff]  ;;  %v757_v54 = vld [vmem:[#allocation6 + $0x338] sm:$0xff] }
 0x1ac   :  { %2884 = vmatpush.msrb.mxu1 %v1400_v55  ;;  %2830 = vmatmul.f32.vlgmr.msrb.gmra.mxu0 %v5155_v16  ;;  %v2198_v55 = vld [vmem:[#allocation6 + $0x3040] sm:$0xff] }
 0x1ad   :  { %2835 = vmatpush.msrb.mxu2 %v1078_v56  ;;  %2857 = vmatpush.msrb.mxu3 %v1274_v57  ;;  %v882_v56 = vld [vmem:[#allocation6 + $0x720] sm:$0xff]  ;;  %v1568_v57 = vld [vmem:[#allocation6 + $0x1c90] sm:$0xff] }
 0x1ae   :  { %2894 = vmatpush.msra.mxu0 %v1764_v58  ;;  %2885 = vmatpush.msrb.mxu1 %v1386_v59  ;;  %v743_v58 = vld [vmem:[#allocation6 + $0x2c8] sm:$0xff]  ;;  %v2184_v59 = vld [vmem:[#allocation6 + $0x2fd0] sm:$0xff] }
 0x1af   :  { %2836 = vmatpush.msrb.mxu2 %v1064_v60  ;;  %2858 = vmatpush.msrb.mxu3 %v1260_v62  ;;  %v1988_v60 = vld [vmem:[#allocation6 + $0x29b0] sm:$0xff]  ;;  %v1554_v62 = vld [vmem:[#allocation6 + $0x1c20] sm:$0xff] }
 0x1b0   :  { %2895 = vmatpush.msra.mxu0 %v1750_v63  ;;  %2886 = vmatpush.msrb.mxu1 %v1372_v0  ;;  %v729_v63 = vld [vmem:[#allocation6 + $0x258] sm:$0xff]  ;;  %v1974_v0 = vld [vmem:[#allocation6 + $0x2940] sm:$0xff] }
 0x1b1   :  { %2837 = vmatpush.msrb.mxu2 %v1050_v1  ;;  %2859 = vmatpush.msrb.mxu3 %v1246_v2  ;;  %v2170_v1 = vld [vmem:[#allocation6 + $0x2f60] sm:$0xff]  ;;  %v1093_v2 = vld [vmem:[#allocation6 + $0xdb8] sm:$0xff] }
 0x1b2   :  { %2896 = vmatpush.msra.mxu0 %v1736_v3  ;;  %2887 = vmatpush.msrb.mxu1 %v1358_v4  ;;  %v715_v3 = vld [vmem:[#allocation6 + $0x1e8] sm:$0xff]  ;;  %v1960_v4 = vld [vmem:[#allocation6 + $0x28d0] sm:$0xff] }
 0x1b3   :  { %2838 = vmatpush.msrb.mxu2 %v1036_v5  ;;  %2860 = vmatpush.msrb.mxu3 %v1232_v6  ;;  %v2156_v5 = vld [vmem:[#allocation6 + $0x2ef0] sm:$0xff]  ;;  %v1079_v6 = vld [vmem:[#allocation6 + $0xd48] sm:$0xff] }
 0x1b4   :  { %2897 = vmatpush.msra.mxu0 %v1722_v7  ;;  %2888 = vmatpush.msrb.mxu1 %v1344_v8  ;;  %v701_v7 = vld [vmem:[#allocation6 + $0x178] sm:$0xff]  ;;  %v1946_v8 = vld [vmem:[#allocation6 + $0x2860] sm:$0xff] }
 0x1b5   :  { %2839 = vmatpush.msrb.mxu2 %v1022_v9  ;;  %2861 = vmatpush.msrb.mxu3 %v1218_v10  ;;  %v2142_v9 = vld [vmem:[#allocation6 + $0x2e80] sm:$0xff]  ;;  %v1065_v10 = vld [vmem:[#allocation6 + $0xcd8] sm:$0xff] }
 0x1b6   :  { %2898 = vmatpush.msra.mxu0 %v1708_v12  ;;  %2889 = vmatpush.msrb.mxu1 %v1330_v13  ;;  %v687_v12 = vld [vmem:[#allocation6 + $0x108] sm:$0xff]  ;;  %v1932_v13 = vld [vmem:[#allocation6 + $0x27f0] sm:$0xff] }
 0x1b7   :  { %2840 = vmatpush.msrb.mxu2 %v1008_v14  ;;  %2862 = vmatpush.msrb.mxu3 %v1204_v15  ;;  %v2128_v14 = vld [vmem:[#allocation6 + $0x2e10] sm:$0xff]  ;;  %v1051_v15 = vld [vmem:[#allocation6 + $0xc68] sm:$0xff] }
 0x1b8   :  { %2890 = vmatmul.f32.vlgmr.msrb.gmra.mxu1 %v5165_v41  ;;  %2899 = vmatpush.msra.mxu0 %v1694_v61  ;;  %v673_v61 = vld [vmem:[#allocation6 + $0x98] sm:$0xff] }
 0x1b9   :  { %2954 = vmatpush.msra.mxu1 %v869_v17  ;;  %2841 = vmatpush.msrb.mxu2 %v994_v18  ;;  %v1918_v17 = vld [vmem:[#allocation6 + $0x2780] sm:$0xff] }
 0x1ba   :  { %2863 = vmatpush.msrb.mxu3 %v1190_v19  ;;  %2900 = vmatpush.msra.mxu0 %v1680_v21  ;;  %v2114_v18 = vld [vmem:[#allocation6 + $0x2da0] sm:$0xff]  ;;  %v1037_v19 = vld [vmem:[#allocation6 + $0xbf8] sm:$0xff]  ;;  %v659_v21 = vld [vmem:[#allocation6 + $0x28] sm:$0xff] }
 0x1bb   :  { %2955 = vmatpush.msra.mxu1 %v855_v23  ;;  %2842 = vmatpush.msrb.mxu2 %v980_v24  ;;  %v1904_v23 = vld [vmem:[#allocation6 + $0x2710] sm:$0xff] }
 0x1bc   :  { %2864 = vmatpush.msrb.mxu3 %v1176_v25  ;;  %2901 = vmatpush.msra.mxu0 %v1666_v26  ;;  %v2100_v24 = vld [vmem:[#allocation6 + $0x2d30] sm:$0xff]  ;;  %v1023_v25 = vld [vmem:[#allocation6 + $0xb88] sm:$0xff]  ;;  %v1765_v26 = vld [vmem:[#allocation6 + $0x22b8] sm:$0xff] }
 0x1bd   :  { %2956 = vmatpush.msra.mxu1 %v841_v27  ;;  %2843 = vmatpush.msrb.mxu2 %v966_v29  ;;  %v1890_v27 = vld [vmem:[#allocation6 + $0x26a0] sm:$0xff] }
 0x1be   :  { %2865 = vmatpush.msrb.mxu3 %v1162_v30  ;;  %2902 = vmatpush.msra.mxu0 %v1652_v31  ;;  %v2086_v29 = vld [vmem:[#allocation6 + $0x2cc0] sm:$0xff]  ;;  %v1009_v30 = vld [vmem:[#allocation6 + $0xb18] sm:$0xff]  ;;  %v1751_v31 = vld [vmem:[#allocation6 + $0x2248] sm:$0xff] }
 0x1bf   :  { %2957 = vmatpush.msra.mxu1 %v827_v33  ;;  %2844 = vmatpush.msrb.mxu2 %v952_v34  ;;  %v1876_v33 = vld [vmem:[#allocation6 + $0x2630] sm:$0xff] }
 0x1c0   :  { %2866 = vmatpush.msrb.mxu3 %v1148_v35  ;;  %2903 = vmatpush.msra.mxu0 %v1638_v36  ;;  %v2072_v34 = vld [vmem:[#allocation6 + $0x2c50] sm:$0xff]  ;;  %v995_v35 = vld [vmem:[#allocation6 + $0xaa8] sm:$0xff]  ;;  %v1737_v36 = vld [vmem:[#allocation6 + $0x21d8] sm:$0xff] }
 0x1c1   :  { %2958 = vmatpush.msra.mxu1 %v813_v32  ;;  %2845 = vmatpush.msrb.mxu2 %v938_v42  ;;  %v1862_v32 = vld [vmem:[#allocation6 + $0x25c0] sm:$0xff] }
 0x1c2   :  { %2867 = vmatpush.msrb.mxu3 %v1134_v37  ;;  %2904 = vmatpush.msra.mxu0 %v1624_v38  ;;  %v2058_v42 = vld [vmem:[#allocation6 + $0x2be0] sm:$0xff]  ;;  %v981_v37 = vld [vmem:[#allocation6 + $0xa38] sm:$0xff]  ;;  %v1723_v38 = vld [vmem:[#allocation6 + $0x2168] sm:$0xff] }
 0x1c3   :  { %2959 = vmatpush.msra.mxu1 %v799_v39  ;;  %2846 = vmatpush.msrb.mxu2 %v924_v43  ;;  %v1848_v39 = vld [vmem:[#allocation6 + $0x2550] sm:$0xff]  ;;  %v5208_v43 = vpop.f32.mrf.mxu0 }
 0x1c4   :  { %2868 = vmatpush.msrb.mxu3 %v1120_v44  ;;  %2905 = vmatpush.msra.mxu0 %v1610_v45  ;;  %v2044_v44 = vld [vmem:[#allocation6 + $0x2b70] sm:$0xff]  ;;  %v967_v45 = vld [vmem:[#allocation6 + $0x9c8] sm:$0xff] }
 0x1c5   :  { %2960 = vmatpush.msra.mxu1 %v785_v46  ;;  %2847 = vmatpush.msrb.mxu2 %v910_v47  ;;  %v1709_v46 = vld [vmem:[#allocation6 + $0x20f8] sm:$0xff]  ;;  %v1834_v47 = vld [vmem:[#allocation6 + $0x24e0] sm:$0xff] }
 0x1c6   :  { %2869 = vmatpush.msrb.mxu3 %v1106_v48  ;;  %2906 = vmatpush.msra.mxu0 %v1596_v49  ;;  %v5210_v48 = vpop.f32.mrf.mxu2  ;;  %v2030_v49 = vld [vmem:[#allocation6 + $0x2b00] sm:$0xff] }
 0x1c7   :  { %2961 = vmatpush.msra.mxu1 %v771_v50  ;;  %2870 = vmatmul.f32.vlgmr.msrb.gmra.mxu3 %v5163_v40  ;;  %v953_v50 = vld [vmem:[#allocation6 + $0x958] sm:$0xff] }
 0x1c8   :  { %2934 = vmatpush.msra.mxu3 %v2212_v51  ;;  %2848 = vmatpush.msrb.mxu2 %v896_v52  ;;  %v1695_v51 = vld [vmem:[#allocation6 + $0x2088] sm:$0xff]  ;;  %v1820_v52 = vld [vmem:[#allocation6 + $0x2470] sm:$0xff] }
 0x1c9   :  { %2907 = vmatpush.msra.mxu0 %v1582_v53  ;;  %2962 = vmatpush.msra.mxu1 %v757_v54  ;;  %v5212_v53 = vpop.f32.mrf.mxu3  ;;  %v2016_v54 = vld [vmem:[#allocation6 + $0x2a90] sm:$0xff] }
 0x1ca   :  { %2935 = vmatpush.msra.mxu3 %v2198_v55  ;;  %2849 = vmatpush.msrb.mxu2 %v882_v56  ;;  %v939_v55 = vld [vmem:[#allocation6 + $0x8e8] sm:$0xff]  ;;  %v1681_v56 = vld [vmem:[#allocation6 + $0x2018] sm:$0xff] }
 0x1cb   :  { %2908 = vmatpush.msra.mxu0 %v1568_v57  ;;  %2963 = vmatpush.msra.mxu1 %v743_v58  ;;  %v1806_v57 = vld [vmem:[#allocation6 + $0x2400] sm:$0xff]  ;;  %v5214_v58 = vpop.f32.mrf.mxu1 }
 0x1cc   :  { %2850 = vmatmul.f32.vlgmr.msrb.gmra.mxu2 %v5158_v22  ;;  %2936 = vmatpush.msra.mxu3 %v2184_v59  ;;  %v2002_v59 = vld [vmem:[#allocation6 + $0x2a20] sm:$0xff] }
 0x1cd   :  { %2914 = vmatpush.msra.mxu2 %v1988_v60  ;;  %2909 = vmatpush.msra.mxu0 %v1554_v62  ;;  %v925_v60 = vld [vmem:[#allocation6 + $0x878] sm:$0xff]  ;;  %v1667_v62 = vld [vmem:[#allocation6 + $0x1fa8] sm:$0xff] }
 0x1ce   :  { %2964 = vmatpush.msra.mxu1 %v729_v63  ;;  %2910 = vmatmul.f32.vlgmr.msra.gmra.mxu0 %v5171_v28  ;;  %v5216_v63 = vpop.f32.mrf.mxu0 }
 0x1cf   :  { %2915 = vmatpush.msra.mxu2 %v1974_v0  ;;  %2937 = vmatpush.msra.mxu3 %v2170_v1  ;;  %v1541_v0 = vld [vmem:[#allocation6 + $0x1bb8] sm:$0xff]  ;;  %v1792_v1 = vld [vmem:[#allocation6 + $0x2390] sm:$0xff] }
 0x1d0   :  { %2974 = vmatpush.msrb.mxu0 %v1093_v2  ;;  %2965 = vmatpush.msra.mxu1 %v715_v3  ;;  %v911_v2 = vld [vmem:[#allocation6 + $0x808] sm:$0xff]  ;;  %v1653_v3 = vld [vmem:[#allocation6 + $0x1f38] sm:$0xff] }
 0x1d1   :  { %2916 = vmatpush.msra.mxu2 %v1960_v4  ;;  %2938 = vmatpush.msra.mxu3 %v2156_v5  ;;  %v5218_v4 = vpop.f32.mrf.mxu2  ;;  %v1527_v5 = vld [vmem:[#allocation6 + $0x1b48] sm:$0xff] }
 0x1d2   :  { %2975 = vmatpush.msrb.mxu0 %v1079_v6  ;;  %2966 = vmatpush.msra.mxu1 %v701_v7  ;;  %v1778_v6 = vld [vmem:[#allocation6 + $0x2320] sm:$0xff]  ;;  %v897_v7 = vld [vmem:[#allocation6 + $0x798] sm:$0xff] }
 0x1d3   :  { %2917 = vmatpush.msra.mxu2 %v1946_v8  ;;  %2939 = vmatpush.msra.mxu3 %v2142_v9  ;;  %v1639_v8 = vld [vmem:[#allocation6 + $0x1ec8] sm:$0xff]  ;;  %v5221_v9 = vpop.f32.mrf.mxu3 }
 0x1d4   :  { %2976 = vmatpush.msrb.mxu0 %v1065_v10  ;;  %2967 = vmatpush.msra.mxu1 %v687_v12  ;;  %v1513_v10 = vld [vmem:[#allocation6 + $0x1ad8] sm:$0xff] }
 0x1d5   :  { %2918 = vmatpush.msra.mxu2 %v1932_v13  ;;  %2940 = vmatpush.msra.mxu3 %v2128_v14  ;;  %v1317_v12 = vld [vmem:[#allocation6 + $0x14b8] sm:$0xff]  ;;  %v883_v13 = vld [vmem:[#allocation6 + $0x728] sm:$0xff]  ;;  %v5223_v14 = vpop.f32.mrf.mxu1 }
 0x1d6   :  { %2977 = vmatpush.msrb.mxu0 %v1051_v15  ;;  %2968 = vmatpush.msra.mxu1 %v673_v61  ;;  %v1625_v15 = vld [vmem:[#allocation6 + $0x1e58] sm:$0xff]  ;;  %v1303_v61 = vld [vmem:[#allocation6 + $0x1448] sm:$0xff] }
 0x1d7   :  { %2919 = vmatpush.msra.mxu2 %v1918_v17  ;;  %2941 = vmatpush.msra.mxu3 %v2114_v18  ;;  %v1499_v17 = vld [vmem:[#allocation6 + $0x1a68] sm:$0xff]  ;;  %v1989_v18 = vld [vmem:[#allocation6 + $0x29b8] sm:$0xff] }
 0x1d8   :  { %2978 = vmatpush.msrb.mxu0 %v1037_v19  ;;  %2969 = vmatpush.msra.mxu1 %v659_v21  ;;  %v1611_v19 = vld [vmem:[#allocation6 + $0x1de8] sm:$0xff]  ;;  %v1289_v21 = vld [vmem:[#allocation6 + $0x13d8] sm:$0xff] }
 0x1d9   :  { %2920 = vmatpush.msra.mxu2 %v1904_v23  ;;  %2942 = vmatpush.msra.mxu3 %v2100_v24  ;;  %v1485_v23 = vld [vmem:[#allocation6 + $0x19f8] sm:$0xff]  ;;  %v5227_v24 = vpop.f32.mrf.mxu0 }
 0x1da   :  { %2970 = vmatmul.f32.vlgmr.msra.gmra.mxu1 %v5155_v16  ;;  %2979 = vmatpush.msrb.mxu0 %v1023_v25  ;;  %v1975_v25 = vld [vmem:[#allocation6 + $0x2948] sm:$0xff] }
 0x1db   :  { %3034 = vmatpush.msrb.mxu1 %v1765_v26  ;;  %2921 = vmatpush.msra.mxu2 %v1890_v27  ;;  %v1597_v26 = vld [vmem:[#allocation6 + $0x1d78] sm:$0xff]  ;;  %v1275_v27 = vld [vmem:[#allocation6 + $0x1368] sm:$0xff] }
 0x1dc   :  { %2943 = vmatpush.msra.mxu3 %v2086_v29  ;;  %2980 = vmatpush.msrb.mxu0 %v1009_v30  ;;  %v1471_v29 = vld [vmem:[#allocation6 + $0x1988] sm:$0xff]  ;;  %v5229_v30 = vpop.f32.mrf.mxu2 }
 0x1dd   :  { %3035 = vmatpush.msrb.mxu1 %v1751_v31  ;;  %2922 = vmatpush.msra.mxu2 %v1876_v33  ;;  %v1961_v31 = vld [vmem:[#allocation6 + $0x28d8] sm:$0xff]  ;;  %v1583_v33 = vld [vmem:[#allocation6 + $0x1d08] sm:$0xff] }
 0x1de   :  { %2944 = vmatpush.msra.mxu3 %v2072_v34  ;;  %2981 = vmatpush.msrb.mxu0 %v995_v35  ;;  %v1261_v34 = vld [vmem:[#allocation6 + $0x12f8] sm:$0xff] }
 0x1df   :  { %3036 = vmatpush.msrb.mxu1 %v1737_v36  ;;  %2923 = vmatpush.msra.mxu2 %v1862_v32  ;;  %v1457_v35 = vld [vmem:[#allocation6 + $0x1918] sm:$0xff]  ;;  %v5231_v36 = vpop.f32.mrf.mxu1  ;;  %v5233_v32 = vpop.f32.mrf.mxu3 }
 0x1e0   :  { %2945 = vmatpush.msra.mxu3 %v2058_v42  ;;  %2982 = vmatpush.msrb.mxu0 %v981_v37  ;;  %v1947_v42 = vld [vmem:[#allocation6 + $0x2868] sm:$0xff]  ;;  %v1569_v37 = vld [vmem:[#allocation6 + $0x1c98] sm:$0xff] }
 0x1e1   :  { %3037 = vmatpush.msrb.mxu1 %v1723_v38  ;;  %2924 = vmatpush.msra.mxu2 %v1848_v39  ;;  %v1247_v38 = vld [vmem:[#allocation6 + $0x1288] sm:$0xff] }
 0x1e2   :  { %2946 = vmatpush.msra.mxu3 %v2044_v44  ;;  %2983 = vmatpush.msrb.mxu0 %v967_v45  ;;  %v1443_v39 = vld [vmem:[#allocation6 + $0x18a8] sm:$0xff]  ;;  %v1933_v44 = vld [vmem:[#allocation6 + $0x27f8] sm:$0xff] }
 0x1e3   :  { %3038 = vmatpush.msrb.mxu1 %v1709_v46  ;;  %2925 = vmatpush.msra.mxu2 %v1834_v47  ;;  %v1555_v45 = vld [vmem:[#allocation6 + $0x1c28] sm:$0xff]  ;;  %v1233_v46 = vld [vmem:[#allocation6 + $0x1218] sm:$0xff] }
 0x1e4   :  { %2947 = vmatpush.msra.mxu3 %v2030_v49  ;;  %2984 = vmatpush.msrb.mxu0 %v953_v50  ;;  %v1429_v47 = vld [vmem:[#allocation6 + $0x1838] sm:$0xff]  ;;  %v5235_v49 = vpop.f32.mrf.mxu0  ;;  %v1919_v50 = vld [vmem:[#allocation6 + $0x2788] sm:$0xff] }
 0x1e5   :  { %3039 = vmatpush.msrb.mxu1 %v1695_v51  ;;  %2926 = vmatpush.msra.mxu2 %v1820_v52  ;;  %v1094_v51 = vld [vmem:[#allocation6 + $0xdc0] sm:$0xff]  ;;  %v1219_v52 = vld [vmem:[#allocation6 + $0x11a8] sm:$0xff] }
 0x1e6   :  { %2948 = vmatpush.msra.mxu3 %v2016_v54  ;;  %2985 = vmatpush.msrb.mxu0 %v939_v55  ;;  %v5237_v54 = vpop.f32.mrf.mxu2  ;;  %v1415_v55 = vld [vmem:[#allocation6 + $0x17c8] sm:$0xff] }
 0x1e7   :  { %3040 = vmatpush.msrb.mxu1 %v1681_v56  ;;  %2927 = vmatpush.msra.mxu2 %v1806_v57  ;;  %v1905_v56 = vld [vmem:[#allocation6 + $0x2718] sm:$0xff]  ;;  %v1080_v57 = vld [vmem:[#allocation6 + $0xd50] sm:$0xff] }
 0x1e8   :  { %2949 = vmatpush.msra.mxu3 %v2002_v59  ;;  %2986 = vmatpush.msrb.mxu0 %v925_v60  ;;  %v1205_v59 = vld [vmem:[#allocation6 + $0x1138] sm:$0xff]  ;;  %v5240_v60 = vpop.f32.mrf.mxu3 }
 0x1e9   :  { %3041 = vmatpush.msrb.mxu1 %v1667_v62  ;;  %2950 = vmatmul.f32.vlgmr.msra.gmra.mxu3 %v5178_v11  ;;  %v1401_v62 = vld [vmem:[#allocation6 + $0x1758] sm:$0xff] }
 0x1ea   :  { %3014 = vmatpush.msrb.mxu3 %v1541_v0  ;;  %2928 = vmatpush.msra.mxu2 %v1792_v1  ;;  %v1891_v0 = vld [vmem:[#allocation6 + $0x26a8] sm:$0xff]  ;;  %v1066_v1 = vld [vmem:[#allocation6 + $0xce0] sm:$0xff] }
 0x1eb   :  { %2987 = vmatpush.msrb.mxu0 %v911_v2  ;;  %3042 = vmatpush.msrb.mxu1 %v1653_v3  ;;  %v1191_v2 = vld [vmem:[#allocation6 + $0x10c8] sm:$0xff]  ;;  %v5242_v3 = vpop.f32.mrf.mxu1 }
 0x1ec   :  { %3015 = vmatpush.msrb.mxu3 %v1527_v5  ;;  %2929 = vmatpush.msra.mxu2 %v1778_v6  ;;  %v1387_v5 = vld [vmem:[#allocation6 + $0x16e8] sm:$0xff]  ;;  %v1877_v6 = vld [vmem:[#allocation6 + $0x2638] sm:$0xff] }
 0x1ed   :  { %2988 = vmatpush.msrb.mxu0 %v897_v7  ;;  %3043 = vmatpush.msrb.mxu1 %v1639_v8  ;;  %v1052_v7 = vld [vmem:[#allocation6 + $0xc70] sm:$0xff]  ;;  %v1177_v8 = vld [vmem:[#allocation6 + $0x1058] sm:$0xff] }
 0x1ee   :  { %2930 = vmatmul.f32.vlgmr.msra.gmra.mxu2 %v5181_v20  ;;  %3016 = vmatpush.msrb.mxu3 %v1513_v10  ;;  %v5244_v10 = vpop.f32.mrf.mxu0 }
 0x1ef   :  { %2994 = vmatpush.msrb.mxu2 %v1317_v12  ;;  %2989 = vmatpush.msrb.mxu0 %v883_v13  ;;  %v1373_v12 = vld [vmem:[#allocation6 + $0x1678] sm:$0xff]  ;;  %v1863_v13 = vld [vmem:[#allocation6 + $0x25c8] sm:$0xff] }
 0x1f0   :  { %3044 = vmatpush.msrb.mxu1 %v1625_v15  ;;  %2990 = vmatmul.f32.vlgmr.msrb.gmra.mxu0 %v5158_v22  ;;  %v1038_v15 = vld [vmem:[#allocation6 + $0xc00] sm:$0xff] }
 0x1f1   :  { %2995 = vmatpush.msrb.mxu2 %v1303_v61  ;;  %3017 = vmatpush.msrb.mxu3 %v1499_v17  ;;  %v1163_v61 = vld [vmem:[#allocation6 + $0xfe8] sm:$0xff]  ;;  %v5246_v17 = vpop.f32.mrf.mxu2 }
 0x1f2   :  { %3054 = vmatpush.msra.mxu0 %v1989_v18  ;;  %3045 = vmatpush.msrb.mxu1 %v1611_v19  ;;  %v1359_v18 = vld [vmem:[#allocation6 + $0x1608] sm:$0xff]  ;;  %v1849_v19 = vld [vmem:[#allocation6 + $0x2558] sm:$0xff] }
 0x1f3   :  { %2996 = vmatpush.msrb.mxu2 %v1289_v21  ;;  %3018 = vmatpush.msrb.mxu3 %v1485_v23  ;;  %v1024_v21 = vld [vmem:[#allocation6 + $0xb90] sm:$0xff]  ;;  %v1149_v23 = vld [vmem:[#allocation6 + $0xf78] sm:$0xff] }
 0x1f4   :  { %3055 = vmatpush.msra.mxu0 %v1975_v25  ;;  %3046 = vmatpush.msrb.mxu1 %v1597_v26  ;;  %v5248_v25 = vpop.f32.mrf.mxu3  ;;  %v1345_v26 = vld [vmem:[#allocation6 + $0x1598] sm:$0xff] }
 0x1f5   :  { %2997 = vmatpush.msrb.mxu2 %v1275_v27  ;;  %3019 = vmatpush.msrb.mxu3 %v1471_v29  ;;  %v1835_v27 = vld [vmem:[#allocation6 + $0x24e8] sm:$0xff]  ;;  %v1010_v29 = vld [vmem:[#allocation6 + $0xb20] sm:$0xff] }
 0x1f6   :  { %3056 = vmatpush.msra.mxu0 %v1961_v31  ;;  %3047 = vmatpush.msrb.mxu1 %v1583_v33  ;;  %v1135_v31 = vld [vmem:[#allocation6 + $0xf08] sm:$0xff]  ;;  %v2222_v33 = vld [vmem:[#allocation7] sm:$0xff] }
 0x1f7   :  { %2998 = vmatpush.msrb.mxu2 %v1261_v34  ;;  %3020 = vmatpush.msrb.mxu3 %v1457_v35  ;;  %v5250_v34 = vpop.f32.mrf.mxu1  ;;  %v1331_v35 = vld [vmem:[#allocation6 + $0x1528] sm:$0xff] }
 0x1f8   :  { %3057 = vmatpush.msra.mxu0 %v1947_v42  ;;  %3048 = vmatpush.msrb.mxu1 %v1569_v37  ;;  %v1821_v42 = vld [vmem:[#allocation6 + $0x2478] sm:$0xff]  ;;  %v996_v37 = vld [vmem:[#allocation6 + $0xab0] sm:$0xff] }
 0x1f9   :  { %2999 = vmatpush.msrb.mxu2 %v1247_v38  ;;  %3021 = vmatpush.msrb.mxu3 %v1443_v39  ;;  %v2229_v38 = vperm.slane %v2222_v33, 3  ;;  %v5252_v39 = vpop.f32.mrf.mxu0  ;;  %v912_v33 = vld [vmem:[#allocation6 + $0x810] sm:$0xff] }
 0x1fa   :  { %3058 = vmatpush.msra.mxu0 %v1933_v44  ;;  %3049 = vmatpush.msrb.mxu1 %v1555_v45  ;;  %v870_v44 = vld [vmem:[#allocation6 + $0x6c0] sm:$0xff]  ;;  %v1121_v45 = vld [vmem:[#allocation6 + $0xe98] sm:$0xff] }
 0x1fb   :  { %3000 = vmatpush.msrb.mxu2 %v1233_v46  ;;  %3022 = vmatpush.msrb.mxu3 %v1429_v47  ;;  %v1807_v46 = vld [vmem:[#allocation6 + $0x2408] sm:$0xff]  ;;  %v982_v47 = vld [vmem:[#allocation6 + $0xa40] sm:$0xff] }
 0x1fc   :  { %3050 = vmatmul.f32.vlgmr.msrb.gmra.mxu1 %v5171_v28  ;;  %3059 = vmatpush.msra.mxu0 %v1919_v50  ;;  %v856_v50 = vld [vmem:[#allocation6 + $0x650] sm:$0xff] }
 0x1fd   :  { %3114 = vmatpush.msra.mxu1 %v1094_v51  ;;  %3001 = vmatpush.msrb.mxu2 %v1219_v52  ;;  %v1107_v51 = vld [vmem:[#allocation6 + $0xe28] sm:$0xff] }
 0x1fe   :  { %3023 = vmatpush.msrb.mxu3 %v1415_v55  ;;  %3060 = vmatpush.msra.mxu0 %v1905_v56  ;;  %v1793_v55 = vld [vmem:[#allocation6 + $0x2398] sm:$0xff]  ;;  %v968_v56 = vld [vmem:[#allocation6 + $0x9d0] sm:$0xff] }
 0x1ff   :  { %3115 = vmatpush.msra.mxu1 %v1080_v57  ;;  %3002 = vmatpush.msrb.mxu2 %v1205_v59  ;;  %v842_v59 = vld [vmem:[#allocation6 + $0x5e0] sm:$0xff] }
 0x200   :  { %3024 = vmatpush.msrb.mxu3 %v1401_v62  ;;  %3061 = vmatpush.msra.mxu0 %v1891_v0  ;;  %v2213_v0 = vld [vmem:[#allocation6 + $0x30b8] sm:$0xff] }
 0x201   :  { %3116 = vmatpush.msra.mxu1 %v1066_v1  ;;  %3003 = vmatpush.msrb.mxu2 %v1191_v2  ;;  %v1779_v1 = vld [vmem:[#allocation6 + $0x2328] sm:$0xff] }
 0x202   :  { %3025 = vmatpush.msrb.mxu3 %v1387_v5  ;;  %3062 = vmatpush.msra.mxu0 %v1877_v6  ;;  %v2731_v5 = vpop.f32.mrf.mxu1  ;;  %v954_v6 = vld [vmem:[#allocation6 + $0x960] sm:$0xff] }
 0x203   :  { %3117 = vmatpush.msra.mxu1 %v1052_v7  ;;  %3004 = vmatpush.msrb.mxu2 %v1177_v8  ;;  %v2199_v7 = vld [vmem:[#allocation6 + $0x3048] sm:$0xff]  ;;  %v828_v8 = vld [vmem:[#allocation6 + $0x570] sm:$0xff] }
 0x204   :  { %3026 = vmatpush.msrb.mxu3 %v1373_v12  ;;  %3063 = vmatpush.msra.mxu0 %v1863_v13  ;;  %v1318_v13 = vld [vmem:[#allocation6 + $0x14c0] sm:$0xff] }
 0x205   :  { %3118 = vmatpush.msra.mxu1 %v1038_v15  ;;  %3005 = vmatpush.msrb.mxu2 %v1163_v61  ;;  %v940_v61 = vld [vmem:[#allocation6 + $0x8f0] sm:$0xff] }
 0x206   :  { %3027 = vmatpush.msrb.mxu3 %v1359_v18  ;;  %3064 = vmatpush.msra.mxu0 %v1849_v19  ;;  %v2711_v62 = vpop.f32.mrf.mxu3  ;;  %v2185_v18 = vld [vmem:[#allocation6 + $0x2fd8] sm:$0xff]  ;;  %v814_v19 = vld [vmem:[#allocation6 + $0x500] sm:$0xff] }
 0x207   :  { %3119 = vmatpush.msra.mxu1 %v1024_v21  ;;  %3006 = vmatpush.msrb.mxu2 %v1149_v23  ;;  %v2751_v15 = vpop.f32.mrf.mxu0  ;;  %v1304_v23 = vld [vmem:[#allocation6 + $0x1450] sm:$0xff] }
 0x208   :  { %3028 = vmatpush.msrb.mxu3 %v1345_v26  ;;  %3065 = vmatpush.msra.mxu0 %v1835_v27  ;;  %v926_v26 = vld [vmem:[#allocation6 + $0x880] sm:$0xff]  ;;  %v2171_v27 = vld [vmem:[#allocation6 + $0x2f68] sm:$0xff] }
 0x209   :  { %3120 = vmatpush.msra.mxu1 %v1010_v29  ;;  %3007 = vmatpush.msrb.mxu2 %v1135_v31  ;;  %v800_v29 = vld [vmem:[#allocation6 + $0x490] sm:$0xff]  ;;  %v1290_v31 = vld [vmem:[#allocation6 + $0x13e0] sm:$0xff] }
 0x20a   :  { %3029 = vmatpush.msrb.mxu3 %v1331_v35  ;;  %3066 = vmatpush.msra.mxu0 %v1821_v42  ;;  %v2157_v35 = vld [vmem:[#allocation6 + $0x2ef8] sm:$0xff]  ;;  %v786_v42 = vld [vmem:[#allocation6 + $0x420] sm:$0xff] }
 0x20b   :  { %3121 = vmatpush.msra.mxu1 %v996_v37  ;;  %3030 = vmatmul.f32.vlgmr.msrb.gmra.mxu3 %v5165_v41  ;;  %v2691_v52 = vpop.f32.mrf.mxu2  ;;  %v1276_v37 = vld [vmem:[#allocation6 + $0x1370] sm:$0xff] }
 0x20c   :  { %3094 = vmatpush.msra.mxu3 %v870_v44  ;;  %3008 = vmatpush.msrb.mxu2 %v1121_v45  ;;  %v2692_v57 = vadd.f32 %v2691_v52, %v2229_v38  ;;  %v898_v38 = vld [vmem:[#allocation6 + $0x7a0] sm:$0xff]  ;;  %v2143_v44 = vld [vmem:[#allocation6 + $0x2e88] sm:$0xff]  ;;  %v772_v45 = vld [vmem:[#allocation6 + $0x3b0] sm:$0xff] }
 0x20d   :  { %3067 = vmatpush.msra.mxu0 %v1807_v46  ;;  %3122 = vmatpush.msra.mxu1 %v982_v47  ;;  %v1262_v46 = vld [vmem:[#allocation6 + $0x1300] sm:$0xff]  ;;  %v884_v47 = vld [vmem:[#allocation6 + $0x730] sm:$0xff] }
 0x20e   :  { %3095 = vmatpush.msra.mxu3 %v856_v50  ;;  %3009 = vmatpush.msrb.mxu2 %v1107_v51  ;;  %v2712_v2 = vadd.f32 %v2711_v62, %v2692_v57  ;;  %v2129_v50 = vld [vmem:[#allocation6 + $0x2e18] sm:$0xff]  ;;  %v758_v51 = vld [vmem:[#allocation6 + $0x340] sm:$0xff]  ;;  %v1248_v52 = vld [vmem:[#allocation6 + $0x1290] sm:$0xff] }
 0x20f   :  { %3068 = vmatpush.msra.mxu0 %v1793_v55  ;;  %3123 = vmatpush.msra.mxu1 %v968_v56  ;;  %v1990_v55 = vld [vmem:[#allocation6 + $0x29c0] sm:$0xff]  ;;  %v2115_v56 = vld [vmem:[#allocation6 + $0x2da8] sm:$0xff]  ;;  %v744_v57 = vld [vmem:[#allocation6 + $0x2d0] sm:$0xff] }
 0x210   :  { %3010 = vmatmul.f32.vlgmr.msrb.gmra.mxu2 %v5163_v40  ;;  %3096 = vmatpush.msra.mxu3 %v842_v59  ;;  %v2732_v12 = vadd.f32 %v2731_v5, %v2712_v2  ;;  %v1234_v59 = vld [vmem:[#allocation6 + $0x1220] sm:$0xff]  ;;  %v1976_v62 = vld [vmem:[#allocation6 + $0x2950] sm:$0xff] }
 0x211   :  { %3074 = vmatpush.msra.mxu2 %v2213_v0  ;;  %3069 = vmatpush.msra.mxu0 %v1779_v1  ;;  %v2101_v0 = vld [vmem:[#allocation6 + $0x2d38] sm:$0xff]  ;;  %v730_v1 = vld [vmem:[#allocation6 + $0x260] sm:$0xff]  ;;  %v1220_v2 = vld [vmem:[#allocation6 + $0x11b0] sm:$0xff] }
 0x212   :  { %3124 = vmatpush.msra.mxu1 %v954_v6  ;;  %3070 = vmatmul.f32.vlgmr.msra.gmra.mxu0 %v5181_v20  ;;  %v5257_v21 = vadd.f32 %v2751_v15, %v2732_v12  ;;  %v1962_v5 = vld [vmem:[#allocation6 + $0x28e0] sm:$0xff]  ;;  %v2087_v6 = vld [vmem:[#allocation6 + $0x2cc8] sm:$0xff]  ;;  %v1948_v12 = vld [vmem:[#allocation6 + $0x2870] sm:$0xff] }
 0x213   :  { %3075 = vmatpush.msra.mxu2 %v2199_v7  ;;  %3097 = vmatpush.msra.mxu3 %v828_v8  ;;  %v716_v7 = vld [vmem:[#allocation6 + $0x1f0] sm:$0xff]  ;;  %v1206_v8 = vld [vmem:[#allocation6 + $0x1140] sm:$0xff] }
 0x214   :  { %3134 = vmatpush.msrb.mxu0 %v1318_v13  ;;  %3125 = vmatpush.msra.mxu1 %v940_v61  ;;  %v2073_v13 = vld [vmem:[#allocation6 + $0x2c58] sm:$0xff]  ;;  %v702_v15 = vld [vmem:[#allocation6 + $0x180] sm:$0xff]  ;;  %v1192_v61 = vld [vmem:[#allocation6 + $0x10d0] sm:$0xff] }
 0x215   :  { %3076 = vmatpush.msra.mxu2 %v2185_v18  ;;  %3098 = vmatpush.msra.mxu3 %v814_v19  ;;  %v1934_v18 = vld [vmem:[#allocation6 + $0x2800] sm:$0xff]  ;;  %v2059_v19 = vld [vmem:[#allocation6 + $0x2be8] sm:$0xff] }
 0x216   :  { %3135 = vmatpush.msrb.mxu0 %v1304_v23  ;;  %3126 = vmatpush.msra.mxu1 %v926_v26  ;;  %v688_v23 = vld [vmem:[#allocation6 + $0x110] sm:$0xff]  ;;  %v1178_v26 = vld [vmem:[#allocation6 + $0x1060] sm:$0xff] }
 0x217   :  { %3077 = vmatpush.msra.mxu2 %v2171_v27  ;;  %3099 = vmatpush.msra.mxu3 %v800_v29  ;;  %v1920_v27 = vld [vmem:[#allocation6 + $0x2790] sm:$0xff]  ;;  %v2045_v29 = vld [vmem:[#allocation6 + $0x2b78] sm:$0xff] }
 0x218   :  { %3136 = vmatpush.msrb.mxu0 %v1290_v31  ;;  %3127 = vmatpush.msra.mxu1 %v912_v33  ;;  %v674_v31 = vld [vmem:[#allocation6 + $0xa0] sm:$0xff]  ;;  %v1164_v33 = vld [vmem:[#allocation6 + $0xff0] sm:$0xff] }
 0x219   :  { %3078 = vmatpush.msra.mxu2 %v2157_v35  ;;  %3100 = vmatpush.msra.mxu3 %v786_v42  ;;  %v1906_v35 = vld [vmem:[#allocation6 + $0x2720] sm:$0xff]  ;;  %v2031_v42 = vld [vmem:[#allocation6 + $0x2b08] sm:$0xff] }
 0x21a   :  { %3137 = vmatpush.msrb.mxu0 %v1276_v37  ;;  %3128 = vmatpush.msra.mxu1 %v898_v38  ;;  %v660_v37 = vld [vmem:[#allocation6 + $0x30] sm:$0xff]  ;;  %v1150_v38 = vld [vmem:[#allocation6 + $0xf80] sm:$0xff] }
 0x21b   :  { %3079 = vmatpush.msra.mxu2 %v2143_v44  ;;  %3101 = vmatpush.msra.mxu3 %v772_v45  ;;  %v1892_v44 = vld [vmem:[#allocation6 + $0x26b0] sm:$0xff]  ;;  %v1766_v45 = vld [vmem:[#allocation6 + $0x22c0] sm:$0xff] }
 0x21c   :  { %3138 = vmatpush.msrb.mxu0 %v1262_v46  ;;  %3129 = vmatpush.msra.mxu1 %v884_v47  ;;  %v2017_v46 = vld [vmem:[#allocation6 + $0x2a98] sm:$0xff]  ;;  %v1136_v47 = vld [vmem:[#allocation6 + $0xf10] sm:$0xff] }
 0x21d   :  { %3080 = vmatpush.msra.mxu2 %v2129_v50  ;;  %3102 = vmatpush.msra.mxu3 %v758_v51  ;;  %v1878_v50 = vld [vmem:[#allocation6 + $0x2640] sm:$0xff]  ;;  %v1752_v51 = vld [vmem:[#allocation6 + $0x2250] sm:$0xff] }
 0x21e   :  { %3130 = vmatmul.f32.vlgmr.msra.gmra.mxu1 %v5158_v22  ;;  %3139 = vmatpush.msrb.mxu0 %v1248_v52  ;;  %v2003_v52 = vld [vmem:[#allocation6 + $0x2a28] sm:$0xff] }
 0x21f   :  { %3194 = vmatpush.msrb.mxu1 %v1990_v55  ;;  %3081 = vmatpush.msra.mxu2 %v2115_v56  ;;  %v1122_v56 = vld [vmem:[#allocation6 + $0xea0] sm:$0xff] }
 0x220   :  { %3103 = vmatpush.msra.mxu3 %v744_v57  ;;  %3140 = vmatpush.msrb.mxu0 %v1234_v59  ;;  %v1864_v57 = vld [vmem:[#allocation6 + $0x25d0] sm:$0xff] }
 0x221   :  { %3195 = vmatpush.msrb.mxu1 %v1976_v62  ;;  %3082 = vmatpush.msra.mxu2 %v2101_v0  ;;  %v1738_v62 = vld [vmem:[#allocation6 + $0x21e0] sm:$0xff] }
 0x222   :  { %3104 = vmatpush.msra.mxu3 %v730_v1  ;;  %3141 = vmatpush.msrb.mxu0 %v1220_v2  ;;  %v1542_v1 = vld [vmem:[#allocation6 + $0x1bc0] sm:$0xff]  ;;  %v1108_v2 = vld [vmem:[#allocation6 + $0xe30] sm:$0xff] }
 0x223   :  { %3196 = vmatpush.msrb.mxu1 %v1962_v5  ;;  %3083 = vmatpush.msra.mxu2 %v2087_v6  ;;  %v2811_v6 = vpop.f32.mrf.mxu1 }
 0x224   :  { %3105 = vmatpush.msra.mxu3 %v716_v7  ;;  %3142 = vmatpush.msrb.mxu0 %v1206_v8  ;;  %v1850_v7 = vld [vmem:[#allocation6 + $0x2560] sm:$0xff]  ;;  %v1528_v8 = vld [vmem:[#allocation6 + $0x1b50] sm:$0xff] }
 0x225   :  { %3197 = vmatpush.msrb.mxu1 %v1948_v12  ;;  %3084 = vmatpush.msra.mxu2 %v2073_v13  ;;  %v1724_v12 = vld [vmem:[#allocation6 + $0x2170] sm:$0xff] }
 0x226   :  { %3106 = vmatpush.msra.mxu3 %v702_v15  ;;  %3143 = vmatpush.msrb.mxu0 %v1192_v61  ;;  %v1836_v15 = vld [vmem:[#allocation6 + $0x24f0] sm:$0xff]  ;;  %v1514_v61 = vld [vmem:[#allocation6 + $0x1ae0] sm:$0xff] }
 0x227   :  { %3198 = vmatpush.msrb.mxu1 %v1934_v18  ;;  %3085 = vmatpush.msra.mxu2 %v2059_v19  ;;  %v1710_v18 = vld [vmem:[#allocation6 + $0x2100] sm:$0xff]  ;;  %v2200_v19 = vld [vmem:[#allocation6 + $0x3050] sm:$0xff] }
 0x228   :  { %3107 = vmatpush.msra.mxu3 %v688_v23  ;;  %3144 = vmatpush.msrb.mxu0 %v1178_v26  ;;  %v2791_v0 = vpop.f32.mrf.mxu3  ;;  %v1822_v23 = vld [vmem:[#allocation6 + $0x2480] sm:$0xff]  ;;  %v1500_v26 = vld [vmem:[#allocation6 + $0x1a70] sm:$0xff] }
 0x229   :  { %3199 = vmatpush.msrb.mxu1 %v1920_v27  ;;  %3086 = vmatpush.msra.mxu2 %v2045_v29  ;;  %v1696_v27 = vld [vmem:[#allocation6 + $0x2090] sm:$0xff]  ;;  %v2186_v29 = vld [vmem:[#allocation6 + $0x2fe0] sm:$0xff] }
 0x22a   :  { %3108 = vmatpush.msra.mxu3 %v674_v31  ;;  %3145 = vmatpush.msrb.mxu0 %v1164_v33  ;;  %v1808_v31 = vld [vmem:[#allocation6 + $0x2410] sm:$0xff]  ;;  %v1486_v33 = vld [vmem:[#allocation6 + $0x1a00] sm:$0xff] }
 0x22b   :  { %3200 = vmatpush.msrb.mxu1 %v1906_v35  ;;  %3087 = vmatpush.msra.mxu2 %v2031_v42  ;;  %v1682_v35 = vld [vmem:[#allocation6 + $0x2020] sm:$0xff]  ;;  %v2172_v42 = vld [vmem:[#allocation6 + $0x2f70] sm:$0xff] }
 0x22c   :  { %3109 = vmatpush.msra.mxu3 %v660_v37  ;;  %3146 = vmatpush.msrb.mxu0 %v1150_v38  ;;  %v1794_v37 = vld [vmem:[#allocation6 + $0x23a0] sm:$0xff]  ;;  %v1472_v38 = vld [vmem:[#allocation6 + $0x1990] sm:$0xff] }
 0x22d   :  { %3201 = vmatpush.msrb.mxu1 %v1892_v44  ;;  %3110 = vmatmul.f32.vlgmr.msra.gmra.mxu3 %v5155_v16  ;;  %v2771_v55 = vpop.f32.mrf.mxu2  ;;  %v1668_v44 = vld [vmem:[#allocation6 + $0x1fb0] sm:$0xff] }
 0x22e   :  { %3174 = vmatpush.msrb.mxu3 %v1766_v45  ;;  %3088 = vmatpush.msra.mxu2 %v2017_v46  ;;  %v2772_v59 = vadd.f32 %v2771_v55, %v5257_v21  ;;  %v2214_v21 = vld [vmem:[#allocation6 + $0x30c0] sm:$0xff]  ;;  %v1780_v46 = vld [vmem:[#allocation6 + $0x2330] sm:$0xff] }
 0x22f   :  { %3147 = vmatpush.msrb.mxu0 %v1136_v47  ;;  %3202 = vmatpush.msrb.mxu1 %v1878_v50  ;;  %v2158_v45 = vld [vmem:[#allocation6 + $0x2f00] sm:$0xff]  ;;  %v1444_v55 = vld [vmem:[#allocation6 + $0x18b0] sm:$0xff] }
 0x230   :  { %3175 = vmatpush.msrb.mxu3 %v1752_v51  ;;  %3089 = vmatpush.msra.mxu2 %v2003_v52  ;;  %v2792_v5 = vadd.f32 %v2791_v0, %v2772_v59  ;;  %v1458_v47 = vld [vmem:[#allocation6 + $0x1920] sm:$0xff]  ;;  %v2144_v51 = vld [vmem:[#allocation6 + $0x2e90] sm:$0xff]  ;;  %v1319_v52 = vld [vmem:[#allocation6 + $0x14c8] sm:$0xff] }
 0x231   :  { %3148 = vmatpush.msrb.mxu0 %v1122_v56  ;;  %3203 = vmatpush.msrb.mxu1 %v1864_v57  ;;  %v1654_v50 = vld [vmem:[#allocation6 + $0x1f40] sm:$0xff]  ;;  %v1640_v56 = vld [vmem:[#allocation6 + $0x1ed0] sm:$0xff]  ;;  %v1305_v59 = vld [vmem:[#allocation6 + $0x1458] sm:$0xff] }
 0x232   :  { %3090 = vmatmul.f32.vlgmr.msra.gmra.mxu2 %v5178_v11  ;;  %3176 = vmatpush.msrb.mxu3 %v1738_v62  ;;  %v5263_v13 = vadd.f32 %v2811_v6, %v2792_v5  ;;  %v2130_v57 = vld [vmem:[#allocation6 + $0x2e20] sm:$0xff]  ;;  %v1416_v5 = vld [vmem:[#allocation6 + $0x17d0] sm:$0xff] }
 0x233   :  { %3154 = vmatpush.msrb.mxu2 %v1542_v1  ;;  %3149 = vmatpush.msrb.mxu0 %v1108_v2  ;;  %v1430_v62 = vld [vmem:[#allocation6 + $0x1840] sm:$0xff]  ;;  %v2116_v1 = vld [vmem:[#allocation6 + $0x2db0] sm:$0xff]  ;;  %v1291_v2 = vld [vmem:[#allocation6 + $0x13e8] sm:$0xff] }
 0x234   :  { %3204 = vmatpush.msrb.mxu1 %v1850_v7  ;;  %3150 = vmatmul.f32.vlgmr.msrb.gmra.mxu0 %v5163_v40  ;;  %v1626_v0 = vld [vmem:[#allocation6 + $0x1e60] sm:$0xff]  ;;  %v1612_v6 = vld [vmem:[#allocation6 + $0x1df0] sm:$0xff] }
 0x235   :  { %3155 = vmatpush.msrb.mxu2 %v1528_v8  ;;  %3177 = vmatpush.msrb.mxu3 %v1724_v12  ;;  %v2102_v7 = vld [vmem:[#allocation6 + $0x2d40] sm:$0xff]  ;;  %v1277_v8 = vld [vmem:[#allocation6 + $0x1378] sm:$0xff] }
 0x236   :  { %3214 = vmatpush.msra.mxu0 %v2214_v21  ;;  %3205 = vmatpush.msrb.mxu1 %v1836_v15  ;;  %v1402_v12 = vld [vmem:[#allocation6 + $0x1760] sm:$0xff]  ;;  %v2088_v15 = vld [vmem:[#allocation6 + $0x2cd0] sm:$0xff] }
 0x237   :  { %3156 = vmatpush.msrb.mxu2 %v1514_v61  ;;  %3178 = vmatpush.msrb.mxu3 %v1710_v18  ;;  %v1598_v21 = vld [vmem:[#allocation6 + $0x1d80] sm:$0xff]  ;;  %v1263_v61 = vld [vmem:[#allocation6 + $0x1308] sm:$0xff]  ;;  %v1388_v18 = vld [vmem:[#allocation6 + $0x16f0] sm:$0xff] }
 0x238   :  { %3215 = vmatpush.msra.mxu0 %v2200_v19  ;;  %3206 = vmatpush.msrb.mxu1 %v1822_v23  ;;  %v1584_v19 = vld [vmem:[#allocation6 + $0x1d10] sm:$0xff]  ;;  %v2074_v23 = vld [vmem:[#allocation6 + $0x2c60] sm:$0xff] }
 0x239   :  { %3157 = vmatpush.msrb.mxu2 %v1500_v26  ;;  %3179 = vmatpush.msrb.mxu3 %v1696_v27  ;;  %v1249_v26 = vld [vmem:[#allocation6 + $0x1298] sm:$0xff]  ;;  %v1374_v27 = vld [vmem:[#allocation6 + $0x1680] sm:$0xff] }
 0x23a   :  { %3216 = vmatpush.msra.mxu0 %v2186_v29  ;;  %3207 = vmatpush.msrb.mxu1 %v1808_v31  ;;  %v1570_v29 = vld [vmem:[#allocation6 + $0x1ca0] sm:$0xff]  ;;  %v2060_v31 = vld [vmem:[#allocation6 + $0x2bf0] sm:$0xff] }
 0x23b   :  { %3158 = vmatpush.msrb.mxu2 %v1486_v33  ;;  %3180 = vmatpush.msrb.mxu3 %v1682_v35  ;;  %v1235_v33 = vld [vmem:[#allocation6 + $0x1228] sm:$0xff]  ;;  %v1360_v35 = vld [vmem:[#allocation6 + $0x1610] sm:$0xff] }
 0x23c   :  { %3217 = vmatpush.msra.mxu0 %v2172_v42  ;;  %3208 = vmatpush.msrb.mxu1 %v1794_v37  ;;  %v1556_v42 = vld [vmem:[#allocation6 + $0x1c30] sm:$0xff]  ;;  %v2046_v37 = vld [vmem:[#allocation6 + $0x2b80] sm:$0xff] }
 0x23d   :  { %3159 = vmatpush.msrb.mxu2 %v1472_v38  ;;  %3181 = vmatpush.msrb.mxu3 %v1668_v44  ;;  %v1221_v38 = vld [vmem:[#allocation6 + $0x11b8] sm:$0xff]  ;;  %v1095_v44 = vld [vmem:[#allocation6 + $0xdc8] sm:$0xff] }
 0x23e   :  { %3218 = vmatpush.msra.mxu0 %v2158_v45  ;;  %3209 = vmatpush.msrb.mxu1 %v1780_v46  ;;  %v1346_v45 = vld [vmem:[#allocation6 + $0x15a0] sm:$0xff]  ;;  %v2032_v46 = vld [vmem:[#allocation6 + $0x2b10] sm:$0xff] }
 0x23f   :  { %3160 = vmatpush.msrb.mxu2 %v1458_v47  ;;  %3182 = vmatpush.msrb.mxu3 %v1654_v50  ;;  %v1207_v47 = vld [vmem:[#allocation6 + $0x1148] sm:$0xff]  ;;  %v1081_v50 = vld [vmem:[#allocation6 + $0xd58] sm:$0xff] }
 0x240   :  { %3210 = vmatmul.f32.vlgmr.msrb.gmra.mxu1 %v5181_v20  ;;  %3219 = vmatpush.msra.mxu0 %v2144_v51  ;;  %v1332_v51 = vld [vmem:[#allocation6 + $0x1530] sm:$0xff] }
 0x241   :  { %3274 = vmatpush.msra.mxu1 %v1319_v52  ;;  %3161 = vmatpush.msrb.mxu2 %v1444_v55  ;;  %v2018_v52 = vld [vmem:[#allocation6 + $0x2aa0] sm:$0xff]  ;;  %v1193_v55 = vld [vmem:[#allocation6 + $0x10d8] sm:$0xff] }
 0x242   :  { %3183 = vmatpush.msrb.mxu3 %v1640_v56  ;;  %3220 = vmatpush.msra.mxu0 %v2130_v57  ;;  %v1067_v56 = vld [vmem:[#allocation6 + $0xce8] sm:$0xff] }
 0x243   :  { %3275 = vmatpush.msra.mxu1 %v1305_v59  ;;  %3162 = vmatpush.msrb.mxu2 %v1430_v62  ;;  %v871_v57 = vld [vmem:[#allocation6 + $0x6c8] sm:$0xff]  ;;  %v2004_v59 = vld [vmem:[#allocation6 + $0x2a30] sm:$0xff] }
 0x244   :  { %3184 = vmatpush.msrb.mxu3 %v1626_v0  ;;  %3221 = vmatpush.msra.mxu0 %v2116_v1  ;;  %v1179_v62 = vld [vmem:[#allocation6 + $0x1068] sm:$0xff]  ;;  %v857_v0 = vld [vmem:[#allocation6 + $0x658] sm:$0xff] }
 0x245   :  { %3276 = vmatpush.msra.mxu1 %v1291_v2  ;;  %3163 = vmatpush.msrb.mxu2 %v1416_v5  ;;  %v1053_v1 = vld [vmem:[#allocation6 + $0xc78] sm:$0xff]  ;;  %v1543_v2 = vld [vmem:[#allocation6 + $0x1bc8] sm:$0xff] }
 0x246   :  { %3185 = vmatpush.msrb.mxu3 %v1612_v6  ;;  %3222 = vmatpush.msra.mxu0 %v2102_v7  ;;  %v1165_v5 = vld [vmem:[#allocation6 + $0xff8] sm:$0xff]  ;;  %v843_v6 = vld [vmem:[#allocation6 + $0x5e8] sm:$0xff] }
 0x247   :  { %3277 = vmatpush.msra.mxu1 %v1277_v8  ;;  %3164 = vmatpush.msrb.mxu2 %v1402_v12  ;;  %v1039_v7 = vld [vmem:[#allocation6 + $0xc08] sm:$0xff]  ;;  %v1529_v8 = vld [vmem:[#allocation6 + $0x1b58] sm:$0xff] }
 0x248   :  { %3186 = vmatpush.msrb.mxu3 %v1598_v21  ;;  %3223 = vmatpush.msra.mxu0 %v2088_v15  ;;  %v1151_v12 = vld [vmem:[#allocation6 + $0xf88] sm:$0xff]  ;;  %v829_v21 = vld [vmem:[#allocation6 + $0x578] sm:$0xff] }
 0x249   :  { %3278 = vmatpush.msra.mxu1 %v1263_v61  ;;  %3165 = vmatpush.msrb.mxu2 %v1388_v18  ;;  %v1025_v15 = vld [vmem:[#allocation6 + $0xb98] sm:$0xff]  ;;  %v1515_v61 = vld [vmem:[#allocation6 + $0x1ae8] sm:$0xff] }
 0x24a   :  { %3187 = vmatpush.msrb.mxu3 %v1584_v19  ;;  %3224 = vmatpush.msra.mxu0 %v2074_v23  ;;  %v1137_v18 = vld [vmem:[#allocation6 + $0xf18] sm:$0xff]  ;;  %v815_v19 = vld [vmem:[#allocation6 + $0x508] sm:$0xff] }
 0x24b   :  { %3279 = vmatpush.msra.mxu1 %v1249_v26  ;;  %3166 = vmatpush.msrb.mxu2 %v1374_v27  ;;  %v1011_v23 = vld [vmem:[#allocation6 + $0xb28] sm:$0xff]  ;;  %v1501_v26 = vld [vmem:[#allocation6 + $0x1a78] sm:$0xff] }
 0x24c   :  { %3188 = vmatpush.msrb.mxu3 %v1570_v29  ;;  %3225 = vmatpush.msra.mxu0 %v2060_v31  ;;  %v1123_v27 = vld [vmem:[#allocation6 + $0xea8] sm:$0xff]  ;;  %v801_v29 = vld [vmem:[#allocation6 + $0x498] sm:$0xff] }
 0x24d   :  { %3280 = vmatpush.msra.mxu1 %v1235_v33  ;;  %3167 = vmatpush.msrb.mxu2 %v1360_v35  ;;  %v997_v31 = vld [vmem:[#allocation6 + $0xab8] sm:$0xff]  ;;  %v1487_v33 = vld [vmem:[#allocation6 + $0x1a08] sm:$0xff] }
 0x24e   :  { %3189 = vmatpush.msrb.mxu3 %v1556_v42  ;;  %3226 = vmatpush.msra.mxu0 %v2046_v37  ;;  %v1109_v35 = vld [vmem:[#allocation6 + $0xe38] sm:$0xff]  ;;  %v787_v42 = vld [vmem:[#allocation6 + $0x428] sm:$0xff] }
 0x24f   :  { %3281 = vmatpush.msra.mxu1 %v1221_v38  ;;  %3190 = vmatmul.f32.vlgmr.msrb.gmra.mxu3 %v5171_v28  ;;  %v983_v37 = vld [vmem:[#allocation6 + $0xa48] sm:$0xff]  ;;  %v1473_v38 = vld [vmem:[#allocation6 + $0x1998] sm:$0xff] }
 0x250   :  { %3254 = vmatpush.msra.mxu3 %v1095_v44  ;;  %3168 = vmatpush.msrb.mxu2 %v1346_v45  ;;  %v2215_v44 = vld [vmem:[#allocation6 + $0x30c8] sm:$0xff]  ;;  %v773_v45 = vld [vmem:[#allocation6 + $0x3b8] sm:$0xff] }
 0x251   :  { %3227 = vmatpush.msra.mxu0 %v2032_v46  ;;  %3282 = vmatpush.msra.mxu1 %v1207_v47  ;;  %v969_v46 = vld [vmem:[#allocation6 + $0x9d8] sm:$0xff]  ;;  %v1459_v47 = vld [vmem:[#allocation6 + $0x1928] sm:$0xff] }
 0x252   :  { %3255 = vmatpush.msra.mxu3 %v1081_v50  ;;  %3169 = vmatpush.msrb.mxu2 %v1332_v51  ;;  %v2201_v50 = vld [vmem:[#allocation6 + $0x3058] sm:$0xff]  ;;  %v759_v51 = vld [vmem:[#allocation6 + $0x348] sm:$0xff] }
 0x253   :  { %3228 = vmatpush.msra.mxu0 %v2018_v52  ;;  %3283 = vmatpush.msra.mxu1 %v1193_v55  ;;  %v955_v52 = vld [vmem:[#allocation6 + $0x968] sm:$0xff]  ;;  %v1445_v55 = vld [vmem:[#allocation6 + $0x18b8] sm:$0xff] }
 0x254   :  { %3170 = vmatmul.f32.vlgmr.msrb.gmra.mxu2 %v5165_v41  ;;  %3256 = vmatpush.msra.mxu3 %v1067_v56  ;;  %v2187_v56 = vld [vmem:[#allocation6 + $0x2fe8] sm:$0xff] }
 0x255   :  { %3234 = vmatpush.msra.mxu2 %v871_v57  ;;  %3229 = vmatpush.msra.mxu0 %v2004_v59  ;;  %v745_v57 = vld [vmem:[#allocation6 + $0x2d8] sm:$0xff] }
 0x256   :  { %3284 = vmatpush.msra.mxu1 %v1179_v62  ;;  %3230 = vmatmul.f32.vlgmr.msra.gmra.mxu0 %v5178_v11  ;;  %v941_v59 = vld [vmem:[#allocation6 + $0x8f8] sm:$0xff]  ;;  %v1431_v62 = vld [vmem:[#allocation6 + $0x1848] sm:$0xff] }
 0x257   :  { %3235 = vmatpush.msra.mxu2 %v857_v0  ;;  %3257 = vmatpush.msra.mxu3 %v1053_v1  ;;  %v2173_v0 = vld [vmem:[#allocation6 + $0x2f78] sm:$0xff]  ;;  %v731_v1 = vld [vmem:[#allocation6 + $0x268] sm:$0xff] }
 0x258   :  { %3294 = vmatpush.msrb.mxu0 %v1543_v2  ;;  %3285 = vmatpush.msra.mxu1 %v1165_v5  ;;  %v927_v2 = vld [vmem:[#allocation6 + $0x888] sm:$0xff]  ;;  %v1417_v5 = vld [vmem:[#allocation6 + $0x17d8] sm:$0xff] }
 0x259   :  { %3236 = vmatpush.msra.mxu2 %v843_v6  ;;  %3258 = vmatpush.msra.mxu3 %v1039_v7  ;;  %v2159_v6 = vld [vmem:[#allocation6 + $0x2f08] sm:$0xff]  ;;  %v717_v7 = vld [vmem:[#allocation6 + $0x1f8] sm:$0xff] }
 0x25a   :  { %3295 = vmatpush.msrb.mxu0 %v1529_v8  ;;  %3286 = vmatpush.msra.mxu1 %v1151_v12  ;;  %v913_v8 = vld [vmem:[#allocation6 + $0x818] sm:$0xff]  ;;  %v1403_v12 = vld [vmem:[#allocation6 + $0x1768] sm:$0xff] }
 0x25b   :  { %3237 = vmatpush.msra.mxu2 %v829_v21  ;;  %3259 = vmatpush.msra.mxu3 %v1025_v15  ;;  %v2145_v21 = vld [vmem:[#allocation6 + $0x2e98] sm:$0xff]  ;;  %v703_v15 = vld [vmem:[#allocation6 + $0x188] sm:$0xff] }
 0x25c   :  { %3296 = vmatpush.msrb.mxu0 %v1515_v61  ;;  %3287 = vmatpush.msra.mxu1 %v1137_v18  ;;  %v899_v61 = vld [vmem:[#allocation6 + $0x7a8] sm:$0xff]  ;;  %v1389_v18 = vld [vmem:[#allocation6 + $0x16f8] sm:$0xff] }
 0x25d   :  { %3238 = vmatpush.msra.mxu2 %v815_v19  ;;  %3260 = vmatpush.msra.mxu3 %v1011_v23  ;;  %v2131_v19 = vld [vmem:[#allocation6 + $0x2e28] sm:$0xff]  ;;  %v689_v23 = vld [vmem:[#allocation6 + $0x118] sm:$0xff] }
 0x25e   :  { %3297 = vmatpush.msrb.mxu0 %v1501_v26  ;;  %3288 = vmatpush.msra.mxu1 %v1123_v27  ;;  %v885_v26 = vld [vmem:[#allocation6 + $0x738] sm:$0xff]  ;;  %v1375_v27 = vld [vmem:[#allocation6 + $0x1688] sm:$0xff] }
 0x25f   :  { %3239 = vmatpush.msra.mxu2 %v801_v29  ;;  %3261 = vmatpush.msra.mxu3 %v997_v31  ;;  %v2117_v29 = vld [vmem:[#allocation6 + $0x2db8] sm:$0xff]  ;;  %v1991_v31 = vld [vmem:[#allocation6 + $0x29c8] sm:$0xff] }
 0x260   :  { %3298 = vmatpush.msrb.mxu0 %v1487_v33  ;;  %3289 = vmatpush.msra.mxu1 %v1109_v35  ;;  %v675_v33 = vld [vmem:[#allocation6 + $0xa8] sm:$0xff]  ;;  %v1361_v35 = vld [vmem:[#allocation6 + $0x1618] sm:$0xff] }
 0x261   :  { %3240 = vmatpush.msra.mxu2 %v787_v42  ;;  %3262 = vmatpush.msra.mxu3 %v983_v37  ;;  %v2103_v42 = vld [vmem:[#allocation6 + $0x2d48] sm:$0xff]  ;;  %v1977_v37 = vld [vmem:[#allocation6 + $0x2958] sm:$0xff] }
 0x262   :  { %3290 = vmatmul.f32.vlgmr.msra.gmra.mxu1 %v5163_v40  ;;  %3299 = vmatpush.msrb.mxu0 %v1473_v38  ;;  %v661_v38 = vld [vmem:[#allocation6 + $0x38] sm:$0xff] }
 0x263   :  { %3354 = vmatpush.msrb.mxu1 %v2215_v44  ;;  %3241 = vmatpush.msra.mxu2 %v773_v45  ;;  %v1347_v44 = vld [vmem:[#allocation6 + $0x15a8] sm:$0xff]  ;;  %v2089_v45 = vld [vmem:[#allocation6 + $0x2cd8] sm:$0xff] }
 0x264   :  { %3263 = vmatpush.msra.mxu3 %v969_v46  ;;  %3300 = vmatpush.msrb.mxu0 %v1459_v47  ;;  %v1963_v46 = vld [vmem:[#allocation6 + $0x28e8] sm:$0xff] }
 0x265   :  { %3355 = vmatpush.msrb.mxu1 %v2201_v50  ;;  %3242 = vmatpush.msra.mxu2 %v759_v51  ;;  %v1767_v47 = vld [vmem:[#allocation6 + $0x22c8] sm:$0xff]  ;;  %v1333_v50 = vld [vmem:[#allocation6 + $0x1538] sm:$0xff] }
 0x266   :  { %3264 = vmatpush.msra.mxu3 %v955_v52  ;;  %3301 = vmatpush.msrb.mxu0 %v1445_v55  ;;  %v2075_v51 = vld [vmem:[#allocation6 + $0x2c68] sm:$0xff]  ;;  %v1753_v52 = vld [vmem:[#allocation6 + $0x2258] sm:$0xff] }
 0x267   :  { %3356 = vmatpush.msrb.mxu1 %v2187_v56  ;;  %3243 = vmatpush.msra.mxu2 %v745_v57  ;;  %v1949_v55 = vld [vmem:[#allocation6 + $0x2878] sm:$0xff]  ;;  %v872_v56 = vld [vmem:[#allocation6 + $0x6d0] sm:$0xff] }
 0x268   :  { %3265 = vmatpush.msra.mxu3 %v941_v59  ;;  %3302 = vmatpush.msrb.mxu0 %v1431_v62  ;;  %v2061_v57 = vld [vmem:[#allocation6 + $0x2bf8] sm:$0xff]  ;;  %v1739_v59 = vld [vmem:[#allocation6 + $0x21e8] sm:$0xff] }
 0x269   :  { %3357 = vmatpush.msrb.mxu1 %v2173_v0  ;;  %3244 = vmatpush.msra.mxu2 %v731_v1  ;;  %v1935_v62 = vld [vmem:[#allocation6 + $0x2808] sm:$0xff]  ;;  %v858_v0 = vld [vmem:[#allocation6 + $0x660] sm:$0xff] }
 0x26a   :  { %3266 = vmatpush.msra.mxu3 %v927_v2  ;;  %3303 = vmatpush.msrb.mxu0 %v1417_v5  ;;  %v2047_v1 = vld [vmem:[#allocation6 + $0x2b88] sm:$0xff]  ;;  %v1725_v2 = vld [vmem:[#allocation6 + $0x2178] sm:$0xff] }
 0x26b   :  { %3358 = vmatpush.msrb.mxu1 %v2159_v6  ;;  %3245 = vmatpush.msra.mxu2 %v717_v7  ;;  %v1921_v5 = vld [vmem:[#allocation6 + $0x2798] sm:$0xff]  ;;  %v844_v6 = vld [vmem:[#allocation6 + $0x5f0] sm:$0xff] }
 0x26c   :  { %3267 = vmatpush.msra.mxu3 %v913_v8  ;;  %3304 = vmatpush.msrb.mxu0 %v1403_v12  ;;  %v2033_v7 = vld [vmem:[#allocation6 + $0x2b18] sm:$0xff]  ;;  %v1711_v8 = vld [vmem:[#allocation6 + $0x2108] sm:$0xff] }
 0x26d   :  { %3359 = vmatpush.msrb.mxu1 %v2145_v21  ;;  %3246 = vmatpush.msra.mxu2 %v703_v15  ;;  %v1907_v12 = vld [vmem:[#allocation6 + $0x2728] sm:$0xff]  ;;  %v830_v21 = vld [vmem:[#allocation6 + $0x580] sm:$0xff] }
 0x26e   :  { %3268 = vmatpush.msra.mxu3 %v899_v61  ;;  %3305 = vmatpush.msrb.mxu0 %v1389_v18  ;;  %v2019_v15 = vld [vmem:[#allocation6 + $0x2aa8] sm:$0xff]  ;;  %v1697_v61 = vld [vmem:[#allocation6 + $0x2098] sm:$0xff] }
 0x26f   :  { %3360 = vmatpush.msrb.mxu1 %v2131_v19  ;;  %3247 = vmatpush.msra.mxu2 %v689_v23  ;;  %v1893_v18 = vld [vmem:[#allocation6 + $0x26b8] sm:$0xff]  ;;  %v816_v19 = vld [vmem:[#allocation6 + $0x510] sm:$0xff] }
 0x270   :  { %3269 = vmatpush.msra.mxu3 %v885_v26  ;;  %3306 = vmatpush.msrb.mxu0 %v1375_v27  ;;  %v2005_v23 = vld [vmem:[#allocation6 + $0x2a38] sm:$0xff]  ;;  %v1683_v26 = vld [vmem:[#allocation6 + $0x2028] sm:$0xff] }
 0x271   :  { %3361 = vmatpush.msrb.mxu1 %v2117_v29  ;;  %3270 = vmatmul.f32.vlgmr.msra.gmra.mxu3 %v5158_v22  ;;  %v1879_v27 = vld [vmem:[#allocation6 + $0x2648] sm:$0xff]  ;;  %v802_v29 = vld [vmem:[#allocation6 + $0x4a0] sm:$0xff] }
 0x272   :  { %3334 = vmatpush.msrb.mxu3 %v1991_v31  ;;  %3248 = vmatpush.msra.mxu2 %v675_v33  ;;  %v1544_v31 = vld [vmem:[#allocation6 + $0x1bd0] sm:$0xff]  ;;  %v1669_v33 = vld [vmem:[#allocation6 + $0x1fb8] sm:$0xff] }
 0x273   :  { %3307 = vmatpush.msrb.mxu0 %v1361_v35  ;;  %3362 = vmatpush.msrb.mxu1 %v2103_v42  ;;  %v1865_v35 = vld [vmem:[#allocation6 + $0x25d8] sm:$0xff]  ;;  %v788_v42 = vld [vmem:[#allocation6 + $0x430] sm:$0xff] }
 0x274   :  { %3335 = vmatpush.msrb.mxu3 %v1977_v37  ;;  %3249 = vmatpush.msra.mxu2 %v661_v38  ;;  %v1530_v37 = vld [vmem:[#allocation6 + $0x1b60] sm:$0xff]  ;;  %v1655_v38 = vld [vmem:[#allocation6 + $0x1f48] sm:$0xff] }
 0x275   :  { %3308 = vmatpush.msrb.mxu0 %v1347_v44  ;;  %3363 = vmatpush.msrb.mxu1 %v2089_v45  ;;  %v1851_v44 = vld [vmem:[#allocation6 + $0x2568] sm:$0xff]  ;;  %v774_v45 = vld [vmem:[#allocation6 + $0x3c0] sm:$0xff] }
 0x276   :  { %3250 = vmatmul.f32.vlgmr.msra.gmra.mxu2 %v5155_v16  ;;  %3336 = vmatpush.msrb.mxu3 %v1963_v46  ;;  %v1516_v46 = vld [vmem:[#allocation6 + $0x1af0] sm:$0xff] }
 0x277   :  { %3314 = vmatpush.msrb.mxu2 %v1767_v47  ;;  %3309 = vmatpush.msrb.mxu0 %v1333_v50  ;;  %v1641_v47 = vld [vmem:[#allocation6 + $0x1ed8] sm:$0xff] }
 0x278   :  { %3364 = vmatpush.msrb.mxu1 %v2075_v51  ;;  %3310 = vmatmul.f32.vlgmr.msrb.gmra.mxu0 %v5165_v41  ;;  %v1837_v50 = vld [vmem:[#allocation6 + $0x24f8] sm:$0xff]  ;;  %v760_v51 = vld [vmem:[#allocation6 + $0x350] sm:$0xff] }
 0x279   :  { %3315 = vmatpush.msrb.mxu2 %v1753_v52  ;;  %3337 = vmatpush.msrb.mxu3 %v1949_v55  ;;  %v1502_v52 = vld [vmem:[#allocation6 + $0x1a80] sm:$0xff]  ;;  %v1627_v55 = vld [vmem:[#allocation6 + $0x1e68] sm:$0xff] }
 0x27a   :  { %3374 = vmatpush.msra.mxu0 %v872_v56  ;;  %3365 = vmatpush.msrb.mxu1 %v2061_v57  ;;  %v1823_v56 = vld [vmem:[#allocation6 + $0x2488] sm:$0xff]  ;;  %v746_v57 = vld [vmem:[#allocation6 + $0x2e0] sm:$0xff] }
 0x27b   :  { %3316 = vmatpush.msrb.mxu2 %v1739_v59  ;;  %3338 = vmatpush.msrb.mxu3 %v1935_v62  ;;  %v1488_v59 = vld [vmem:[#allocation6 + $0x1a10] sm:$0xff]  ;;  %v1613_v62 = vld [vmem:[#allocation6 + $0x1df8] sm:$0xff] }
 0x27c   :  { %3375 = vmatpush.msra.mxu0 %v858_v0  ;;  %3366 = vmatpush.msrb.mxu1 %v2047_v1  ;;  %v1809_v0 = vld [vmem:[#allocation6 + $0x2418] sm:$0xff]  ;;  %v732_v1 = vld [vmem:[#allocation6 + $0x270] sm:$0xff] }
 0x27d   :  { %3317 = vmatpush.msrb.mxu2 %v1725_v2  ;;  %3339 = vmatpush.msrb.mxu3 %v1921_v5  ;;  %v1474_v2 = vld [vmem:[#allocation6 + $0x19a0] sm:$0xff]  ;;  %v1599_v5 = vld [vmem:[#allocation6 + $0x1d88] sm:$0xff] }
 0x27e   :  { %3376 = vmatpush.msra.mxu0 %v844_v6  ;;  %3367 = vmatpush.msrb.mxu1 %v2033_v7  ;;  %v1795_v6 = vld [vmem:[#allocation6 + $0x23a8] sm:$0xff]  ;;  %v718_v7 = vld [vmem:[#allocation6 + $0x200] sm:$0xff] }
 0x27f   :  { %3318 = vmatpush.msrb.mxu2 %v1711_v8  ;;  %3340 = vmatpush.msrb.mxu3 %v1907_v12  ;;  %v1460_v8 = vld [vmem:[#allocation6 + $0x1930] sm:$0xff]  ;;  %v1585_v12 = vld [vmem:[#allocation6 + $0x1d18] sm:$0xff] }
 0x280   :  { %3377 = vmatpush.msra.mxu0 %v830_v21  ;;  %3368 = vmatpush.msrb.mxu1 %v2019_v15  ;;  %v1781_v21 = vld [vmem:[#allocation6 + $0x2338] sm:$0xff]  ;;  %v704_v15 = vld [vmem:[#allocation6 + $0x190] sm:$0xff] }
 0x281   :  { %3319 = vmatpush.msrb.mxu2 %v1697_v61  ;;  %3341 = vmatpush.msrb.mxu3 %v1893_v18  ;;  %v1446_v61 = vld [vmem:[#allocation6 + $0x18c0] sm:$0xff]  ;;  %v1320_v18 = vld [vmem:[#allocation6 + $0x14d0] sm:$0xff] }
 0x282   :  { %3378 = vmatpush.msra.mxu0 %v816_v19  ;;  %3369 = vmatpush.msrb.mxu1 %v2005_v23  ;;  %v1571_v19 = vld [vmem:[#allocation6 + $0x1ca8] sm:$0xff]  ;;  %v690_v23 = vld [vmem:[#allocation6 + $0x120] sm:$0xff] }
 0x283   :  { %3320 = vmatpush.msrb.mxu2 %v1683_v26  ;;  %3342 = vmatpush.msrb.mxu3 %v1879_v27  ;;  %v1432_v26 = vld [vmem:[#allocation6 + $0x1850] sm:$0xff]  ;;  %v1306_v27 = vld [vmem:[#allocation6 + $0x1460] sm:$0xff] }
 0x284   :  { %3370 = vmatmul.f32.vlgmr.msrb.gmra.mxu1 %v5178_v11  ;;  %3379 = vmatpush.msra.mxu0 %v802_v29  ;;  %v1557_v29 = vld [vmem:[#allocation6 + $0x1c38] sm:$0xff] }
 0x285   :  { %3434 = vmatpush.msra.mxu1 %v1544_v31  ;;  %3321 = vmatpush.msrb.mxu2 %v1669_v33  ;;  %v676_v31 = vld [vmem:[#allocation6 + $0xb0] sm:$0xff]  ;;  %v1418_v33 = vld [vmem:[#allocation6 + $0x17e0] sm:$0xff] }
 0x286   :  { %3343 = vmatpush.msrb.mxu3 %v1865_v35  ;;  %3380 = vmatpush.msra.mxu0 %v788_v42  ;;  %v1292_v35 = vld [vmem:[#allocation6 + $0x13f0] sm:$0xff] }
 0x287   :  { %3435 = vmatpush.msra.mxu1 %v1530_v37  ;;  %3322 = vmatpush.msrb.mxu2 %v1655_v38  ;;  %v1096_v42 = vld [vmem:[#allocation6 + $0xdd0] sm:$0xff]  ;;  %v662_v37 = vld [vmem:[#allocation6 + $0x40] sm:$0xff] }
 0x288   :  { %3344 = vmatpush.msrb.mxu3 %v1851_v44  ;;  %3381 = vmatpush.msra.mxu0 %v774_v45  ;;  %v1404_v38 = vld [vmem:[#allocation6 + $0x1770] sm:$0xff]  ;;  %v1082_v44 = vld [vmem:[#allocation6 + $0xd60] sm:$0xff] }
 0x289   :  { %3436 = vmatpush.msra.mxu1 %v1516_v46  ;;  %3323 = vmatpush.msrb.mxu2 %v1641_v47  ;;  %v1278_v45 = vld [vmem:[#allocation6 + $0x1380] sm:$0xff]  ;;  %v1768_v46 = vld [vmem:[#allocation6 + $0x22d0] sm:$0xff] }
 0x28a   :  { %3345 = vmatpush.msrb.mxu3 %v1837_v50  ;;  %3382 = vmatpush.msra.mxu0 %v760_v51  ;;  %v1390_v47 = vld [vmem:[#allocation6 + $0x1700] sm:$0xff]  ;;  %v1068_v50 = vld [vmem:[#allocation6 + $0xcf0] sm:$0xff] }
 0x28b   :  { %3437 = vmatpush.msra.mxu1 %v1502_v52  ;;  %3324 = vmatpush.msrb.mxu2 %v1627_v55  ;;  %v1264_v51 = vld [vmem:[#allocation6 + $0x1310] sm:$0xff]  ;;  %v1754_v52 = vld [vmem:[#allocation6 + $0x2260] sm:$0xff] }
 0x28c   :  { %3346 = vmatpush.msrb.mxu3 %v1823_v56  ;;  %3383 = vmatpush.msra.mxu0 %v746_v57  ;;  %v1376_v55 = vld [vmem:[#allocation6 + $0x1690] sm:$0xff]  ;;  %v1054_v56 = vld [vmem:[#allocation6 + $0xc80] sm:$0xff] }
 0x28d   :  { %3438 = vmatpush.msra.mxu1 %v1488_v59  ;;  %3325 = vmatpush.msrb.mxu2 %v1613_v62  ;;  %v1250_v57 = vld [vmem:[#allocation6 + $0x12a0] sm:$0xff]  ;;  %v1740_v59 = vld [vmem:[#allocation6 + $0x21f0] sm:$0xff] }
 0x28e   :  { %3347 = vmatpush.msrb.mxu3 %v1809_v0  ;;  %3384 = vmatpush.msra.mxu0 %v732_v1  ;;  %v1362_v62 = vld [vmem:[#allocation6 + $0x1620] sm:$0xff]  ;;  %v1040_v0 = vld [vmem:[#allocation6 + $0xc10] sm:$0xff] }
 0x28f   :  { %3439 = vmatpush.msra.mxu1 %v1474_v2  ;;  %3326 = vmatpush.msrb.mxu2 %v1599_v5  ;;  %v1236_v1 = vld [vmem:[#allocation6 + $0x1230] sm:$0xff]  ;;  %v1726_v2 = vld [vmem:[#allocation6 + $0x2180] sm:$0xff] }
 0x290   :  { %3348 = vmatpush.msrb.mxu3 %v1795_v6  ;;  %3385 = vmatpush.msra.mxu0 %v718_v7  ;;  %v1348_v5 = vld [vmem:[#allocation6 + $0x15b0] sm:$0xff]  ;;  %v1026_v6 = vld [vmem:[#allocation6 + $0xba0] sm:$0xff] }
 0x291   :  { %3440 = vmatpush.msra.mxu1 %v1460_v8  ;;  %3327 = vmatpush.msrb.mxu2 %v1585_v12  ;;  %v1222_v7 = vld [vmem:[#allocation6 + $0x11c0] sm:$0xff]  ;;  %v1712_v8 = vld [vmem:[#allocation6 + $0x2110] sm:$0xff] }
 0x292   :  { %3349 = vmatpush.msrb.mxu3 %v1781_v21  ;;  %3386 = vmatpush.msra.mxu0 %v704_v15  ;;  %v1334_v12 = vld [vmem:[#allocation6 + $0x1540] sm:$0xff]  ;;  %v1012_v21 = vld [vmem:[#allocation6 + $0xb30] sm:$0xff] }
 0x293   :  { %3441 = vmatpush.msra.mxu1 %v1446_v61  ;;  %3350 = vmatmul.f32.vlgmr.msrb.gmra.mxu3 %v5181_v20  ;;  %v1208_v15 = vld [vmem:[#allocation6 + $0x1150] sm:$0xff]  ;;  %v1698_v61 = vld [vmem:[#allocation6 + $0x20a0] sm:$0xff] }
 0x294   :  { %3414 = vmatpush.msra.mxu3 %v1320_v18  ;;  %3328 = vmatpush.msrb.mxu2 %v1571_v19  ;;  %v873_v18 = vld [vmem:[#allocation6 + $0x6d8] sm:$0xff]  ;;  %v998_v19 = vld [vmem:[#allocation6 + $0xac0] sm:$0xff] }
 0x295   :  { %3387 = vmatpush.msra.mxu0 %v690_v23  ;;  %3442 = vmatpush.msra.mxu1 %v1432_v26  ;;  %v1194_v23 = vld [vmem:[#allocation6 + $0x10e0] sm:$0xff]  ;;  %v1684_v26 = vld [vmem:[#allocation6 + $0x2030] sm:$0xff] }
 0x296   :  { %3415 = vmatpush.msra.mxu3 %v1306_v27  ;;  %3329 = vmatpush.msrb.mxu2 %v1557_v29  ;;  %v859_v27 = vld [vmem:[#allocation6 + $0x668] sm:$0xff]  ;;  %v984_v29 = vld [vmem:[#allocation6 + $0xa50] sm:$0xff] }
 0x297   :  { %3388 = vmatpush.msra.mxu0 %v676_v31  ;;  %3443 = vmatpush.msra.mxu1 %v1418_v33  ;;  %v1180_v31 = vld [vmem:[#allocation6 + $0x1070] sm:$0xff]  ;;  %v1670_v33 = vld [vmem:[#allocation6 + $0x1fc0] sm:$0xff] }
 0x298   :  { %3330 = vmatmul.f32.vlgmr.msrb.gmra.mxu2 %v5171_v28  ;;  %3416 = vmatpush.msra.mxu3 %v1292_v35  ;;  %v845_v35 = vld [vmem:[#allocation6 + $0x5f8] sm:$0xff] }
 0x299   :  { %3394 = vmatpush.msra.mxu2 %v1096_v42  ;;  %3389 = vmatpush.msra.mxu0 %v662_v37  ;;  %v970_v42 = vld [vmem:[#allocation6 + $0x9e0] sm:$0xff] }
 0x29a   :  { %3444 = vmatpush.msra.mxu1 %v1404_v38  ;;  %3390 = vmatmul.f32.vlgmr.msra.gmra.mxu0 %v5155_v16  ;;  %v1166_v37 = vld [vmem:[#allocation6 + $0x1000] sm:$0xff]  ;;  %v1656_v38 = vld [vmem:[#allocation6 + $0x1f50] sm:$0xff] }
 0x29b   :  { %3395 = vmatpush.msra.mxu2 %v1082_v44  ;;  %3417 = vmatpush.msra.mxu3 %v1278_v45  ;;  %v831_v44 = vld [vmem:[#allocation6 + $0x588] sm:$0xff]  ;;  %v956_v45 = vld [vmem:[#allocation6 + $0x970] sm:$0xff] }
 0x29c   :  { %3454 = vmatpush.msrb.mxu0 %v1768_v46  ;;  %3445 = vmatpush.msra.mxu1 %v1390_v47  ;;  %v1152_v46 = vld [vmem:[#allocation6 + $0xf90] sm:$0xff]  ;;  %v1642_v47 = vld [vmem:[#allocation6 + $0x1ee0] sm:$0xff] }
 0x29d   :  { %3396 = vmatpush.msra.mxu2 %v1068_v50  ;;  %3418 = vmatpush.msra.mxu3 %v1264_v51  ;;  %v817_v50 = vld [vmem:[#allocation6 + $0x518] sm:$0xff]  ;;  %v942_v51 = vld [vmem:[#allocation6 + $0x900] sm:$0xff] }
 0x29e   :  { %3455 = vmatpush.msrb.mxu0 %v1754_v52  ;;  %3446 = vmatpush.msra.mxu1 %v1376_v55  ;;  %v1138_v52 = vld [vmem:[#allocation6 + $0xf20] sm:$0xff]  ;;  %v1628_v55 = vld [vmem:[#allocation6 + $0x1e70] sm:$0xff] }
 0x29f   :  { %3397 = vmatpush.msra.mxu2 %v1054_v56  ;;  %3419 = vmatpush.msra.mxu3 %v1250_v57  ;;  %v803_v56 = vld [vmem:[#allocation6 + $0x4a8] sm:$0xff]  ;;  %v928_v57 = vld [vmem:[#allocation6 + $0x890] sm:$0xff] }
 0x2a0   :  { %3456 = vmatpush.msrb.mxu0 %v1740_v59  ;;  %3447 = vmatpush.msra.mxu1 %v1362_v62  ;;  %v1124_v59 = vld [vmem:[#allocation6 + $0xeb0] sm:$0xff]  ;;  %v1614_v62 = vld [vmem:[#allocation6 + $0x1e00] sm:$0xff] }
 0x2a1   :  { %3398 = vmatpush.msra.mxu2 %v1040_v0  ;;  %3420 = vmatpush.msra.mxu3 %v1236_v1  ;;  %v789_v0 = vld [vmem:[#allocation6 + $0x438] sm:$0xff]  ;;  %v914_v1 = vld [vmem:[#allocation6 + $0x820] sm:$0xff] }
 0x2a2   :  { %3457 = vmatpush.msrb.mxu0 %v1726_v2  ;;  %3448 = vmatpush.msra.mxu1 %v1348_v5  ;;  %v1110_v2 = vld [vmem:[#allocation6 + $0xe40] sm:$0xff]  ;;  %v1600_v5 = vld [vmem:[#allocation6 + $0x1d90] sm:$0xff] }
 0x2a3   :  { %3399 = vmatpush.msra.mxu2 %v1026_v6  ;;  %3421 = vmatpush.msra.mxu3 %v1222_v7  ;;  %v775_v6 = vld [vmem:[#allocation6 + $0x3c8] sm:$0xff]  ;;  %v2216_v7 = vld [vmem:[#allocation6 + $0x30d0] sm:$0xff] }
 0x2a4   :  { %3458 = vmatpush.msrb.mxu0 %v1712_v8  ;;  %3449 = vmatpush.msra.mxu1 %v1334_v12  ;;  %v900_v8 = vld [vmem:[#allocation6 + $0x7b0] sm:$0xff]  ;;  %v1586_v12 = vld [vmem:[#allocation6 + $0x1d20] sm:$0xff] }
 0x2a5   :  { %3400 = vmatpush.msra.mxu2 %v1012_v21  ;;  %3422 = vmatpush.msra.mxu3 %v1208_v15  ;;  %v761_v21 = vld [vmem:[#allocation6 + $0x358] sm:$0xff]  ;;  %v2202_v15 = vld [vmem:[#allocation6 + $0x3060] sm:$0xff] }
 0x2a6   :  { %3450 = vmatmul.f32.vlgmr.msra.gmra.mxu1 %v5165_v41  ;;  %3459 = vmatpush.msrb.mxu0 %v1698_v61  ;;  %v886_v61 = vld [vmem:[#allocation6 + $0x740] sm:$0xff] }
 0x2a7   :  { %3514 = vmatpush.msrb.mxu1 %v873_v18  ;;  %3401 = vmatpush.msra.mxu2 %v998_v19  ;;  %v1572_v18 = vld [vmem:[#allocation6 + $0x1cb0] sm:$0xff]  ;;  %v747_v19 = vld [vmem:[#allocation6 + $0x2e8] sm:$0xff] }
 0x2a8   :  { %3423 = vmatpush.msra.mxu3 %v1194_v23  ;;  %3460 = vmatpush.msrb.mxu0 %v1684_v26  ;;  %v2188_v23 = vld [vmem:[#allocation6 + $0x2ff0] sm:$0xff] }
 0x2a9   :  { %3515 = vmatpush.msrb.mxu1 %v859_v27  ;;  %3402 = vmatpush.msra.mxu2 %v984_v29  ;;  %v1992_v26 = vld [vmem:[#allocation6 + $0x29d0] sm:$0xff]  ;;  %v1558_v27 = vld [vmem:[#allocation6 + $0x1c40] sm:$0xff]  ;;  %v733_v29 = vld [vmem:[#allocation6 + $0x278] sm:$0xff] }
 0x2aa   :  { %3424 = vmatpush.msra.mxu3 %v1180_v31  ;;  %3461 = vmatpush.msrb.mxu0 %v1670_v33  ;;  %v1978_v31 = vld [vmem:[#allocation6 + $0x2960] sm:$0xff] }
 0x2ab   :  { %3516 = vmatpush.msrb.mxu1 %v845_v35  ;;  %3403 = vmatpush.msra.mxu2 %v970_v42  ;;  %v2174_v33 = vld [vmem:[#allocation6 + $0x2f80] sm:$0xff]  ;;  %v1097_v35 = vld [vmem:[#allocation6 + $0xdd8] sm:$0xff]  ;;  %v719_v42 = vld [vmem:[#allocation6 + $0x208] sm:$0xff] }
 0x2ac   :  { %3425 = vmatpush.msra.mxu3 %v1166_v37  ;;  %3462 = vmatpush.msrb.mxu0 %v1656_v38  ;;  %v1964_v37 = vld [vmem:[#allocation6 + $0x28f0] sm:$0xff] }
 0x2ad   :  { %3517 = vmatpush.msrb.mxu1 %v831_v44  ;;  %3404 = vmatpush.msra.mxu2 %v956_v45  ;;  %v2160_v38 = vld [vmem:[#allocation6 + $0x2f10] sm:$0xff]  ;;  %v1083_v44 = vld [vmem:[#allocation6 + $0xd68] sm:$0xff]  ;;  %v705_v45 = vld [vmem:[#allocation6 + $0x198] sm:$0xff] }
 0x2ae   :  { %3426 = vmatpush.msra.mxu3 %v1152_v46  ;;  %3463 = vmatpush.msrb.mxu0 %v1642_v47  ;;  %v1950_v46 = vld [vmem:[#allocation6 + $0x2880] sm:$0xff] }
 0x2af   :  { %3518 = vmatpush.msrb.mxu1 %v817_v50  ;;  %3405 = vmatpush.msra.mxu2 %v942_v51  ;;  %v2146_v47 = vld [vmem:[#allocation6 + $0x2ea0] sm:$0xff]  ;;  %v1069_v50 = vld [vmem:[#allocation6 + $0xcf8] sm:$0xff]  ;;  %v691_v51 = vld [vmem:[#allocation6 + $0x128] sm:$0xff] }
 0x2b0   :  { %3427 = vmatpush.msra.mxu3 %v1138_v52  ;;  %3464 = vmatpush.msrb.mxu0 %v1628_v55  ;;  %v1936_v52 = vld [vmem:[#allocation6 + $0x2810] sm:$0xff] }
 0x2b1   :  { %3519 = vmatpush.msrb.mxu1 %v803_v56  ;;  %3406 = vmatpush.msra.mxu2 %v928_v57  ;;  %v2132_v55 = vld [vmem:[#allocation6 + $0x2e30] sm:$0xff]  ;;  %v1055_v56 = vld [vmem:[#allocation6 + $0xc88] sm:$0xff]  ;;  %v677_v57 = vld [vmem:[#allocation6 + $0xb8] sm:$0xff] }
 0x2b2   :  { %3428 = vmatpush.msra.mxu3 %v1124_v59  ;;  %3465 = vmatpush.msrb.mxu0 %v1614_v62  ;;  %v1922_v59 = vld [vmem:[#allocation6 + $0x27a0] sm:$0xff] }
 0x2b3   :  { %3520 = vmatpush.msrb.mxu1 %v789_v0  ;;  %3407 = vmatpush.msra.mxu2 %v914_v1  ;;  %v2118_v62 = vld [vmem:[#allocation6 + $0x2dc0] sm:$0xff]  ;;  %v1041_v0 = vld [vmem:[#allocation6 + $0xc18] sm:$0xff]  ;;  %v663_v1 = vld [vmem:[#allocation6 + $0x48] sm:$0xff] }
 0x2b4   :  { %3429 = vmatpush.msra.mxu3 %v1110_v2  ;;  %3466 = vmatpush.msrb.mxu0 %v1600_v5  ;;  %v1908_v2 = vld [vmem:[#allocation6 + $0x2730] sm:$0xff] }
 0x2b5   :  { %3521 = vmatpush.msrb.mxu1 %v775_v6  ;;  %3430 = vmatmul.f32.vlgmr.msra.gmra.mxu3 %v5163_v40  ;;  %v2104_v5 = vld [vmem:[#allocation6 + $0x2d50] sm:$0xff]  ;;  %v1027_v6 = vld [vmem:[#allocation6 + $0xba8] sm:$0xff] }
 0x2b6   :  { %3494 = vmatpush.msrb.mxu3 %v2216_v7  ;;  %3408 = vmatpush.msra.mxu2 %v900_v8  ;;  %v1769_v7 = vld [vmem:[#allocation6 + $0x22d8] sm:$0xff]  ;;  %v1894_v8 = vld [vmem:[#allocation6 + $0x26c0] sm:$0xff] }
 0x2b7   :  { %3467 = vmatpush.msrb.mxu0 %v1586_v12  ;;  %3522 = vmatpush.msrb.mxu1 %v761_v21  ;;  %v2090_v12 = vld [vmem:[#allocation6 + $0x2ce0] sm:$0xff]  ;;  %v1013_v21 = vld [vmem:[#allocation6 + $0xb38] sm:$0xff] }
 0x2b8   :  { %3495 = vmatpush.msrb.mxu3 %v2202_v15  ;;  %3409 = vmatpush.msra.mxu2 %v886_v61  ;;  %v1755_v15 = vld [vmem:[#allocation6 + $0x2268] sm:$0xff]  ;;  %v1880_v61 = vld [vmem:[#allocation6 + $0x2650] sm:$0xff] }
 0x2b9   :  { %3468 = vmatpush.msrb.mxu0 %v1572_v18  ;;  %3523 = vmatpush.msrb.mxu1 %v747_v19  ;;  %v2076_v18 = vld [vmem:[#allocation6 + $0x2c70] sm:$0xff]  ;;  %v999_v19 = vld [vmem:[#allocation6 + $0xac8] sm:$0xff] }
 0x2ba   :  { %3410 = vmatmul.f32.vlgmr.msra.gmra.mxu2 %v5158_v22  ;;  %3496 = vmatpush.msrb.mxu3 %v2188_v23  ;;  %v1741_v23 = vld [vmem:[#allocation6 + $0x21f8] sm:$0xff] }
 0x2bb   :  { %3474 = vmatpush.msrb.mxu2 %v1992_v26  ;;  %3469 = vmatpush.msrb.mxu0 %v1558_v27  ;;  %v1866_v26 = vld [vmem:[#allocation6 + $0x25e0] sm:$0xff] }
 0x2bc   :  { %3524 = vmatpush.msrb.mxu1 %v733_v29  ;;  %3470 = vmatmul.f32.vlgmr.msrb.gmra.mxu0 %v5171_v28  ;;  %v2062_v27 = vld [vmem:[#allocation6 + $0x2c00] sm:$0xff]  ;;  %v985_v29 = vld [vmem:[#allocation6 + $0xa58] sm:$0xff] }
 0x2bd   :  { %3475 = vmatpush.msrb.mxu2 %v1978_v31  ;;  %3497 = vmatpush.msrb.mxu3 %v2174_v33  ;;  %v1727_v31 = vld [vmem:[#allocation6 + $0x2188] sm:$0xff]  ;;  %v1852_v33 = vld [vmem:[#allocation6 + $0x2570] sm:$0xff] }
 0x2be   :  { %3534 = vmatpush.msra.mxu0 %v1097_v35  ;;  %3525 = vmatpush.msrb.mxu1 %v719_v42  ;;  %v2048_v35 = vld [vmem:[#allocation6 + $0x2b90] sm:$0xff]  ;;  %v971_v42 = vld [vmem:[#allocation6 + $0x9e8] sm:$0xff] }
 0x2bf   :  { %3476 = vmatpush.msrb.mxu2 %v1964_v37  ;;  %3498 = vmatpush.msrb.mxu3 %v2160_v38  ;;  %v1713_v37 = vld [vmem:[#allocation6 + $0x2118] sm:$0xff]  ;;  %v1838_v38 = vld [vmem:[#allocation6 + $0x2500] sm:$0xff] }
 0x2c0   :  { %3535 = vmatpush.msra.mxu0 %v1083_v44  ;;  %3526 = vmatpush.msrb.mxu1 %v705_v45  ;;  %v2034_v44 = vld [vmem:[#allocation6 + $0x2b20] sm:$0xff]  ;;  %v957_v45 = vld [vmem:[#allocation6 + $0x978] sm:$0xff] }
 0x2c1   :  { %3477 = vmatpush.msrb.mxu2 %v1950_v46  ;;  %3499 = vmatpush.msrb.mxu3 %v2146_v47  ;;  %v1699_v46 = vld [vmem:[#allocation6 + $0x20a8] sm:$0xff]  ;;  %v1824_v47 = vld [vmem:[#allocation6 + $0x2490] sm:$0xff] }
 0x2c2   :  { %3536 = vmatpush.msra.mxu0 %v1069_v50  ;;  %3527 = vmatpush.msrb.mxu1 %v691_v51  ;;  %v2020_v50 = vld [vmem:[#allocation6 + $0x2ab0] sm:$0xff]  ;;  %v943_v51 = vld [vmem:[#allocation6 + $0x908] sm:$0xff] }
 0x2c3   :  { %3478 = vmatpush.msrb.mxu2 %v1936_v52  ;;  %3500 = vmatpush.msrb.mxu3 %v2132_v55  ;;  %v1685_v52 = vld [vmem:[#allocation6 + $0x2038] sm:$0xff]  ;;  %v1810_v55 = vld [vmem:[#allocation6 + $0x2420] sm:$0xff] }
 0x2c4   :  { %3537 = vmatpush.msra.mxu0 %v1055_v56  ;;  %3528 = vmatpush.msrb.mxu1 %v677_v57  ;;  %v2006_v56 = vld [vmem:[#allocation6 + $0x2a40] sm:$0xff]  ;;  %v929_v57 = vld [vmem:[#allocation6 + $0x898] sm:$0xff] }
 0x2c5   :  { %3479 = vmatpush.msrb.mxu2 %v1922_v59  ;;  %3501 = vmatpush.msrb.mxu3 %v2118_v62  ;;  %v1671_v59 = vld [vmem:[#allocation6 + $0x1fc8] sm:$0xff]  ;;  %v1545_v62 = vld [vmem:[#allocation6 + $0x1bd8] sm:$0xff] }
 0x2c6   :  { %3538 = vmatpush.msra.mxu0 %v1041_v0  ;;  %3529 = vmatpush.msrb.mxu1 %v663_v1  ;;  %v1796_v0 = vld [vmem:[#allocation6 + $0x23b0] sm:$0xff]  ;;  %v915_v1 = vld [vmem:[#allocation6 + $0x828] sm:$0xff] }
 0x2c7   :  { %3480 = vmatpush.msrb.mxu2 %v1908_v2  ;;  %3502 = vmatpush.msrb.mxu3 %v2104_v5  ;;  %v1657_v2 = vld [vmem:[#allocation6 + $0x1f58] sm:$0xff]  ;;  %v1531_v5 = vld [vmem:[#allocation6 + $0x1b68] sm:$0xff] }
 0x2c8   :  { %3530 = vmatmul.f32.vlgmr.msrb.gmra.mxu1 %v5155_v16  ;;  %3539 = vmatpush.msra.mxu0 %v1027_v6  ;;  %v1782_v6 = vld [vmem:[#allocation6 + $0x2340] sm:$0xff] }
 0x2c9   :  { %3594 = vmatpush.msra.mxu1 %v1769_v7  ;;  %3481 = vmatpush.msrb.mxu2 %v1894_v8  ;;  %v901_v7 = vld [vmem:[#allocation6 + $0x7b8] sm:$0xff]  ;;  %v1643_v8 = vld [vmem:[#allocation6 + $0x1ee8] sm:$0xff] }
 0x2ca   :  { %3503 = vmatpush.msrb.mxu3 %v2090_v12  ;;  %3540 = vmatpush.msra.mxu0 %v1013_v21  ;;  %v1517_v12 = vld [vmem:[#allocation6 + $0x1af8] sm:$0xff] }
 0x2cb   :  { %3595 = vmatpush.msra.mxu1 %v1755_v15  ;;  %3482 = vmatpush.msrb.mxu2 %v1880_v61  ;;  %v1321_v21 = vld [vmem:[#allocation6 + $0x14d8] sm:$0xff]  ;;  %v887_v15 = vld [vmem:[#allocation6 + $0x748] sm:$0xff] }
 0x2cc   :  { %3504 = vmatpush.msrb.mxu3 %v2076_v18  ;;  %3541 = vmatpush.msra.mxu0 %v999_v19  ;;  %v1629_v61 = vld [vmem:[#allocation6 + $0x1e78] sm:$0xff]  ;;  %v1307_v18 = vld [vmem:[#allocation6 + $0x1468] sm:$0xff] }
 0x2cd   :  { %3596 = vmatpush.msra.mxu1 %v1741_v23  ;;  %3483 = vmatpush.msrb.mxu2 %v1866_v26  ;;  %v1503_v19 = vld [vmem:[#allocation6 + $0x1a88] sm:$0xff]  ;;  %v1993_v23 = vld [vmem:[#allocation6 + $0x29d8] sm:$0xff] }
 0x2ce   :  { %3505 = vmatpush.msrb.mxu3 %v2062_v27  ;;  %3542 = vmatpush.msra.mxu0 %v985_v29  ;;  %v1615_v26 = vld [vmem:[#allocation6 + $0x1e08] sm:$0xff]  ;;  %v1293_v27 = vld [vmem:[#allocation6 + $0x13f8] sm:$0xff] }
 0x2cf   :  { %3597 = vmatpush.msra.mxu1 %v1727_v31  ;;  %3484 = vmatpush.msrb.mxu2 %v1852_v33  ;;  %v1489_v29 = vld [vmem:[#allocation6 + $0x1a18] sm:$0xff]  ;;  %v1979_v31 = vld [vmem:[#allocation6 + $0x2968] sm:$0xff] }
 0x2d0   :  { %3506 = vmatpush.msrb.mxu3 %v2048_v35  ;;  %3543 = vmatpush.msra.mxu0 %v971_v42  ;;  %v1601_v33 = vld [vmem:[#allocation6 + $0x1d98] sm:$0xff]  ;;  %v1279_v35 = vld [vmem:[#allocation6 + $0x1388] sm:$0xff] }
 0x2d1   :  { %3598 = vmatpush.msra.mxu1 %v1713_v37  ;;  %3485 = vmatpush.msrb.mxu2 %v1838_v38  ;;  %v1475_v42 = vld [vmem:[#allocation6 + $0x19a8] sm:$0xff]  ;;  %v1965_v37 = vld [vmem:[#allocation6 + $0x28f8] sm:$0xff] }
 0x2d2   :  { %3507 = vmatpush.msrb.mxu3 %v2034_v44  ;;  %3544 = vmatpush.msra.mxu0 %v957_v45  ;;  %v1587_v38 = vld [vmem:[#allocation6 + $0x1d28] sm:$0xff]  ;;  %v1265_v44 = vld [vmem:[#allocation6 + $0x1318] sm:$0xff] }
 0x2d3   :  { %3599 = vmatpush.msra.mxu1 %v1699_v46  ;;  %3486 = vmatpush.msrb.mxu2 %v1824_v47  ;;  %v1461_v45 = vld [vmem:[#allocation6 + $0x1938] sm:$0xff]  ;;  %v1951_v46 = vld [vmem:[#allocation6 + $0x2888] sm:$0xff] }
 0x2d4   :  { %3508 = vmatpush.msrb.mxu3 %v2020_v50  ;;  %3545 = vmatpush.msra.mxu0 %v943_v51  ;;  %v1573_v47 = vld [vmem:[#allocation6 + $0x1cb8] sm:$0xff]  ;;  %v1251_v50 = vld [vmem:[#allocation6 + $0x12a8] sm:$0xff] }
 0x2d5   :  { %3600 = vmatpush.msra.mxu1 %v1685_v52  ;;  %3487 = vmatpush.msrb.mxu2 %v1810_v55  ;;  %v1447_v51 = vld [vmem:[#allocation6 + $0x18c8] sm:$0xff]  ;;  %v1937_v52 = vld [vmem:[#allocation6 + $0x2818] sm:$0xff] }
 0x2d6   :  { %3509 = vmatpush.msrb.mxu3 %v2006_v56  ;;  %3546 = vmatpush.msra.mxu0 %v929_v57  ;;  %v1559_v55 = vld [vmem:[#allocation6 + $0x1c48] sm:$0xff]  ;;  %v1237_v56 = vld [vmem:[#allocation6 + $0x1238] sm:$0xff] }
 0x2d7   :  { %3601 = vmatpush.msra.mxu1 %v1671_v59  ;;  %3510 = vmatmul.f32.vlgmr.msrb.gmra.mxu3 %v5178_v11  ;;  %v1433_v57 = vld [vmem:[#allocation6 + $0x1858] sm:$0xff]  ;;  %v1923_v59 = vld [vmem:[#allocation6 + $0x27a8] sm:$0xff] }
 0x2d8   :  { %3574 = vmatpush.msra.mxu3 %v1545_v62  ;;  %3488 = vmatpush.msrb.mxu2 %v1796_v0  ;;  %v1098_v62 = vld [vmem:[#allocation6 + $0xde0] sm:$0xff]  ;;  %v1223_v0 = vld [vmem:[#allocation6 + $0x11c8] sm:$0xff] }
 0x2d9   :  { %3547 = vmatpush.msra.mxu0 %v915_v1  ;;  %3602 = vmatpush.msra.mxu1 %v1657_v2  ;;  %v1419_v1 = vld [vmem:[#allocation6 + $0x17e8] sm:$0xff]  ;;  %v1909_v2 = vld [vmem:[#allocation6 + $0x2738] sm:$0xff] }
 0x2da   :  { %3575 = vmatpush.msra.mxu3 %v1531_v5  ;;  %3489 = vmatpush.msrb.mxu2 %v1782_v6  ;;  %v1084_v5 = vld [vmem:[#allocation6 + $0xd70] sm:$0xff]  ;;  %v1209_v6 = vld [vmem:[#allocation6 + $0x1158] sm:$0xff] }
 0x2db   :  { %3548 = vmatpush.msra.mxu0 %v901_v7  ;;  %3603 = vmatpush.msra.mxu1 %v1643_v8  ;;  %v1405_v7 = vld [vmem:[#allocation6 + $0x1778] sm:$0xff]  ;;  %v1895_v8 = vld [vmem:[#allocation6 + $0x26c8] sm:$0xff] }
 0x2dc   :  { %3490 = vmatmul.f32.vlgmr.msrb.gmra.mxu2 %v5181_v20  ;;  %3576 = vmatpush.msra.mxu3 %v1517_v12  ;;  %v1070_v12 = vld [vmem:[#allocation6 + $0xd00] sm:$0xff] }
 0x2dd   :  { %3554 = vmatpush.msra.mxu2 %v1321_v21  ;;  %3549 = vmatpush.msra.mxu0 %v887_v15  ;;  %v1195_v21 = vld [vmem:[#allocation6 + $0x10e8] sm:$0xff] }
 0x2de   :  { %3604 = vmatpush.msra.mxu1 %v1629_v61  ;;  %3550 = vmatmul.f32.vlgmr.msra.gmra.mxu0 %v5158_v22  ;;  %v1391_v15 = vld [vmem:[#allocation6 + $0x1708] sm:$0xff]  ;;  %v1881_v61 = vld [vmem:[#allocation6 + $0x2658] sm:$0xff] }
 0x2df   :  { %3555 = vmatpush.msra.mxu2 %v1307_v18  ;;  %3577 = vmatpush.msra.mxu3 %v1503_v19  ;;  %v1056_v18 = vld [vmem:[#allocation6 + $0xc90] sm:$0xff]  ;;  %v1181_v19 = vld [vmem:[#allocation6 + $0x1078] sm:$0xff] }
 0x2e0   :  { %3614 = vmatpush.msrb.mxu0 %v1993_v23  ;;  %3605 = vmatpush.msra.mxu1 %v1615_v26  ;;  %v1377_v23 = vld [vmem:[#allocation6 + $0x1698] sm:$0xff]  ;;  %v1867_v26 = vld [vmem:[#allocation6 + $0x25e8] sm:$0xff] }
 0x2e1   :  { %3556 = vmatpush.msra.mxu2 %v1293_v27  ;;  %3578 = vmatpush.msra.mxu3 %v1489_v29  ;;  %v1042_v27 = vld [vmem:[#allocation6 + $0xc20] sm:$0xff]  ;;  %v1167_v29 = vld [vmem:[#allocation6 + $0x1008] sm:$0xff] }
 0x2e2   :  { %3615 = vmatpush.msrb.mxu0 %v1979_v31  ;;  %3606 = vmatpush.msra.mxu1 %v1601_v33  ;;  %v1363_v31 = vld [vmem:[#allocation6 + $0x1628] sm:$0xff]  ;;  %v1853_v33 = vld [vmem:[#allocation6 + $0x2578] sm:$0xff] }
 0x2e3   :  { %3557 = vmatpush.msra.mxu2 %v1279_v35  ;;  %3579 = vmatpush.msra.mxu3 %v1475_v42  ;;  %v1028_v35 = vld [vmem:[#allocation6 + $0xbb0] sm:$0xff]  ;;  %v1153_v42 = vld [vmem:[#allocation6 + $0xf98] sm:$0xff] }
 0x2e4   :  { %3616 = vmatpush.msrb.mxu0 %v1965_v37  ;;  %3607 = vmatpush.msra.mxu1 %v1587_v38  ;;  %v1349_v37 = vld [vmem:[#allocation6 + $0x15b8] sm:$0xff]  ;;  %v1839_v38 = vld [vmem:[#allocation6 + $0x2508] sm:$0xff] }
 0x2e5   :  { %3558 = vmatpush.msra.mxu2 %v1265_v44  ;;  %3580 = vmatpush.msra.mxu3 %v1461_v45  ;;  %v1014_v44 = vld [vmem:[#allocation6 + $0xb40] sm:$0xff]  ;;  %v1139_v45 = vld [vmem:[#allocation6 + $0xf28] sm:$0xff] }
 0x2e6   :  { %3617 = vmatpush.msrb.mxu0 %v1951_v46  ;;  %3608 = vmatpush.msra.mxu1 %v1573_v47  ;;  %v1335_v46 = vld [vmem:[#allocation6 + $0x1548] sm:$0xff]  ;;  %v1825_v47 = vld [vmem:[#allocation6 + $0x2498] sm:$0xff] }
 0x2e7   :  { %3559 = vmatpush.msra.mxu2 %v1251_v50  ;;  %3581 = vmatpush.msra.mxu3 %v1447_v51  ;;  %v1000_v50 = vld [vmem:[#allocation6 + $0xad0] sm:$0xff]  ;;  %v874_v51 = vld [vmem:[#allocation6 + $0x6e0] sm:$0xff] }
 0x2e8   :  { %3618 = vmatpush.msrb.mxu0 %v1937_v52  ;;  %3609 = vmatpush.msra.mxu1 %v1559_v55  ;;  %v1125_v52 = vld [vmem:[#allocation6 + $0xeb8] sm:$0xff]  ;;  %v1811_v55 = vld [vmem:[#allocation6 + $0x2428] sm:$0xff] }
 0x2e9   :  { %3560 = vmatpush.msra.mxu2 %v1237_v56  ;;  %3582 = vmatpush.msra.mxu3 %v1433_v57  ;;  %v986_v56 = vld [vmem:[#allocation6 + $0xa60] sm:$0xff]  ;;  %v860_v57 = vld [vmem:[#allocation6 + $0x670] sm:$0xff] }
 0x2ea   :  { %3610 = vmatmul.f32.vlgmr.msra.gmra.mxu1 %v5171_v28  ;;  %3619 = vmatpush.msrb.mxu0 %v1923_v59  ;;  %v1111_v59 = vld [vmem:[#allocation6 + $0xe48] sm:$0xff] }
 0x2eb   :  { %3674 = vmatpush.msrb.mxu1 %v1098_v62  ;;  %3561 = vmatpush.msra.mxu2 %v1223_v0  ;;  %v1797_v62 = vld [vmem:[#allocation6 + $0x23b8] sm:$0xff]  ;;  %v972_v0 = vld [vmem:[#allocation6 + $0x9f0] sm:$0xff] }
 0x2ec   :  { %3583 = vmatpush.msra.mxu3 %v1419_v1  ;;  %3620 = vmatpush.msrb.mxu0 %v1909_v2  ;;  %v846_v1 = vld [vmem:[#allocation6 + $0x600] sm:$0xff]  ;;  %v2217_v2 = vld [vmem:[#allocation6 + $0x30d8] sm:$0xff] }
 0x2ed   :  { %3675 = vmatpush.msrb.mxu1 %v1084_v5  ;;  %3562 = vmatpush.msra.mxu2 %v1209_v6  ;;  %v1783_v5 = vld [vmem:[#allocation6 + $0x2348] sm:$0xff]  ;;  %v958_v6 = vld [vmem:[#allocation6 + $0x980] sm:$0xff] }
 0x2ee   :  { %3584 = vmatpush.msra.mxu3 %v1405_v7  ;;  %3621 = vmatpush.msrb.mxu0 %v1895_v8  ;;  %v2203_v7 = vld [vmem:[#allocation6 + $0x3068] sm:$0xff]  ;;  %v832_v8 = vld [vmem:[#allocation6 + $0x590] sm:$0xff] }
 0x2ef   :  { %3676 = vmatpush.msrb.mxu1 %v1070_v12  ;;  %3563 = vmatpush.msra.mxu2 %v1195_v21  ;;  %v1322_v12 = vld [vmem:[#allocation6 + $0x14e0] sm:$0xff]  ;;  %v944_v21 = vld [vmem:[#allocation6 + $0x910] sm:$0xff] }
 0x2f0   :  { %3585 = vmatpush.msra.mxu3 %v1391_v15  ;;  %3622 = vmatpush.msrb.mxu0 %v1881_v61  ;;  %v2189_v15 = vld [vmem:[#allocation6 + $0x2ff8] sm:$0xff]  ;;  %v818_v61 = vld [vmem:[#allocation6 + $0x520] sm:$0xff] }
 0x2f1   :  { %3677 = vmatpush.msrb.mxu1 %v1056_v18  ;;  %3564 = vmatpush.msra.mxu2 %v1181_v19  ;;  %v1308_v18 = vld [vmem:[#allocation6 + $0x1470] sm:$0xff]  ;;  %v930_v19 = vld [vmem:[#allocation6 + $0x8a0] sm:$0xff] }
 0x2f2   :  { %3586 = vmatpush.msra.mxu3 %v1377_v23  ;;  %3623 = vmatpush.msrb.mxu0 %v1867_v26  ;;  %v2175_v23 = vld [vmem:[#allocation6 + $0x2f88] sm:$0xff]  ;;  %v804_v26 = vld [vmem:[#allocation6 + $0x4b0] sm:$0xff] }
 0x2f3   :  { %3678 = vmatpush.msrb.mxu1 %v1042_v27  ;;  %3565 = vmatpush.msra.mxu2 %v1167_v29  ;;  %v1294_v27 = vld [vmem:[#allocation6 + $0x1400] sm:$0xff]  ;;  %v916_v29 = vld [vmem:[#allocation6 + $0x830] sm:$0xff] }
 0x2f4   :  { %3587 = vmatpush.msra.mxu3 %v1363_v31  ;;  %3624 = vmatpush.msrb.mxu0 %v1853_v33  ;;  %v2161_v31 = vld [vmem:[#allocation6 + $0x2f18] sm:$0xff]  ;;  %v790_v33 = vld [vmem:[#allocation6 + $0x440] sm:$0xff] }
 0x2f5   :  { %3679 = vmatpush.msrb.mxu1 %v1028_v35  ;;  %3566 = vmatpush.msra.mxu2 %v1153_v42  ;;  %v1280_v35 = vld [vmem:[#allocation6 + $0x1390] sm:$0xff]  ;;  %v902_v42 = vld [vmem:[#allocation6 + $0x7c0] sm:$0xff] }
 0x2f6   :  { %3588 = vmatpush.msra.mxu3 %v1349_v37  ;;  %3625 = vmatpush.msrb.mxu0 %v1839_v38  ;;  %v2147_v37 = vld [vmem:[#allocation6 + $0x2ea8] sm:$0xff]  ;;  %v776_v38 = vld [vmem:[#allocation6 + $0x3d0] sm:$0xff] }
 0x2f7   :  { %3680 = vmatpush.msrb.mxu1 %v1014_v44  ;;  %3567 = vmatpush.msra.mxu2 %v1139_v45  ;;  %v1266_v44 = vld [vmem:[#allocation6 + $0x1320] sm:$0xff]  ;;  %v888_v45 = vld [vmem:[#allocation6 + $0x750] sm:$0xff] }
 0x2f8   :  { %3589 = vmatpush.msra.mxu3 %v1335_v46  ;;  %3626 = vmatpush.msrb.mxu0 %v1825_v47  ;;  %v2133_v46 = vld [vmem:[#allocation6 + $0x2e38] sm:$0xff]  ;;  %v762_v47 = vld [vmem:[#allocation6 + $0x360] sm:$0xff] }
 0x2f9   :  { %3681 = vmatpush.msrb.mxu1 %v1000_v50  ;;  %3590 = vmatmul.f32.vlgmr.msra.gmra.mxu3 %v5165_v41  ;;  %v1252_v50 = vld [vmem:[#allocation6 + $0x12b0] sm:$0xff] }
 0x2fa   :  { %3654 = vmatpush.msrb.mxu3 %v874_v51  ;;  %3568 = vmatpush.msra.mxu2 %v1125_v52  ;;  %v1994_v51 = vld [vmem:[#allocation6 + $0x29e0] sm:$0xff]  ;;  %v2119_v52 = vld [vmem:[#allocation6 + $0x2dc8] sm:$0xff] }
 0x2fb   :  { %3627 = vmatpush.msrb.mxu0 %v1811_v55  ;;  %3682 = vmatpush.msrb.mxu1 %v986_v56  ;;  %v748_v55 = vld [vmem:[#allocation6 + $0x2f0] sm:$0xff]  ;;  %v1238_v56 = vld [vmem:[#allocation6 + $0x1240] sm:$0xff] }
 0x2fc   :  { %3655 = vmatpush.msrb.mxu3 %v860_v57  ;;  %3569 = vmatpush.msra.mxu2 %v1111_v59  ;;  %v1980_v57 = vld [vmem:[#allocation6 + $0x2970] sm:$0xff]  ;;  %v2105_v59 = vld [vmem:[#allocation6 + $0x2d58] sm:$0xff] }
 0x2fd   :  { %3628 = vmatpush.msrb.mxu0 %v1797_v62  ;;  %3683 = vmatpush.msrb.mxu1 %v972_v0  ;;  %v734_v62 = vld [vmem:[#allocation6 + $0x280] sm:$0xff]  ;;  %v1224_v0 = vld [vmem:[#allocation6 + $0x11d0] sm:$0xff] }
 0x2fe   :  { %3570 = vmatmul.f32.vlgmr.msra.gmra.mxu2 %v5163_v40  ;;  %3656 = vmatpush.msrb.mxu3 %v846_v1  ;;  %v1966_v1 = vld [vmem:[#allocation6 + $0x2900] sm:$0xff] }
 0x2ff   :  { %3634 = vmatpush.msrb.mxu2 %v2217_v2  ;;  %3629 = vmatpush.msrb.mxu0 %v1783_v5  ;;  %v2091_v2 = vld [vmem:[#allocation6 + $0x2ce8] sm:$0xff]  ;;  %v720_v5 = vld [vmem:[#allocation6 + $0x210] sm:$0xff] }
 0x300   :  { %3684 = vmatpush.msrb.mxu1 %v958_v6  ;;  %3630 = vmatmul.f32.vlgmr.msrb.gmra.mxu0 %v5181_v20  ;;  %v1210_v6 = vld [vmem:[#allocation6 + $0x1160] sm:$0xff] }
 0x301   :  { %3635 = vmatpush.msrb.mxu2 %v2203_v7  ;;  %3657 = vmatpush.msrb.mxu3 %v832_v8  ;;  %v1952_v7 = vld [vmem:[#allocation6 + $0x2890] sm:$0xff]  ;;  %v2077_v8 = vld [vmem:[#allocation6 + $0x2c78] sm:$0xff] }
 0x302   :  { %3694 = vmatpush.msra.mxu0 %v1322_v12  ;;  %3685 = vmatpush.msrb.mxu1 %v944_v21  ;;  %v706_v12 = vld [vmem:[#allocation6 + $0x1a0] sm:$0xff]  ;;  %v1196_v21 = vld [vmem:[#allocation6 + $0x10f0] sm:$0xff] }
 0x303   :  { %3636 = vmatpush.msrb.mxu2 %v2189_v15  ;;  %3658 = vmatpush.msrb.mxu3 %v818_v61  ;;  %v1938_v15 = vld [vmem:[#allocation6 + $0x2820] sm:$0xff]  ;;  %v2063_v61 = vld [vmem:[#allocation6 + $0x2c08] sm:$0xff] }
 0x304   :  { %3695 = vmatpush.msra.mxu0 %v1308_v18  ;;  %3686 = vmatpush.msrb.mxu1 %v930_v19  ;;  %v692_v18 = vld [vmem:[#allocation6 + $0x130] sm:$0xff]  ;;  %v1182_v19 = vld [vmem:[#allocation6 + $0x1080] sm:$0xff] }
 0x305   :  { %3637 = vmatpush.msrb.mxu2 %v2175_v23  ;;  %3659 = vmatpush.msrb.mxu3 %v804_v26  ;;  %v1924_v23 = vld [vmem:[#allocation6 + $0x27b0] sm:$0xff]  ;;  %v2049_v26 = vld [vmem:[#allocation6 + $0x2b98] sm:$0xff] }
 0x306   :  { %3696 = vmatpush.msra.mxu0 %v1294_v27  ;;  %3687 = vmatpush.msrb.mxu1 %v916_v29  ;;  %v678_v27 = vld [vmem:[#allocation6 + $0xc0] sm:$0xff]  ;;  %v1168_v29 = vld [vmem:[#allocation6 + $0x1010] sm:$0xff] }
 0x307   :  { %3638 = vmatpush.msrb.mxu2 %v2161_v31  ;;  %3660 = vmatpush.msrb.mxu3 %v790_v33  ;;  %v1910_v31 = vld [vmem:[#allocation6 + $0x2740] sm:$0xff]  ;;  %v2035_v33 = vld [vmem:[#allocation6 + $0x2b28] sm:$0xff] }
 0x308   :  { %3697 = vmatpush.msra.mxu0 %v1280_v35  ;;  %3688 = vmatpush.msrb.mxu1 %v902_v42  ;;  %v664_v35 = vld [vmem:[#allocation6 + $0x50] sm:$0xff]  ;;  %v1154_v42 = vld [vmem:[#allocation6 + $0xfa0] sm:$0xff] }
 0x309   :  { %3639 = vmatpush.msrb.mxu2 %v2147_v37  ;;  %3661 = vmatpush.msrb.mxu3 %v776_v38  ;;  %v1896_v37 = vld [vmem:[#allocation6 + $0x26d0] sm:$0xff]  ;;  %v1770_v38 = vld [vmem:[#allocation6 + $0x22e0] sm:$0xff] }
 0x30a   :  { %3698 = vmatpush.msra.mxu0 %v1266_v44  ;;  %3689 = vmatpush.msrb.mxu1 %v888_v45  ;;  %v2021_v44 = vld [vmem:[#allocation6 + $0x2ab8] sm:$0xff]  ;;  %v1140_v45 = vld [vmem:[#allocation6 + $0xf30] sm:$0xff] }
 0x30b   :  { %3640 = vmatpush.msrb.mxu2 %v2133_v46  ;;  %3662 = vmatpush.msrb.mxu3 %v762_v47  ;;  %v1882_v46 = vld [vmem:[#allocation6 + $0x2660] sm:$0xff]  ;;  %v1756_v47 = vld [vmem:[#allocation6 + $0x2270] sm:$0xff] }
 0x30c   :  { %3690 = vmatmul.f32.vlgmr.msrb.gmra.mxu1 %v5158_v22  ;;  %3699 = vmatpush.msra.mxu0 %v1252_v50  ;;  %v2007_v50 = vld [vmem:[#allocation6 + $0x2a48] sm:$0xff] }
 0x30d   :  { %3754 = vmatpush.msra.mxu1 %v1994_v51  ;;  %3641 = vmatpush.msrb.mxu2 %v2119_v52  ;;  %v1126_v51 = vld [vmem:[#allocation6 + $0xec0] sm:$0xff]  ;;  %v1868_v52 = vld [vmem:[#allocation6 + $0x25f0] sm:$0xff] }
 0x30e   :  { %3663 = vmatpush.msrb.mxu3 %v748_v55  ;;  %3700 = vmatpush.msra.mxu0 %v1238_v56  ;;  %v1742_v55 = vld [vmem:[#allocation6 + $0x2200] sm:$0xff] }
 0x30f   :  { %3755 = vmatpush.msra.mxu1 %v1980_v57  ;;  %3642 = vmatpush.msrb.mxu2 %v2105_v59  ;;  %v1546_v56 = vld [vmem:[#allocation6 + $0x1be0] sm:$0xff]  ;;  %v1112_v57 = vld [vmem:[#allocation6 + $0xe50] sm:$0xff] }
 0x310   :  { %3664 = vmatpush.msrb.mxu3 %v734_v62  ;;  %3701 = vmatpush.msra.mxu0 %v1224_v0  ;;  %v1854_v59 = vld [vmem:[#allocation6 + $0x2580] sm:$0xff]  ;;  %v1532_v62 = vld [vmem:[#allocation6 + $0x1b70] sm:$0xff] }
 0x311   :  { %3756 = vmatpush.msra.mxu1 %v1966_v1  ;;  %3643 = vmatpush.msrb.mxu2 %v2091_v2  ;;  %v1728_v0 = vld [vmem:[#allocation6 + $0x2190] sm:$0xff]  ;;  %v2218_v1 = vld [vmem:[#allocation6 + $0x30e0] sm:$0xff] }
 0x312   :  { %3665 = vmatpush.msrb.mxu3 %v720_v5  ;;  %3702 = vmatpush.msra.mxu0 %v1210_v6  ;;  %v1840_v2 = vld [vmem:[#allocation6 + $0x2510] sm:$0xff]  ;;  %v1518_v5 = vld [vmem:[#allocation6 + $0x1b00] sm:$0xff] }
 0x313   :  { %3757 = vmatpush.msra.mxu1 %v1952_v7  ;;  %3644 = vmatpush.msrb.mxu2 %v2077_v8  ;;  %v1714_v6 = vld [vmem:[#allocation6 + $0x2120] sm:$0xff]  ;;  %v2204_v7 = vld [vmem:[#allocation6 + $0x3070] sm:$0xff] }
 0x314   :  { %3666 = vmatpush.msrb.mxu3 %v706_v12  ;;  %3703 = vmatpush.msra.mxu0 %v1196_v21  ;;  %v1826_v8 = vld [vmem:[#allocation6 + $0x24a0] sm:$0xff]  ;;  %v1504_v12 = vld [vmem:[#allocation6 + $0x1a90] sm:$0xff] }
 0x315   :  { %3758 = vmatpush.msra.mxu1 %v1938_v15  ;;  %3645 = vmatpush.msrb.mxu2 %v2063_v61  ;;  %v1700_v21 = vld [vmem:[#allocation6 + $0x20b0] sm:$0xff]  ;;  %v2190_v15 = vld [vmem:[#allocation6 + $0x3000] sm:$0xff] }
 0x316   :  { %3667 = vmatpush.msrb.mxu3 %v692_v18  ;;  %3704 = vmatpush.msra.mxu0 %v1182_v19  ;;  %v1812_v61 = vld [vmem:[#allocation6 + $0x2430] sm:$0xff]  ;;  %v1490_v18 = vld [vmem:[#allocation6 + $0x1a20] sm:$0xff] }
 0x317   :  { %3759 = vmatpush.msra.mxu1 %v1924_v23  ;;  %3646 = vmatpush.msrb.mxu2 %v2049_v26  ;;  %v1686_v19 = vld [vmem:[#allocation6 + $0x2040] sm:$0xff]  ;;  %v2176_v23 = vld [vmem:[#allocation6 + $0x2f90] sm:$0xff] }
 0x318   :  { %3668 = vmatpush.msrb.mxu3 %v678_v27  ;;  %3705 = vmatpush.msra.mxu0 %v1168_v29  ;;  %v1798_v26 = vld [vmem:[#allocation6 + $0x23c0] sm:$0xff]  ;;  %v1476_v27 = vld [vmem:[#allocation6 + $0x19b0] sm:$0xff] }
 0x319   :  { %3760 = vmatpush.msra.mxu1 %v1910_v31  ;;  %3647 = vmatpush.msrb.mxu2 %v2035_v33  ;;  %v1672_v29 = vld [vmem:[#allocation6 + $0x1fd0] sm:$0xff]  ;;  %v2162_v31 = vld [vmem:[#allocation6 + $0x2f20] sm:$0xff] }
 0x31a   :  { %3669 = vmatpush.msrb.mxu3 %v664_v35  ;;  %3706 = vmatpush.msra.mxu0 %v1154_v42  ;;  %v1784_v33 = vld [vmem:[#allocation6 + $0x2350] sm:$0xff]  ;;  %v1462_v35 = vld [vmem:[#allocation6 + $0x1940] sm:$0xff] }
 0x31b   :  { %3761 = vmatpush.msra.mxu1 %v1896_v37  ;;  %3670 = vmatmul.f32.vlgmr.msrb.gmra.mxu3 %v5155_v16  ;;  %v1658_v42 = vld [vmem:[#allocation6 + $0x1f60] sm:$0xff]  ;;  %v2148_v37 = vld [vmem:[#allocation6 + $0x2eb0] sm:$0xff] }
 0x31c   :  { %3734 = vmatpush.msra.mxu3 %v1770_v38  ;;  %3648 = vmatpush.msrb.mxu2 %v2021_v44  ;;  %v1323_v38 = vld [vmem:[#allocation6 + $0x14e8] sm:$0xff]  ;;  %v1448_v44 = vld [vmem:[#allocation6 + $0x18d0] sm:$0xff] }
 0x31d   :  { %3707 = vmatpush.msra.mxu0 %v1140_v45  ;;  %3762 = vmatpush.msra.mxu1 %v1882_v46  ;;  %v1644_v45 = vld [vmem:[#allocation6 + $0x1ef0] sm:$0xff]  ;;  %v2134_v46 = vld [vmem:[#allocation6 + $0x2e40] sm:$0xff] }
 0x31e   :  { %3735 = vmatpush.msra.mxu3 %v1756_v47  ;;  %3649 = vmatpush.msrb.mxu2 %v2007_v50  ;;  %v1309_v47 = vld [vmem:[#allocation6 + $0x1478] sm:$0xff]  ;;  %v1434_v50 = vld [vmem:[#allocation6 + $0x1860] sm:$0xff] }
 0x31f   :  { %3708 = vmatpush.msra.mxu0 %v1126_v51  ;;  %3763 = vmatpush.msra.mxu1 %v1868_v52  ;;  %v1630_v51 = vld [vmem:[#allocation6 + $0x1e80] sm:$0xff]  ;;  %v2120_v52 = vld [vmem:[#allocation6 + $0x2dd0] sm:$0xff] }
 0x320   :  { %3650 = vmatmul.f32.vlgmr.msrb.gmra.mxu2 %v5178_v11  ;;  %3736 = vmatpush.msra.mxu3 %v1742_v55  ;;  %v1295_v55 = vld [vmem:[#allocation6 + $0x1408] sm:$0xff] }
 0x321   :  { %3714 = vmatpush.msra.mxu2 %v1546_v56  ;;  %3709 = vmatpush.msra.mxu0 %v1112_v57  ;;  %v1420_v56 = vld [vmem:[#allocation6 + $0x17f0] sm:$0xff] }
 0x322   :  { %3764 = vmatpush.msra.mxu1 %v1854_v59  ;;  %3710 = vmatmul.f32.vlgmr.msra.gmra.mxu0 %v5163_v40  ;;  %v1616_v57 = vld [vmem:[#allocation6 + $0x1e10] sm:$0xff]  ;;  %v2106_v59 = vld [vmem:[#allocation6 + $0x2d60] sm:$0xff] }
 0x323   :  { %3715 = vmatpush.msra.mxu2 %v1532_v62  ;;  %3737 = vmatpush.msra.mxu3 %v1728_v0  ;;  %v1281_v62 = vld [vmem:[#allocation6 + $0x1398] sm:$0xff]  ;;  %v1406_v0 = vld [vmem:[#allocation6 + $0x1780] sm:$0xff] }
 0x324   :  { %3774 = vmatpush.msrb.mxu0 %v2218_v1  ;;  %3765 = vmatpush.msra.mxu1 %v1840_v2  ;;  %v1602_v1 = vld [vmem:[#allocation6 + $0x1da0] sm:$0xff]  ;;  %v2092_v2 = vld [vmem:[#allocation6 + $0x2cf0] sm:$0xff] }
 0x325   :  { %3716 = vmatpush.msra.mxu2 %v1518_v5  ;;  %3738 = vmatpush.msra.mxu3 %v1714_v6  ;;  %v1267_v5 = vld [vmem:[#allocation6 + $0x1328] sm:$0xff]  ;;  %v1392_v6 = vld [vmem:[#allocation6 + $0x1710] sm:$0xff] }
 0x326   :  { %3775 = vmatpush.msrb.mxu0 %v2204_v7  ;;  %3766 = vmatpush.msra.mxu1 %v1826_v8  ;;  %v1588_v7 = vld [vmem:[#allocation6 + $0x1d30] sm:$0xff]  ;;  %v2078_v8 = vld [vmem:[#allocation6 + $0x2c80] sm:$0xff] }
 0x327   :  { %3717 = vmatpush.msra.mxu2 %v1504_v12  ;;  %3739 = vmatpush.msra.mxu3 %v1700_v21  ;;  %v1253_v12 = vld [vmem:[#allocation6 + $0x12b8] sm:$0xff]  ;;  %v1378_v21 = vld [vmem:[#allocation6 + $0x16a0] sm:$0xff] }
 0x328   :  { %3776 = vmatpush.msrb.mxu0 %v2190_v15  ;;  %3767 = vmatpush.msra.mxu1 %v1812_v61  ;;  %v1574_v15 = vld [vmem:[#allocation6 + $0x1cc0] sm:$0xff]  ;;  %v2064_v61 = vld [vmem:[#allocation6 + $0x2c10] sm:$0xff] }
 0x329   :  { %3718 = vmatpush.msra.mxu2 %v1490_v18  ;;  %3740 = vmatpush.msra.mxu3 %v1686_v19  ;;  %v1239_v18 = vld [vmem:[#allocation6 + $0x1248] sm:$0xff]  ;;  %v1364_v19 = vld [vmem:[#allocation6 + $0x1630] sm:$0xff] }
 0x32a   :  { %3777 = vmatpush.msrb.mxu0 %v2176_v23  ;;  %3768 = vmatpush.msra.mxu1 %v1798_v26  ;;  %v1560_v23 = vld [vmem:[#allocation6 + $0x1c50] sm:$0xff]  ;;  %v2050_v26 = vld [vmem:[#allocation6 + $0x2ba0] sm:$0xff] }
 0x32b   :  { %3719 = vmatpush.msra.mxu2 %v1476_v27  ;;  %3741 = vmatpush.msra.mxu3 %v1672_v29  ;;  %v1225_v27 = vld [vmem:[#allocation6 + $0x11d8] sm:$0xff]  ;;  %v1099_v29 = vld [vmem:[#allocation6 + $0xde8] sm:$0xff] }
 0x32c   :  { %3778 = vmatpush.msrb.mxu0 %v2162_v31  ;;  %3769 = vmatpush.msra.mxu1 %v1784_v33  ;;  %v1350_v31 = vld [vmem:[#allocation6 + $0x15c0] sm:$0xff]  ;;  %v2036_v33 = vld [vmem:[#allocation6 + $0x2b30] sm:$0xff] }
 0x32d   :  { %3720 = vmatpush.msra.mxu2 %v1462_v35  ;;  %3742 = vmatpush.msra.mxu3 %v1658_v42  ;;  %v1211_v35 = vld [vmem:[#allocation6 + $0x1168] sm:$0xff]  ;;  %v1085_v42 = vld [vmem:[#allocation6 + $0xd78] sm:$0xff] }
 0x32e   :  { %3770 = vmatmul.f32.vlgmr.msra.gmra.mxu1 %v5181_v20  ;;  %3779 = vmatpush.msrb.mxu0 %v2148_v37  ;;  %v1336_v37 = vld [vmem:[#allocation6 + $0x1550] sm:$0xff] }
 0x32f   :  { %3834 = vmatpush.msrb.mxu1 %v1323_v38  ;;  %3721 = vmatpush.msra.mxu2 %v1448_v44  ;;  %v2022_v38 = vld [vmem:[#allocation6 + $0x2ac0] sm:$0xff]  ;;  %v1197_v44 = vld [vmem:[#allocation6 + $0x10f8] sm:$0xff] }
 0x330   :  { %3743 = vmatpush.msra.mxu3 %v1644_v45  ;;  %3780 = vmatpush.msrb.mxu0 %v2134_v46  ;;  %v1071_v45 = vld [vmem:[#allocation6 + $0xd08] sm:$0xff] }
 0x331   :  { %3835 = vmatpush.msrb.mxu1 %v1309_v47  ;;  %3722 = vmatpush.msra.mxu2 %v1434_v50  ;;  %v875_v46 = vld [vmem:[#allocation6 + $0x6e8] sm:$0xff]  ;;  %v2008_v47 = vld [vmem:[#allocation6 + $0x2a50] sm:$0xff] }
 0x332   :  { %3744 = vmatpush.msra.mxu3 %v1630_v51  ;;  %3781 = vmatpush.msrb.mxu0 %v2120_v52  ;;  %v1183_v50 = vld [vmem:[#allocation6 + $0x1088] sm:$0xff]  ;;  %v861_v51 = vld [vmem:[#allocation6 + $0x678] sm:$0xff] }
 0x333   :  { %3836 = vmatpush.msrb.mxu1 %v1295_v55  ;;  %3723 = vmatpush.msra.mxu2 %v1420_v56  ;;  %v1057_v52 = vld [vmem:[#allocation6 + $0xc98] sm:$0xff]  ;;  %v1547_v55 = vld [vmem:[#allocation6 + $0x1be8] sm:$0xff] }
 0x334   :  { %3745 = vmatpush.msra.mxu3 %v1616_v57  ;;  %3782 = vmatpush.msrb.mxu0 %v2106_v59  ;;  %v1169_v56 = vld [vmem:[#allocation6 + $0x1018] sm:$0xff]  ;;  %v847_v57 = vld [vmem:[#allocation6 + $0x608] sm:$0xff] }
 0x335   :  { %3837 = vmatpush.msrb.mxu1 %v1281_v62  ;;  %3724 = vmatpush.msra.mxu2 %v1406_v0  ;;  %v1043_v59 = vld [vmem:[#allocation6 + $0xc28] sm:$0xff]  ;;  %v1533_v62 = vld [vmem:[#allocation6 + $0x1b78] sm:$0xff] }
 0x336   :  { %3746 = vmatpush.msra.mxu3 %v1602_v1  ;;  %3783 = vmatpush.msrb.mxu0 %v2092_v2  ;;  %v1155_v0 = vld [vmem:[#allocation6 + $0xfa8] sm:$0xff]  ;;  %v833_v1 = vld [vmem:[#allocation6 + $0x598] sm:$0xff] }
 0x337   :  { %3838 = vmatpush.msrb.mxu1 %v1267_v5  ;;  %3725 = vmatpush.msra.mxu2 %v1392_v6  ;;  %v1029_v2 = vld [vmem:[#allocation6 + $0xbb8] sm:$0xff]  ;;  %v1519_v5 = vld [vmem:[#allocation6 + $0x1b08] sm:$0xff] }
 0x338   :  { %3747 = vmatpush.msra.mxu3 %v1588_v7  ;;  %3784 = vmatpush.msrb.mxu0 %v2078_v8  ;;  %v1141_v6 = vld [vmem:[#allocation6 + $0xf38] sm:$0xff]  ;;  %v819_v7 = vld [vmem:[#allocation6 + $0x528] sm:$0xff] }
 0x339   :  { %3839 = vmatpush.msrb.mxu1 %v1253_v12  ;;  %3726 = vmatpush.msra.mxu2 %v1378_v21  ;;  %v1015_v8 = vld [vmem:[#allocation6 + $0xb48] sm:$0xff]  ;;  %v1505_v12 = vld [vmem:[#allocation6 + $0x1a98] sm:$0xff] }
 0x33a   :  { %3748 = vmatpush.msra.mxu3 %v1574_v15  ;;  %3785 = vmatpush.msrb.mxu0 %v2064_v61  ;;  %v1127_v21 = vld [vmem:[#allocation6 + $0xec8] sm:$0xff]  ;;  %v805_v15 = vld [vmem:[#allocation6 + $0x4b8] sm:$0xff] }
 0x33b   :  { %3840 = vmatpush.msrb.mxu1 %v1239_v18  ;;  %3727 = vmatpush.msra.mxu2 %v1364_v19  ;;  %v1001_v61 = vld [vmem:[#allocation6 + $0xad8] sm:$0xff]  ;;  %v1491_v18 = vld [vmem:[#allocation6 + $0x1a28] sm:$0xff] }
 0x33c   :  { %3749 = vmatpush.msra.mxu3 %v1560_v23  ;;  %3786 = vmatpush.msrb.mxu0 %v2050_v26  ;;  %v1113_v19 = vld [vmem:[#allocation6 + $0xe58] sm:$0xff]  ;;  %v791_v23 = vld [vmem:[#allocation6 + $0x448] sm:$0xff] }
 0x33d   :  { %3841 = vmatpush.msrb.mxu1 %v1225_v27  ;;  %3750 = vmatmul.f32.vlgmr.msra.gmra.mxu3 %v5171_v28  ;;  %v987_v26 = vld [vmem:[#allocation6 + $0xa68] sm:$0xff]  ;;  %v1477_v27 = vld [vmem:[#allocation6 + $0x19b8] sm:$0xff] }
 0x33e   :  { %3814 = vmatpush.msrb.mxu3 %v1099_v29  ;;  %3728 = vmatpush.msra.mxu2 %v1350_v31  ;;  %v2219_v29 = vld [vmem:[#allocation6 + $0x30e8] sm:$0xff]  ;;  %v777_v31 = vld [vmem:[#allocation6 + $0x3d8] sm:$0xff] }
 0x33f   :  { %3787 = vmatpush.msrb.mxu0 %v2036_v33  ;;  %3842 = vmatpush.msrb.mxu1 %v1211_v35  ;;  %v973_v33 = vld [vmem:[#allocation6 + $0x9f8] sm:$0xff]  ;;  %v1463_v35 = vld [vmem:[#allocation6 + $0x1948] sm:$0xff] }
 0x340   :  { %3815 = vmatpush.msrb.mxu3 %v1085_v42  ;;  %3729 = vmatpush.msra.mxu2 %v1336_v37  ;;  %v2205_v42 = vld [vmem:[#allocation6 + $0x3078] sm:$0xff]  ;;  %v763_v37 = vld [vmem:[#allocation6 + $0x368] sm:$0xff] }
 0x341   :  { %3788 = vmatpush.msrb.mxu0 %v2022_v38  ;;  %3843 = vmatpush.msrb.mxu1 %v1197_v44  ;;  %v959_v38 = vld [vmem:[#allocation6 + $0x988] sm:$0xff]  ;;  %v1449_v44 = vld [vmem:[#allocation6 + $0x18d8] sm:$0xff] }
 0x342   :  { %3730 = vmatmul.f32.vlgmr.msra.gmra.mxu2 %v5165_v41  ;;  %3816 = vmatpush.msrb.mxu3 %v1071_v45  ;;  %v2191_v45 = vld [vmem:[#allocation6 + $0x3008] sm:$0xff] }
 0x343   :  { %3794 = vmatpush.msrb.mxu2 %v875_v46  ;;  %3789 = vmatpush.msrb.mxu0 %v2008_v47  ;;  %v749_v46 = vld [vmem:[#allocation6 + $0x2f8] sm:$0xff] }
 0x344   :  { %3844 = vmatpush.msrb.mxu1 %v1183_v50  ;;  %3790 = vmatmul.f32.vlgmr.msrb.gmra.mxu0 %v5178_v11  ;;  %v945_v47 = vld [vmem:[#allocation6 + $0x918] sm:$0xff]  ;;  %v1435_v50 = vld [vmem:[#allocation6 + $0x1868] sm:$0xff] }
 0x345   :  { %3795 = vmatpush.msrb.mxu2 %v861_v51  ;;  %3817 = vmatpush.msrb.mxu3 %v1057_v52  ;;  %v2177_v51 = vld [vmem:[#allocation6 + $0x2f98] sm:$0xff]  ;;  %v735_v52 = vld [vmem:[#allocation6 + $0x288] sm:$0xff] }
 0x346   :  { %3854 = vmatpush.msra.mxu0 %v1547_v55  ;;  %3845 = vmatpush.msrb.mxu1 %v1169_v56  ;;  %v931_v55 = vld [vmem:[#allocation6 + $0x8a8] sm:$0xff]  ;;  %v1421_v56 = vld [vmem:[#allocation6 + $0x17f8] sm:$0xff] }
 0x347   :  { %3796 = vmatpush.msrb.mxu2 %v847_v57  ;;  %3818 = vmatpush.msrb.mxu3 %v1043_v59  ;;  %v2163_v57 = vld [vmem:[#allocation6 + $0x2f28] sm:$0xff]  ;;  %v721_v59 = vld [vmem:[#allocation6 + $0x218] sm:$0xff] }
 0x348   :  { %3855 = vmatpush.msra.mxu0 %v1533_v62  ;;  %3846 = vmatpush.msrb.mxu1 %v1155_v0  ;;  %v917_v62 = vld [vmem:[#allocation6 + $0x838] sm:$0xff]  ;;  %v1407_v0 = vld [vmem:[#allocation6 + $0x1788] sm:$0xff] }
 0x349   :  { %3797 = vmatpush.msrb.mxu2 %v833_v1  ;;  %3819 = vmatpush.msrb.mxu3 %v1029_v2  ;;  %v2149_v1 = vld [vmem:[#allocation6 + $0x2eb8] sm:$0xff]  ;;  %v707_v2 = vld [vmem:[#allocation6 + $0x1a8] sm:$0xff] }
 0x34a   :  { %3856 = vmatpush.msra.mxu0 %v1519_v5  ;;  %3847 = vmatpush.msrb.mxu1 %v1141_v6  ;;  %v903_v5 = vld [vmem:[#allocation6 + $0x7c8] sm:$0xff]  ;;  %v1393_v6 = vld [vmem:[#allocation6 + $0x1718] sm:$0xff] }
 0x34b   :  { %3798 = vmatpush.msrb.mxu2 %v819_v7  ;;  %3820 = vmatpush.msrb.mxu3 %v1015_v8  ;;  %v2135_v7 = vld [vmem:[#allocation6 + $0x2e48] sm:$0xff]  ;;  %v693_v8 = vld [vmem:[#allocation6 + $0x138] sm:$0xff] }
 0x34c   :  { %3857 = vmatpush.msra.mxu0 %v1505_v12  ;;  %3848 = vmatpush.msrb.mxu1 %v1127_v21  ;;  %v889_v12 = vld [vmem:[#allocation6 + $0x758] sm:$0xff]  ;;  %v1379_v21 = vld [vmem:[#allocation6 + $0x16a8] sm:$0xff] }
 0x34d   :  { %3799 = vmatpush.msrb.mxu2 %v805_v15  ;;  %3821 = vmatpush.msrb.mxu3 %v1001_v61  ;;  %v2121_v15 = vld [vmem:[#allocation6 + $0x2dd8] sm:$0xff]  ;;  %v1995_v61 = vld [vmem:[#allocation6 + $0x29e8] sm:$0xff] }
 0x34e   :  { %3858 = vmatpush.msra.mxu0 %v1491_v18  ;;  %3849 = vmatpush.msrb.mxu1 %v1113_v19  ;;  %v679_v18 = vld [vmem:[#allocation6 + $0xc8] sm:$0xff]  ;;  %v1365_v19 = vld [vmem:[#allocation6 + $0x1638] sm:$0xff] }
 0x34f   :  { %3800 = vmatpush.msrb.mxu2 %v791_v23  ;;  %3822 = vmatpush.msrb.mxu3 %v987_v26  ;;  %v2107_v23 = vld [vmem:[#allocation6 + $0x2d68] sm:$0xff]  ;;  %v1981_v26 = vld [vmem:[#allocation6 + $0x2978] sm:$0xff] }
 0x350   :  { %3850 = vmatmul.f32.vlgmr.msrb.gmra.mxu1 %v5163_v40  ;;  %3859 = vmatpush.msra.mxu0 %v1477_v27  ;;  %v665_v27 = vld [vmem:[#allocation6 + $0x58] sm:$0xff] }
 0x351   :  { %3914 = vmatpush.msra.mxu1 %v2219_v29  ;;  %3801 = vmatpush.msrb.mxu2 %v777_v31  ;;  %v1351_v29 = vld [vmem:[#allocation6 + $0x15c8] sm:$0xff]  ;;  %v2093_v31 = vld [vmem:[#allocation6 + $0x2cf8] sm:$0xff] }
 0x352   :  { %3823 = vmatpush.msrb.mxu3 %v973_v33  ;;  %3860 = vmatpush.msra.mxu0 %v1463_v35  ;;  %v1967_v33 = vld [vmem:[#allocation6 + $0x2908] sm:$0xff] }
 0x353   :  { %3915 = vmatpush.msra.mxu1 %v2205_v42  ;;  %3802 = vmatpush.msrb.mxu2 %v763_v37  ;;  %v1771_v35 = vld [vmem:[#allocation6 + $0x22e8] sm:$0xff]  ;;  %v1337_v42 = vld [vmem:[#allocation6 + $0x1558] sm:$0xff] }
 0x354   :  { %3824 = vmatpush.msrb.mxu3 %v959_v38  ;;  %3861 = vmatpush.msra.mxu0 %v1449_v44  ;;  %v2079_v37 = vld [vmem:[#allocation6 + $0x2c88] sm:$0xff]  ;;  %v1757_v38 = vld [vmem:[#allocation6 + $0x2278] sm:$0xff] }
 0x355   :  { %3916 = vmatpush.msra.mxu1 %v2191_v45  ;;  %3803 = vmatpush.msrb.mxu2 %v749_v46  ;;  %v1953_v44 = vld [vmem:[#allocation6 + $0x2898] sm:$0xff]  ;;  %v876_v45 = vld [vmem:[#allocation6 + $0x6f0] sm:$0xff] }
 0x356   :  { %3825 = vmatpush.msrb.mxu3 %v945_v47  ;;  %3862 = vmatpush.msra.mxu0 %v1435_v50  ;;  %v2065_v46 = vld [vmem:[#allocation6 + $0x2c18] sm:$0xff]  ;;  %v1743_v47 = vld [vmem:[#allocation6 + $0x2208] sm:$0xff] }
 0x357   :  { %3917 = vmatpush.msra.mxu1 %v2177_v51  ;;  %3804 = vmatpush.msrb.mxu2 %v735_v52  ;;  %v1939_v50 = vld [vmem:[#allocation6 + $0x2828] sm:$0xff]  ;;  %v862_v51 = vld [vmem:[#allocation6 + $0x680] sm:$0xff] }
 0x358   :  { %3826 = vmatpush.msrb.mxu3 %v931_v55  ;;  %3863 = vmatpush.msra.mxu0 %v1421_v56  ;;  %v2051_v52 = vld [vmem:[#allocation6 + $0x2ba8] sm:$0xff]  ;;  %v1729_v55 = vld [vmem:[#allocation6 + $0x2198] sm:$0xff] }
 0x359   :  { %3918 = vmatpush.msra.mxu1 %v2163_v57  ;;  %3805 = vmatpush.msrb.mxu2 %v721_v59  ;;  %v1925_v56 = vld [vmem:[#allocation6 + $0x27b8] sm:$0xff]  ;;  %v848_v57 = vld [vmem:[#allocation6 + $0x610] sm:$0xff] }
 0x35a   :  { %3827 = vmatpush.msrb.mxu3 %v917_v62  ;;  %3864 = vmatpush.msra.mxu0 %v1407_v0  ;;  %v2037_v59 = vld [vmem:[#allocation6 + $0x2b38] sm:$0xff]  ;;  %v1715_v62 = vld [vmem:[#allocation6 + $0x2128] sm:$0xff] }
 0x35b   :  { %3919 = vmatpush.msra.mxu1 %v2149_v1  ;;  %3806 = vmatpush.msrb.mxu2 %v707_v2  ;;  %v1911_v0 = vld [vmem:[#allocation6 + $0x2748] sm:$0xff]  ;;  %v834_v1 = vld [vmem:[#allocation6 + $0x5a0] sm:$0xff] }
 0x35c   :  { %3828 = vmatpush.msrb.mxu3 %v903_v5  ;;  %3865 = vmatpush.msra.mxu0 %v1393_v6  ;;  %v2023_v2 = vld [vmem:[#allocation6 + $0x2ac8] sm:$0xff]  ;;  %v1701_v5 = vld [vmem:[#allocation6 + $0x20b8] sm:$0xff] }
 0x35d   :  { %3920 = vmatpush.msra.mxu1 %v2135_v7  ;;  %3807 = vmatpush.msrb.mxu2 %v693_v8  ;;  %v1897_v6 = vld [vmem:[#allocation6 + $0x26d8] sm:$0xff]  ;;  %v820_v7 = vld [vmem:[#allocation6 + $0x530] sm:$0xff] }
 0x35e   :  { %3829 = vmatpush.msrb.mxu3 %v889_v12  ;;  %3866 = vmatpush.msra.mxu0 %v1379_v21  ;;  %v2009_v8 = vld [vmem:[#allocation6 + $0x2a58] sm:$0xff]  ;;  %v1687_v12 = vld [vmem:[#allocation6 + $0x2048] sm:$0xff] }
 0x35f   :  { %3921 = vmatpush.msra.mxu1 %v2121_v15  ;;  %3830 = vmatmul.f32.vlgmr.msrb.gmra.mxu3 %v5158_v22  ;;  %v1883_v21 = vld [vmem:[#allocation6 + $0x2668] sm:$0xff]  ;;  %v806_v15 = vld [vmem:[#allocation6 + $0x4c0] sm:$0xff] }
 0x360   :  { %3894 = vmatpush.msra.mxu3 %v1995_v61  ;;  %3808 = vmatpush.msrb.mxu2 %v679_v18  ;;  %v1548_v61 = vld [vmem:[#allocation6 + $0x1bf0] sm:$0xff]  ;;  %v1673_v18 = vld [vmem:[#allocation6 + $0x1fd8] sm:$0xff] }
 0x361   :  { %3867 = vmatpush.msra.mxu0 %v1365_v19  ;;  %3922 = vmatpush.msra.mxu1 %v2107_v23  ;;  %v1869_v19 = vld [vmem:[#allocation6 + $0x25f8] sm:$0xff]  ;;  %v792_v23 = vld [vmem:[#allocation6 + $0x450] sm:$0xff] }
 0x362   :  { %3895 = vmatpush.msra.mxu3 %v1981_v26  ;;  %3809 = vmatpush.msrb.mxu2 %v665_v27  ;;  %v1534_v26 = vld [vmem:[#allocation6 + $0x1b80] sm:$0xff]  ;;  %v1659_v27 = vld [vmem:[#allocation6 + $0x1f68] sm:$0xff] }
 0x363   :  { %3868 = vmatpush.msra.mxu0 %v1351_v29  ;;  %3923 = vmatpush.msra.mxu1 %v2093_v31  ;;  %v1855_v29 = vld [vmem:[#allocation6 + $0x2588] sm:$0xff]  ;;  %v778_v31 = vld [vmem:[#allocation6 + $0x3e0] sm:$0xff] }
 0x364   :  { %3810 = vmatmul.f32.vlgmr.msrb.gmra.mxu2 %v5155_v16  ;;  %3896 = vmatpush.msra.mxu3 %v1967_v33  ;;  %v1520_v33 = vld [vmem:[#allocation6 + $0x1b10] sm:$0xff] }
 0x365   :  { %3874 = vmatpush.msra.mxu2 %v1771_v35  ;;  %3869 = vmatpush.msra.mxu0 %v1337_v42  ;;  %v1645_v35 = vld [vmem:[#allocation6 + $0x1ef8] sm:$0xff] }
 0x366   :  { %3924 = vmatpush.msra.mxu1 %v2079_v37  ;;  %3870 = vmatmul.f32.vlgmr.msra.gmra.mxu0 %v5165_v41  ;;  %v1841_v42 = vld [vmem:[#allocation6 + $0x2518] sm:$0xff]  ;;  %v764_v37 = vld [vmem:[#allocation6 + $0x370] sm:$0xff] }
 0x367   :  { %3875 = vmatpush.msra.mxu2 %v1757_v38  ;;  %3897 = vmatpush.msra.mxu3 %v1953_v44  ;;  %v1506_v38 = vld [vmem:[#allocation6 + $0x1aa0] sm:$0xff]  ;;  %v1631_v44 = vld [vmem:[#allocation6 + $0x1e88] sm:$0xff] }
 0x368   :  { %3934 = vmatpush.msrb.mxu0 %v876_v45  ;;  %3925 = vmatpush.msra.mxu1 %v2065_v46  ;;  %v1827_v45 = vld [vmem:[#allocation6 + $0x24a8] sm:$0xff]  ;;  %v750_v46 = vld [vmem:[#allocation6 + $0x300] sm:$0xff] }
 0x369   :  { %3876 = vmatpush.msra.mxu2 %v1743_v47  ;;  %3898 = vmatpush.msra.mxu3 %v1939_v50  ;;  %v1492_v47 = vld [vmem:[#allocation6 + $0x1a30] sm:$0xff]  ;;  %v1617_v50 = vld [vmem:[#allocation6 + $0x1e18] sm:$0xff] }
 0x36a   :  { %3935 = vmatpush.msrb.mxu0 %v862_v51  ;;  %3926 = vmatpush.msra.mxu1 %v2051_v52  ;;  %v1813_v51 = vld [vmem:[#allocation6 + $0x2438] sm:$0xff]  ;;  %v736_v52 = vld [vmem:[#allocation6 + $0x290] sm:$0xff] }
 0x36b   :  { %3877 = vmatpush.msra.mxu2 %v1729_v55  ;;  %3899 = vmatpush.msra.mxu3 %v1925_v56  ;;  %v1478_v55 = vld [vmem:[#allocation6 + $0x19c0] sm:$0xff]  ;;  %v1603_v56 = vld [vmem:[#allocation6 + $0x1da8] sm:$0xff] }
 0x36c   :  { %3936 = vmatpush.msrb.mxu0 %v848_v57  ;;  %3927 = vmatpush.msra.mxu1 %v2037_v59  ;;  %v1799_v57 = vld [vmem:[#allocation6 + $0x23c8] sm:$0xff]  ;;  %v722_v59 = vld [vmem:[#allocation6 + $0x220] sm:$0xff] }
 0x36d   :  { %3878 = vmatpush.msra.mxu2 %v1715_v62  ;;  %3900 = vmatpush.msra.mxu3 %v1911_v0  ;;  %v1464_v62 = vld [vmem:[#allocation6 + $0x1950] sm:$0xff]  ;;  %v1589_v0 = vld [vmem:[#allocation6 + $0x1d38] sm:$0xff] }
 0x36e   :  { %3937 = vmatpush.msrb.mxu0 %v834_v1  ;;  %3928 = vmatpush.msra.mxu1 %v2023_v2  ;;  %v1785_v1 = vld [vmem:[#allocation6 + $0x2358] sm:$0xff]  ;;  %v708_v2 = vld [vmem:[#allocation6 + $0x1b0] sm:$0xff] }
 0x36f   :  { %3879 = vmatpush.msra.mxu2 %v1701_v5  ;;  %3901 = vmatpush.msra.mxu3 %v1897_v6  ;;  %v1450_v5 = vld [vmem:[#allocation6 + $0x18e0] sm:$0xff]  ;;  %v1324_v6 = vld [vmem:[#allocation6 + $0x14f0] sm:$0xff] }
 0x370   :  { %3938 = vmatpush.msrb.mxu0 %v820_v7  ;;  %3929 = vmatpush.msra.mxu1 %v2009_v8  ;;  %v1575_v7 = vld [vmem:[#allocation6 + $0x1cc8] sm:$0xff]  ;;  %v694_v8 = vld [vmem:[#allocation6 + $0x140] sm:$0xff] }
 0x371   :  { %3880 = vmatpush.msra.mxu2 %v1687_v12  ;;  %3902 = vmatpush.msra.mxu3 %v1883_v21  ;;  %v1436_v12 = vld [vmem:[#allocation6 + $0x1870] sm:$0xff]  ;;  %v1310_v21 = vld [vmem:[#allocation6 + $0x1480] sm:$0xff] }
 0x372   :  { %3930 = vmatmul.f32.vlgmr.msra.gmra.mxu1 %v5178_v11  ;;  %3939 = vmatpush.msrb.mxu0 %v806_v15  ;;  %v1561_v15 = vld [vmem:[#allocation6 + $0x1c58] sm:$0xff] }
 0x373   :  { %3994 = vmatpush.msrb.mxu1 %v1548_v61  ;;  %3881 = vmatpush.msra.mxu2 %v1673_v18  ;;  %v680_v61 = vld [vmem:[#allocation6 + $0xd0] sm:$0xff]  ;;  %v1422_v18 = vld [vmem:[#allocation6 + $0x1800] sm:$0xff] }
 0x374   :  { %3903 = vmatpush.msra.mxu3 %v1869_v19  ;;  %3940 = vmatpush.msrb.mxu0 %v792_v23  ;;  %v1296_v19 = vld [vmem:[#allocation6 + $0x1410] sm:$0xff] }
 0x375   :  { %3995 = vmatpush.msrb.mxu1 %v1534_v26  ;;  %3882 = vmatpush.msra.mxu2 %v1659_v27  ;;  %v1100_v23 = vld [vmem:[#allocation6 + $0xdf0] sm:$0xff]  ;;  %v666_v26 = vld [vmem:[#allocation6 + $0x60] sm:$0xff] }
 0x376   :  { %3904 = vmatpush.msra.mxu3 %v1855_v29  ;;  %3941 = vmatpush.msrb.mxu0 %v778_v31  ;;  %v1408_v27 = vld [vmem:[#allocation6 + $0x1790] sm:$0xff]  ;;  %v1086_v29 = vld [vmem:[#allocation6 + $0xd80] sm:$0xff] }
 0x377   :  { %3996 = vmatpush.msrb.mxu1 %v1520_v33  ;;  %3883 = vmatpush.msra.mxu2 %v1645_v35  ;;  %v1282_v31 = vld [vmem:[#allocation6 + $0x13a0] sm:$0xff]  ;;  %v1772_v33 = vld [vmem:[#allocation6 + $0x22f0] sm:$0xff] }
 0x378   :  { %3905 = vmatpush.msra.mxu3 %v1841_v42  ;;  %3942 = vmatpush.msrb.mxu0 %v764_v37  ;;  %v1394_v35 = vld [vmem:[#allocation6 + $0x1720] sm:$0xff]  ;;  %v1072_v42 = vld [vmem:[#allocation6 + $0xd10] sm:$0xff] }
 0x379   :  { %3997 = vmatpush.msrb.mxu1 %v1506_v38  ;;  %3884 = vmatpush.msra.mxu2 %v1631_v44  ;;  %v1268_v37 = vld [vmem:[#allocation6 + $0x1330] sm:$0xff]  ;;  %v1758_v38 = vld [vmem:[#allocation6 + $0x2280] sm:$0xff] }
 0x37a   :  { %3906 = vmatpush.msra.mxu3 %v1827_v45  ;;  %3943 = vmatpush.msrb.mxu0 %v750_v46  ;;  %v1380_v44 = vld [vmem:[#allocation6 + $0x16b0] sm:$0xff]  ;;  %v1058_v45 = vld [vmem:[#allocation6 + $0xca0] sm:$0xff] }
 0x37b   :  { %3998 = vmatpush.msrb.mxu1 %v1492_v47  ;;  %3885 = vmatpush.msra.mxu2 %v1617_v50  ;;  %v1254_v46 = vld [vmem:[#allocation6 + $0x12c0] sm:$0xff]  ;;  %v1744_v47 = vld [vmem:[#allocation6 + $0x2210] sm:$0xff] }
 0x37c   :  { %3907 = vmatpush.msra.mxu3 %v1813_v51  ;;  %3944 = vmatpush.msrb.mxu0 %v736_v52  ;;  %v1366_v50 = vld [vmem:[#allocation6 + $0x1640] sm:$0xff]  ;;  %v1044_v51 = vld [vmem:[#allocation6 + $0xc30] sm:$0xff] }
 0x37d   :  { %3999 = vmatpush.msrb.mxu1 %v1478_v55  ;;  %3886 = vmatpush.msra.mxu2 %v1603_v56  ;;  %v1240_v52 = vld [vmem:[#allocation6 + $0x1250] sm:$0xff]  ;;  %v1730_v55 = vld [vmem:[#allocation6 + $0x21a0] sm:$0xff] }
 0x37e   :  { %3908 = vmatpush.msra.mxu3 %v1799_v57  ;;  %3945 = vmatpush.msrb.mxu0 %v722_v59  ;;  %v1352_v56 = vld [vmem:[#allocation6 + $0x15d0] sm:$0xff]  ;;  %v1030_v57 = vld [vmem:[#allocation6 + $0xbc0] sm:$0xff] }
 0x37f   :  { %4000 = vmatpush.msrb.mxu1 %v1464_v62  ;;  %3887 = vmatpush.msra.mxu2 %v1589_v0  ;;  %v1226_v59 = vld [vmem:[#allocation6 + $0x11e0] sm:$0xff]  ;;  %v1716_v62 = vld [vmem:[#allocation6 + $0x2130] sm:$0xff] }
 0x380   :  { %3909 = vmatpush.msra.mxu3 %v1785_v1  ;;  %3946 = vmatpush.msrb.mxu0 %v708_v2  ;;  %v1338_v0 = vld [vmem:[#allocation6 + $0x1560] sm:$0xff]  ;;  %v1016_v1 = vld [vmem:[#allocation6 + $0xb50] sm:$0xff] }
 0x381   :  { %4001 = vmatpush.msrb.mxu1 %v1450_v5  ;;  %3910 = vmatmul.f32.vlgmr.msra.gmra.mxu3 %v5181_v20  ;;  %v1212_v2 = vld [vmem:[#allocation6 + $0x1170] sm:$0xff]  ;;  %v1702_v5 = vld [vmem:[#allocation6 + $0x20c0] sm:$0xff] }
 0x382   :  { %3974 = vmatpush.msrb.mxu3 %v1324_v6  ;;  %3888 = vmatpush.msra.mxu2 %v1575_v7  ;;  %v877_v6 = vld [vmem:[#allocation6 + $0x6f8] sm:$0xff]  ;;  %v1002_v7 = vld [vmem:[#allocation6 + $0xae0] sm:$0xff] }
 0x383   :  { %3947 = vmatpush.msrb.mxu0 %v694_v8  ;;  %4002 = vmatpush.msrb.mxu1 %v1436_v12  ;;  %v1198_v8 = vld [vmem:[#allocation6 + $0x1100] sm:$0xff]  ;;  %v1688_v12 = vld [vmem:[#allocation6 + $0x2050] sm:$0xff] }
 0x384   :  { %3975 = vmatpush.msrb.mxu3 %v1310_v21  ;;  %3889 = vmatpush.msra.mxu2 %v1561_v15  ;;  %v863_v21 = vld [vmem:[#allocation6 + $0x688] sm:$0xff]  ;;  %v988_v15 = vld [vmem:[#allocation6 + $0xa70] sm:$0xff] }
 0x385   :  { %3948 = vmatpush.msrb.mxu0 %v680_v61  ;;  %4003 = vmatpush.msrb.mxu1 %v1422_v18  ;;  %v1184_v61 = vld [vmem:[#allocation6 + $0x1090] sm:$0xff]  ;;  %v1674_v18 = vld [vmem:[#allocation6 + $0x1fe0] sm:$0xff] }
 0x386   :  { %3890 = vmatmul.f32.vlgmr.msra.gmra.mxu2 %v5171_v28  ;;  %3976 = vmatpush.msrb.mxu3 %v1296_v19  ;;  %v849_v19 = vld [vmem:[#allocation6 + $0x618] sm:$0xff] }
 0x387   :  { %3954 = vmatpush.msrb.mxu2 %v1100_v23  ;;  %3949 = vmatpush.msrb.mxu0 %v666_v26  ;;  %v974_v23 = vld [vmem:[#allocation6 + $0xa00] sm:$0xff] }
 0x388   :  { %4004 = vmatpush.msrb.mxu1 %v1408_v27  ;;  %3950 = vmatmul.f32.vlgmr.msrb.gmra.mxu0 %v5155_v16  ;;  %v1170_v26 = vld [vmem:[#allocation6 + $0x1020] sm:$0xff]  ;;  %v1660_v27 = vld [vmem:[#allocation6 + $0x1f70] sm:$0xff] }
 0x389   :  { %3955 = vmatpush.msrb.mxu2 %v1086_v29  ;;  %3977 = vmatpush.msrb.mxu3 %v1282_v31  ;;  %v835_v29 = vld [vmem:[#allocation6 + $0x5a8] sm:$0xff]  ;;  %v960_v31 = vld [vmem:[#allocation6 + $0x990] sm:$0xff] }
 0x38a   :  { %4014 = vmatpush.msra.mxu0 %v1772_v33  ;;  %4005 = vmatpush.msrb.mxu1 %v1394_v35  ;;  %v1156_v33 = vld [vmem:[#allocation6 + $0xfb0] sm:$0xff]  ;;  %v1646_v35 = vld [vmem:[#allocation6 + $0x1f00] sm:$0xff] }
 0x38b   :  { %3956 = vmatpush.msrb.mxu2 %v1072_v42  ;;  %3978 = vmatpush.msrb.mxu3 %v1268_v37  ;;  %v821_v42 = vld [vmem:[#allocation6 + $0x538] sm:$0xff]  ;;  %v946_v37 = vld [vmem:[#allocation6 + $0x920] sm:$0xff] }
 0x38c   :  { %4015 = vmatpush.msra.mxu0 %v1758_v38  ;;  %4006 = vmatpush.msrb.mxu1 %v1380_v44  ;;  %v1142_v38 = vld [vmem:[#allocation6 + $0xf40] sm:$0xff]  ;;  %v1632_v44 = vld [vmem:[#allocation6 + $0x1e90] sm:$0xff] }
 0x38d   :  { %3957 = vmatpush.msrb.mxu2 %v1058_v45  ;;  %3979 = vmatpush.msrb.mxu3 %v1254_v46  ;;  %v807_v45 = vld [vmem:[#allocation6 + $0x4c8] sm:$0xff]  ;;  %v932_v46 = vld [vmem:[#allocation6 + $0x8b0] sm:$0xff] }
 0x38e   :  { %4016 = vmatpush.msra.mxu0 %v1744_v47  ;;  %4007 = vmatpush.msrb.mxu1 %v1366_v50  ;;  %v1128_v47 = vld [vmem:[#allocation6 + $0xed0] sm:$0xff]  ;;  %v1618_v50 = vld [vmem:[#allocation6 + $0x1e20] sm:$0xff] }
 0x38f   :  { %3958 = vmatpush.msrb.mxu2 %v1044_v51  ;;  %3980 = vmatpush.msrb.mxu3 %v1240_v52  ;;  %v793_v51 = vld [vmem:[#allocation6 + $0x458] sm:$0xff]  ;;  %v918_v52 = vld [vmem:[#allocation6 + $0x840] sm:$0xff] }
 0x390   :  { %4017 = vmatpush.msra.mxu0 %v1730_v55  ;;  %4008 = vmatpush.msrb.mxu1 %v1352_v56  ;;  %v1114_v55 = vld [vmem:[#allocation6 + $0xe60] sm:$0xff]  ;;  %v1604_v56 = vld [vmem:[#allocation6 + $0x1db0] sm:$0xff] }
 0x391   :  { %3959 = vmatpush.msrb.mxu2 %v1030_v57  ;;  %3981 = vmatpush.msrb.mxu3 %v1226_v59  ;;  %v779_v57 = vld [vmem:[#allocation6 + $0x3e8] sm:$0xff]  ;;  %v2220_v59 = vld [vmem:[#allocation6 + $0x30f0] sm:$0xff] }
 0x392   :  { %4018 = vmatpush.msra.mxu0 %v1716_v62  ;;  %4009 = vmatpush.msrb.mxu1 %v1338_v0  ;;  %v904_v62 = vld [vmem:[#allocation6 + $0x7d0] sm:$0xff]  ;;  %v1590_v0 = vld [vmem:[#allocation6 + $0x1d40] sm:$0xff] }
 0x393   :  { %3960 = vmatpush.msrb.mxu2 %v1016_v1  ;;  %3982 = vmatpush.msrb.mxu3 %v1212_v2  ;;  %v765_v1 = vld [vmem:[#allocation6 + $0x378] sm:$0xff]  ;;  %v2206_v2 = vld [vmem:[#allocation6 + $0x3080] sm:$0xff] }
 0x394   :  { %4010 = vmatmul.f32.vlgmr.msrb.gmra.mxu1 %v5165_v41  ;;  %4019 = vmatpush.msra.mxu0 %v1702_v5  ;;  %v890_v5 = vld [vmem:[#allocation6 + $0x760] sm:$0xff] }
 0x395   :  { %4074 = vmatpush.msra.mxu1 %v877_v6  ;;  %3961 = vmatpush.msrb.mxu2 %v1002_v7  ;;  %v1576_v6 = vld [vmem:[#allocation6 + $0x1cd0] sm:$0xff]  ;;  %v751_v7 = vld [vmem:[#allocation6 + $0x308] sm:$0xff] }
 0x396   :  { %3983 = vmatpush.msrb.mxu3 %v1198_v8  ;;  %4020 = vmatpush.msra.mxu0 %v1688_v12  ;;  %v2192_v8 = vld [vmem:[#allocation6 + $0x3010] sm:$0xff] }
 0x397   :  { %4075 = vmatpush.msra.mxu1 %v863_v21  ;;  %3962 = vmatpush.msrb.mxu2 %v988_v15  ;;  %v1996_v12 = vld [vmem:[#allocation6 + $0x29f0] sm:$0xff]  ;;  %v1562_v21 = vld [vmem:[#allocation6 + $0x1c60] sm:$0xff]  ;;  %v737_v15 = vld [vmem:[#allocation6 + $0x298] sm:$0xff] }
 0x398   :  { %3984 = vmatpush.msrb.mxu3 %v1184_v61  ;;  %4021 = vmatpush.msra.mxu0 %v1674_v18  ;;  %v1982_v61 = vld [vmem:[#allocation6 + $0x2980] sm:$0xff] }
 0x399   :  { %4076 = vmatpush.msra.mxu1 %v849_v19  ;;  %3963 = vmatpush.msrb.mxu2 %v974_v23  ;;  %v2178_v18 = vld [vmem:[#allocation6 + $0x2fa0] sm:$0xff]  ;;  %v1101_v19 = vld [vmem:[#allocation6 + $0xdf8] sm:$0xff]  ;;  %v723_v23 = vld [vmem:[#allocation6 + $0x228] sm:$0xff] }
 0x39a   :  { %3985 = vmatpush.msrb.mxu3 %v1170_v26  ;;  %4022 = vmatpush.msra.mxu0 %v1660_v27  ;;  %v1968_v26 = vld [vmem:[#allocation6 + $0x2910] sm:$0xff] }
 0x39b   :  { %4077 = vmatpush.msra.mxu1 %v835_v29  ;;  %3964 = vmatpush.msrb.mxu2 %v960_v31  ;;  %v2164_v27 = vld [vmem:[#allocation6 + $0x2f30] sm:$0xff]  ;;  %v1087_v29 = vld [vmem:[#allocation6 + $0xd88] sm:$0xff]  ;;  %v709_v31 = vld [vmem:[#allocation6 + $0x1b8] sm:$0xff] }
 0x39c   :  { %3986 = vmatpush.msrb.mxu3 %v1156_v33  ;;  %4023 = vmatpush.msra.mxu0 %v1646_v35  ;;  %v1954_v33 = vld [vmem:[#allocation6 + $0x28a0] sm:$0xff] }
 0x39d   :  { %4078 = vmatpush.msra.mxu1 %v821_v42  ;;  %3965 = vmatpush.msrb.mxu2 %v946_v37  ;;  %v2150_v35 = vld [vmem:[#allocation6 + $0x2ec0] sm:$0xff]  ;;  %v1073_v42 = vld [vmem:[#allocation6 + $0xd18] sm:$0xff]  ;;  %v695_v37 = vld [vmem:[#allocation6 + $0x148] sm:$0xff] }
 0x39e   :  { %3987 = vmatpush.msrb.mxu3 %v1142_v38  ;;  %4024 = vmatpush.msra.mxu0 %v1632_v44  ;;  %v1940_v38 = vld [vmem:[#allocation6 + $0x2830] sm:$0xff] }
 0x39f   :  { %4079 = vmatpush.msra.mxu1 %v807_v45  ;;  %3966 = vmatpush.msrb.mxu2 %v932_v46  ;;  %v2136_v44 = vld [vmem:[#allocation6 + $0x2e50] sm:$0xff]  ;;  %v1059_v45 = vld [vmem:[#allocation6 + $0xca8] sm:$0xff]  ;;  %v681_v46 = vld [vmem:[#allocation6 + $0xd8] sm:$0xff] }
 0x3a0   :  { %3988 = vmatpush.msrb.mxu3 %v1128_v47  ;;  %4025 = vmatpush.msra.mxu0 %v1618_v50  ;;  %v1926_v47 = vld [vmem:[#allocation6 + $0x27c0] sm:$0xff] }
 0x3a1   :  { %4080 = vmatpush.msra.mxu1 %v793_v51  ;;  %3967 = vmatpush.msrb.mxu2 %v918_v52  ;;  %v2122_v50 = vld [vmem:[#allocation6 + $0x2de0] sm:$0xff]  ;;  %v1045_v51 = vld [vmem:[#allocation6 + $0xc38] sm:$0xff]  ;;  %v667_v52 = vld [vmem:[#allocation6 + $0x68] sm:$0xff] }
 0x3a2   :  { %3989 = vmatpush.msrb.mxu3 %v1114_v55  ;;  %4026 = vmatpush.msra.mxu0 %v1604_v56  ;;  %v1912_v55 = vld [vmem:[#allocation6 + $0x2750] sm:$0xff] }
 0x3a3   :  { %4081 = vmatpush.msra.mxu1 %v779_v57  ;;  %3990 = vmatmul.f32.vlgmr.msrb.gmra.mxu3 %v5163_v40  ;;  %v2108_v56 = vld [vmem:[#allocation6 + $0x2d70] sm:$0xff]  ;;  %v1031_v57 = vld [vmem:[#allocation6 + $0xbc8] sm:$0xff] }
 0x3a4   :  { %4054 = vmatpush.msra.mxu3 %v2220_v59  ;;  %3968 = vmatpush.msrb.mxu2 %v904_v62  ;;  %v1773_v59 = vld [vmem:[#allocation6 + $0x22f8] sm:$0xff]  ;;  %v1898_v62 = vld [vmem:[#allocation6 + $0x26e0] sm:$0xff] }
 0x3a5   :  { %4027 = vmatpush.msra.mxu0 %v1590_v0  ;;  %4082 = vmatpush.msra.mxu1 %v765_v1  ;;  %v2094_v0 = vld [vmem:[#allocation6 + $0x2d00] sm:$0xff]  ;;  %v1017_v1 = vld [vmem:[#allocation6 + $0xb58] sm:$0xff] }
 0x3a6   :  { %4055 = vmatpush.msra.mxu3 %v2206_v2  ;;  %3969 = vmatpush.msrb.mxu2 %v890_v5  ;;  %v1759_v2 = vld [vmem:[#allocation6 + $0x2288] sm:$0xff]  ;;  %v1884_v5 = vld [vmem:[#allocation6 + $0x2670] sm:$0xff] }
 0x3a7   :  { %4028 = vmatpush.msra.mxu0 %v1576_v6  ;;  %4083 = vmatpush.msra.mxu1 %v751_v7  ;;  %v2080_v6 = vld [vmem:[#allocation6 + $0x2c90] sm:$0xff]  ;;  %v1003_v7 = vld [vmem:[#allocation6 + $0xae8] sm:$0xff] }
 0x3a8   :  { %3970 = vmatmul.f32.vlgmr.msrb.gmra.mxu2 %v5158_v22  ;;  %4056 = vmatpush.msra.mxu3 %v2192_v8  ;;  %v1745_v8 = vld [vmem:[#allocation6 + $0x2218] sm:$0xff] }
 0x3a9   :  { %4034 = vmatpush.msra.mxu2 %v1996_v12  ;;  %4029 = vmatpush.msra.mxu0 %v1562_v21  ;;  %v1870_v12 = vld [vmem:[#allocation6 + $0x2600] sm:$0xff] }
 0x3aa   :  { %4084 = vmatpush.msra.mxu1 %v737_v15  ;;  %4030 = vmatmul.f32.vlgmr.msra.gmra.mxu0 %v5171_v28  ;;  %v2066_v21 = vld [vmem:[#allocation6 + $0x2c20] sm:$0xff]  ;;  %v989_v15 = vld [vmem:[#allocation6 + $0xa78] sm:$0xff] }
 0x3ab   :  { %4035 = vmatpush.msra.mxu2 %v1982_v61  ;;  %4057 = vmatpush.msra.mxu3 %v2178_v18  ;;  %v1731_v61 = vld [vmem:[#allocation6 + $0x21a8] sm:$0xff]  ;;  %v1856_v18 = vld [vmem:[#allocation6 + $0x2590] sm:$0xff] }
 0x3ac   :  { %4094 = vmatpush.msrb.mxu0 %v1101_v19  ;;  %4085 = vmatpush.msra.mxu1 %v723_v23  ;;  %v975_v19 = vld [vmem:[#allocation6 + $0xa08] sm:$0xff]  ;;  %v1717_v23 = vld [vmem:[#allocation6 + $0x2138] sm:$0xff] }
 0x3ad   :  { %4036 = vmatpush.msra.mxu2 %v1968_v26  ;;  %4058 = vmatpush.msra.mxu3 %v2164_v27  ;;  %v1842_v26 = vld [vmem:[#allocation6 + $0x2520] sm:$0xff] }
 0x3ae   :  { %4095 = vmatpush.msrb.mxu0 %v1087_v29  ;;  %4086 = vmatpush.msra.mxu1 %v709_v31  ;;  %v2038_v27 = vld [vmem:[#allocation6 + $0x2b40] sm:$0xff]  ;;  %v961_v29 = vld [vmem:[#allocation6 + $0x998] sm:$0xff]  ;;  %v1703_v31 = vld [vmem:[#allocation6 + $0x20c8] sm:$0xff] }
 0x3af   :  { %4037 = vmatpush.msra.mxu2 %v1954_v33  ;;  %4059 = vmatpush.msra.mxu3 %v2150_v35  ;;  %v1828_v33 = vld [vmem:[#allocation6 + $0x24b0] sm:$0xff] }
 0x3b0   :  { %4096 = vmatpush.msrb.mxu0 %v1073_v42  ;;  %4087 = vmatpush.msra.mxu1 %v695_v37  ;;  %v2024_v35 = vld [vmem:[#allocation6 + $0x2ad0] sm:$0xff]  ;;  %v947_v42 = vld [vmem:[#allocation6 + $0x928] sm:$0xff]  ;;  %v1689_v37 = vld [vmem:[#allocation6 + $0x2058] sm:$0xff] }
 0x3b1   :  { %4038 = vmatpush.msra.mxu2 %v1940_v38  ;;  %4060 = vmatpush.msra.mxu3 %v2136_v44  ;;  %v1814_v38 = vld [vmem:[#allocation6 + $0x2440] sm:$0xff] }
 0x3b2   :  { %4097 = vmatpush.msrb.mxu0 %v1059_v45  ;;  %4088 = vmatpush.msra.mxu1 %v681_v46  ;;  %v2010_v44 = vld [vmem:[#allocation6 + $0x2a60] sm:$0xff]  ;;  %v933_v45 = vld [vmem:[#allocation6 + $0x8b8] sm:$0xff]  ;;  %v1675_v46 = vld [vmem:[#allocation6 + $0x1fe8] sm:$0xff] }
 0x3b3   :  { %4039 = vmatpush.msra.mxu2 %v1926_v47  ;;  %4061 = vmatpush.msra.mxu3 %v2122_v50  ;;  %v1549_v47 = vld [vmem:[#allocation6 + $0x1bf8] sm:$0xff]  ;;  %v1800_v50 = vld [vmem:[#allocation6 + $0x23d0] sm:$0xff] }
 0x3b4   :  { %4098 = vmatpush.msrb.mxu0 %v1045_v51  ;;  %4089 = vmatpush.msra.mxu1 %v667_v52  ;;  %v919_v51 = vld [vmem:[#allocation6 + $0x848] sm:$0xff]  ;;  %v1661_v52 = vld [vmem:[#allocation6 + $0x1f78] sm:$0xff] }
 0x3b5   :  { %4040 = vmatpush.msra.mxu2 %v1912_v55  ;;  %4062 = vmatpush.msra.mxu3 %v2108_v56  ;;  %v1535_v55 = vld [vmem:[#allocation6 + $0x1b88] sm:$0xff]  ;;  %v1786_v56 = vld [vmem:[#allocation6 + $0x2360] sm:$0xff] }
 0x3b6   :  { %4090 = vmatmul.f32.vlgmr.msra.gmra.mxu1 %v5155_v16  ;;  %4099 = vmatpush.msrb.mxu0 %v1031_v57  ;;  %v2052_v16 = vld [vmem:[#allocation6 + $0x2bb0] sm:$0xff]  ;;  %v905_v57 = vld [vmem:[#allocation6 + $0x7d8] sm:$0xff] }
 0x3b7   :  { %4154 = vmatpush.msrb.mxu1 %v1773_v59  ;;  %4041 = vmatpush.msra.mxu2 %v1898_v62  ;;  %v1647_v59 = vld [vmem:[#allocation6 + $0x1f08] sm:$0xff]  ;;  %v1521_v62 = vld [vmem:[#allocation6 + $0x1b18] sm:$0xff] }
 0x3b8   :  { %4063 = vmatpush.msra.mxu3 %v2094_v0  ;;  %4100 = vmatpush.msrb.mxu0 %v1017_v1  ;;  %v1325_v0 = vld [vmem:[#allocation6 + $0x14f8] sm:$0xff]  ;;  %v891_v1 = vld [vmem:[#allocation6 + $0x768] sm:$0xff] }
 0x3b9   :  { %4155 = vmatpush.msrb.mxu1 %v1759_v2  ;;  %4042 = vmatpush.msra.mxu2 %v1884_v5  ;;  %v1633_v2 = vld [vmem:[#allocation6 + $0x1e98] sm:$0xff]  ;;  %v1311_v5 = vld [vmem:[#allocation6 + $0x1488] sm:$0xff] }
 0x3ba   :  { %4064 = vmatpush.msra.mxu3 %v2080_v6  ;;  %4101 = vmatpush.msrb.mxu0 %v1003_v7  ;;  %v1507_v6 = vld [vmem:[#allocation6 + $0x1aa8] sm:$0xff]  ;;  %v1997_v7 = vld [vmem:[#allocation6 + $0x29f8] sm:$0xff] }
 0x3bb   :  { %4156 = vmatpush.msrb.mxu1 %v1745_v8  ;;  %4043 = vmatpush.msra.mxu2 %v1870_v12  ;;  %v1619_v8 = vld [vmem:[#allocation6 + $0x1e28] sm:$0xff]  ;;  %v1297_v12 = vld [vmem:[#allocation6 + $0x1418] sm:$0xff] }
 0x3bc   :  { %4065 = vmatpush.msra.mxu3 %v2066_v21  ;;  %4102 = vmatpush.msrb.mxu0 %v989_v15  ;;  %v1493_v21 = vld [vmem:[#allocation6 + $0x1a38] sm:$0xff]  ;;  %v1983_v15 = vld [vmem:[#allocation6 + $0x2988] sm:$0xff] }
 0x3bd   :  { %4157 = vmatpush.msrb.mxu1 %v1731_v61  ;;  %4044 = vmatpush.msra.mxu2 %v1856_v18  ;;  %v1605_v61 = vld [vmem:[#allocation6 + $0x1db8] sm:$0xff]  ;;  %v1283_v18 = vld [vmem:[#allocation6 + $0x13a8] sm:$0xff] }
 0x3be   :  { %4066 = vmatpush.msra.mxu3 %v2052_v16  ;;  %4103 = vmatpush.msrb.mxu0 %v975_v19  ;;  %v1479_v16 = vld [vmem:[#allocation6 + $0x19c8] sm:$0xff]  ;;  %v1969_v19 = vld [vmem:[#allocation6 + $0x2918] sm:$0xff] }
 0x3bf   :  { %4158 = vmatpush.msrb.mxu1 %v1717_v23  ;;  %4045 = vmatpush.msra.mxu2 %v1842_v26  ;;  %v1591_v23 = vld [vmem:[#allocation6 + $0x1d48] sm:$0xff]  ;;  %v1269_v26 = vld [vmem:[#allocation6 + $0x1338] sm:$0xff] }
 0x3c0   :  { %4067 = vmatpush.msra.mxu3 %v2038_v27  ;;  %4104 = vmatpush.msrb.mxu0 %v961_v29  ;;  %v1465_v27 = vld [vmem:[#allocation6 + $0x1958] sm:$0xff] }
 0x3c1   :  { %4159 = vmatpush.msrb.mxu1 %v1703_v31  ;;  %4046 = vmatpush.msra.mxu2 %v1828_v33  ;;  %v1577_v29 = vld [vmem:[#allocation6 + $0x1cd8] sm:$0xff]  ;;  %v1255_v31 = vld [vmem:[#allocation6 + $0x12c8] sm:$0xff] }
 0x3c2   :  { %4068 = vmatpush.msra.mxu3 %v2024_v35  ;;  %4105 = vmatpush.msrb.mxu0 %v947_v42  ;;  %v1451_v33 = vld [vmem:[#allocation6 + $0x18e8] sm:$0xff]  ;;  %v1941_v35 = vld [vmem:[#allocation6 + $0x2838] sm:$0xff] }
 0x3c3   :  { %4160 = vmatpush.msrb.mxu1 %v1689_v37  ;;  %4047 = vmatpush.msra.mxu2 %v1814_v38  ;;  %v1563_v42 = vld [vmem:[#allocation6 + $0x1c68] sm:$0xff]  ;;  %v1241_v37 = vld [vmem:[#allocation6 + $0x1258] sm:$0xff] }
 0x3c4   :  { %4069 = vmatpush.msra.mxu3 %v2010_v44  ;;  %4106 = vmatpush.msrb.mxu0 %v933_v45  ;;  %v1437_v38 = vld [vmem:[#allocation6 + $0x1878] sm:$0xff]  ;;  %v1927_v44 = vld [vmem:[#allocation6 + $0x27c8] sm:$0xff] }
 0x3c5   :  { %4161 = vmatpush.msrb.mxu1 %v1675_v46  ;;  %4070 = vmatmul.f32.vlgmr.msra.gmra.mxu3 %v5178_v11  ;;  %v4259_v45 = vld [vmem:[#allocation9 + $0xf8] sm:$0xff] }
 0x3c6   :  { %4134 = vmatpush.msrb.mxu3 %v1549_v47  ;;  %4048 = vmatpush.msra.mxu2 %v1800_v50  ;;  %v1227_v46 = vld [vmem:[#allocation6 + $0x11e8] sm:$0xff]  ;;  %v1913_v50 = vld [vmem:[#allocation6 + $0x2758] sm:$0xff] }
 0x3c7   :  { %4107 = vmatpush.msrb.mxu0 %v919_v51  ;;  %4162 = vmatpush.msrb.mxu1 %v1661_v52  ;;  %v1423_v47 = vld [vmem:[#allocation6 + $0x1808] sm:$0xff]  ;;  %v4258_v51 = vld [vmem:[#allocation9 + $0xf0] sm:$0xff] }
 0x3c8   :  { %4135 = vmatpush.msrb.mxu3 %v1535_v55  ;;  %4049 = vmatpush.msra.mxu2 %v1786_v56  ;;  %v1213_v52 = vld [vmem:[#allocation6 + $0x1178] sm:$0xff]  ;;  %v1899_v56 = vld [vmem:[#allocation6 + $0x26e8] sm:$0xff] }
 0x3c9   :  { %4108 = vmatpush.msrb.mxu0 %v905_v57  ;;  %4163 = vmatpush.msrb.mxu1 %v1647_v59  ;;  %v1409_v55 = vld [vmem:[#allocation6 + $0x1798] sm:$0xff]  ;;  %v1199_v59 = vld [vmem:[#allocation6 + $0x1108] sm:$0xff] }
 0x3ca   :  { %4050 = vmatmul.f32.vlgmr.msra.gmra.mxu2 %v5181_v20  ;;  %4136 = vmatpush.msrb.mxu3 %v1521_v62  ;;  %v4257_v57 = vld [vmem:[#allocation9 + $0xe8] sm:$0xff]  ;;  %v1395_v62 = vld [vmem:[#allocation6 + $0x1728] sm:$0xff] }
 0x3cb   :  { %4114 = vmatpush.msrb.mxu2 %v1325_v0  ;;  %4109 = vmatpush.msrb.mxu0 %v891_v1  ;;  %v1885_v0 = vld [vmem:[#allocation6 + $0x2678] sm:$0xff]  ;;  %v4256_v1 = vld [vmem:[#allocation9 + $0xe0] sm:$0xff] }
 0x3cc   :  { %4164 = vmatpush.msrb.mxu1 %v1633_v2  ;;  %4110 = vmatmul.f32.vlgmr.msrb.gmra.mxu0 %v5158_v22  ;;  %v1955_v22 = vld [vmem:[#allocation6 + $0x28a8] sm:$0xff]  ;;  %v1185_v2 = vld [vmem:[#allocation6 + $0x1098] sm:$0xff] }
 0x3cd   :  { %4115 = vmatpush.msrb.mxu2 %v1311_v5  ;;  %4137 = vmatpush.msrb.mxu3 %v1507_v6  ;;  %v1381_v5 = vld [vmem:[#allocation6 + $0x16b8] sm:$0xff]  ;;  %v1871_v6 = vld [vmem:[#allocation6 + $0x2608] sm:$0xff] }
 0x3ce   :  { %4174 = vmatpush.msra.mxu0 %v1997_v7  ;;  %4165 = vmatpush.msrb.mxu1 %v1619_v8  ;;  %v5317_v7 = vld [vmem:[#allocation7] sm:$0xff] }
 0x3cf   :  { %4116 = vmatpush.msrb.mxu2 %v1297_v12  ;;  %4138 = vmatpush.msrb.mxu3 %v1493_v21  ;;  %v2227_v8 = vperm.slane %v5317_v7, 1  ;;  %v4255_v12 = vld [vmem:[#allocation9 + $0xd8] sm:$0xff] }
 0x3d0   :  { %4175 = vmatpush.msra.mxu0 %v1983_v15  ;;  %4166 = vmatpush.msrb.mxu1 %v1605_v61  ;;  %v1171_v21 = vld [vmem:[#allocation6 + $0x1028] sm:$0xff]  ;;  %v5320_v15 = vpop.f32.mrf.mxu2 }
 0x3d1   :  { %4117 = vmatpush.msrb.mxu2 %v1283_v18  ;;  %4139 = vmatpush.msrb.mxu3 %v1479_v16  ;;  %v1367_v61 = vld [vmem:[#allocation6 + $0x1648] sm:$0xff]  ;;  %v1857_v18 = vld [vmem:[#allocation6 + $0x2598] sm:$0xff] }
 0x3d2   :  { %4176 = vmatpush.msra.mxu0 %v1969_v19  ;;  %4167 = vmatpush.msrb.mxu1 %v1591_v23  ;;  %v4254_v16 = vld [vmem:[#allocation9 + $0xd0] sm:$0xff] }
 0x3d3   :  { %4118 = vmatpush.msrb.mxu2 %v1269_v26  ;;  %4140 = vmatpush.msrb.mxu3 %v1465_v27  ;;  %v1157_v19 = vld [vmem:[#allocation6 + $0xfb8] sm:$0xff]  ;;  %v1843_v26 = vld [vmem:[#allocation6 + $0x2528] sm:$0xff]  ;;  %v2412_v27 = vadd.f32 %v5223_v14, %v2227_v8 }
 0x3d4   :  { %4177 = vmatpush.msra.mxu0 %v1955_v22  ;;  %4168 = vmatpush.msrb.mxu1 %v1577_v29  ;;  %v1353_v23 = vld [vmem:[#allocation6 + $0x15d8] sm:$0xff]  ;;  %v1143_v29 = vld [vmem:[#allocation6 + $0xf48] sm:$0xff] }
 0x3d5   :  { %4119 = vmatpush.msrb.mxu2 %v1255_v31  ;;  %4141 = vmatpush.msrb.mxu3 %v1451_v33  ;;  %v4253_v22 = vld [vmem:[#allocation9 + $0xc8] sm:$0xff]  ;;  %v5323_v31 = vpop.f32.mrf.mxu1  ;;  %v1339_v33 = vld [vmem:[#allocation6 + $0x1568] sm:$0xff] }
 0x3d6   :  { %4178 = vmatpush.msra.mxu0 %v1941_v35  ;;  %4169 = vmatpush.msrb.mxu1 %v1563_v42  ;;  %v1829_v35 = vld [vmem:[#allocation6 + $0x24b8] sm:$0xff]  ;;  %v2432_v42 = vadd.f32 %v5227_v24, %v2412_v27  ;;  %v4243_v14 = vld [vmem:[#allocation9 + $0x78] sm:$0xff] }
 0x3d7   :  { %4120 = vmatpush.msrb.mxu2 %v1241_v37  ;;  %4142 = vmatpush.msrb.mxu3 %v1437_v38  ;;  %v5326_v37 = vpop.f32.mrf.mxu3  ;;  %v4252_v38 = vld [vmem:[#allocation9 + $0xc0] sm:$0xff]  ;;  %v4242_v24 = vld [vmem:[#allocation9 + $0x70] sm:$0xff] }
 0x3d8   :  { %4170 = vmatmul.f32.vlgmr.msrb.gmra.mxu1 %v5171_v28  ;;  %4179 = vmatpush.msra.mxu0 %v1927_v44  ;;  %v5315_v28 = vpop.f32.mrf.mxu0  ;;  %v2179_v27 = vld [vmem:[#allocation6 + $0x2fa8] sm:$0xff] }
 0x3d9   :  { %4476 = vmatpush.msra.mxu1 %v4259_v45  ;;  %4121 = vmatpush.msrb.mxu2 %v1227_v46  ;;  %v1129_v45 = vld [vmem:[#allocation6 + $0xed8] sm:$0xff]  ;;  %v2452_v46 = vadd.f32 %v5229_v30, %v2432_v42 }
 0x3da   :  { %4143 = vmatpush.msrb.mxu3 %v1423_v47  ;;  %4180 = vmatpush.msra.mxu0 %v1913_v50  ;;  %v1815_v47 = vld [vmem:[#allocation6 + $0x2448] sm:$0xff] }
 0x3db   :  { %4477 = vmatpush.msra.mxu1 %v4258_v51  ;;  %4122 = vmatpush.msrb.mxu2 %v1213_v52  ;;  %v4251_v50 = vld [vmem:[#allocation9 + $0xb8] sm:$0xff]  ;;  %v5331_v51 = vpop.f32.mrf.mxu2  ;;  %v2472_v30 = vadd.f32 %v5233_v32, %v2452_v46 }
 0x3dc   :  { %4144 = vmatpush.msrb.mxu3 %v1409_v55  ;;  %4181 = vmatpush.msra.mxu0 %v1899_v56  ;;  %v1115_v52 = vld [vmem:[#allocation6 + $0xe68] sm:$0xff]  ;;  %v1801_v55 = vld [vmem:[#allocation6 + $0x23d8] sm:$0xff] }
 0x3dd   :  { %4478 = vmatpush.msra.mxu1 %v4257_v57  ;;  %4123 = vmatpush.msrb.mxu2 %v1199_v59  ;;  %v4250_v56 = vld [vmem:[#allocation9 + $0xb0] sm:$0xff]  ;;  %v4241_v57 = vld [vmem:[#allocation9 + $0x68] sm:$0xff]  ;;  %v4275_v32 = vld [vmem:[#allocation9 + $0x178] sm:$0xff] }
 0x3de   :  { %4145 = vmatpush.msrb.mxu3 %v1395_v62  ;;  %4182 = vmatpush.msra.mxu0 %v1885_v0  ;;  %v2221_v59 = vld [vmem:[#allocation6 + $0x30f8] sm:$0xff]  ;;  %v1787_v62 = vld [vmem:[#allocation6 + $0x2368] sm:$0xff]  ;;  %v2226_v0 = vperm.slane %v5317_v7, 0 }
 0x3df   :  { %4479 = vmatpush.msra.mxu1 %v4256_v1  ;;  %4124 = vmatpush.msrb.mxu2 %v1185_v2  ;;  %v5336_v1 = vpop.f32.mrf.mxu1  ;;  %v5338_v2 = vpop.f32.mrf.mxu3 }
 0x3e0   :  { %4146 = vmatpush.msrb.mxu3 %v1381_v5  ;;  %4183 = vmatpush.msra.mxu0 %v1871_v6  ;;  %v5328_v44 = vpop.f32.mrf.mxu0  ;;  %v2207_v5 = vld [vmem:[#allocation6 + $0x3088] sm:$0xff] }
 0x3e1   :  { %4480 = vmatpush.msra.mxu1 %v4255_v12  ;;  %4125 = vmatpush.msrb.mxu2 %v1171_v21  ;;  %v4240_v6 = vld [vmem:[#allocation9 + $0x60] sm:$0xff]  ;;  %v2492_v21 = vadd.f32 %v5231_v36, %v2472_v30  ;;  %v4273_v36 = vld [vmem:[#allocation9 + $0x168] sm:$0xff] }
 0x3e2   :  { %4147 = vmatpush.msrb.mxu3 %v1367_v61  ;;  %4184 = vmatpush.msra.mxu0 %v1857_v18  ;;  %v4248_v12 = vld [vmem:[#allocation9 + $0xa0] sm:$0xff]  ;;  %v2193_v61 = vld [vmem:[#allocation6 + $0x3018] sm:$0xff]  ;;  %v4239_v18 = vld [vmem:[#allocation9 + $0x58] sm:$0xff] }
 0x3e3   :  { %4481 = vmatpush.msra.mxu1 %v4254_v16  ;;  %4126 = vmatpush.msrb.mxu2 %v1157_v19  ;;  %v2272_v16 = vadd.f32 %v5208_v43, %v2226_v0  ;;  %v5346_v19 = vpop.f32.mrf.mxu2  ;;  %v2165_v43 = vld [vmem:[#allocation6 + $0x2f38] sm:$0xff]  ;;  %v2123_v0 = vld [vmem:[#allocation6 + $0x2de8] sm:$0xff] }
 0x3e4   :  { %4148 = vmatpush.msrb.mxu3 %v1353_v23  ;;  %4185 = vmatpush.msra.mxu0 %v1843_v26  ;;  %v4247_v23 = vld [vmem:[#allocation9 + $0x98] sm:$0xff]  ;;  %v2228_v26 = vperm.slane %v5317_v7, 2 }
 0x3e5   :  { %4482 = vmatpush.msra.mxu1 %v4253_v22  ;;  %4127 = vmatpush.msrb.mxu2 %v1143_v29  ;;  %v4238_v22 = vld [vmem:[#allocation9 + $0x50] sm:$0xff]  ;;  %v2512_v29 = vadd.f32 %v5235_v49, %v2492_v21  ;;  %v2151_v49 = vld [vmem:[#allocation6 + $0x2ec8] sm:$0xff] }
 0x3e6   :  { %4149 = vmatpush.msrb.mxu3 %v1339_v33  ;;  %4186 = vmatpush.msra.mxu0 %v1829_v35  ;;  %v4237_v33 = vld [vmem:[#allocation9 + $0x48] sm:$0xff]  ;;  %v2292_v35 = vadd.f32 %v5210_v48, %v2272_v16  ;;  %v4271_v48 = vld [vmem:[#allocation9 + $0x158] sm:$0xff]  ;;  %v4268_v21 = vld [vmem:[#allocation9 + $0x140] sm:$0xff] }
 0x3e7   :  { %4483 = vmatpush.msra.mxu1 %v4252_v38  ;;  %4150 = vmatmul.f32.vlgmr.msrb.gmra.mxu3 %v5165_v41  ;;  %v4249_v41 = vld [vmem:[#allocation9 + $0xa8] sm:$0xff]  ;;  %v5351_v42 = vpop.f32.mrf.mxu1  ;;  %v4272_v38 = vld [vmem:[#allocation9 + $0x160] sm:$0xff]  ;;  %v2532_v46 = vadd.f32 %v5237_v54, %v2512_v29  ;;  %v4270_v54 = vld [vmem:[#allocation9 + $0x150] sm:$0xff] }
 0x3e8   :  { %4456 = vmatpush.msra.mxu3 %v4243_v14  ;;  %4128 = vmatpush.msrb.mxu2 %v1129_v45  ;;  %v5341_v8 = vpop.f32.mrf.mxu0  ;;  %v4245_v14 = vld [vmem:[#allocation9 + $0x88] sm:$0xff]  ;;  %v2552_v45 = vadd.f32 %v5240_v60, %v2228_v26  ;;  %v2312_v60 = vadd.f32 %v5212_v53, %v2292_v35  ;;  %v4319_v35 = vld [vmem:[#allocation9 + $0x2d8] sm:$0xff] }
 0x3e9   :  { %4187 = vmatpush.msra.mxu0 %v1815_v47  ;;  %4484 = vmatpush.msra.mxu1 %v4251_v50  ;;  %v5355_v47 = vpop.f32.mrf.mxu3  ;;  %v4236_v50 = vld [vmem:[#allocation9 + $0x40] sm:$0xff]  ;;  %v2109_v53 = vld [vmem:[#allocation6 + $0x2d78] sm:$0xff] }
 0x3ea   :  { %4457 = vmatpush.msra.mxu3 %v4242_v24  ;;  %4129 = vmatpush.msrb.mxu2 %v1115_v52  ;;  %v4244_v52 = vld [vmem:[#allocation9 + $0x80] sm:$0xff]  ;;  %v2572_v30 = vadd.f32 %v5242_v3, %v2552_v45  ;;  %v4233_v3 = vld [vmem:[#allocation9 + $0x28] sm:$0xff] }
 0x3eb   :  { %4188 = vmatpush.msra.mxu0 %v1801_v55  ;;  %4485 = vmatpush.msra.mxu1 %v4250_v56  ;;  %v2137_v55 = vld [vmem:[#allocation6 + $0x2e58] sm:$0xff]  ;;  %v4235_v56 = vld [vmem:[#allocation9 + $0x38] sm:$0xff] }
 0x3ec   :  { %4130 = vmatmul.f32.vlgmr.msrb.gmra.mxu2 %v5163_v40  ;;  %4458 = vmatpush.msra.mxu3 %v4241_v57  ;;  %v4274_v40 = vld [vmem:[#allocation9 + $0x170] sm:$0xff]  ;;  %v5360_v57 = vpop.f32.mrf.mxu2  ;;  %v4321_v16 = vld [vmem:[#allocation9 + $0x2e8] sm:$0xff] }
 0x3ed   :  { %4194 = vmatpush.msra.mxu2 %v2221_v59  ;;  %4189 = vmatpush.msra.mxu0 %v1787_v62  ;;  %v4215_v59 = vmax.f32 %v2532_v46, 0.0  ;;  %v4323_v62 = vld [vmem:[#allocation9 + $0x2f8] sm:$0xff]  ;;  %v2053_v46 = vld [vmem:[#allocation6 + $0x2bb8] sm:$0xff] }
 0x3ee   :  { %4486 = vmatpush.msra.mxu1 %v4249_v41  ;;  %4190 = vmatmul.f32.vlgmr.msra.gmra.mxu0 %v5181_v20  ;;  %v4246_v20 = vld [vmem:[#allocation9 + $0x90] sm:$0xff] }
 0x3ef   :  { %4195 = vmatpush.msra.mxu2 %v2207_v5  ;;  %4459 = vmatpush.msra.mxu3 %v4240_v6  ;;  %v4234_v41 = vld [vmem:[#allocation9 + $0x30] sm:$0xff]  ;;  %v4269_v5 = vld [vmem:[#allocation9 + $0x148] sm:$0xff] }
 0x3f0   :  { %4496 = vmatpush.msrb.mxu0 %v4275_v32  ;;  %4487 = vmatpush.msra.mxu1 %v4248_v12  ;;  %v5357_v24 = vpop.f32.mrf.mxu0  ;;  %v4322_v6 = vld [vmem:[#allocation9 + $0x2f0] sm:$0xff]  ;;  %v2332_v32 = vadd.f32 %v5214_v58, %v2312_v60  ;;  %v5364_v12 = vpop.f32.mrf.mxu1  ;;  %v4232_v58 = vld [vmem:[#allocation9 + $0x20] sm:$0xff]  ;;  %v4317_v60 = vld [vmem:[#allocation9 + $0x2c8] sm:$0xff] }
 0x3f1   :  { %4196 = vmatpush.msra.mxu2 %v2193_v61  ;;  %4460 = vmatpush.msra.mxu3 %v4239_v18  ;;  %v2592_v61 = vadd.f32 %v5244_v10, %v2572_v30  ;;  %v5367_v18 = vpop.f32.mrf.mxu3  ;;  %v2081_v10 = vld [vmem:[#allocation6 + $0x2c98] sm:$0xff]  ;;  %v4228_v30 = vld [vmem:[#allocation9] sm:$0xff] }
 0x3f2   :  { %4497 = vmatpush.msrb.mxu0 %v4274_v40  ;;  %4488 = vmatpush.msra.mxu1 %v4247_v23  ;;  %v2095_v40 = vld [vmem:[#allocation6 + $0x2d08] sm:$0xff]  ;;  %v2352_v23 = vadd.f32 %v5216_v63, %v2332_v32  ;;  %v4266_v63 = vld [vmem:[#allocation9 + $0x130] sm:$0xff] }
 0x3f3   :  { %4197 = vmatpush.msra.mxu2 %v2179_v27  ;;  %4461 = vmatpush.msra.mxu3 %v4238_v22  ;;  %v4267_v27 = vld [vmem:[#allocation9 + $0x138] sm:$0xff]  ;;  %v2612_v22 = vadd.f32 %v5246_v17, %v2592_v61  ;;  %v4230_v17 = vld [vmem:[#allocation9 + $0x10] sm:$0xff]  ;;  %v4261_v61 = vld [vmem:[#allocation9 + $0x108] sm:$0xff] }
 0x3f4   :  { %4498 = vmatpush.msrb.mxu0 %v4273_v36  ;;  %4489 = vmatpush.msra.mxu1 %v4246_v20  ;;  %v4320_v36 = vld [vmem:[#allocation9 + $0x2e0] sm:$0xff]  ;;  %v2372_v20 = vadd.f32 %v5218_v4, %v2352_v23  ;;  %v5374_v29 = vpop.f32.mrf.mxu2  ;;  %v4318_v4 = vld [vmem:[#allocation9 + $0x2d0] sm:$0xff]  ;;  %v4305_v23 = vld [vmem:[#allocation9 + $0x268] sm:$0xff] }
 0x3f5   :  { %4198 = vmatpush.msra.mxu2 %v2165_v43  ;;  %4462 = vmatpush.msra.mxu3 %v4237_v33  ;;  %v4231_v43 = vld [vmem:[#allocation9 + $0x18] sm:$0xff]  ;;  %v2231_v33 = vperm.slane %v5317_v7, 5  ;;  %v2632_v45 = vadd.f32 %v5248_v25, %v2612_v22  ;;  %v4262_v32 = vld [vmem:[#allocation9 + $0x110] sm:$0xff]  ;;  %v4260_v22 = vld [vmem:[#allocation9 + $0x100] sm:$0xff] }
 0x3f6   :  { %4499 = vmatpush.msrb.mxu0 %v4272_v38  ;;  %4490 = vmatpush.msra.mxu1 %v4245_v14  ;;  %v2067_v38 = vld [vmem:[#allocation6 + $0x2c28] sm:$0xff]  ;;  %v4265_v14 = vld [vmem:[#allocation9 + $0x128] sm:$0xff] }
 0x3f7   :  { %4199 = vmatpush.msra.mxu2 %v2151_v49  ;;  %4463 = vmatpush.msra.mxu3 %v4236_v50  ;;  %v2392_v49 = vadd.f32 %v5221_v9, %v2372_v20  ;;  %v2039_v25 = vld [vmem:[#allocation6 + $0x2b48] sm:$0xff] }
 0x3f8   :  { %4500 = vmatpush.msrb.mxu0 %v4271_v48  ;;  %4491 = vmatpush.msra.mxu1 %v4244_v52  ;;  %v5370_v26 = vpop.f32.mrf.mxu0  ;;  %v5379_v50 = vpop.f32.mrf.mxu1  ;;  %v4229_v48 = vld [vmem:[#allocation9 + $0x8] sm:$0xff]  ;;  %v4264_v52 = vld [vmem:[#allocation9 + $0x120] sm:$0xff]  ;;  %v4263_v9 = vld [vmem:[#allocation9 + $0x118] sm:$0xff] }
 0x3f9   :  { %4200 = vmatpush.msra.mxu2 %v2137_v55  ;;  %4464 = vmatpush.msra.mxu3 %v4235_v56  ;;  %v2972_v55 = vadd.f32 %v5336_v1, %v2231_v33  ;;  %v5382_v56 = vpop.f32.mrf.mxu3  ;;  %v4214_v1 = vmax.f32 %v2392_v49, 0.0  ;;  %v4339_v33 = vld [vmem:[#allocation9 + $0x378] sm:$0xff]  ;;  %v4288_v49 = vld [vmem:[#allocation9 + $0x1e0] sm:$0xff] }
 0x3fa   :  { %4492 = vmatmul.f32.vlgmr.msra.gmra.mxu1 %v4215_v59  ;;  %4501 = vmatpush.msrb.mxu0 %v4270_v54  ;;  %v2652_v59 = vadd.f32 %v5250_v34, %v2632_v45  ;;  %v4306_v34 = vld [vmem:[#allocation9 + $0x270] sm:$0xff] }
 0x3fb   :  { %4556 = vmatpush.msrb.mxu1 %v4323_v62  ;;  %4201 = vmatpush.msra.mxu2 %v2123_v0  ;;  %v2992_v62 = vadd.f32 %v5341_v8, %v2972_v55  ;;  %v4316_v0 = vld [vmem:[#allocation9 + $0x2c0] sm:$0xff] }
 0x3fc   :  { %4465 = vmatpush.msra.mxu3 %v4234_v41  ;;  %4502 = vmatpush.msrb.mxu0 %v4269_v5  ;;  %v5388_v41 = vpop.f32.mrf.mxu2  ;;  %v4307_v5 = vld [vmem:[#allocation9 + $0x278] sm:$0xff] }
 0x3fd   :  { %4557 = vmatpush.msrb.mxu1 %v4322_v6  ;;  %4202 = vmatpush.msra.mxu2 %v2109_v53  ;;  %v2025_v6 = vld [vmem:[#allocation6 + $0x2ad8] sm:$0xff]  ;;  %v3012_v53 = vadd.f32 %v5346_v19, %v2992_v62  ;;  %v2011_v8 = vld [vmem:[#allocation6 + $0x2a68] sm:$0xff] }
 0x3fe   :  { %4466 = vmatpush.msra.mxu3 %v4233_v3  ;;  %4503 = vmatpush.msrb.mxu0 %v4268_v21  ;;  %v4315_v3 = vld [vmem:[#allocation9 + $0x2b8] sm:$0xff]  ;;  %v2672_v21 = vadd.f32 %v5252_v39, %v2652_v59  ;;  %v4336_v62 = vld [vmem:[#allocation9 + $0x360] sm:$0xff] }
 0x3ff   :  { %4558 = vmatpush.msrb.mxu1 %v4321_v16  ;;  %4203 = vmatpush.msra.mxu2 %v2095_v40  ;;  %v4314_v16 = vld [vmem:[#allocation9 + $0x2b0] sm:$0xff]  ;;  %v3032_v19 = vadd.f32 %v5355_v47, %v3012_v53 }
 0x400   :  { %4467 = vmatpush.msra.mxu3 %v4232_v58  ;;  %4504 = vmatpush.msrb.mxu0 %v4267_v27  ;;  %v5384_v54 = vpop.f32.mrf.mxu0  ;;  %v5392_v40 = vpop.f32.mrf.mxu1  ;;  %v4291_v27 = vld [vmem:[#allocation9 + $0x1f8] sm:$0xff]  ;;  %v4216_v20 = vmax.f32 %v2672_v21, 0.0 }
 0x401   :  { %4559 = vmatpush.msrb.mxu1 %v4320_v36  ;;  %4204 = vmatpush.msra.mxu2 %v2081_v10  ;;  %v5395_v58 = vpop.f32.mrf.mxu3  ;;  %v2230_v36 = vperm.slane %v5317_v7, 4  ;;  %v4313_v10 = vld [vmem:[#allocation9 + $0x2a8] sm:$0xff] }
 0x402   :  { %4468 = vmatpush.msra.mxu3 %v4231_v43  ;;  %4505 = vmatpush.msrb.mxu0 %v4266_v63  ;;  %v4290_v43 = vld [vmem:[#allocation9 + $0x1f0] sm:$0xff]  ;;  %v4304_v63 = vld [vmem:[#allocation9 + $0x260] sm:$0xff] }
 0x403   :  { %4560 = vmatpush.msrb.mxu1 %v4319_v35  ;;  %4205 = vmatpush.msra.mxu2 %v2067_v38  ;;  %v4312_v35 = vld [vmem:[#allocation9 + $0x2a0] sm:$0xff]  ;;  %v3052_v38 = vadd.f32 %v5351_v42, %v3032_v19  ;;  %v2832_v45 = vadd.f32 %v5315_v28, %v2230_v36  ;;  %v4337_v42 = vld [vmem:[#allocation9 + $0x368] sm:$0xff]  ;;  %v4298_v19 = vld [vmem:[#allocation9 + $0x230] sm:$0xff] }
 0x404   :  { %4469 = vmatpush.msra.mxu3 %v4230_v17  ;;  %4506 = vmatpush.msrb.mxu0 %v4265_v14  ;;  %v5401_v47 = vpop.f32.mrf.mxu2  ;;  %v4289_v17 = vld [vmem:[#allocation9 + $0x1e8] sm:$0xff]  ;;  %v4303_v14 = vld [vmem:[#allocation9 + $0x258] sm:$0xff]  ;;  %v4386_v36 = vld [vmem:[#allocation9 + $0x4f0] sm:$0xff] }
 0x405   :  { %4561 = vmatpush.msrb.mxu1 %v4318_v4  ;;  %4206 = vmatpush.msra.mxu2 %v2053_v46  ;;  %v4311_v4 = vld [vmem:[#allocation9 + $0x298] sm:$0xff]  ;;  %v2232_v46 = vperm.slane %v5317_v7, 6  ;;  %v3072_v28 = vadd.f32 %v5357_v24, %v3052_v38  ;;  %v4300_v24 = vld [vmem:[#allocation9 + $0x240] sm:$0xff] }
 0x406   :  { %4470 = vmatpush.msra.mxu3 %v4229_v48  ;;  %4507 = vmatpush.msrb.mxu0 %v4264_v52  ;;  %v4302_v48 = vld [vmem:[#allocation9 + $0x250] sm:$0xff]  ;;  %v2852_v52 = vadd.f32 %v5320_v15, %v2832_v45  ;;  %v4309_v15 = vld [vmem:[#allocation9 + $0x288] sm:$0xff] }
 0x407   :  { %4562 = vmatpush.msrb.mxu1 %v4317_v60  ;;  %4207 = vmatpush.msra.mxu2 %v2039_v25  ;;  %v4310_v60 = vld [vmem:[#allocation9 + $0x290] sm:$0xff] }
 0x408   :  { %4471 = vmatpush.msra.mxu3 %v4228_v30  ;;  %4508 = vmatpush.msrb.mxu0 %v4263_v9  ;;  %v5398_v39 = vpop.f32.mrf.mxu0  ;;  %v5407_v55 = vpop.f32.mrf.mxu1  ;;  %v4287_v30 = vld [vmem:[#allocation9 + $0x1d8] sm:$0xff]  ;;  %v4301_v9 = vld [vmem:[#allocation9 + $0x248] sm:$0xff] }
 0x409   :  { %4563 = vmatpush.msrb.mxu1 %v4316_v0  ;;  %4472 = vmatmul.f32.vlgmr.msra.gmra.mxu3 %v4214_v1  ;;  %v5410_v25 = vpop.f32.mrf.mxu3  ;;  %v3112_v0 = vadd.f32 %v5367_v18, %v2232_v46  ;;  %v3092_v1 = vadd.f32 %v5360_v57, %v3072_v28  ;;  %v4334_v18 = vld [vmem:[#allocation9 + $0x350] sm:$0xff]  ;;  %v5433_v46 = vld [vmem:[#allocation7 + $0x8] sm:$0x3f]  ;;  %v4329_v28 = vld [vmem:[#allocation9 + $0x328] sm:$0xff] }
 0x40a   :  { %4536 = vmatpush.msrb.mxu3 %v4307_v5  ;;  %4208 = vmatpush.msra.mxu2 %v2025_v6  ;;  %v4286_v5 = vld [vmem:[#allocation9 + $0x1d0] sm:$0xff]  ;;  %v2872_v6 = vadd.f32 %v5326_v37, %v2852_v52  ;;  %v4284_v37 = vld [vmem:[#allocation9 + $0x1c0] sm:$0xff]  ;;  %v4383_v52 = vld [vmem:[#allocation9 + $0x4d8] sm:$0xff] }
 0x40b   :  { %4509 = vmatpush.msrb.mxu0 %v4262_v32  ;;  %4564 = vmatpush.msrb.mxu1 %v4315_v3  ;;  %v4335_v32 = vld [vmem:[#allocation9 + $0x358] sm:$0xff]  ;;  %v4308_v3 = vld [vmem:[#allocation9 + $0x280] sm:$0xff]  ;;  %v3132_v57 = vadd.f32 %v5364_v12, %v3112_v0  ;;  %v4219_v21 = vmax.f32 %v3092_v1, 0.0  ;;  %v4293_v1 = vld [vmem:[#allocation9 + $0x208] sm:$0xff] }
 0x40c   :  { %4537 = vmatpush.msrb.mxu3 %v4306_v34  ;;  %4209 = vmatpush.msra.mxu2 %v2011_v8  ;;  %v5417_v53 = vpop.f32.mrf.mxu2  ;;  %v4285_v34 = vld [vmem:[#allocation9 + $0x1c8] sm:$0xff]  ;;  %v4299_v8 = vld [vmem:[#allocation9 + $0x238] sm:$0xff] }
 0x40d   :  { %4510 = vmatpush.msrb.mxu0 %v4261_v61  ;;  %4565 = vmatpush.msrb.mxu1 %v4314_v16  ;;  %v4387_v61 = vld [vmem:[#allocation9 + $0x4f8] sm:$0xff]  ;;  %v2892_v16 = vadd.f32 %v5323_v31, %v2872_v6  ;;  %v3152_v31 = vadd.f32 %v5370_v26, %v3132_v57  ;;  %v4381_v6 = vld [vmem:[#allocation9 + $0x4c8] sm:$0xff] }
 0x40e   :  { %4210 = vmatmul.f32.vlgmr.msra.gmra.mxu2 %v5178_v11  ;;  %4538 = vmatpush.msrb.mxu3 %v4305_v23  ;;  %v4338_v11 = vld [vmem:[#allocation9 + $0x370] sm:$0xff] }
 0x40f   :  { %4516 = vmatpush.msrb.mxu2 %v4291_v27  ;;  %4511 = vmatpush.msrb.mxu0 %v4260_v22  ;;  %v4333_v27 = vld [vmem:[#allocation9 + $0x348] sm:$0xff]  ;;  %v3172_v45 = vadd.f32 %v5374_v29, %v3152_v31  ;;  %v4294_v29 = vld [vmem:[#allocation9 + $0x210] sm:$0xff] }
 0x410   :  { %4566 = vmatpush.msrb.mxu1 %v4313_v10  ;;  %4512 = vmatmul.f32.vlgmr.msrb.gmra.mxu0 %v4216_v20  ;;  %v5412_v59 = vpop.f32.mrf.mxu0  ;;  %v5421_v23 = vpop.f32.mrf.mxu1  ;;  %v4283_v10 = vld [vmem:[#allocation9 + $0x1b8] sm:$0xff]  ;;  %v4297_v20 = vld [vmem:[#allocation9 + $0x228] sm:$0xff] }
 0x411   :  { %4517 = vmatpush.msrb.mxu2 %v4290_v43  ;;  %4539 = vmatpush.msrb.mxu3 %v4304_v63  ;;  %v5423_v22 = vpop.f32.mrf.mxu3  ;;  %v4332_v43 = vld [vmem:[#allocation9 + $0x340] sm:$0xff]  ;;  %v4385_v63 = vld [vmem:[#allocation9 + $0x4e8] sm:$0xff] }
 0x412   :  { %4576 = vmatpush.msra.mxu0 %v4339_v33  ;;  %4567 = vmatpush.msrb.mxu1 %v4312_v35  ;;  %v4282_v33 = vld [vmem:[#allocation9 + $0x1b0] sm:$0xff]  ;;  %v2912_v35 = vadd.f32 %v5328_v44, %v2892_v16  ;;  %v4369_v31 = vld [vmem:[#allocation9 + $0x468] sm:$0xff] }
 0x413   :  { %4518 = vmatpush.msrb.mxu2 %v4289_v17  ;;  %4540 = vmatpush.msrb.mxu3 %v4303_v14  ;;  %v4296_v17 = vld [vmem:[#allocation9 + $0x220] sm:$0xff]  ;;  %v4331_v14 = vld [vmem:[#allocation9 + $0x338] sm:$0xff]  ;;  %v4330_v44 = vld [vmem:[#allocation9 + $0x330] sm:$0xff] }
 0x414   :  { %4577 = vmatpush.msra.mxu0 %v4338_v11  ;;  %4568 = vmatpush.msrb.mxu1 %v4311_v4  ;;  %v5429_v38 = vpop.f32.mrf.mxu2  ;;  %v4384_v11 = vld [vmem:[#allocation9 + $0x4e0] sm:$0xff]  ;;  %v4281_v4 = vld [vmem:[#allocation9 + $0x1a8] sm:$0xff]  ;;  %v2932_v26 = vadd.f32 %v5331_v51, %v2912_v35  ;;  %v4326_v16 = vld [vmem:[#allocation9 + $0x310] sm:$0xff] }
 0x415   :  { %4519 = vmatpush.msrb.mxu2 %v4288_v49  ;;  %4541 = vmatpush.msrb.mxu3 %v4302_v48  ;;  %v4295_v49 = vld [vmem:[#allocation9 + $0x218] sm:$0xff]  ;;  %v2235_v48 = vperm.slane %v5433_v46, 1 }
 0x416   :  { %4578 = vmatpush.msra.mxu0 %v4337_v42  ;;  %4569 = vmatpush.msrb.mxu1 %v4310_v60  ;;  %v4280_v42 = vld [vmem:[#allocation9 + $0x1a0] sm:$0xff] }
 0x417   :  { %4520 = vmatpush.msrb.mxu2 %v4287_v30  ;;  %4542 = vmatpush.msrb.mxu3 %v4301_v9  ;;  %v3192_v30 = vadd.f32 %v5382_v56, %v3172_v45  ;;  %v4382_v9 = vld [vmem:[#allocation9 + $0x4d0] sm:$0xff]  ;;  %v4292_v56 = vld [vmem:[#allocation9 + $0x200] sm:$0xff] }
 0x418   :  { %4579 = vmatpush.msra.mxu0 %v4336_v62  ;;  %4570 = vmatpush.msrb.mxu1 %v4309_v15  ;;  %v5425_v12 = vpop.f32.mrf.mxu0  ;;  %v3531_v60 = vpop.f32.mrf.mxu1  ;;  %v4279_v62 = vld [vmem:[#allocation9 + $0x198] sm:$0xff]  ;;  %v2952_v15 = vadd.f32 %v5338_v2, %v2932_v26  ;;  %v4380_v2 = vld [vmem:[#allocation9 + $0x4c0] sm:$0xff]  ;;  %v4354_v26 = vld [vmem:[#allocation9 + $0x3f0] sm:$0xff] }
 0x419   :  { %4521 = vmatpush.msrb.mxu2 %v4286_v5  ;;  %4543 = vmatpush.msrb.mxu3 %v4300_v24  ;;  %v5437_v51 = vpop.f32.mrf.mxu3  ;;  %v4328_v5 = vld [vmem:[#allocation9 + $0x320] sm:$0xff]  ;;  %v3532_v24 = vadd.f32 %v3531_v60, %v2235_v48 }
 0x41a   :  { %4580 = vmatpush.msra.mxu0 %v4335_v32  ;;  %4571 = vmatpush.msrb.mxu1 %v4308_v3  ;;  %v4278_v32 = vld [vmem:[#allocation9 + $0x190] sm:$0xff]  ;;  %v4218_v57 = vmax.f32 %v2952_v15, 0.0  ;;  %v4376_v48 = vld [vmem:[#allocation9 + $0x4a0] sm:$0xff] }
 0x41b   :  { %4522 = vmatpush.msrb.mxu2 %v4285_v34  ;;  %4544 = vmatpush.msrb.mxu3 %v4299_v8  ;;  %v4327_v34 = vld [vmem:[#allocation9 + $0x318] sm:$0xff]  ;;  %v3212_v8 = vadd.f32 %v5379_v50, %v3192_v30  ;;  %v4402_v30 = vld [vmem:[#allocation9 + $0x570] sm:$0xff] }
 0x41c   :  { %4572 = vmatmul.f32.vlgmr.msrb.gmra.mxu1 %v4219_v21  ;;  %4581 = vmatpush.msra.mxu0 %v4334_v18  ;;  %v3571_v3 = vpop.f32.mrf.mxu2  ;;  %v4371_v21 = vld [vmem:[#allocation9 + $0x478] sm:$0xff] }
 0x41d   :  { %4636 = vmatpush.msra.mxu1 %v4387_v61  ;;  %4523 = vmatpush.msrb.mxu2 %v4284_v37  ;;  %v4277_v61 = vld [vmem:[#allocation9 + $0x188] sm:$0xff]  ;;  %v3232_v50 = vadd.f32 %v5384_v54, %v3212_v8 }
 0x41e   :  { %4545 = vmatpush.msrb.mxu3 %v4298_v19  ;;  %4582 = vmatpush.msra.mxu0 %v4333_v27  ;;  %v4379_v19 = vld [vmem:[#allocation9 + $0x4b8] sm:$0xff]  ;;  %v4370_v27 = vld [vmem:[#allocation9 + $0x470] sm:$0xff]  ;;  %v4377_v54 = vld [vmem:[#allocation9 + $0x4a8] sm:$0xff] }
 0x41f   :  { %4637 = vmatpush.msra.mxu1 %v4386_v36  ;;  %4524 = vmatpush.msrb.mxu2 %v4283_v10  ;;  %v4276_v36 = vld [vmem:[#allocation9 + $0x180] sm:$0xff]  ;;  %v4220_v45 = vmax.f32 %v3232_v50, 0.0 }
 0x420   :  { %4546 = vmatpush.msrb.mxu3 %v4297_v20  ;;  %4583 = vmatpush.msra.mxu0 %v4332_v43  ;;  %v3551_v0 = vpop.f32.mrf.mxu0  ;;  %v4325_v20 = vld [vmem:[#allocation9 + $0x308] sm:$0xff]  ;;  %v4378_v43 = vld [vmem:[#allocation9 + $0x4b0] sm:$0xff] }
 0x421   :  { %4638 = vmatpush.msra.mxu1 %v4385_v63  ;;  %4525 = vmatpush.msrb.mxu2 %v4282_v33  ;;  %v3552_v18 = vadd.f32 %v3551_v0, %v3532_v24  ;;  %v3591_v10 = vpop.f32.mrf.mxu3  ;;  %v4217_v63 = vmax.f32 %v5263_v13, 0.0  ;;  %v2234_v33 = vperm.slane %v5433_v46, 0  ;;  %v4403_v13 = vld [vmem:[#allocation9 + $0x578] sm:$0xff]  ;;  %v4374_v24 = vld [vmem:[#allocation9 + $0x490] sm:$0xff] }
 0x422   :  { %4547 = vmatpush.msrb.mxu3 %v4296_v17  ;;  %4584 = vmatpush.msra.mxu0 %v4331_v14  ;;  %v4355_v17 = vld [vmem:[#allocation9 + $0x3f8] sm:$0xff]  ;;  %v4324_v14 = vld [vmem:[#allocation9 + $0x300] sm:$0xff] }
 0x423   :  { %4639 = vmatpush.msra.mxu1 %v4384_v11  ;;  %4526 = vmatpush.msrb.mxu2 %v4281_v4  ;;  %v3572_v37 = vadd.f32 %v3571_v3, %v3552_v18  ;;  %v2233_v11 = vperm.slane %v5317_v7, 7  ;;  %v2236_v7 = vperm.slane %v5433_v46, 2  ;;  %v4365_v3 = vld [vmem:[#allocation9 + $0x448] sm:$0xff] }
 0x424   :  { %4548 = vmatpush.msrb.mxu3 %v4295_v49  ;;  %4585 = vmatpush.msra.mxu0 %v4330_v44  ;;  %v4368_v49 = vld [vmem:[#allocation9 + $0x460] sm:$0xff]  ;;  %v3611_v44 = vpop.f32.mrf.mxu1  ;;  %v3651_v60 = vpop.f32.mrf.mxu2 }
 0x425   :  { %4640 = vmatpush.msra.mxu1 %v4383_v52  ;;  %4527 = vmatpush.msrb.mxu2 %v4280_v42  ;;  %v3592_v35 = vadd.f32 %v3591_v10, %v3572_v37  ;;  %v3392_v52 = vadd.f32 %v5412_v59, %v2234_v33  ;;  %v4352_v59 = vld [vmem:[#allocation9 + $0x3e0] sm:$0xff]  ;;  %v4347_v33 = vld [vmem:[#allocation9 + $0x3b8] sm:$0xff] }
 0x426   :  { %4549 = vmatpush.msrb.mxu3 %v4294_v29  ;;  %4586 = vmatpush.msra.mxu0 %v4329_v28  ;;  %v4353_v29 = vld [vmem:[#allocation9 + $0x3e8] sm:$0xff]  ;;  %v4367_v28 = vld [vmem:[#allocation9 + $0x458] sm:$0xff]  ;;  %v4372_v37 = vld [vmem:[#allocation9 + $0x480] sm:$0xff] }
 0x427   :  { %4641 = vmatpush.msra.mxu1 %v4382_v9  ;;  %4528 = vmatpush.msrb.mxu2 %v4279_v62  ;;  %v3612_v42 = vadd.f32 %v3611_v44, %v3592_v35  ;;  %v4375_v9 = vld [vmem:[#allocation9 + $0x498] sm:$0xff]  ;;  %v3252_v62 = vadd.f32 %v5388_v41, %v2233_v11  ;;  %v3412_v15 = vadd.f32 %v5417_v53, %v3392_v52  ;;  %v4400_v41 = vld [vmem:[#allocation9 + $0x560] sm:$0xff]  ;;  %v4361_v35 = vld [vmem:[#allocation9 + $0x428] sm:$0xff] }
 0x428   :  { %4550 = vmatpush.msrb.mxu3 %v4293_v1  ;;  %4587 = vmatpush.msra.mxu0 %v4328_v5  ;;  %v3631_v4 = vpop.f32.mrf.mxu0  ;;  %v4366_v1 = vld [vmem:[#allocation9 + $0x450] sm:$0xff]  ;;  %v4401_v5 = vld [vmem:[#allocation9 + $0x568] sm:$0xff] }
 0x429   :  { %4642 = vmatpush.msra.mxu1 %v4381_v6  ;;  %4529 = vmatpush.msrb.mxu2 %v4278_v32  ;;  %v3671_v0 = vpop.f32.mrf.mxu3  ;;  %v3632_v6 = vadd.f32 %v3631_v4, %v3612_v42  ;;  %v4351_v32 = vld [vmem:[#allocation9 + $0x3d8] sm:$0xff]  ;;  %v3272_v53 = vadd.f32 %v5395_v58, %v3252_v62  ;;  %v3432_v8 = vadd.f32 %v5423_v22, %v3412_v15  ;;  %v4398_v58 = vld [vmem:[#allocation9 + $0x550] sm:$0xff]  ;;  %v4360_v4 = vld [vmem:[#allocation9 + $0x420] sm:$0xff] }
 0x42a   :  { %4551 = vmatpush.msrb.mxu3 %v4292_v56  ;;  %4588 = vmatpush.msra.mxu0 %v4327_v34  ;;  %v3672_v56 = vadd.f32 %v3671_v0, %v2236_v7  ;;  %v4373_v34 = vld [vmem:[#allocation9 + $0x488] sm:$0xff]  ;;  %v4346_v11 = vld [vmem:[#allocation9 + $0x3b0] sm:$0xff]  ;;  %v4392_v62 = vld [vmem:[#allocation9 + $0x520] sm:$0xff] }
 0x42b   :  { %4643 = vmatpush.msra.mxu1 %v4380_v2  ;;  %4552 = vmatmul.f32.vlgmr.msrb.gmra.mxu3 %v4218_v57  ;;  %v3652_v2 = vadd.f32 %v3651_v60, %v3632_v6  ;;  %v4350_v57 = vld [vmem:[#allocation9 + $0x3d0] sm:$0xff]  ;;  %v3292_v22 = vadd.f32 %v5392_v40, %v3272_v53  ;;  %v3452_v10 = vadd.f32 %v5421_v23, %v3432_v8  ;;  %v4345_v52 = vld [vmem:[#allocation9 + $0x3a8] sm:$0xff]  ;;  %v4344_v60 = vld [vmem:[#allocation9 + $0x3a0] sm:$0xff] }
 0x42c   :  { %4616 = vmatpush.msra.mxu3 %v4371_v21  ;;  %4530 = vmatpush.msrb.mxu2 %v4277_v61  ;;  %v4364_v21 = vld [vmem:[#allocation9 + $0x440] sm:$0xff]  ;;  %v4399_v61 = vld [vmem:[#allocation9 + $0x558] sm:$0xff]  ;;  %v4393_v7 = vld [vmem:[#allocation9 + $0x528] sm:$0xff] }
 0x42d   :  { %4589 = vmatpush.msra.mxu0 %v4326_v16  ;;  %4644 = vmatpush.msra.mxu1 %v4379_v19  ;;  %v3691_v16 = vpop.f32.mrf.mxu1  ;;  %v3731_v19 = vpop.f32.mrf.mxu2  ;;  %v3312_v40 = vadd.f32 %v5398_v39, %v3292_v22  ;;  %v3472_v23 = vadd.f32 %v5425_v12, %v3452_v10  ;;  %v4359_v39 = vld [vmem:[#allocation9 + $0x418] sm:$0xff]  ;;  %v4394_v12 = vld [vmem:[#allocation9 + $0x530] sm:$0xff]  ;;  %v4340_v53 = vld [vmem:[#allocation9 + $0x380] sm:$0xff] }
 0x42e   :  { %4617 = vmatpush.msra.mxu3 %v4370_v27  ;;  %4531 = vmatpush.msrb.mxu2 %v4276_v36  ;;  %v4349_v27 = vld [vmem:[#allocation9 + $0x3c8] sm:$0xff]  ;;  %v4363_v36 = vld [vmem:[#allocation9 + $0x438] sm:$0xff]  ;;  %v3692_v50 = vadd.f32 %v3691_v16, %v3672_v56  ;;  %v4390_v56 = vld [vmem:[#allocation9 + $0x510] sm:$0xff] }
 0x42f   :  { %4590 = vmatpush.msra.mxu0 %v4325_v20  ;;  %4645 = vmatpush.msra.mxu1 %v4378_v43  ;;  %v4223_v20 = vmax.f32 %v3652_v2, 0.0  ;;  %v4348_v43 = vld [vmem:[#allocation9 + $0x3c0] sm:$0xff]  ;;  %v3332_v44 = vadd.f32 %v5401_v47, %v3312_v40  ;;  %v4419_v2 = vld [vmem:[#allocation9 + $0x5f8] sm:$0xff]  ;;  %v4417_v22 = vld [vmem:[#allocation9 + $0x5e8] sm:$0xff] }
 0x430   :  { %4532 = vmatmul.f32.vlgmr.msrb.gmra.mxu2 %v4217_v63  ;;  %4618 = vmatpush.msra.mxu3 %v4369_v31  ;;  %v3711_v18 = vpop.f32.mrf.mxu0  ;;  %v4362_v31 = vld [vmem:[#allocation9 + $0x430] sm:$0xff]  ;;  %v4397_v63 = vld [vmem:[#allocation9 + $0x548] sm:$0xff]  ;;  %v4451_v10 = vld [vmem:[#allocation9 + $0x6f8] sm:$0xff] }
 0x431   :  { %4596 = vmatpush.msra.mxu2 %v4355_v17  ;;  %4591 = vmatpush.msra.mxu0 %v4324_v14  ;;  %v3712_v17 = vadd.f32 %v3711_v18, %v3692_v50  ;;  %v4396_v14 = vld [vmem:[#allocation9 + $0x540] sm:$0xff]  ;;  %v3352_v47 = vadd.f32 %v5410_v25, %v3332_v44  ;;  %v4389_v18 = vld [vmem:[#allocation9 + $0x508] sm:$0xff] }
 0x432   :  { %4646 = vmatpush.msra.mxu1 %v4377_v54  ;;  %4592 = vmatmul.f32.vlgmr.msra.gmra.mxu0 %v4220_v45  ;;  %v3751_v54 = vpop.f32.mrf.mxu3  ;;  %v4432_v50 = vld [vmem:[#allocation9 + $0x660] sm:$0xff]  ;;  %v4429_v40 = vld [vmem:[#allocation9 + $0x648] sm:$0xff] }
 0x433   :  { %4597 = vmatpush.msra.mxu2 %v4354_v26  ;;  %4619 = vmatpush.msra.mxu3 %v4368_v49  ;;  %v3732_v26 = vadd.f32 %v3731_v19, %v3712_v17  ;;  %v4395_v49 = vld [vmem:[#allocation9 + $0x538] sm:$0xff]  ;;  %v3372_v25 = vadd.f32 %v5407_v55, %v3352_v47  ;;  %v4430_v17 = vld [vmem:[#allocation9 + $0x650] sm:$0xff]  ;;  %v4448_v44 = vld [vmem:[#allocation9 + $0x6e0] sm:$0xff] }
 0x434   :  { %4656 = vmatpush.msrb.mxu0 %v4403_v13  ;;  %4647 = vmatpush.msra.mxu1 %v4376_v48  ;;  %v3492_v13 = vadd.f32 %v5429_v38, %v3472_v23  ;;  %v4450_v23 = vld [vmem:[#allocation9 + $0x6f0] sm:$0xff]  ;;  %v4425_v47 = vld [vmem:[#allocation9 + $0x628] sm:$0xff] }
 0x435   :  { %4598 = vmatpush.msra.mxu2 %v4353_v29  ;;  %4620 = vmatpush.msra.mxu3 %v4367_v28  ;;  %v5457_v48 = vpop.f32.mrf.mxu2  ;;  %v3771_v42 = vpop.f32.mrf.mxu1  ;;  %v4358_v29 = vld [vmem:[#allocation9 + $0x410] sm:$0xff]  ;;  %v3752_v28 = vadd.f32 %v3751_v54, %v3732_v26  ;;  %v4221_v55 = vmax.f32 %v3372_v25, 0.0  ;;  %v4449_v54 = vld [vmem:[#allocation9 + $0x6e8] sm:$0xff] }
 0x436   :  { %4657 = vmatpush.msrb.mxu0 %v4402_v30  ;;  %4648 = vmatpush.msra.mxu1 %v4375_v9  ;;  %v3512_v38 = vadd.f32 %v5437_v51, %v3492_v13  ;;  %v4343_v30 = vld [vmem:[#allocation9 + $0x398] sm:$0xff]  ;;  %v4357_v9 = vld [vmem:[#allocation9 + $0x408] sm:$0xff] }
 0x437   :  { %4599 = vmatpush.msra.mxu2 %v4352_v59  ;;  %4621 = vmatpush.msra.mxu3 %v4366_v1  ;;  %v4342_v59 = vld [vmem:[#allocation9 + $0x390] sm:$0xff]  ;;  %v4356_v1 = vld [vmem:[#allocation9 + $0x400] sm:$0xff]  ;;  %v4413_v13 = vld [vmem:[#allocation9 + $0x5c8] sm:$0xff] }
 0x438   :  { %4658 = vmatpush.msrb.mxu0 %v4401_v5  ;;  %4649 = vmatpush.msra.mxu1 %v4374_v24  ;;  %v3791_v45 = vpop.f32.mrf.mxu0  ;;  %v3772_v5 = vadd.f32 %v3771_v42, %v3752_v28  ;;  %v4391_v24 = vld [vmem:[#allocation9 + $0x518] sm:$0xff]  ;;  %v4222_v51 = vmax.f32 %v3512_v38, 0.0  ;;  %v4412_v42 = vld [vmem:[#allocation9 + $0x5c0] sm:$0xff]  ;;  %v4446_v28 = vld [vmem:[#allocation9 + $0x6d0] sm:$0xff] }
 0x439   :  { %4600 = vmatpush.msra.mxu2 %v4351_v32  ;;  %4622 = vmatpush.msra.mxu3 %v4365_v3  ;;  %v4435_v32 = vld [vmem:[#allocation9 + $0x678] sm:$0xff]  ;;  %v4341_v3 = vld [vmem:[#allocation9 + $0x388] sm:$0xff] }
 0x43a   :  { %4659 = vmatpush.msrb.mxu0 %v4400_v41  ;;  %4650 = vmatpush.msra.mxu1 %v4373_v34  ;;  %v5461_v15 = vpop.f32.mrf.mxu3  ;;  %v4434_v34 = vld [vmem:[#allocation9 + $0x670] sm:$0xff]  ;;  %v3792_v8 = vadd.f32 %v3791_v45, %v3772_v5  ;;  %v4445_v38 = vld [vmem:[#allocation9 + $0x6c8] sm:$0xff]  ;;  %v4444_v5 = vld [vmem:[#allocation9 + $0x6c0] sm:$0xff] }
 0x43b   :  { %4601 = vmatpush.msra.mxu2 %v4350_v57  ;;  %4623 = vmatpush.msra.mxu3 %v4364_v21  ;;  %v4433_v57 = vld [vmem:[#allocation9 + $0x668] sm:$0xff]  ;;  %v2238_v21 = vperm.slane %v5433_v46, 4 }
 0x43c   :  { %4660 = vmatpush.msrb.mxu0 %v4399_v61  ;;  %4651 = vmatpush.msra.mxu1 %v4372_v37  ;;  %v4388_v61 = vld [vmem:[#allocation9 + $0x500] sm:$0xff]  ;;  %v2237_v37 = vperm.slane %v5433_v46, 3  ;;  %v4409_v25 = vld [vmem:[#allocation9 + $0x5a8] sm:$0xff] }
 0x43d   :  { %4602 = vmatpush.msra.mxu2 %v4349_v27  ;;  %4624 = vmatpush.msra.mxu3 %v4363_v36  ;;  %v5466_v6 = vpop.f32.mrf.mxu2  ;;  %v5468_v41 = vpop.f32.mrf.mxu1  ;;  %v4418_v27 = vld [vmem:[#allocation9 + $0x5f0] sm:$0xff]  ;;  %v4224_v36 = vmax.f32 %v3792_v8, 0.0  ;;  %v4407_v8 = vld [vmem:[#allocation9 + $0x598] sm:$0xff] }
 0x43e   :  { %4652 = vmatmul.f32.vlgmr.msra.gmra.mxu1 %v4223_v20  ;;  %4661 = vmatpush.msrb.mxu0 %v4398_v58 }
 0x43f   :  { %4603 = vmatpush.msra.mxu2 %v4348_v43  ;;  %4625 = vmatpush.msra.mxu3 %v4362_v31  ;;  %v4431_v43 = vld [vmem:[#allocation9 + $0x658] sm:$0xff]  ;;  %v3812_v31 = vadd.f32 %v5457_v48, %v2237_v37 }
 0x440   :  { %4662 = vmatpush.msrb.mxu0 %v4397_v63  ;;  %v5463_v0 = vpop.f32.mrf.mxu0  ;;  %4716 = vmatpush.msrb.mxu1 %v4451_v10  ;;  %v4427_v48 = vld [vmem:[#allocation9 + $0x638] sm:$0xff]  ;;  %v2239_v10 = vperm.slane %v5433_v46, 5  ;;  %v4750_v46 = vld [vmem:[#allocation12 + $0x68] sm:$0xff] }
 0x441   :  { %4604 = vmatpush.msra.mxu2 %v4347_v33  ;;  %4626 = vmatpush.msra.mxu3 %v4361_v35  ;;  %v4416_v33 = vld [vmem:[#allocation9 + $0x5e0] sm:$0xff]  ;;  %v3832_v45 = vadd.f32 %v5461_v15, %v3812_v31  ;;  %v4410_v15 = vld [vmem:[#allocation9 + $0x5b0] sm:$0xff] }
 0x442   :  { %4663 = vmatpush.msrb.mxu0 %v4396_v14  ;;  %v5472_v16 = vpop.f32.mrf.mxu3  ;;  %v4415_v14 = vld [vmem:[#allocation9 + $0x5d8] sm:$0xff]  ;;  %4717 = vmatpush.msrb.mxu1 %v4450_v23 }
 0x443   :  { %4605 = vmatpush.msra.mxu2 %v4346_v11  ;;  %4627 = vmatpush.msra.mxu3 %v4360_v4  ;;  %v4414_v4 = vld [vmem:[#allocation9 + $0x5d0] sm:$0xff] }
 0x444   :  { %4664 = vmatpush.msrb.mxu0 %v4395_v49  ;;  %v4428_v49 = vld [vmem:[#allocation9 + $0x640] sm:$0xff]  ;;  %4718 = vmatpush.msrb.mxu1 %v4449_v54 }
 0x445   :  { %4606 = vmatpush.msra.mxu2 %v4345_v52  ;;  %4628 = vmatpush.msra.mxu3 %v4359_v39  ;;  %v3971_v58 = vpop.f32.mrf.mxu2  ;;  %v5475_v63 = vpop.f32.mrf.mxu1  ;;  %v4447_v52 = vld [vmem:[#allocation9 + $0x6d8] sm:$0xff]  ;;  %v3852_v39 = vadd.f32 %v5468_v41, %v3832_v45  ;;  %v4442_v41 = vld [vmem:[#allocation9 + $0x6b0] sm:$0xff] }
 0x446   :  { %4665 = vmatpush.msrb.mxu0 %v4394_v12  ;;  %4719 = vmatpush.msrb.mxu1 %v4448_v44  ;;  %v4751_v44 = vld [vmem:[#allocation12 + $0x70] sm:$0xff] }
 0x447   :  { %4607 = vmatpush.msra.mxu2 %v4344_v60  ;;  %4629 = vmatpush.msra.mxu3 %v4358_v29  ;;  %v4426_v29 = vld [vmem:[#allocation9 + $0x630] sm:$0xff] }
 0x448   :  { %4666 = vmatpush.msrb.mxu0 %v4393_v7  ;;  %v3951_v19 = vpop.f32.mrf.mxu0  ;;  %v4411_v7 = vld [vmem:[#allocation9 + $0x5b8] sm:$0xff]  ;;  %4720 = vmatpush.msrb.mxu1 %v4447_v52 }
 0x449   :  { %4608 = vmatpush.msra.mxu2 %v4343_v30  ;;  %4630 = vmatpush.msra.mxu3 %v4357_v9  ;;  %v3952_v20 = vadd.f32 %v3951_v19, %v2238_v21  ;;  %v3872_v30 = vadd.f32 %v5463_v0, %v3852_v39  ;;  %v4408_v0 = vld [vmem:[#allocation9 + $0x5a0] sm:$0xff]  ;;  %v4747_v52 = vld [vmem:[#allocation12 + $0x50] sm:$0xff]  ;;  %v4746_v39 = vld [vmem:[#allocation12 + $0x48] sm:$0xff] }
 0x44a   :  { %4667 = vmatpush.msrb.mxu0 %v4392_v62  ;;  %v3991_v11 = vpop.f32.mrf.mxu3  ;;  %4721 = vmatpush.msrb.mxu1 %v4446_v28 }
 0x44b   :  { %4609 = vmatpush.msra.mxu2 %v4342_v59  ;;  %4631 = vmatpush.msra.mxu3 %v4356_v1  ;;  %v3972_v35 = vadd.f32 %v3971_v58, %v3952_v20  ;;  %v4424_v1 = vld [vmem:[#allocation9 + $0x620] sm:$0xff]  ;;  %v4437_v58 = vld [vmem:[#allocation9 + $0x688] sm:$0xff] }
 0x44c   :  { %4668 = vmatpush.msrb.mxu0 %v4391_v24  ;;  %4632 = vmatmul.f32.vlgmr.msra.gmra.mxu3 %v4222_v51  ;;  %v3892_v24 = vadd.f32 %v5466_v6, %v3872_v30  ;;  %v4740_v30 = vld [vmem:[#allocation12 + $0x18] sm:$0xff] }
 0x44d   :  { %4696 = vmatpush.msrb.mxu3 %v4435_v32  ;;  %4610 = vmatpush.msra.mxu2 %v4341_v3  ;;  %v3992_v26 = vadd.f32 %v3991_v11, %v3972_v35  ;;  %v4011_v12 = vpop.f32.mrf.mxu1  ;;  %v4051_v62 = vpop.f32.mrf.mxu2  ;;  %v4423_v32 = vld [vmem:[#allocation9 + $0x618] sm:$0xff] }
 0x44e   :  { %4669 = vmatpush.msrb.mxu0 %v4390_v56  ;;  %4722 = vmatpush.msrb.mxu1 %v4445_v38  ;;  %v4443_v3 = vld [vmem:[#allocation9 + $0x6b8] sm:$0xff]  ;;  %v4422_v56 = vld [vmem:[#allocation9 + $0x610] sm:$0xff]  ;;  %v4741_v38 = vld [vmem:[#allocation12 + $0x20] sm:$0xff] }
 0x44f   :  { %4697 = vmatpush.msrb.mxu3 %v4434_v34  ;;  %4611 = vmatpush.msra.mxu2 %v4340_v53  ;;  %v4012_v60 = vadd.f32 %v4011_v12, %v3992_v26  ;;  %v3912_v34 = vadd.f32 %v5472_v16, %v3892_v24  ;;  %v4404_v16 = vld [vmem:[#allocation9 + $0x580] sm:$0xff] }
 0x450   :  { %4670 = vmatpush.msrb.mxu0 %v4389_v18  ;;  %4612 = vmatmul.f32.vlgmr.msra.gmra.mxu2 %v4221_v55  ;;  %v4031_v9 = vpop.f32.mrf.mxu0  ;;  %v4421_v18 = vld [vmem:[#allocation9 + $0x608] sm:$0xff] }
 0x451   :  { %4676 = vmatpush.msrb.mxu2 %v4419_v2  ;;  %4698 = vmatpush.msrb.mxu3 %v4433_v57  ;;  %v4032_v59 = vadd.f32 %v4031_v9, %v4012_v60  ;;  %v4441_v55 = vld [vmem:[#allocation9 + $0x6a8] sm:$0xff]  ;;  %v4406_v2 = vld [vmem:[#allocation9 + $0x590] sm:$0xff]  ;;  %v4420_v57 = vld [vmem:[#allocation9 + $0x600] sm:$0xff]  ;;  %v3932_v21 = vadd.f32 %v5475_v63, %v3912_v34 }
 0x452   :  { %4671 = vmatpush.msrb.mxu0 %v4388_v61  ;;  %4723 = vmatpush.msrb.mxu1 %v4444_v5  ;;  %v4071_v53 = vpop.f32.mrf.mxu3  ;;  %v4405_v61 = vld [vmem:[#allocation9 + $0x588] sm:$0xff]  ;;  %v4823_v60 = vld [vmem:[#allocation10] ss:$0 sm:$0xff] }
 0x453   :  { %4672 = vmatmul.f32.vlgmr.msrb.gmra.mxu0 %v4224_v36  ;;  %4677 = vmatpush.msrb.mxu2 %v4418_v27  ;;  %v4052_v51 = vadd.f32 %v4051_v62, %v4032_v59  ;;  %v4225_v19 = vmax.f32 %v3932_v21, 0.0  ;;  %v4440_v27 = vld [vmem:[#allocation9 + $0x6a0] sm:$0xff]  ;;  %v4439_v36 = vld [vmem:[#allocation9 + $0x698] sm:$0xff] }
 0x454   :  { %4699 = vmatpush.msrb.mxu3 %v4432_v50  ;;  %4724 = vmatpush.msrb.mxu1 %v4443_v3  ;;  %v4438_v50 = vld [vmem:[#allocation9 + $0x690] sm:$0xff]  ;;  %v4745_v12 = vld [vmem:[#allocation12 + $0x40] sm:$0xff] }
 0x455   :  { %4678 = vmatpush.msrb.mxu2 %v4417_v22  ;;  %v4072_v6 = vadd.f32 %v4071_v53, %v4052_v51  ;;  %v4436_v22 = vld [vmem:[#allocation9 + $0x680] sm:$0xff]  ;;  %v4091_v20 = vpop.f32.mrf.mxu1  ;;  %v4739_v51 = vld [vmem:[#allocation12 + $0x10] sm:$0xff] }
 0x456   :  { %4700 = vmatpush.msrb.mxu3 %v4431_v43  ;;  %4725 = vmatpush.msrb.mxu1 %v4442_v41  ;;  %v4092_v31 = vadd.f32 %v4091_v20, %v2239_v10  ;;  %v4737_v3 = vld [vmem:[#allocation12] sm:$0xff] }
 0x457   :  { %4679 = vmatpush.msrb.mxu2 %v4416_v33  ;;  %v4226_v37 = vmax.f32 %v4072_v6, 0.0 }
 0x458   :  { %4701 = vmatpush.msrb.mxu3 %v4430_v17  ;;  %4726 = vmatpush.msrb.mxu1 %v4441_v55  ;;  %v4111_v43 = vpop.f32.mrf.mxu0 }
 0x459   :  { %4680 = vmatpush.msrb.mxu2 %v4415_v14  ;;  %v4112_v33 = vadd.f32 %v4111_v43, %v4092_v31 }
 0x45a   :  { %4702 = vmatpush.msrb.mxu3 %v4429_v40  ;;  %4727 = vmatpush.msrb.mxu1 %v4440_v27 }
 0x45b   :  { %4681 = vmatpush.msrb.mxu2 %v4414_v4 }
 0x45c   :  { %4703 = vmatpush.msrb.mxu3 %v4428_v49  ;;  %4728 = vmatpush.msrb.mxu1 %v4439_v36  ;;  %v4752_v49 = vld [vmem:[#allocation12 + $0x78] sm:$0xff] }
 0x45d   :  { %4682 = vmatpush.msrb.mxu2 %v4413_v13  ;;  %v4171_v40 = vpop.f32.mrf.mxu1  ;;  %4757 = vmatpush.msra.mxu0 %v4752_v49  ;;  %v4749_v13 = vld [vmem:[#allocation12 + $0x60] sm:$0xff] }
 0x45e   :  { %4704 = vmatpush.msrb.mxu3 %v4427_v48  ;;  %4729 = vmatpush.msrb.mxu1 %v4438_v50  ;;  %v4748_v48 = vld [vmem:[#allocation12 + $0x58] sm:$0xff] }
 0x45f   :  { %4683 = vmatpush.msrb.mxu2 %v4412_v42  ;;  %4758 = vmatpush.msra.mxu0 %v4751_v44  ;;  %v4744_v42 = vld [vmem:[#allocation12 + $0x38] sm:$0xff] }
 0x460   :  { %4705 = vmatpush.msrb.mxu3 %v4426_v29  ;;  %4730 = vmatpush.msrb.mxu1 %v4437_v58  ;;  %v4743_v29 = vld [vmem:[#allocation12 + $0x30] sm:$0xff]  ;;  %v4824_v58 = vld [vmem:[#allocation13] ss:$0 sm:$0xff] }
 0x461   :  { %4684 = vmatpush.msrb.mxu2 %v4411_v7  ;;  %4759 = vmatpush.msra.mxu0 %v4750_v46  ;;  %v4742_v7 = vld [vmem:[#allocation12 + $0x28] sm:$0xff] }
 0x462   :  { %4706 = vmatpush.msrb.mxu3 %v4425_v47  ;;  %4731 = vmatpush.msrb.mxu1 %v4436_v22 }
 0x463   :  { %4685 = vmatpush.msrb.mxu2 %v4410_v15  ;;  %4760 = vmatpush.msra.mxu0 %v4749_v13 }
 0x464   :  { %4707 = vmatpush.msrb.mxu3 %v4424_v1 }
 0x465   :  { %4686 = vmatpush.msrb.mxu2 %v4409_v25  ;;  %4761 = vmatpush.msra.mxu0 %v4748_v48 }
 0x466   :  { %4708 = vmatpush.msrb.mxu3 %v4423_v32  ;;  %v4738_v32 = vld [vmem:[#allocation12 + $0x8] sm:$0xff] }
 0x467   :  { %4687 = vmatpush.msrb.mxu2 %v4408_v0  ;;  %4762 = vmatpush.msra.mxu0 %v4747_v52 }
 0x468   :  { %4709 = vmatpush.msrb.mxu3 %v4422_v56 }
 0x469   :  { %4688 = vmatpush.msrb.mxu2 %v4407_v8  ;;  %4763 = vmatpush.msra.mxu0 %v4746_v39 }
 0x46a   :  { %4710 = vmatpush.msrb.mxu3 %v4421_v18  ;;  %v4151_v17 = vpop.f32.mrf.mxu3 }
 0x46b   :  { %4689 = vmatpush.msrb.mxu2 %v4406_v2  ;;  %v4191_v54 = vpop.f32.mrf.mxu0  ;;  %4764 = vmatpush.msra.mxu0 %v4745_v12 }
 0x46c   :  { %4711 = vmatpush.msrb.mxu3 %v4420_v57 }
 0x46d   :  { %4712 = vmatmul.f32.vlgmr.msrb.gmra.mxu3 %v4226_v37  ;;  %4690 = vmatpush.msrb.mxu2 %v4405_v61 }
 0x46e   :  { %4765 = vmatpush.msra.mxu0 %v4744_v42 }
 0x46f   :  { %4691 = vmatpush.msrb.mxu2 %v4404_v16  ;;  %v4131_v63 = vpop.f32.mrf.mxu2 }
 0x470   :  { %4692 = vmatmul.f32.vlgmr.msrb.gmra.mxu2 %v4225_v19  ;;  %v4132_v35 = vadd.f32 %v4131_v63, %v4112_v33  ;;  %4766 = vmatpush.msra.mxu0 %v4743_v29 }
 0x472   :  { %v4152_v14 = vadd.f32 %v4151_v17, %v4132_v35  ;;  %4767 = vmatpush.msra.mxu0 %v4742_v7 }
 0x474   :  { %v4172_v23 = vadd.f32 %v4171_v40, %v4152_v14  ;;  %4768 = vmatpush.msra.mxu0 %v4741_v38 }
 0x476   :  { %v4192_v45 = vadd.f32 %v4191_v54, %v4172_v23  ;;  %4769 = vmatpush.msra.mxu0 %v4740_v30 }
 0x477   :  { %v4493_v9 = vpop.f32.mrf.mxu1 }
 0x478   :  { %4770 = vmatpush.msra.mxu0 %v4739_v51 }
 0x47a   :  { %4771 = vmatpush.msra.mxu0 %v4738_v32 }
 0x47c   :  { %4772 = vmatpush.msra.mxu0 %v4737_v3 }
 0x48c   :  { %v4473_v28 = vpop.f32.mrf.mxu3 }
 0x48d   :  { %v4474_v47 = vadd.f32 %v4823_v60, %v4473_v28  ;;  %v4513_v15 = vpop.f32.mrf.mxu0 }
 0x48f   :  { %v4494_v62 = vadd.f32 %v4493_v9, %v4474_v47 }
 0x491   :  { %v4211_v11 = vpop.f32.mrf.mxu2  ;;  %v4514_v1 = vadd.f32 %v4513_v15, %v4494_v62 }
 0x492   :  { %v4212_v4 = vadd.f32 %v4211_v11, %v4192_v45 }
 0x494   :  { %v4227_v26 = vmax.f32 %v4212_v4, 0.0 }
 0x496   :  { %4732 = vmatmul.f32.vlgmr.msrb.gmra.mxu1 %v4227_v26 }
 0x499   :  { %v4573_v0 = vpop.f32.mrf.mxu1 }
 0x4ae   :  { %v4553_v24 = vpop.f32.mrf.mxu3 }
 0x4af   :  { %v4593_v41 = vpop.f32.mrf.mxu0 }
 0x4b3   :  { %v4533_v59 = vpop.f32.mrf.mxu2 }
 0x4b4   :  { %v4534_v5 = vadd.f32 %v4533_v59, %v4514_v1 }
 0x4b6   :  { %v4554_v25 = vadd.f32 %v4553_v24, %v4534_v5 }
 0x4b8   :  { %v4574_v56 = vadd.f32 %v4573_v0, %v4554_v25 }
 0x4ba   :  { %v4594_v53 = vadd.f32 %v4593_v41, %v4574_v56 }
 0x4bb   :  { %v4653_v55 = vpop.f32.mrf.mxu1 }
 0x4cf   :  { %v4633_v6 = vpop.f32.mrf.mxu3 }
 0x4d0   :  { %v4673_v57 = vpop.f32.mrf.mxu0 }
 0x4d3   :  { %v4613_v34 = vpop.f32.mrf.mxu2 }
 0x4d4   :  { %v4614_v8 = vadd.f32 %v4613_v34, %v4594_v53 }
 0x4d6   :  { %v4634_v18 = vadd.f32 %v4633_v6, %v4614_v8 }
 0x4d8   :  { %v4654_v2 = vadd.f32 %v4653_v55, %v4634_v18 }
 0x4da   :  { %v4674_v61 = vadd.f32 %v4673_v57, %v4654_v2 }
 0x4f0   :  { %v4713_v16 = vpop.f32.mrf.mxu3 }
 0x4f3   :  { %v4693_v21 = vpop.f32.mrf.mxu2 }
 0x4f4   :  { %v4694_v37 = vadd.f32 %v4693_v21, %v4674_v61 }
 0x4f6   :  { %v4714_v19 = vadd.f32 %v4713_v16, %v4694_v37 }
 0x513   :  { %v4733_v27 = vpop.f32.mrf.mxu1 }
 0x514   :  { %v4734_v36 = vadd.f32 %v4733_v27, %v4714_v19 }
 0x516   :  { %v4736_v50 = vmax.f32 %v4734_v36, 0.0 }
 0x518   :  { %4773 = vmatmul.f32.vlgmr.msra.gmra.mxu0 %v4736_v50 }
 0x595   :  { %v4774_v22 = vpop.f32.mrf.mxu0 }
 0x596   :  { %v4775_v10 = vadd.f32 %v4824_v58, %v4774_v22 }
 0x598   :  { %4777 = vmax.xlane.f32.xlu0 %v4775_v10 }
 0x60b   :  { %v4778_v20 = vpop.xlane.xlu0 %4777 }
 0x60c   :  { %v4779_v43 = vsub.f32 %v4775_v10, %v4778_v20 }
 0x60e   :  { %v4780_v31 = vmul.f32 1.442695, %v4779_v43 }
 0x610   :  { %4825 = vpow2.f32 %v4780_v31 }
 0x616   :  { %v4826_v63 = vpop.eup %4825 }
 0x617   :  { %4782 = vadd.xlane.f32.xlu0 %v4826_v63 }
 0x68a   :  { %v4783_v33 = vpop.xlane.xlu0 %4782 }
 0x68b   :  { %4827 = vrcp.f32 %v4783_v33 }
 0x691   :  { %v4828_v35 = vpop.eup %4827 }
 0x692   :  { %v4785_v17 = vmul.f32 %v4828_v35, %v4783_v33 }
 0x694   :  { %v4786_v14 = vsub.f32 2.0, %v4785_v17 }
 0x696   :  { %v4787_v40 = vmul.f32 %v4828_v35, %v4786_v14 }
 0x698   :  { %v4788_v23 = vmul.f32 %v4787_v40, %v4783_v33 }
 0x69a   :  { %v4789_v54 = vsub.f32 2.0, %v4788_v23 }
 0x69c   :  { %v4790_v45 = vmul.f32 %v4789_v54, %v4787_v40 }
 0x69e   :  { %v4791_v11 = vmul.f32 %v4826_v63, %v4790_v45 }
 0x6a0   :  { %4792 = vst [vmem:[%s5496_s9] sm:$0xff] %v4791_v11 }
 0x6a1   :  { %4797 = vsyncpa [#allocation3], 1 }
 0x6a2   :  { %4798 = vsyncpa [#allocation5], 1 }
 0x6a3   :  { %4799 = vsyncpa [#allocation8], 1 }
 0x6a4   :  { %4800 = vsyncpa [#allocation11], 1 }
 0x6a5   :  { %4801 = vsyncpa [#allocation14], 1 }

</bundles_post_ra>
